<compile_context>
chip_gen: v6e
topology: v6e:2x2x1
jax: 0.10.0
libtpu: 0.0.40
codegen_flags: <defaults>
</compile_context>

<pallas_src>
import jax
import jax.numpy as jnp
import numpy as np
from jax import lax
from jax.experimental import pallas as pl
from jax.experimental.pallas import tpu as pltpu

# Small synthetic shapes (MNIST would be 28x28 -> 9216 features; here 16x16
# -> 2304 features.  fc1/fc2 are unused in forward, so this is consistent.)
N_BATCH = 2
H, W = 16, 16
C_IN, C1, C2 = 1, 32, 64
C2P = 128                               # conv2 out channels padded to full lane width
K = 3
H1, W1 = H - K + 1, W - K + 1           # 14, 14 after conv1
H2, W2 = H1 - K + 1, W1 - K + 1         # 12, 12 after conv2
HP, WP = H2 // 2, W2 // 2               # 6, 6 after 2x2 max pool
FEAT = C2 * HP * WP                     # 2304 flattened features


def net1_kernel(x_ref, w1_ref, b1_ref, w2_ref, b2_ref, o_ref):
    """Whole batch in one invocation (grid=(1,)).

    x_ref:  (N, H, W, 1)        NHWC input (C_IN = 1)
    w1_ref: (K*K, C1)           conv1 weights, row = kh*K + kw
    b1_ref: (1, C1)
    w2_ref: (K*K*C1, C2P)       conv2 weights as an im2col matrix, cols zero-padded to 128
    b2_ref: (1, C2P)
    o_ref:  (N*HP*WP, C2P)      pooled activations, rows = (b, hp, wp), lanes = channel
    """
    n = x_ref.shape[0]

    # ---- conv1 (1->32, 3x3, VALID) + ReLU, batch-vectorized.
    #      Hoist the single lane broadcast (1 -> C1 lanes) out of the 9-tap loop;
    #      each tap is then a plain VPU multiply against a sublane-broadcast row of w1.
    xb = jnp.broadcast_to(x_ref[...], (n, H, W, C1))            # (N, 16, 16, 32)
    w1 = w1_ref[...]                                            # (9, 32)
    acc1 = xb[:, 0:H1, 0:W1, :] * w1[0]
    for t in range(1, K * K):
        kh, kw = divmod(t, K)
        acc1 = acc1 + xb[:, kh:kh + H1, kw:kw + W1, :] * w1[t]  # (N, 14, 14, 32)
    h1 = jnp.maximum(acc1 + b1_ref[...], 0.0)

    # ---- conv2 (32->64, 3x3, VALID) as ONE MXU matmul, no im2col scratch:
    #      patch matrix (N*H2*W2, 9*C1) = (288, 288) built with a single lane
    #      concatenate (no VMEM round trip, no masked stores), then
    #      (288, 288) x (288, 128): 64 real + 64 zero-padded output channels.
    cols = [h1[:, kh:kh + H2, kw:kw + W2, :].reshape(n * H2 * W2, C1)
            for kh in range(K) for kw in range(K)]
    patches = jnp.concatenate(cols, axis=1)                     # (288, 288)
    acc2 = jnp.dot(patches, w2_ref[...],
                   preferred_element_type=jnp.float32)          # (288, 128)
    h2 = jnp.maximum(acc2 + b2_ref[...], 0.0)                   # ReLU, full-lane VPU

    # ---- max_pool2d(kernel=2, stride=2), lane-dense (C2P = 128).
    #      All reshapes preserve the 128-lane minor dim; the 12-row (H2/W2)
    #      periodicity makes some sublane repacking unavoidable but small.
    hr = h2.reshape(n * HP, 2, W2, C2P)                         # pair up H rows
    rowmax = jnp.maximum(hr[:, 0], hr[:, 1])                    # (n*HP, W2, C2P)
    cr = rowmax.reshape(n * HP, WP, 2, C2P)                     # pair up W columns
    pooled = jnp.maximum(cr[:, :, 0], cr[:, :, 1])              # (n*HP, WP, C2P)

    # dropout1 = nn.Dropout2d(0.25): identity in eval/inference mode.

    # ---- Lane-dense store: one full-width (72, 128) block, no masked stores.
    #      The channel-major permute for torch.flatten(NCHW) happens in the wrapper.
    o_ref[...] = pooled.reshape(n * HP * WP, C2P)


@jax.jit
def net1_forward(x_nchw, w1, b1, w2, b2):
    """x_nchw: (N, 1, H, W) float32.  Returns (N, C2*HP*WP) float32."""
    n = x_nchw.shape[0]
    # C_IN == 1, so NCHW->NHWC is a free metadata reshape (no data movement).
    x = jnp.transpose(x_nchw, (0, 2, 3, 1)).astype(jnp.float32)        # (N, H, W, 1)
    # conv1 weights as (kh*K + kw, C1); conv2 weights as an im2col matrix,
    # row = (kh*K + kw)*C1 + cin, cols zero-padded 64 -> 128.
    w1_mat = w1.astype(jnp.float32).reshape(K * K, C1)                 # (9, 32)
    w2_mat = w2.astype(jnp.float32).reshape(K * K * C1, C2)            # (288, 64)
    w2_pad = jnp.pad(w2_mat, ((0, 0), (0, C2P - C2)))                  # (288, 128)
    b2_pad = jnp.pad(b2.astype(jnp.float32), ((0, 0), (0, C2P - C2)))  # (1, 128)

    pooled = pl.pallas_call(
        net1_kernel,
        out_shape=jax.ShapeDtypeStruct((n * HP * WP, C2P), jnp.float32),
        grid_spec=pltpu.PrefetchScalarGridSpec(
            num_scalar_prefetch=0,
            grid=(1,),                                  # single step: no per-image grid overhead
            in_specs=[
                pl.BlockSpec((n, H, W, C_IN), lambda i: (0, 0, 0, 0)),
                pl.BlockSpec((K * K, C1), lambda i: (0, 0)),
                pl.BlockSpec((1, C1), lambda i: (0, 0)),
                pl.BlockSpec((K * K * C1, C2P), lambda i: (0, 0)),
                pl.BlockSpec((1, C2P), lambda i: (0, 0)),
            ],
            out_specs=pl.BlockSpec((n * HP * WP, C2P), lambda i: (0, 0)),
        ),
        compiler_params=pltpu.CompilerParams(
            dimension_semantics=("arbitrary",)),
    )(x, w1_mat, b1.astype(jnp.float32), w2_pad, b2_pad)

    # Channel-major permute for torch.flatten(NCHW): tiny (18 KB) XLA transpose,
    # fused into the same jitted program (the kernel's stores stay lane-dense).
    y = pooled.reshape(n, HP * WP, C2P)[:, :, :C2]                     # (N, 36, 64)
    return jnp.transpose(y, (0, 2, 1)).reshape(n, FEAT)                # (N, 2304)


def reference_forward(x_nchw, w1, b1, w2, b2):
    """Pure-JAX reference (NCHW, like PyTorch) for correctness checking."""
    x = x_nchw.astype(jnp.float32)
    w1_oihw = jnp.transpose(w1, (3, 2, 0, 1))
    w2_oihw = jnp.transpose(w2, (3, 2, 0, 1))
    y = lax.conv_general_dilated(x, w1_oihw, (1, 1), "VALID",
                                 dimension_numbers=("NCHW", "OIHW", "NCHW"))
    y = jnp.maximum(y + b1.reshape(1, C1, 1, 1), 0.0)
    y = lax.conv_general_dilated(y, w2_oihw, (1, 1), "VALID",
                                 dimension_numbers=("NCHW", "OIHW", "NCHW"))
    y = jnp.maximum(y + b2.reshape(1, C2, 1, 1), 0.0)
    y = lax.reduce_window(y, -jnp.inf, lax.max,
                          (1, 1, 2, 2), (1, 1, 2, 2), "VALID")
    return y.reshape(y.shape[0], -1)


if __name__ == "__main__":
    key = jax.random.PRNGKey(0)
    kx, k1, k2, k3, k4 = jax.random.split(key, 5)

    # Deterministic synthetic parameters (shapes from Net1.__init__).
    x = jax.random.normal(kx, (N_BATCH, C_IN, H, W), jnp.float32)       # NCHW
    w1 = jax.random.normal(k1, (K, K, C_IN, C1), jnp.float32) * 0.2     # HWIO
    b1 = jax.random.normal(k2, (1, C1), jnp.float32) * 0.1
    w2 = jax.random.normal(k3, (K, K, C1, C2), jnp.float32) * 0.05      # HWIO
    b2 = jax.random.normal(k4, (1, C2), jnp.float32) * 0.1

    out = jax.block_until_ready(net1_forward(x, w1, b1, w2, b2))
    ref = jax.block_until_ready(reference_forward(x, w1, b1, w2, b2))

    assert out.shape == (N_BATCH, FEAT), out.shape
    np.testing.assert_allclose(np.asarray(out), np.asarray(ref),
                               rtol=1e-4, atol=1e-4)
    print("KERNEL_OK")
</pallas_src>

<mosaic_0001>
module attributes {stable_mosaic.version = 11 : i64} {
  func.func @net1_kernel(%arg0: i32, %arg1: memref<2x16x16x1xf32, #tpu.memory_space<vmem>>, %arg2: memref<9x32xf32, #tpu.memory_space<vmem>>, %arg3: memref<1x32xf32, #tpu.memory_space<vmem>>, %arg4: memref<288x128xf32, #tpu.memory_space<vmem>>, %arg5: memref<1x128xf32, #tpu.memory_space<vmem>>, %arg6: memref<72x128xf32, #tpu.memory_space<vmem>>) attributes {dimension_semantics = [#tpu.dimension_semantics<arbitrary>], iteration_bounds = array<i64: 1>, scalar_prefetch = 0 : i64, scratch_operands = 0 : i64, tpu.core_type = #tpu.core_type<tc>, window_params = [{pipeline_mode = #tpu.pipeline_mode<synchronous>, transform_indices = @transform_0, window_bounds = array<i64: 2, 16, 16, 1>}, {pipeline_mode = #tpu.pipeline_mode<synchronous>, transform_indices = @transform_1, window_bounds = array<i64: 9, 32>}, {pipeline_mode = #tpu.pipeline_mode<synchronous>, transform_indices = @transform_2, window_bounds = array<i64: 1, 32>}, {pipeline_mode = #tpu.pipeline_mode<synchronous>, transform_indices = @transform_3, window_bounds = array<i64: 288, 128>}, {pipeline_mode = #tpu.pipeline_mode<synchronous>, transform_indices = @transform_4, window_bounds = array<i64: 1, 128>}, {pipeline_mode = #tpu.pipeline_mode<synchronous>, transform_indices = @transform_5, window_bounds = array<i64: 72, 128>}]} {
    %c0 = arith.constant 0 : index
    %c0_0 = arith.constant 0 : index
    %c0_1 = arith.constant 0 : index
    %c0_2 = arith.constant 0 : index
    %0 = vector.load %arg1[%c0, %c0_0, %c0_1, %c0_2] : memref<2x16x16x1xf32, #tpu.memory_space<vmem>>, vector<2x16x16x1xf32>
    %1 = vector.shape_cast %0 : vector<2x16x16x1xf32> to vector<2x16x16x1xf32>
    %2 = vector.broadcast %1 : vector<2x16x16x1xf32> to vector<2x16x16x32xf32>
    %c0_3 = arith.constant 0 : index
    %c0_4 = arith.constant 0 : index
    %3 = vector.load %arg2[%c0_3, %c0_4] : memref<9x32xf32, #tpu.memory_space<vmem>>, vector<9x32xf32>
    %4 = vector.extract_strided_slice %2 {offsets = [0, 0, 0, 0], sizes = [2, 14, 14, 32], strides = [1, 1, 1, 1]} : vector<2x16x16x32xf32> to vector<2x14x14x32xf32>
    %5 = vector.extract_strided_slice %3 {offsets = [0, 0], sizes = [1, 32], strides = [1, 1]} : vector<9x32xf32> to vector<1x32xf32>
    %6 = vector.shape_cast %5 : vector<1x32xf32> to vector<32xf32>
    %7 = vector.shape_cast %6 : vector<32xf32> to vector<1x1x1x32xf32>
    %8 = vector.broadcast %7 : vector<1x1x1x32xf32> to vector<2x14x14x32xf32>
    %9 = arith.mulf %4, %8 : vector<2x14x14x32xf32>
    %10 = vector.extract_strided_slice %2 {offsets = [0, 0, 1, 0], sizes = [2, 14, 14, 32], strides = [1, 1, 1, 1]} : vector<2x16x16x32xf32> to vector<2x14x14x32xf32>
    %11 = vector.extract_strided_slice %3 {offsets = [1, 0], sizes = [1, 32], strides = [1, 1]} : vector<9x32xf32> to vector<1x32xf32>
    %12 = vector.shape_cast %11 : vector<1x32xf32> to vector<32xf32>
    %13 = vector.shape_cast %12 : vector<32xf32> to vector<1x1x1x32xf32>
    %14 = vector.broadcast %13 : vector<1x1x1x32xf32> to vector<2x14x14x32xf32>
    %15 = arith.mulf %10, %14 : vector<2x14x14x32xf32>
    %16 = arith.addf %9, %15 : vector<2x14x14x32xf32>
    %17 = vector.extract_strided_slice %2 {offsets = [0, 0, 2, 0], sizes = [2, 14, 14, 32], strides = [1, 1, 1, 1]} : vector<2x16x16x32xf32> to vector<2x14x14x32xf32>
    %18 = vector.extract_strided_slice %3 {offsets = [2, 0], sizes = [1, 32], strides = [1, 1]} : vector<9x32xf32> to vector<1x32xf32>
    %19 = vector.shape_cast %18 : vector<1x32xf32> to vector<32xf32>
    %20 = vector.shape_cast %19 : vector<32xf32> to vector<1x1x1x32xf32>
    %21 = vector.broadcast %20 : vector<1x1x1x32xf32> to vector<2x14x14x32xf32>
    %22 = arith.mulf %17, %21 : vector<2x14x14x32xf32>
    %23 = arith.addf %16, %22 : vector<2x14x14x32xf32>
    %24 = vector.extract_strided_slice %2 {offsets = [0, 1, 0, 0], sizes = [2, 14, 14, 32], strides = [1, 1, 1, 1]} : vector<2x16x16x32xf32> to vector<2x14x14x32xf32>
    %25 = vector.extract_strided_slice %3 {offsets = [3, 0], sizes = [1, 32], strides = [1, 1]} : vector<9x32xf32> to vector<1x32xf32>
    %26 = vector.shape_cast %25 : vector<1x32xf32> to vector<32xf32>
    %27 = vector.shape_cast %26 : vector<32xf32> to vector<1x1x1x32xf32>
    %28 = vector.broadcast %27 : vector<1x1x1x32xf32> to vector<2x14x14x32xf32>
    %29 = arith.mulf %24, %28 : vector<2x14x14x32xf32>
    %30 = arith.addf %23, %29 : vector<2x14x14x32xf32>
    %31 = vector.extract_strided_slice %2 {offsets = [0, 1, 1, 0], sizes = [2, 14, 14, 32], strides = [1, 1, 1, 1]} : vector<2x16x16x32xf32> to vector<2x14x14x32xf32>
    %32 = vector.extract_strided_slice %3 {offsets = [4, 0], sizes = [1, 32], strides = [1, 1]} : vector<9x32xf32> to vector<1x32xf32>
    %33 = vector.shape_cast %32 : vector<1x32xf32> to vector<32xf32>
    %34 = vector.shape_cast %33 : vector<32xf32> to vector<1x1x1x32xf32>
    %35 = vector.broadcast %34 : vector<1x1x1x32xf32> to vector<2x14x14x32xf32>
    %36 = arith.mulf %31, %35 : vector<2x14x14x32xf32>
    %37 = arith.addf %30, %36 : vector<2x14x14x32xf32>
    %38 = vector.extract_strided_slice %2 {offsets = [0, 1, 2, 0], sizes = [2, 14, 14, 32], strides = [1, 1, 1, 1]} : vector<2x16x16x32xf32> to vector<2x14x14x32xf32>
    %39 = vector.extract_strided_slice %3 {offsets = [5, 0], sizes = [1, 32], strides = [1, 1]} : vector<9x32xf32> to vector<1x32xf32>
    %40 = vector.shape_cast %39 : vector<1x32xf32> to vector<32xf32>
    %41 = vector.shape_cast %40 : vector<32xf32> to vector<1x1x1x32xf32>
    %42 = vector.broadcast %41 : vector<1x1x1x32xf32> to vector<2x14x14x32xf32>
    %43 = arith.mulf %38, %42 : vector<2x14x14x32xf32>
    %44 = arith.addf %37, %43 : vector<2x14x14x32xf32>
    %45 = vector.extract_strided_slice %2 {offsets = [0, 2, 0, 0], sizes = [2, 14, 14, 32], strides = [1, 1, 1, 1]} : vector<2x16x16x32xf32> to vector<2x14x14x32xf32>
    %46 = vector.extract_strided_slice %3 {offsets = [6, 0], sizes = [1, 32], strides = [1, 1]} : vector<9x32xf32> to vector<1x32xf32>
    %47 = vector.shape_cast %46 : vector<1x32xf32> to vector<32xf32>
    %48 = vector.shape_cast %47 : vector<32xf32> to vector<1x1x1x32xf32>
    %49 = vector.broadcast %48 : vector<1x1x1x32xf32> to vector<2x14x14x32xf32>
    %50 = arith.mulf %45, %49 : vector<2x14x14x32xf32>
    %51 = arith.addf %44, %50 : vector<2x14x14x32xf32>
    %52 = vector.extract_strided_slice %2 {offsets = [0, 2, 1, 0], sizes = [2, 14, 14, 32], strides = [1, 1, 1, 1]} : vector<2x16x16x32xf32> to vector<2x14x14x32xf32>
    %53 = vector.extract_strided_slice %3 {offsets = [7, 0], sizes = [1, 32], strides = [1, 1]} : vector<9x32xf32> to vector<1x32xf32>
    %54 = vector.shape_cast %53 : vector<1x32xf32> to vector<32xf32>
    %55 = vector.shape_cast %54 : vector<32xf32> to vector<1x1x1x32xf32>
    %56 = vector.broadcast %55 : vector<1x1x1x32xf32> to vector<2x14x14x32xf32>
    %57 = arith.mulf %52, %56 : vector<2x14x14x32xf32>
    %58 = arith.addf %51, %57 : vector<2x14x14x32xf32>
    %59 = vector.extract_strided_slice %2 {offsets = [0, 2, 2, 0], sizes = [2, 14, 14, 32], strides = [1, 1, 1, 1]} : vector<2x16x16x32xf32> to vector<2x14x14x32xf32>
    %60 = vector.extract_strided_slice %3 {offsets = [8, 0], sizes = [1, 32], strides = [1, 1]} : vector<9x32xf32> to vector<1x32xf32>
    %61 = vector.shape_cast %60 : vector<1x32xf32> to vector<32xf32>
    %62 = vector.shape_cast %61 : vector<32xf32> to vector<1x1x1x32xf32>
    %63 = vector.broadcast %62 : vector<1x1x1x32xf32> to vector<2x14x14x32xf32>
    %64 = arith.mulf %59, %63 : vector<2x14x14x32xf32>
    %65 = arith.addf %58, %64 : vector<2x14x14x32xf32>
    %c0_5 = arith.constant 0 : index
    %c0_6 = arith.constant 0 : index
    %66 = vector.load %arg3[%c0_5, %c0_6] : memref<1x32xf32, #tpu.memory_space<vmem>>, vector<1x32xf32>
    %67 = vector.shape_cast %66 : vector<1x32xf32> to vector<1x1x1x32xf32>
    %68 = vector.broadcast %67 : vector<1x1x1x32xf32> to vector<2x14x14x32xf32>
    %69 = arith.addf %65, %68 : vector<2x14x14x32xf32>
    %cst = arith.constant 0.000000e+00 : f32
    %70 = vector.broadcast %cst : f32 to vector<2x14x14x32xf32>
    %71 = arith.maximumf %69, %70 : vector<2x14x14x32xf32>
    %72 = vector.extract_strided_slice %71 {offsets = [0, 0, 0, 0], sizes = [2, 12, 12, 32], strides = [1, 1, 1, 1]} : vector<2x14x14x32xf32> to vector<2x12x12x32xf32>
    %73 = vector.shape_cast %72 : vector<2x12x12x32xf32> to vector<288x32xf32>
    %74 = vector.extract_strided_slice %71 {offsets = [0, 0, 1, 0], sizes = [2, 12, 12, 32], strides = [1, 1, 1, 1]} : vector<2x14x14x32xf32> to vector<2x12x12x32xf32>
    %75 = vector.shape_cast %74 : vector<2x12x12x32xf32> to vector<288x32xf32>
    %76 = vector.extract_strided_slice %71 {offsets = [0, 0, 2, 0], sizes = [2, 12, 12, 32], strides = [1, 1, 1, 1]} : vector<2x14x14x32xf32> to vector<2x12x12x32xf32>
    %77 = vector.shape_cast %76 : vector<2x12x12x32xf32> to vector<288x32xf32>
    %78 = vector.extract_strided_slice %71 {offsets = [0, 1, 0, 0], sizes = [2, 12, 12, 32], strides = [1, 1, 1, 1]} : vector<2x14x14x32xf32> to vector<2x12x12x32xf32>
    %79 = vector.shape_cast %78 : vector<2x12x12x32xf32> to vector<288x32xf32>
    %80 = vector.extract_strided_slice %71 {offsets = [0, 1, 1, 0], sizes = [2, 12, 12, 32], strides = [1, 1, 1, 1]} : vector<2x14x14x32xf32> to vector<2x12x12x32xf32>
    %81 = vector.shape_cast %80 : vector<2x12x12x32xf32> to vector<288x32xf32>
    %82 = vector.extract_strided_slice %71 {offsets = [0, 1, 2, 0], sizes = [2, 12, 12, 32], strides = [1, 1, 1, 1]} : vector<2x14x14x32xf32> to vector<2x12x12x32xf32>
    %83 = vector.shape_cast %82 : vector<2x12x12x32xf32> to vector<288x32xf32>
    %84 = vector.extract_strided_slice %71 {offsets = [0, 2, 0, 0], sizes = [2, 12, 12, 32], strides = [1, 1, 1, 1]} : vector<2x14x14x32xf32> to vector<2x12x12x32xf32>
    %85 = vector.shape_cast %84 : vector<2x12x12x32xf32> to vector<288x32xf32>
    %86 = vector.extract_strided_slice %71 {offsets = [0, 2, 1, 0], sizes = [2, 12, 12, 32], strides = [1, 1, 1, 1]} : vector<2x14x14x32xf32> to vector<2x12x12x32xf32>
    %87 = vector.shape_cast %86 : vector<2x12x12x32xf32> to vector<288x32xf32>
    %88 = vector.extract_strided_slice %71 {offsets = [0, 2, 2, 0], sizes = [2, 12, 12, 32], strides = [1, 1, 1, 1]} : vector<2x14x14x32xf32> to vector<2x12x12x32xf32>
    %89 = vector.shape_cast %88 : vector<2x12x12x32xf32> to vector<288x32xf32>
    %90 = tpu.concatenate %73, %75, %77, %79, %81, %83, %85, %87, %89 in 1 : vector<288x32xf32>, vector<288x32xf32>, vector<288x32xf32>, vector<288x32xf32>, vector<288x32xf32>, vector<288x32xf32>, vector<288x32xf32>, vector<288x32xf32>, vector<288x32xf32> -> vector<288x288xf32>
    %c0_7 = arith.constant 0 : index
    %c0_8 = arith.constant 0 : index
    %91 = vector.load %arg4[%c0_7, %c0_8] : memref<288x128xf32, #tpu.memory_space<vmem>>, vector<288x128xf32>
    %cst_9 = arith.constant dense<0.000000e+00> : vector<288x128xf32>
    %92 = tpu.matmul %90, %91, %cst_9 {dimension_numbers = #tpu.dot_dimension_numbers<[1], [0], [0], [1], [0, 0, 1, 1], [], []>} : vector<288x288xf32>, vector<288x128xf32>, vector<288x128xf32> -> vector<288x128xf32>
    %c0_10 = arith.constant 0 : index
    %c0_11 = arith.constant 0 : index
    %93 = vector.load %arg5[%c0_10, %c0_11] : memref<1x128xf32, #tpu.memory_space<vmem>>, vector<1x128xf32>
    %94 = vector.broadcast %93 : vector<1x128xf32> to vector<288x128xf32>
    %95 = arith.addf %92, %94 : vector<288x128xf32>
    %cst_12 = arith.constant 0.000000e+00 : f32
    %96 = vector.broadcast %cst_12 : f32 to vector<288x128xf32>
    %97 = arith.maximumf %95, %96 : vector<288x128xf32>
    %98 = vector.shape_cast %97 : vector<288x128xf32> to vector<12x2x12x128xf32>
    %99 = vector.extract_strided_slice %98 {offsets = [0, 0, 0, 0], sizes = [12, 1, 12, 128], strides = [1, 1, 1, 1]} : vector<12x2x12x128xf32> to vector<12x1x12x128xf32>
    %100 = vector.shape_cast %99 : vector<12x1x12x128xf32> to vector<12x12x128xf32>
    %101 = vector.extract_strided_slice %98 {offsets = [0, 1, 0, 0], sizes = [12, 1, 12, 128], strides = [1, 1, 1, 1]} : vector<12x2x12x128xf32> to vector<12x1x12x128xf32>
    %102 = vector.shape_cast %101 : vector<12x1x12x128xf32> to vector<12x12x128xf32>
    %103 = arith.maximumf %100, %102 : vector<12x12x128xf32>
    %104 = vector.shape_cast %103 : vector<12x12x128xf32> to vector<12x6x2x128xf32>
    %105 = vector.extract_strided_slice %104 {offsets = [0, 0, 0, 0], sizes = [12, 6, 1, 128], strides = [1, 1, 1, 1]} : vector<12x6x2x128xf32> to vector<12x6x1x128xf32>
    %106 = vector.shape_cast %105 : vector<12x6x1x128xf32> to vector<12x6x128xf32>
    %107 = vector.extract_strided_slice %104 {offsets = [0, 0, 1, 0], sizes = [12, 6, 1, 128], strides = [1, 1, 1, 1]} : vector<12x6x2x128xf32> to vector<12x6x1x128xf32>
    %108 = vector.shape_cast %107 : vector<12x6x1x128xf32> to vector<12x6x128xf32>
    %109 = arith.maximumf %106, %108 : vector<12x6x128xf32>
    %110 = vector.shape_cast %109 : vector<12x6x128xf32> to vector<72x128xf32>
    %c0_13 = arith.constant 0 : index
    %c0_14 = arith.constant 0 : index
    %111 = vector.load %arg6[%c0_13, %c0_14] : memref<72x128xf32, #tpu.memory_space<vmem>>, vector<72x128xf32>
    tpu.vector_store %arg6[%c0_13, %c0_14], %110 {strides = array<i32>} : memref<72x128xf32, #tpu.memory_space<vmem>>, vector<72x128xf32>,
    return
  }
  func.func @transform_0(%arg0: i32) -> (i32, i32, i32, i32) {
    %c0_i32 = arith.constant 0 : i32
    %c0_i32_0 = arith.constant 0 : i32
    %c0_i32_1 = arith.constant 0 : i32
    %c0_i32_2 = arith.constant 0 : i32
    %c0_i32_3 = arith.constant 0 : i32
    return %c0_i32, %c0_i32_0, %c0_i32_1, %c0_i32_2 : i32, i32, i32, i32
  }
  func.func @transform_1(%arg0: i32) -> (i32, i32) {
    %c0_i32 = arith.constant 0 : i32
    %c0_i32_0 = arith.constant 0 : i32
    %c0_i32_1 = arith.constant 0 : i32
    return %c0_i32, %c0_i32_0 : i32, i32
  }
  func.func @transform_2(%arg0: i32) -> (i32, i32) {
    %c0_i32 = arith.constant 0 : i32
    %c0_i32_0 = arith.constant 0 : i32
    %c0_i32_1 = arith.constant 0 : i32
    return %c0_i32, %c0_i32_0 : i32, i32
  }
  func.func @transform_3(%arg0: i32) -> (i32, i32) {
    %c0_i32 = arith.constant 0 : i32
    %c0_i32_0 = arith.constant 0 : i32
    %c0_i32_1 = arith.constant 0 : i32
    return %c0_i32, %c0_i32_0 : i32, i32
  }
  func.func @transform_4(%arg0: i32) -> (i32, i32) {
    %c0_i32 = arith.constant 0 : i32
    %c0_i32_0 = arith.constant 0 : i32
    %c0_i32_1 = arith.constant 0 : i32
    return %c0_i32, %c0_i32_0 : i32, i32
  }
  func.func @transform_5(%arg0: i32) -> (i32, i32) {
    %c0_i32 = arith.constant 0 : i32
    %c0_i32_0 = arith.constant 0 : i32
    %c0_i32_1 = arith.constant 0 : i32
    return %c0_i32, %c0_i32_0 : i32, i32
  }
}

</mosaic_0001>

<bundles_post_ra>
// kernel: net1_forward.1
= control target key start
LH: loop header
LB: loop body
LE: loop exit
PB: predicated region body
PF: predicated region fallthrough
CT: control target
= control target key end

     0   :  { %v7352_v0 = vmov 0   ;;  %v366_v59 = vlaneseq  ;;  %vm542_vm0 = vcmask 1046528   ;;  %vm855_vm1 = vcmask 1045504   ;;  %s7353_s26 = smov 32   ;;  %s7354_s10 = smov 64   ;;  %s13440_s0 = inlined_call_operand.vmem [shape: f32[2,16,16,1], index: 0, kind: input, shape index: {}]   ;;  %s13441_s1 = inlined_call_operand.vmem [shape: f32[9,32], index: 1, kind: input, shape index: {}]   ;;  %s13442_s2 = inlined_call_operand.vmem [shape: f32[1,32], index: 2, kind: input, shape index: {}]   ;;  %s13443_s3 = inlined_call_operand.vmem [shape: f32[288,128], index: 3, kind: input, shape index: {}]   ;;  %s13444_s4 = inlined_call_operand.vmem [shape: f32[1,128], index: 4, kind: input, shape index: {}]   ;;  %s13445_s5 = inlined_call_operand.vmem [shape: f32[72,128], index: 5, kind: output, shape index: {}]  }
   0x1   :  { %6803 = vset.pattern.permute.xlu1 %v7352_v0  ;;  %6802 = vset.pattern.permute.xlu0 %v7352_v0  ;;  %v22_v1 = vld [vmem:[%s13440_s0 + $0x10] sm:$0xff]  ;;  %v20_v2 = vld [vmem:[%s13440_s0] sm:$0xff]  ;;  %v23_v3 = vld [vmem:[%s13440_s0 + $0x18] sm:$0xff]  ;;  %vm2787_vm2 = vcmask 1042432   ;;  %vm2788_vm3 = vcmask 1046532   ;;  %vm3030_vm5 = vcmask 1041408  }
   0x2   :  { %98 = vperm.xlu1 %6803, %v22_v1   ;;  %88 = vperm.xlu0 %6802, %v20_v2   ;;  %v21_v4 = vld [vmem:[%s13440_s0 + $0x8] sm:$0xff]  ;;  %v24_v6 = vld [vmem:[%s13440_s0 + $0x20] sm:$0xff]  ;;  %v27_v7 = vld [vmem:[%s13440_s0 + $0x38] sm:$0xff]  ;;  %v7568_v62 = vshrl.u32 %v366_v59, 7  ;;  %vm3031_vm6 = vcmask 1045508   ;;  %vm4323_vm8 = vcmask 261120  }
   0x3   :  { %v25_v5 = vld [vmem:[%s13440_s0 + $0x28] sm:$0xff]  ;;  %v26_v8 = vld [vmem:[%s13440_s0 + $0x30] sm:$0xff]  ;;  %v28_v10 = vld [vmem:[%s13440_s0 + $0x40] sm:$0xff]  ;;  %vm4360_vm9 = vcmask 523264   ;;  %vm4397_vm10 = vcmask 785408   ;;  %vm6371_vm11 = vcmask 1041409  }
   0x4   :  { %v29_v9 = vld [vmem:[%s13440_s0 + $0x48] sm:$0xff]  ;;  %v31_v11 = vld [vmem:[%s13440_s0 + $0x58] sm:$0xff]  ;;  %v30_v12 = vld [vmem:[%s13440_s0 + $0x50] sm:$0xff]  ;;  %13894 = vst [vmem:[#allocation2_spill] sm:$0xff] %v7568_v62  ;;  %v428_v1 = vsub.s32 1, %v7568_v62  ;;  %vm6373_vm12 = vcmask 1042434  }
   0x5   :  { %v33_v13 = vld [vmem:[%s13440_s0 + $0x68] sm:$0xff]  ;;  %v32_v14 = vld [vmem:[%s13440_s0 + $0x60] sm:$0xff]  ;;  %v35_v15 = vld [vmem:[%s13440_s0 + $0x78] sm:$0xff]  ;;  %vm6375_vm13 = vcmask 1043459   ;;  %vm6377_vm14 = vcmask 1044484   ;;  %vm6379_vm15 = vcmask 1045509  }
   0x6   :  { %103 = vperm.xlu1 %6803, %v23_v3   ;;  %93 = vperm.xlu0 %6802, %v21_v4   ;;  %v34_v16 = vld [vmem:[%s13440_s0 + $0x70] sm:$0xff]  ;;  %v37_v17 = vld [vmem:[%s13440_s0 + $0x88] sm:$0xff]  ;;  %v36_v18 = vld [vmem:[%s13440_s0 + $0x80] sm:$0xff] }
   0x7   :  { %v39_v19 = vld [vmem:[%s13440_s0 + $0x98] sm:$0xff]  ;;  %v38_v20 = vld [vmem:[%s13440_s0 + $0x90] sm:$0xff]  ;;  %v41_v21 = vld [vmem:[%s13440_s0 + $0xa8] sm:$0xff] }
   0x8   :  { %v40_v22 = vld [vmem:[%s13440_s0 + $0xa0] sm:$0xff]  ;;  %v43_v23 = vld [vmem:[%s13440_s0 + $0xb8] sm:$0xff]  ;;  %v42_v24 = vld [vmem:[%s13440_s0 + $0xb0] sm:$0xff] }
   0x9   :  { %v45_v25 = vld [vmem:[%s13440_s0 + $0xc8] sm:$0xff]  ;;  %v44_v26 = vld [vmem:[%s13440_s0 + $0xc0] sm:$0xff]  ;;  %v47_v27 = vld [vmem:[%s13440_s0 + $0xd8] sm:$0xff] }
   0xa   :  { %113 = vperm.xlu1 %6803, %v25_v5   ;;  %108 = vperm.xlu0 %6802, %v24_v6   ;;  %v46_v28 = vld [vmem:[%s13440_s0 + $0xd0] sm:$0xff]  ;;  %v53_v29 = vld [vmem:[%s13440_s0 + $0x108] sm:$0xff]  ;;  %v52_v30 = vld [vmem:[%s13440_s0 + $0x100] sm:$0xff] }
   0xb   :  { %v55_v31 = vld [vmem:[%s13440_s0 + $0x118] sm:$0xff]  ;;  %v54_v32 = vld [vmem:[%s13440_s0 + $0x110] sm:$0xff]  ;;  %v57_v33 = vld [vmem:[%s13440_s0 + $0x128] sm:$0xff] }
   0xc   :  { %v56_v34 = vld [vmem:[%s13440_s0 + $0x120] sm:$0xff]  ;;  %v59_v35 = vld [vmem:[%s13440_s0 + $0x138] sm:$0xff]  ;;  %v58_v36 = vld [vmem:[%s13440_s0 + $0x130] sm:$0xff] }
   0xd   :  { %v61_v37 = vld [vmem:[%s13440_s0 + $0x148] sm:$0xff]  ;;  %v60_v38 = vld [vmem:[%s13440_s0 + $0x140] sm:$0xff]  ;;  %v63_v39 = vld [vmem:[%s13440_s0 + $0x158] sm:$0xff] }
   0xe   :  { %123 = vperm.xlu1 %6803, %v27_v7   ;;  %118 = vperm.xlu0 %6802, %v26_v8   ;;  %v62_v40 = vld [vmem:[%s13440_s0 + $0x150] sm:$0xff]  ;;  %v65_v41 = vld [vmem:[%s13440_s0 + $0x168] sm:$0xff]  ;;  %v64_v42 = vld [vmem:[%s13440_s0 + $0x160] sm:$0xff]  ;;  %v741_v8 = vsub.s32 2, %v7568_v62 }
   0xf   :  { %v67_v43 = vld [vmem:[%s13440_s0 + $0x178] sm:$0xff]  ;;  %v66_v44 = vld [vmem:[%s13440_s0 + $0x170] sm:$0xff]  ;;  %v69_v45 = vld [vmem:[%s13440_s0 + $0x188] sm:$0xff] }
  0x10   :  { %v68_v46 = vld [vmem:[%s13440_s0 + $0x180] sm:$0xff]  ;;  %v71_v47 = vld [vmem:[%s13440_s0 + $0x198] sm:$0xff]  ;;  %v70_v48 = vld [vmem:[%s13440_s0 + $0x190] sm:$0xff] }
  0x11   :  { %v73_v49 = vld [vmem:[%s13440_s0 + $0x1a8] sm:$0xff]  ;;  %v72_v50 = vld [vmem:[%s13440_s0 + $0x1a0] sm:$0xff]  ;;  %v75_v51 = vld [vmem:[%s13440_s0 + $0x1b8] sm:$0xff] }
  0x12   :  { %133 = vperm.xlu1 %6803, %v29_v9   ;;  %128 = vperm.xlu0 %6802, %v28_v10   ;;  %v74_v52 = vld [vmem:[%s13440_s0 + $0x1b0] sm:$0xff]  ;;  %v77_v53 = vld [vmem:[%s13440_s0 + $0x1c8] sm:$0xff]  ;;  %v76_v54 = vld [vmem:[%s13440_s0 + $0x1c0] sm:$0xff]  ;;  %v7590_v9 = vsub.s32 0, %v7568_v62 }
  0x13   :  { %v79_v55 = vld [vmem:[%s13440_s0 + $0x1d8] sm:$0xff]  ;;  %v78_v56 = vld [vmem:[%s13440_s0 + $0x1d0] sm:$0xff]  ;;  %v49_v57 = vld [vmem:[%s13440_s0 + $0xe8] sm:$0xff] }
  0x14   :  { %v48_v58 = vld [vmem:[%s13440_s0 + $0xe0] sm:$0xff]  ;;  %v81_v60 = vld [vmem:[%s13440_s0 + $0x1e8] sm:$0xff]  ;;  %v51_v63 = vld [vmem:[%s13440_s0 + $0xf8] sm:$0xff]  ;;  %13895 = vst [vmem:[#allocation3_spill] sm:$0xff] %v7590_v9 }
  0x15   :  { %v80_v61 = vld [vmem:[%s13440_s0 + $0x1e0] sm:$0xff]  ;;  %v50_v0 = vld [vmem:[%s13440_s0 + $0xf0] sm:$0xff]  ;;  %v83_v3 = vld [vmem:[%s13440_s0 + $0x1f8] sm:$0xff] }
  0x16   :  { %143 = vperm.xlu1 %6803, %v31_v11   ;;  %138 = vperm.xlu0 %6802, %v30_v12   ;;  %v84_v2 = vld [vmem:[%s13441_s1] sm:$0xff]  ;;  %v82_v4 = vld [vmem:[%s13440_s0 + $0x1f0] sm:$0xff]  ;;  %vm8220_vm4 = vmor %vm2787_vm2, %vm2788_vm3 }
  0x17   :  { %v7586_v5 = vrot.slane %v84_v2, %v428_v1  ;;  %vm10461_vm7 = vmor %vm3030_vm5, %vm3031_vm6 }
  0x1a   :  { %153 = vperm.xlu1 %6803, %v33_v13   ;;  %148 = vperm.xlu0 %6802, %v32_v14   ;;  %v7594_v14 = vrot.slane %v84_v2, %v741_v8 }
  0x1e   :  { %163 = vperm.xlu1 %6803, %v35_v15   ;;  %158 = vperm.xlu0 %6802, %v34_v16   ;;  %v7597_v15 = vrot.slane %v84_v2, %v7590_v9  ;;  %v1074_v16 = vsub.s32 3, %v7568_v62 }
  0x22   :  { %173 = vperm.xlu1 %6803, %v37_v17   ;;  %168 = vperm.xlu0 %6802, %v36_v18   ;;  %v1190_v18 = vsub.s32 4, %v7568_v62 }
  0x26   :  { %183 = vperm.xlu1 %6803, %v39_v19   ;;  %178 = vperm.xlu0 %6802, %v38_v20   ;;  %v1502_v19 = vsub.s32 5, %v7568_v62 }
  0x2a   :  { %193 = vperm.xlu1 %6803, %v41_v21   ;;  %188 = vperm.xlu0 %6802, %v40_v22   ;;  %v1950_v21 = vsub.s32 7, %v7568_v62 }
  0x2e   :  { %203 = vperm.xlu1 %6803, %v43_v23   ;;  %198 = vperm.xlu0 %6802, %v42_v24  }
  0x32   :  { %213 = vperm.xlu1 %6803, %v45_v25   ;;  %208 = vperm.xlu0 %6802, %v44_v26  }
  0x36   :  { %223 = vperm.xlu1 %6803, %v47_v27   ;;  %218 = vperm.xlu0 %6802, %v46_v28   ;;  %v1834_v27 = vsub.s32 6, %v7568_v62 }
  0x3a   :  { %233 = vperm.xlu1 %6803, %v53_v29   ;;  %228 = vperm.xlu0 %6802, %v52_v30  }
  0x3e   :  { %243 = vperm.xlu1 %6803, %v55_v31   ;;  %238 = vperm.xlu0 %6802, %v54_v32  }
  0x42   :  { %253 = vperm.xlu1 %6803, %v57_v33   ;;  %248 = vperm.xlu0 %6802, %v56_v34   ;;  %v7613_v33 = vrot.slane %v84_v2, %v1074_v16  ;;  %v7615_v34 = vrot.slane %v84_v2, %v1190_v18 }
  0x46   :  { %263 = vperm.xlu1 %6803, %v59_v35   ;;  %258 = vperm.xlu0 %6802, %v58_v36  }
  0x4a   :  { %273 = vperm.xlu1 %6803, %v61_v37   ;;  %268 = vperm.xlu0 %6802, %v60_v38   ;;  %v7619_v37 = vrot.slane %v84_v2, %v1502_v19 }
  0x4e   :  { %283 = vperm.xlu1 %6803, %v63_v39   ;;  %278 = vperm.xlu0 %6802, %v62_v40   ;;  %v7621_v40 = vrot.slane %v84_v2, %v1950_v21 }
  0x52   :  { %293 = vperm.xlu1 %6803, %v65_v41   ;;  %288 = vperm.xlu0 %6802, %v64_v42  }
  0x56   :  { %303 = vperm.xlu1 %6803, %v67_v43   ;;  %298 = vperm.xlu0 %6802, %v66_v44   ;;  %v7626_v44 = vrot.slane %v84_v2, %v1834_v27 }
  0x5a   :  { %313 = vperm.xlu1 %6803, %v69_v45   ;;  %308 = vperm.xlu0 %6802, %v68_v46  }
  0x5e   :  { %323 = vperm.xlu1 %6803, %v71_v47   ;;  %318 = vperm.xlu0 %6802, %v70_v48  }
  0x62   :  { %333 = vperm.xlu1 %6803, %v73_v49   ;;  %328 = vperm.xlu0 %6802, %v72_v50  }
  0x66   :  { %343 = vperm.xlu1 %6803, %v75_v51   ;;  %338 = vperm.xlu0 %6802, %v74_v52  }
  0x6a   :  { %353 = vperm.xlu1 %6803, %v77_v53   ;;  %348 = vperm.xlu0 %6802, %v76_v54  }
  0x6e   :  { %363 = vperm.xlu1 %6803, %v79_v55   ;;  %358 = vperm.xlu0 %6802, %v78_v56  }
  0x72   :  { %1059 = vperm.xlu1 %6803, %v49_v57   ;;  %1054 = vperm.xlu0 %6802, %v48_v58  }
  0x76   :  { %1069 = vperm.xlu1 %6803, %v81_v60   ;;  %1064 = vperm.xlu0 %6802, %v80_v61  }
  0x7a   :  { %1819 = vperm.xlu1 %6803, %v51_v63   ;;  %1814 = vperm.xlu0 %6802, %v50_v0  }
  0x7d   :  { %v99_v6 = vpop.permute.xlu1 %98  ;;  %v89_v7 = vpop.permute.xlu0 %88 }
  0x7e   :  { %1829 = vperm.xlu1 %6803, %v83_v3   ;;  %1824 = vperm.xlu0 %6802, %v82_v4   ;;  %v430_v10 = vmul.f32 %v7586_v5, %v89_v7  ;;  %v743_v26 = vmul.f32 %v7594_v14, %v89_v7  ;;  %v432_v35 = vmul.f32 %v7586_v5, %v99_v6 }
  0x7f   :  { %v370_v36 = vmul.f32 %v7597_v15, %v89_v7  ;;  %v372_v41 = vmul.f32 %v7597_v15, %v99_v6  ;;  %v745_v45 = vmul.f32 %v7594_v14, %v99_v6  ;;  %v1076_v50 = vmul.f32 %v7613_v33, %v99_v6 }
  0x80   :  { %v543_v20 = vrot.slane %v430_v10, 1  ;;  %v856_v46 = vrot.slane %v743_v26, 2  ;;  %v546_v49 = vrot.slane %v432_v35, 1  ;;  %v1192_v51 = vmul.f32 %v7615_v34, %v99_v6 }
  0x81   :  { %v104_v11 = vpop.permute.xlu1 %103  ;;  %v94_v12 = vpop.permute.xlu0 %93  ;;  %v1504_v58 = vmul.f32 %v7619_v37, %v99_v6  ;;  %v859_v3 = vrot.slane %v745_v45, 2 }
  0x82   :  { %v433_v13 = vmul.f32 %v7586_v5, %v104_v11  ;;  %v431_v17 = vmul.f32 %v7586_v5, %v94_v12  ;;  %v371_v23 = vmul.f32 %v7597_v15, %v94_v12  ;;  %v744_v25 = vmul.f32 %v7594_v14, %v94_v12 }
  0x83   :  { %v373_v28 = vmul.f32 %v7597_v15, %v104_v11  ;;  %v746_v29 = vmul.f32 %v7594_v14, %v104_v11  ;;  %v1193_v52 = vmul.f32 %v7615_v34, %v104_v11  ;;  %v1505_v55 = vmul.f32 %v7619_v37, %v104_v11 }
  0x84   :  { %v547_v22 = vrot.slane %v433_v13, 1  ;;  %v544_v24 = vrot.slane %v431_v17, 1  ;;  %v857_v39 = vrot.slane %v744_v25, 2  ;;  %v1077_v56 = vmul.f32 %v7613_v33, %v104_v11 }
  0x85   :  { %v7611_v32 = vpop.permute.xlu1 %113  ;;  %v860_v47 = vrot.slane %v746_v29, 2  ;;  %v7632_v53 = vpop.permute.xlu0 %108  ;;  %v1305_v4 = vrot.slane %v1193_v52, 1  ;;  %v1304_v8 = vrot.slane %v1192_v51, 1  ;;  %v1617_v11 = vrot.slane %v1505_v55, 2 }
  0x86   :  { %v545_v30 = vsel %vm542_vm0, %v543_v20, %v544_v24  ;;  %v684_v31 = vadd.f32 %v544_v24, %v371_v23  ;;  %v686_v38 = vadd.f32 %v547_v22, %v373_v28  ;;  %v435_v43 = vmul.f32 %v7586_v5, %v7611_v32 }
  0x87   :  { %v683_v42 = vadd.f32 %v545_v30, %v370_v36  ;;  %v858_v57 = vsel %vm855_vm1, %v856_v46, %v857_v39  ;;  %v548_v59 = vsel %vm542_vm0, %v546_v49, %v547_v22  ;;  %v1079_v0 = vmul.f32 %v7613_v33, %v7611_v32 }
  0x88   :  { %v997_v48 = vadd.f32 %v857_v39, %v684_v31  ;;  %v999_v54 = vadd.f32 %v860_v47, %v686_v38  ;;  %v550_v61 = vrot.slane %v435_v43, 1  ;;  %v1195_v1 = vmul.f32 %v7615_v34, %v7611_v32 }
  0x89   :  { %v996_v60 = vadd.f32 %v858_v57, %v683_v42  ;;  %v434_v2 = vmul.f32 %v7586_v5, %v7632_v53  ;;  %v375_v7 = vmul.f32 %v7597_v15, %v7611_v32  ;;  %v748_v6 = vmul.f32 %v7594_v14, %v7611_v32  ;;  %v124_v13 = vpop.permute.xlu1 %123 }
  0x8a   :  { %v1133_v63 = vadd.f32 %v1077_v56, %v997_v48  ;;  %v685_v10 = vadd.f32 %v548_v59, %v372_v41  ;;  %v1135_v12 = vadd.f32 %v1079_v0, %v999_v54  ;;  %v1616_v16 = vrot.slane %v1504_v58, 2  ;;  %v119_v41 = vpop.permute.xlu0 %118 }
  0x8b   :  { %v1132_v17 = vadd.f32 %v1076_v50, %v996_v60  ;;  %v688_v18 = vadd.f32 %v550_v61, %v375_v7  ;;  %v7651_v19 = vmul.f32 %v7619_v37, %v7611_v32  ;;  %v1308_v21 = vrot.slane %v1195_v1, 1 }
  0x8c   :  { %v1445_v20 = vadd.f32 %v1305_v4, %v1133_v63  ;;  %v549_v22 = vrot.slane %v434_v2, 1  ;;  %v1194_v23 = vmul.f32 %v7615_v34, %v7632_v53  ;;  %v861_v24 = vsel %vm855_vm1, %v859_v3, %v860_v47  ;;  %v7698_v2 = vld [vmem:[%s13441_s1 + $0x8] ss:$0 sm:$0xff] }
  0x8d   :  { %v1306_v25 = vsel %vm542_vm0, %v1304_v8, %v1305_v4  ;;  %v863_v26 = vrot.slane %v748_v6, 2  ;;  %v437_v27 = vmul.f32 %v7586_v5, %v124_v13  ;;  %v998_v28 = vadd.f32 %v861_v24, %v685_v10  ;;  %v7703_v6 = vpop.permute.xlu1 %133 }
  0x8e   :  { %v1618_v29 = vsel %vm855_vm1, %v1616_v16, %v1617_v11  ;;  %v1447_v30 = vadd.f32 %v1308_v21, %v1135_v12  ;;  %v374_v31 = vmul.f32 %v7597_v15, %v7632_v53  ;;  %v1444_v35 = vadd.f32 %v1306_v25, %v1132_v17 }
  0x8f   :  { %v1001_v36 = vadd.f32 %v863_v26, %v688_v18  ;;  %v13448_v38 = vrot.slane %v7651_v19, 2  ;;  %v747_v39 = vmul.f32 %v7594_v14, %v7632_v53  ;;  %v7664_v42 = vadd.f32 %v1617_v11, %v1445_v20 }
  0x90   :  { %v551_v43 = vsel %vm542_vm0, %v549_v22, %v550_v61  ;;  %v1078_v45 = vmul.f32 %v7613_v33, %v7632_v53  ;;  %v1307_v46 = vrot.slane %v1194_v23, 1  ;;  %v7671_v47 = vmul.f32 %v7619_v37, %v7632_v53 }
  0x91   :  { %v553_v48 = vrot.slane %v437_v27, 1  ;;  %v1081_v49 = vmul.f32 %v7613_v33, %v124_v13  ;;  %v1197_v50 = vmul.f32 %v7615_v34, %v124_v13  ;;  %v7677_v51 = vadd.f32 %v13448_v38, %v1447_v30 }
  0x92   :  { %v1134_v52 = vadd.f32 %v1078_v45, %v998_v28  ;;  %v7680_v54 = vmul.f32 %v7594_v14, %v124_v13  ;;  %v436_v55 = vmul.f32 %v7586_v5, %v119_v41  ;;  %v7683_v56 = vadd.f32 %v1618_v29, %v1444_v35  ;;  %v129_v35 = vpop.permute.xlu0 %128 }
  0x93   :  { %v862_v57 = vrot.slane %v747_v39, 2  ;;  %v377_v58 = vmul.f32 %v7597_v15, %v124_v13  ;;  %v1137_v59 = vadd.f32 %v1081_v49, %v1001_v36  ;;  %v687_v60 = vadd.f32 %v551_v43, %v374_v31 }
  0x94   :  { %v1309_v61 = vsel %vm542_vm0, %v1307_v46, %v1308_v21  ;;  %v7689_v63 = vmul.f32 %v7621_v40, %v7632_v53  ;;  %v7692_v0 = vmul.f32 %v7619_v37, %v124_v13  ;;  %v1311_v4 = vrot.slane %v1197_v50, 1 }
  0x95   :  { %v690_v3 = vadd.f32 %v553_v48, %v377_v58  ;;  %v7701_v7 = vmul.f32 %v7621_v40, %v124_v13  ;;  %v7705_v8 = vadd.f32 %v1309_v61, %v1134_v52  ;;  %v866_v10 = vrot.slane %v7680_v54, 2  ;;  %v7744_v58 = vpop.permute.xlu1 %143 }
  0x96   :  { %v7709_v11 = vmul.f32 %v7698_v2, %v124_v13  ;;  %v552_v12 = vrot.slane %v436_v55, 1  ;;  %v1449_v16 = vadd.f32 %v1311_v4, %v1137_v59  ;;  %v7712_v17 = vmul.f32 %v7626_v44, %v124_v13  ;;  %13896 = vst [vmem:[#allocation4_spill] sm:$0xff] %v7744_v58 }
  0x97   :  { %v864_v18 = vsel %vm855_vm1, %v862_v57, %v863_v26  ;;  %v1196_v20 = vmul.f32 %v7615_v34, %v119_v41  ;;  %v13446_v21 = vrot.slane %v7692_v0, 2  ;;  %v749_v23 = vmul.f32 %v7594_v14, %v119_v41 }
  0x98   :  { %v1000_v22 = vadd.f32 %v864_v18, %v687_v60  ;;  %v439_v24 = vmul.f32 %v7586_v5, %v7703_v6  ;;  %v1003_v25 = vadd.f32 %v866_v10, %v690_v3  ;;  %v376_v28 = vmul.f32 %v7597_v15, %v119_v41 }
  0x99   :  { %v7723_v13 = vmul.f32 %v7619_v37, %v119_v41  ;;  %v554_v29 = vsel %vm542_vm0, %v552_v12, %v553_v48  ;;  %v1080_v30 = vmul.f32 %v7613_v33, %v119_v41  ;;  %v7729_v31 = vmul.f32 %v7621_v40, %v119_v41  ;;  %v7809_v59 = vpop.permute.xlu1 %153 }
  0x9a   :  { %v7733_v36 = vadd.f32 %v13446_v21, %v1449_v16  ;;  %v1310_v39 = vrot.slane %v1196_v20, 1  ;;  %v1083_v43 = vmul.f32 %v7613_v33, %v7703_v6  ;;  %v1199_v45 = vmul.f32 %v7615_v34, %v7703_v6  ;;  %13901 = vst [vmem:[#allocation9_spill] sm:$0xff] %v7809_v59 }
  0x9b   :  { %v865_v46 = vrot.slane %v749_v23, 2  ;;  %v1136_v49 = vadd.f32 %v1080_v30, %v1000_v22  ;;  %v7740_v48 = vmul.f32 %v7626_v44, %v119_v41  ;;  %v556_v50 = vrot.slane %v439_v24, 1 }
  0x9c   :  { %v689_v52 = vadd.f32 %v554_v29, %v376_v28  ;;  %v1139_v55 = vadd.f32 %v1083_v43, %v1003_v25  ;;  %v438_v57 = vmul.f32 %v7586_v5, %v129_v35  ;;  %v7748_v60 = vmul.f32 %v7698_v2, %v119_v41 }
  0x9d   :  { %v379_v61 = vmul.f32 %v7597_v15, %v7703_v6  ;;  %v752_v3 = vmul.f32 %v7594_v14, %v7703_v6  ;;  %v1312_v12 = vsel %vm542_vm0, %v1310_v39, %v1311_v4  ;;  %v1314_v16 = vrot.slane %v1199_v45, 1 }
  0x9e   :  { %v7757_v18 = vmul.f32 %v7619_v37, %v7703_v6  ;;  %v7761_v20 = vmul.f32 %v7621_v40, %v7703_v6  ;;  %v7763_v22 = vadd.f32 %v1312_v12, %v1136_v49  ;;  %v1198_v23 = vmul.f32 %v7615_v34, %v129_v35 }
  0x9f   :  { %v692_v41 = vadd.f32 %v556_v50, %v379_v61  ;;  %v441_v24 = vmul.f32 %v7586_v5, %v7744_v58  ;;  %v1451_v25 = vadd.f32 %v1314_v16, %v1139_v55  ;;  %v867_v4 = vsel %vm855_vm1, %v865_v46, %v866_v10 }
  0xa0   :  { %13897 = vst [vmem:[#allocation5_spill] sm:$0xff] %v7757_v18  ;;  %v555_v28 = vrot.slane %v438_v57, 1  ;;  %v751_v29 = vmul.f32 %v7594_v14, %v129_v35  ;;  %v869_v39 = vrot.slane %v752_v3, 2  ;;  %v7773_v43 = vmul.f32 %v7626_v44, %v7703_v6  ;;  %v139_v3 = vpop.permute.xlu0 %138 }
  0xa1   :  { %v1002_v45 = vadd.f32 %v867_v4, %v689_v52  ;;  %v13447_v49 = vrot.slane %v7757_v18, 2  ;;  %v378_v12 = vmul.f32 %v7597_v15, %v129_v35  ;;  %v7779_v55 = vmul.f32 %v7619_v37, %v129_v35 }
  0xa2   :  { %v1005_v10 = vadd.f32 %v869_v39, %v692_v41  ;;  %v1082_v46 = vmul.f32 %v7613_v33, %v129_v35  ;;  %v1313_v57 = vrot.slane %v1198_v23, 1  ;;  %v559_v54 = vrot.slane %v441_v24, 1 }
  0xa3   :  { %13898 = vst [vmem:[#allocation6_spill] sm:$0xff] %v7779_v55  ;;  %v7784_v21 = vadd.f32 %v13447_v49, %v1451_v25  ;;  %v557_v52 = vsel %vm542_vm0, %v555_v28, %v556_v50  ;;  %v868_v4 = vrot.slane %v751_v29, 2  ;;  %v7788_v61 = vmul.f32 %v7621_v40, %v129_v35 }
  0xa4   :  { %v1138_v30 = vadd.f32 %v1082_v46, %v1002_v45  ;;  %v381_v26 = vmul.f32 %v7597_v15, %v7744_v58  ;;  %v7794_v41 = vmul.f32 %v7594_v14, %v7744_v58  ;;  %v1201_v23 = vmul.f32 %v7615_v34, %v7744_v58 }
  0xa5   :  { %13899 = vst [vmem:[#allocation7_spill] sm:$0xff] %v7784_v21  ;;  %v7800_v25 = vmul.f32 %v7626_v44, %v129_v35  ;;  %v1085_v50 = vmul.f32 %v7613_v33, %v7744_v58  ;;  %v440_v28 = vmul.f32 %v7586_v5, %v139_v3  ;;  %v691_v29 = vadd.f32 %v557_v52, %v378_v12 }
  0xa6   :  { %v1315_v45 = vsel %vm542_vm0, %v1313_v57, %v1314_v16  ;;  %v7807_v46 = vmul.f32 %v7698_v2, %v129_v35  ;;  %v694_v49 = vadd.f32 %v559_v54, %v381_v26  ;;  %v7814_v1 = vmul.f32 %v7619_v37, %v7744_v58 }
  0xa7   :  { %v1141_v24 = vadd.f32 %v1085_v50, %v1005_v10  ;;  %v7818_v38 = vmul.f32 %v7621_v40, %v7744_v58  ;;  %v7820_v12 = vadd.f32 %v1315_v45, %v1138_v30  ;;  %v872_v16 = vrot.slane %v7794_v41, 2 }
  0xa8   :  { %13900 = vst [vmem:[#allocation8_spill] sm:$0xff] %v7807_v46  ;;  %13902 = vst [vmem:[#allocation10_spill] sm:$0xff] %v7814_v1  ;;  %v1317_v35 = vrot.slane %v1201_v23, 1  ;;  %v870_v26 = vsel %vm855_vm1, %v868_v4, %v869_v39  ;;  %v558_v57 = vrot.slane %v440_v28, 1  ;;  %v753_v52 = vmul.f32 %v7594_v14, %v139_v3 }
  0xa9   :  { %13903 = vst [vmem:[#allocation11_spill] sm:$0xff] %v7818_v38  ;;  %13904 = vst [vmem:[#allocation12_spill] sm:$0xff] %v7820_v12  ;;  %v1200_v10 = vmul.f32 %v7615_v34, %v139_v3  ;;  %v443_v50 = vmul.f32 %v7586_v5, %v7809_v59  ;;  %v1007_v9 = vadd.f32 %v872_v16, %v694_v49  ;;  %v13909_v12 = vrot.slane %v7814_v1, 2 }
  0xaa   :  { %v7831_v30 = vmul.f32 %v7626_v44, %v7744_v58  ;;  %v1004_v45 = vadd.f32 %v870_v26, %v691_v29  ;;  %v1453_v41 = vadd.f32 %v1317_v35, %v1141_v24  ;;  %v380_v4 = vmul.f32 %v7597_v15, %v139_v3  ;;  %v149_v58 = vpop.permute.xlu0 %148 }
  0xab   :  { %v1084_v28 = vmul.f32 %v7613_v33, %v139_v3  ;;  %v7838_v62 = vmul.f32 %v7619_v37, %v139_v3  ;;  %v1087_v49 = vmul.f32 %v7613_v33, %v7809_v59  ;;  %v1203_v27 = vmul.f32 %v7615_v34, %v7809_v59 }
  0xac   :  { %13905 = vst [vmem:[#allocation13_spill] sm:$0xff] %v7831_v30  ;;  %v560_v24 = vsel %vm542_vm0, %v558_v57, %v559_v54  ;;  %v871_v29 = vrot.slane %v753_v52, 2  ;;  %v1316_v26 = vrot.slane %v1200_v10, 1  ;;  %v562_v23 = vrot.slane %v443_v50, 1 }
  0xad   :  { %13906 = vst [vmem:[#allocation14_spill] sm:$0xff] %v7838_v62  ;;  %v1140_v39 = vadd.f32 %v1084_v28, %v1004_v45  ;;  %v7846_v38 = vmul.f32 %v7626_v44, %v139_v3  ;;  %v7849_v30 = vmul.f32 %v7621_v40, %v139_v3  ;;  %v1143_v21 = vadd.f32 %v1087_v49, %v1007_v9 }
  0xae   :  { %v7853_v55 = vadd.f32 %v13909_v12, %v1453_v41  ;;  %v383_v18 = vmul.f32 %v7597_v15, %v7809_v59  ;;  %v7859_v54 = vmul.f32 %v7594_v14, %v7809_v59  ;;  %v442_v57 = vmul.f32 %v7586_v5, %v149_v58  ;;  %v164_v12 = vpop.permute.xlu1 %163 }
  0xaf   :  { %13907 = vst [vmem:[#allocation15_spill] sm:$0xff] %v7846_v38  ;;  %13908 = vst [vmem:[#allocation16_spill] sm:$0xff] %v7849_v30  ;;  %v693_v52 = vadd.f32 %v560_v24, %v380_v4  ;;  %v7863_v10 = vmul.f32 %v7698_v2, %v139_v3  ;;  %v1320_v50 = vrot.slane %v1203_v27, 1  ;;  %v7867_v9 = vmul.f32 %v7619_v37, %v7809_v59  ;;  %v159_v3 = vpop.permute.xlu0 %158 }
  0xb0   :  { %13910 = vst [vmem:[#allocation17_spill] sm:$0xff] %v7853_v55  ;;  %v1318_v45 = vsel %vm542_vm0, %v1316_v26, %v1317_v35  ;;  %v696_v28 = vadd.f32 %v562_v23, %v383_v18  ;;  %v7873_v49 = vmul.f32 %v7621_v40, %v7809_v59  ;;  %v1202_v27 = vmul.f32 %v7615_v34, %v149_v58 }
  0xb1   :  { %13911 = vst [vmem:[#allocation18_spill] sm:$0xff] %v7863_v10  ;;  %13912 = vst [vmem:[#allocation19_spill] sm:$0xff] %v7867_v9  ;;  %v7875_v55 = vadd.f32 %v1318_v45, %v1140_v39  ;;  %v1455_v4 = vadd.f32 %v1320_v50, %v1143_v21  ;;  %v875_v24 = vrot.slane %v7859_v54, 2  ;;  %v873_v1 = vsel %vm855_vm1, %v871_v29, %v872_v16 }
  0xb2   :  { %13913 = vst [vmem:[#allocation20_spill] sm:$0xff] %v7873_v49  ;;  %v561_v38 = vrot.slane %v442_v57, 1  ;;  %v445_v35 = vmul.f32 %v7586_v5, %v164_v12  ;;  %v13461_v26 = vrot.slane %v7867_v9, 2  ;;  %v1006_v41 = vadd.f32 %v873_v1, %v693_v52 }
  0xb3   :  { %13914 = vst [vmem:[#allocation21_spill] sm:$0xff] %v7875_v55  ;;  %v755_v39 = vmul.f32 %v7594_v14, %v149_v58  ;;  %v1009_v45 = vadd.f32 %v875_v24, %v696_v28  ;;  %v7887_v21 = vmul.f32 %v7626_v44, %v7809_v59  ;;  %v382_v54 = vmul.f32 %v7597_v15, %v149_v58 }
  0xb4   :  { %v7893_v16 = vadd.f32 %v13461_v26, %v1455_v4  ;;  %v1086_v29 = vmul.f32 %v7613_v33, %v149_v58  ;;  %v1319_v57 = vrot.slane %v1202_v27, 1  ;;  %v7897_v1 = vmul.f32 %v7619_v37, %v149_v58 }
  0xb5   :  { %13915 = vst [vmem:[#allocation22_spill] sm:$0xff] %v7887_v21  ;;  %v563_v52 = vsel %vm542_vm0, %v561_v38, %v562_v23  ;;  %v565_v28 = vrot.slane %v445_v35, 1  ;;  %v1089_v18 = vmul.f32 %v7613_v33, %v164_v12  ;;  %v1205_v59 = vmul.f32 %v7615_v34, %v164_v12 }
  0xb6   :  { %13916 = vst [vmem:[#allocation23_spill] sm:$0xff] %v7893_v16  ;;  %13917 = vst [vmem:[#allocation24_spill] sm:$0xff] %v7897_v1  ;;  %v874_v49 = vrot.slane %v755_v39, 2  ;;  %v1142_v21 = vadd.f32 %v1086_v29, %v1006_v41  ;;  %v7903_v55 = vmul.f32 %v7621_v40, %v149_v58  ;;  %v7906_v4 = vmul.f32 %v7698_v2, %v149_v58 }
  0xb7   :  { %v7909_v27 = vmul.f32 %v7626_v44, %v149_v58  ;;  %v385_v26 = vmul.f32 %v7597_v15, %v164_v12  ;;  %v7913_v38 = vmul.f32 %v7594_v14, %v164_v12  ;;  %v1145_v23 = vadd.f32 %v1089_v18, %v1009_v45 }
  0xb8   :  { %13918 = vst [vmem:[#allocation25_spill] sm:$0xff] %v7903_v55  ;;  %13919 = vst [vmem:[#allocation26_spill] sm:$0xff] %v7906_v4  ;;  %v695_v35 = vadd.f32 %v563_v52, %v382_v54  ;;  %v7917_v41 = vmul.f32 %v7619_v37, %v164_v12  ;;  %v444_v39 = vmul.f32 %v7586_v5, %v159_v3  ;;  %v1323_v62 = vrot.slane %v1205_v59, 1 }
  0xb9   :  { %13920 = vst [vmem:[#allocation27_spill] sm:$0xff] %v7909_v27  ;;  %v1321_v29 = vsel %vm542_vm0, %v1319_v57, %v1320_v50  ;;  %v698_v9 = vadd.f32 %v565_v28, %v385_v26  ;;  %v7922_v58 = vmul.f32 %v7621_v40, %v164_v12  ;;  %v7924_v27 = vpop.permute.xlu1 %173  ;;  %v7931_v54 = vmul.f32 %v7698_v2, %v164_v12 }
  0xba   :  { %13921 = vst [vmem:[#allocation28_spill] sm:$0xff] %v7917_v41  ;;  %13923 = vst [vmem:[#allocation30_spill] sm:$0xff] %v7924_v27  ;;  %v7926_v10 = vadd.f32 %v1321_v29, %v1142_v21  ;;  %v878_v52 = vrot.slane %v7913_v38, 2  ;;  %v1457_v16 = vadd.f32 %v1323_v62, %v1145_v23  ;;  %v7935_v50 = vmul.f32 %v7626_v44, %v164_v12  ;;  %v169_v23 = vpop.permute.xlu0 %168 }
  0xbb   :  { %13922 = vst [vmem:[#allocation29_spill] sm:$0xff] %v7922_v58  ;;  %13925 = vst [vmem:[#allocation32_spill] sm:$0xff] %v7931_v54  ;;  %v1204_v59 = vmul.f32 %v7615_v34, %v159_v3  ;;  %v13472_v26 = vrot.slane %v7917_v41, 2  ;;  %v876_v21 = vsel %vm855_vm1, %v874_v49, %v875_v24  ;;  %v564_v57 = vrot.slane %v444_v39, 1 }
  0xbc   :  { %13924 = vst [vmem:[#allocation31_spill] sm:$0xff] %v7926_v10  ;;  %13926 = vst [vmem:[#allocation33_spill] sm:$0xff] %v7935_v50  ;;  %v447_v29 = vmul.f32 %v7586_v5, %v7924_v27  ;;  %v1011_v45 = vadd.f32 %v878_v52, %v698_v9  ;;  %v1008_v4 = vadd.f32 %v876_v21, %v695_v35 }
  0xbd   :  { %v384_v38 = vmul.f32 %v7597_v15, %v159_v3  ;;  %v757_v50 = vmul.f32 %v7594_v14, %v159_v3  ;;  %v7947_v55 = vmul.f32 %v7619_v37, %v159_v3  ;;  %v7950_v49 = vmul.f32 %v7621_v40, %v159_v3 }
  0xbe   :  { %v7954_v24 = vadd.f32 %v13472_v26, %v1457_v16  ;;  %v1088_v9 = vmul.f32 %v7613_v33, %v159_v3  ;;  %v1322_v35 = vrot.slane %v1204_v59, 1  ;;  %v7958_v39 = vmul.f32 %v7626_v44, %v159_v3 }
  0xbf   :  { %13927 = vst [vmem:[#allocation34_spill] sm:$0xff] %v7947_v55  ;;  %13928 = vst [vmem:[#allocation35_spill] sm:$0xff] %v7950_v49  ;;  %v566_v21 = vsel %vm542_vm0, %v564_v57, %v565_v28  ;;  %v7962_v12 = vmul.f32 %v7698_v2, %v159_v3  ;;  %v568_v18 = vrot.slane %v447_v29, 1  ;;  %v446_v54 = vmul.f32 %v7586_v5, %v169_v23 }
  0xc0   :  { %13929 = vst [vmem:[#allocation36_spill] sm:$0xff] %v7954_v24  ;;  %13930 = vst [vmem:[#allocation37_spill] sm:$0xff] %v7958_v39  ;;  %v1144_v58 = vadd.f32 %v1088_v9, %v1008_v4  ;;  %v760_v41 = vmul.f32 %v7594_v14, %v7924_v27  ;;  %v1091_v16 = vmul.f32 %v7613_v33, %v7924_v27  ;;  %v877_v26 = vrot.slane %v757_v50, 2 }
  0xc1   :  { %13931 = vst [vmem:[#allocation38_spill] sm:$0xff] %v7962_v12  ;;  %v1207_v59 = vmul.f32 %v7615_v34, %v7924_v27  ;;  %v387_v3 = vmul.f32 %v7597_v15, %v7924_v27  ;;  %v697_v57 = vadd.f32 %v566_v21, %v384_v38  ;;  %v7977_v4 = vmul.f32 %v7619_v37, %v7924_v27  ;;  %v7988_v38 = vpop.permute.xlu1 %183 }
  0xc2   :  { %v1147_v29 = vadd.f32 %v1091_v16, %v1011_v45  ;;  %v7981_v9 = vmul.f32 %v7621_v40, %v7924_v27  ;;  %v1324_v39 = vsel %vm542_vm0, %v1322_v35, %v1323_v62  ;;  %v567_v55 = vrot.slane %v446_v54, 1  ;;  %13934 = vst [vmem:[#allocation41_spill] sm:$0xff] %v7988_v38 }
  0xc3   :  { %v700_v24 = vadd.f32 %v568_v18, %v387_v3  ;;  %v7985_v28 = vadd.f32 %v1324_v39, %v1144_v58  ;;  %v881_v49 = vrot.slane %v760_v41, 2  ;;  %v1326_v10 = vrot.slane %v1207_v59, 1  ;;  %v179_v39 = vpop.permute.xlu0 %178 }
  0xc4   :  { %13932 = vst [vmem:[#allocation39_spill] sm:$0xff] %v7981_v9  ;;  %v1206_v45 = vmul.f32 %v7615_v34, %v169_v23  ;;  %v7992_v21 = vmul.f32 %v7626_v44, %v7924_v27  ;;  %v879_v16 = vsel %vm855_vm1, %v877_v26, %v878_v52  ;;  %v386_v62 = vmul.f32 %v7597_v15, %v169_v23 }
  0xc5   :  { %13933 = vst [vmem:[#allocation40_spill] sm:$0xff] %v7985_v28  ;;  %v759_v35 = vmul.f32 %v7594_v14, %v169_v23  ;;  %v1459_v3 = vadd.f32 %v1326_v10, %v1147_v29  ;;  %v1010_v54 = vadd.f32 %v879_v16, %v697_v57  ;;  %v1013_v59 = vadd.f32 %v881_v49, %v700_v24 }
  0xc6   :  { %13935 = vst [vmem:[#allocation42_spill] sm:$0xff] %v7992_v21  ;;  %v569_v50 = vsel %vm542_vm0, %v567_v55, %v568_v18  ;;  %v8001_v28 = vmul.f32 %v7619_v37, %v169_v23  ;;  %v449_v52 = vmul.f32 %v7586_v5, %v7988_v38  ;;  %v1090_v26 = vmul.f32 %v7613_v33, %v169_v23 }
  0xc7   :  { %v1325_v27 = vrot.slane %v1206_v45, 1  ;;  %v8007_v29 = vmul.f32 %v7626_v44, %v169_v23  ;;  %v8010_v58 = vmul.f32 %v7621_v40, %v169_v23  ;;  %v880_v57 = vrot.slane %v759_v35, 2 }
  0xc8   :  { %v1093_v24 = vmul.f32 %v7613_v33, %v7988_v38  ;;  %v1209_v55 = vmul.f32 %v7615_v34, %v7988_v38  ;;  %v448_v18 = vmul.f32 %v7586_v5, %v179_v39  ;;  %v13937_v16 = vrot.slane %v7977_v4, 2 }
  0xc9   :  { %13936 = vst [vmem:[#allocation43_spill] sm:$0xff] %v8007_v29  ;;  %v699_v45 = vadd.f32 %v569_v50, %v386_v62  ;;  %v1146_v9 = vadd.f32 %v1090_v26, %v1010_v54  ;;  %v8022_v29 = vmul.f32 %v7698_v2, %v169_v23  ;;  %v571_v35 = vrot.slane %v449_v52, 1 }
  0xca   :  { %v8019_v41 = vadd.f32 %v13937_v16, %v1459_v3  ;;  %v8027_v12 = vmul.f32 %v7594_v14, %v7988_v38  ;;  %v1149_v1 = vadd.f32 %v1093_v24, %v1013_v59  ;;  %v1327_v30 = vsel %vm542_vm0, %v1325_v27, %v1326_v10 }
  0xcb   :  { %v389_v3 = vmul.f32 %v7597_v15, %v7988_v38  ;;  %v8035_v50 = vmul.f32 %v7619_v37, %v7988_v38  ;;  %v1329_v23 = vrot.slane %v1209_v55, 1  ;;  %v882_v62 = vsel %vm855_vm1, %v880_v57, %v881_v49  ;;  %v8050_v49 = vpop.permute.xlu1 %193 }
  0xcc   :  { %13938 = vst [vmem:[#allocation44_spill] sm:$0xff] %v8019_v41  ;;  %v570_v54 = vrot.slane %v448_v18, 1  ;;  %v1208_v52 = vmul.f32 %v7615_v34, %v179_v39  ;;  %v8039_v26 = vadd.f32 %v1327_v30, %v1146_v9  ;;  %v8044_v10 = vmul.f32 %v7621_v40, %v7988_v38  ;;  %13940 = vst [vmem:[#allocation46_spill] sm:$0xff] %v8050_v49 }
  0xcd   :  { %v1012_v27 = vadd.f32 %v882_v62, %v699_v45  ;;  %v702_v24 = vadd.f32 %v571_v35, %v389_v3  ;;  %v1461_v21 = vadd.f32 %v1329_v23, %v1149_v1  ;;  %v8048_v55 = vmul.f32 %v7594_v14, %v179_v39 }
  0xce   :  { %13939 = vst [vmem:[#allocation45_spill] sm:$0xff] %v8039_v26  ;;  %v8054_v30 = vmul.f32 %v7626_v44, %v7988_v38  ;;  %v1092_v9 = vmul.f32 %v7613_v33, %v179_v39  ;;  %v8058_v57 = vmul.f32 %v7619_v37, %v179_v39  ;;  %v8061_v18 = vmul.f32 %v7621_v40, %v179_v39 }
  0xcf   :  { %v13483_v45 = vrot.slane %v8035_v50, 2  ;;  %v572_v1 = vsel %vm542_vm0, %v570_v54, %v571_v35  ;;  %v1328_v3 = vrot.slane %v1208_v52, 1  ;;  %v8066_v62 = vmul.f32 %v7698_v2, %v179_v39 }
  0xd0   :  { %13941 = vst [vmem:[#allocation47_spill] sm:$0xff] %v8054_v30  ;;  %13942 = vst [vmem:[#allocation48_spill] sm:$0xff] %v8058_v57  ;;  %v388_v46 = vmul.f32 %v7597_v15, %v179_v39  ;;  %v1148_v16 = vadd.f32 %v1092_v9, %v1012_v27  ;;  %v8072_v38 = vmul.f32 %v7586_v5, %v8050_v49  ;;  %v13943_v26 = vrot.slane %v8027_v12, 2  ;;  %v189_v27 = vpop.permute.xlu0 %188 }
  0xd1   :  { %v8078_v41 = vadd.f32 %v13483_v45, %v1461_v21  ;;  %v883_v35 = vrot.slane %v8048_v55, 2  ;;  %v8082_v54 = vmul.f32 %v7626_v44, %v179_v39  ;;  %v8088_v9 = vmul.f32 %v7594_v14, %v8050_v49 }
  0xd2   :  { %v1015_v30 = vadd.f32 %v13943_v26, %v702_v24  ;;  %v701_v52 = vadd.f32 %v572_v1, %v388_v46  ;;  %v1330_v26 = vsel %vm542_vm0, %v1328_v3, %v1329_v23  ;;  %v391_v21 = vmul.f32 %v7597_v15, %v8050_v49 }
  0xd3   :  { %13944 = vst [vmem:[#allocation49_spill] sm:$0xff] %v8078_v41  ;;  %v1095_v39 = vmul.f32 %v7613_v33, %v8050_v49  ;;  %v8096_v55 = vadd.f32 %v1330_v26, %v1148_v16  ;;  %v8101_v1 = vmul.f32 %v7615_v34, %v8050_v49  ;;  %v13946_v59 = vrot.slane %v7651_v19, 2 }
  0xd4   :  { %v13947_v23 = vrot.slane %v7671_v47, 2  ;;  %v8110_v45 = vmul.f32 %v7619_v37, %v8050_v49  ;;  %v1836_v16 = vmul.f32 %v7626_v44, %v7632_v53  ;;  %v1837_v26 = vmul.f32 %v7626_v44, %v7611_v32 }
  0xd5   :  { %13945 = vst [vmem:[#allocation50_spill] sm:$0xff] %v8096_v55  ;;  %v1151_v46 = vadd.f32 %v1095_v39, %v1015_v30  ;;  %v1953_v19 = vmul.f32 %v7621_v40, %v7611_v32  ;;  %v2064_v47 = vrot.slane %v7689_v63, 1  ;;  %v8128_v41 = vmul.f32 %v7626_v44, %v8050_v49 }
  0xd6   :  { %v1621_v3 = vsel %vm855_vm1, %v13947_v23, %v13946_v59  ;;  %v1892_v59 = vadd.f32 %v1836_v16, %v7683_v56  ;;  %v1893_v23 = vadd.f32 %v1837_v26, %v7664_v42  ;;  %v13949_v39 = vrot.slane %v7701_v7, 1 }
  0xd7   :  { %v1758_v24 = vadd.f32 %v1621_v3, %v7705_v8  ;;  %v2264_v3 = vmul.f32 %v7698_v2, %v7632_v53  ;;  %13948 = vst [vmem:[#allocation51_spill] sm:$0xff] %v8128_v41  ;;  %v2065_v30 = vrot.slane %v1953_v19, 1  ;;  %v13950_v55 = vrot.slane %v7729_v31, 1 }
  0xd8   :  { %v2265_v42 = vmul.f32 %v7698_v2, %v7611_v32  ;;  %v13951_v56 = vrot.slane %v8072_v38, 1  ;;  %v8141_v53 = vmul.f32 %v7621_v40, %v8050_v49  ;;  %v390_v57 = vmul.f32 %v7597_v15, %v189_v27 }
  0xd9   :  { %v1894_v8 = vadd.f32 %v7740_v48, %v1758_v24  ;;  %v2069_v63 = vsel %vm542_vm0, %v13950_v55, %v13949_v39  ;;  %v2376_v16 = vrot.slane %v2264_v3, 2  ;;  %v2066_v26 = vsel %vm542_vm0, %v2064_v47, %v2065_v30 }
  0xda   :  { %v704_v48 = vadd.f32 %v13951_v56, %v391_v21  ;;  %13952 = vst [vmem:[#allocation52_spill] sm:$0xff] %v8141_v53  ;;  %v2205_v19 = vadd.f32 %v2065_v30, %v1893_v23  ;;  %v2377_v31 = vrot.slane %v2265_v42, 2  ;;  %v13953_v55 = vrot.slane %v7709_v11, 2  ;;  %v8152_v21 = vld [vmem:[%s13442_s2] ss:$0 sm:$0xff] }
  0xdb   :  { %v2206_v24 = vadd.f32 %v2069_v63, %v1894_v8  ;;  %v13954_v39 = vrot.slane %v7748_v60, 2  ;;  %v1332_v8 = vrot.slane %v8101_v1, 1  ;;  %v450_v3 = vmul.f32 %v7586_v5, %v189_v27 }
  0xdc   :  { %v2204_v63 = vadd.f32 %v2066_v26, %v1892_v59  ;;  %v13486_v47 = vrot.slane %v8110_v45, 2  ;;  %v13955_v23 = vrot.slane %v8027_v12, 2  ;;  %v2378_v60 = vsel %vm855_vm1, %v2376_v16, %v2377_v31 }
  0xdd   :  { %v2381_v32 = vsel %vm855_vm1, %v13954_v39, %v13953_v55  ;;  %v2517_v42 = vadd.f32 %v2377_v31, %v2205_v19  ;;  %v1463_v55 = vadd.f32 %v1332_v8, %v1151_v46  ;;  %v1210_v59 = vmul.f32 %v7615_v34, %v189_v27  ;;  %v8171_v46 = vpop.permute.xlu1 %203 }
  0xde   :  { %v2518_v56 = vadd.f32 %v2381_v32, %v2206_v24  ;;  %v885_v30 = vsel %vm855_vm1, %v883_v35, %v13955_v23  ;;  %v2516_v49 = vadd.f32 %v2378_v60, %v2204_v63  ;;  %v13956_v12 = vrot.slane %v8088_v9, 2 }
  0xdf   :  { %v1014_v1 = vadd.f32 %v885_v30, %v701_v52  ;;  %v2580_v24 = vadd.f32 %v8152_v21, %v2517_v42  ;;  %v573_v35 = vrot.slane %v450_v3, 1  ;;  %v8174_v31 = vmul.f32 %v7594_v14, %v189_v27 }
  0xe0   :  { %v2581_v41 = vadd.f32 %v8152_v21, %v2518_v56  ;;  %v1017_v26 = vadd.f32 %v13956_v12, %v704_v48  ;;  %v2579_v16 = vadd.f32 %v8152_v21, %v2516_v49  ;;  %v1094_v52 = vmul.f32 %v7613_v33, %v189_v27 }
  0xe1   :  { %v8178_v32 = vmul.f32 %v7619_v37, %v189_v27  ;;  %v8180_v63 = vmax.f32 %v2580_v24, 0.0  ;;  %v8184_v48 = vadd.f32 %v13486_v47, %v1463_v55  ;;  %v8187_v49 = vmul.f32 %v7626_v44, %v189_v27 }
  0xe2   :  { %v8169_v19 = vmax.f32 %v2581_v41, 0.0  ;;  %v8189_v41 = vmax.f32 %v2579_v16, 0.0  ;;  %v1331_v56 = vrot.slane %v1210_v59, 1  ;;  %v8202_v60 = vmul.f32 %v7586_v5, %v8171_v46 }
  0xe3   :  { %13958 = vst [vmem:[#allocation54_spill] sm:$0xff] %v8180_v63  ;;  %13959 = vst [vmem:[#allocation55_spill] sm:$0xff] %v8184_v48  ;;  %v8197_v23 = vcombine.high %v8180_v63, %v8180_v63  ;;  %v2795_v30 = vrot.slane %v8180_v63, 5  ;;  %v13964_v42 = vrot.slane %v8072_v38, 1  ;;  %v1150_v24 = vadd.f32 %v1094_v52, %v1014_v1 }
  0xe4   :  { %13957 = vst [vmem:[#allocation53_spill] sm:$0xff] %v8169_v19  ;;  %13960 = vst [vmem:[#allocation56_spill] sm:$0xff] %v8187_v49  ;;  %v8193_v3 = vcombine.high %v8169_v19, %v8169_v19  ;;  %v8209_v12 = vcombine.high %v8189_v41, %v8189_v41  ;;  %v8213_v16 = vmul.f32 %v7621_v40, %v189_v27  ;;  %v6466_v59 = vrot.slane %v8169_v19, 9 }
  0xe5   :  { %13961 = vst [vmem:[#allocation57_spill] sm:$0xff] %v8189_v41  ;;  %13963 = vst [vmem:[#allocation59_spill] sm:$0xff] %v8197_v23  ;;  %v575_v55 = vsel %vm542_vm0, %v573_v35, %v13964_v42  ;;  %v8216_v39 = vmul.f32 %v7698_v2, %v189_v27  ;;  %v2797_v38 = vrot.slane %v2795_v30, 4  ;;  %v2798_v1 = vrot.slane %v8197_v23, 5 }
  0xe6   :  { %13962 = vst [vmem:[#allocation58_spill] sm:$0xff] %v8193_v3  ;;  %13965 = vst [vmem:[#allocation60_spill] sm:$0xff] %v8209_v12  ;;  %v886_v35 = vrot.slane %v8174_v31, 2  ;;  %v2792_v42 = vrot.slane %v8209_v12, 5  ;;  %v703_v63 = vadd.f32 %v575_v55, %v390_v57  ;;  %v1333_v27 = vsel %vm542_vm0, %v1331_v56, %v1332_v8 }
  0xe7   :  { %v8233_v53 = vmul.f32 %v7594_v14, %v8171_v46  ;;  %v6465_v49 = vrot.slane %v8189_v41, 9  ;;  %v2799_v31 = vsel %vm8220_vm4, %v2797_v38, %v2798_v1  ;;  %v13968_v52 = vrot.slane %v8193_v3, 5  ;;  %v199_v41 = vpop.permute.xlu0 %198 }
  0xe8   :  { %v2794_v23 = vrot.slane %v2792_v42, 4  ;;  %v8244_v57 = vadd.f32 %v1333_v27, %v1150_v24  ;;  %v8250_v55 = vmul.f32 %v7615_v34, %v8171_v46  ;;  %v1097_v24 = vmul.f32 %v7613_v33, %v8171_v46 }
  0xe9   :  { %v8242_v12 = vsel %vm8220_vm4, %v6466_v59, %v13968_v52  ;;  %v2793_v48 = vsel %vm8220_vm4, %v6465_v49, %v2792_v42  ;;  %v393_v59 = vmul.f32 %v7597_v15, %v8171_v46  ;;  %v13499_v27 = vrot.slane %v8233_v53, 2 }
  0xea   :  { %13969 = vst [vmem:[#allocation61_spill] sm:$0xff] %v8242_v12  ;;  %v2796_v38 = vsel %vm8220_vm4, %v2794_v23, %v2795_v30  ;;  %v3442_v52 = vcombine.low %v2799_v31, %v8242_v12  ;;  %v13970_v56 = vrot.slane %v7692_v0, 2  ;;  %v13971_v8 = vrot.slane %v7723_v13, 2 }
  0xeb   :  { %v3441_v1 = vcombine.low %v2793_v48, %v2796_v38  ;;  %v13972_v42 = vrot.slane %v8202_v60, 1  ;;  %v1153_v30 = vadd.f32 %v1097_v24, %v1017_v26  ;;  %v1895_v48 = vadd.f32 %v7712_v17, %v7677_v51 }
  0xec   :  { %v1624_v49 = vsel %vm855_vm1, %v13971_v8, %v13970_v56  ;;  %v1335_v31 = vrot.slane %v8250_v55, 1  ;;  %v8275_v0 = vmul.f32 %v7619_v37, %v8171_v46  ;;  %v1897_v13 = vadd.f32 %v7773_v43, %v7733_v36 }
  0xed   :  { %v706_v23 = vadd.f32 %v13972_v42, %v393_v59  ;;  %v1760_v19 = vadd.f32 %v1624_v49, %v7763_v22  ;;  %v6804_v38 = vpack.i.bf16 %v3442_v52, %v3441_v1  ;;  %v8281_v8 = vmul.f32 %v7626_v44, %v8171_v46 }
  0xee   :  { %13973 = vst [vmem:[#allocation62_spill] sm:$0xff] %v8275_v0  ;;  %v13975_v22 = vrot.slane %v7701_v7, 1  ;;  %v2269_v51 = vmul.f32 %v7698_v2, %v7703_v6  ;;  %v8291_v17 = vmul.f32 %v7621_v40, %v8171_v46  ;;  %v452_v36 = vmul.f32 %v7586_v5, %v199_v41 }
  0xef   :  { %13974 = vst [vmem:[#allocation63_spill] sm:$0xff] %v8281_v8  ;;  %v1896_v26 = vadd.f32 %v7800_v25, %v1760_v19  ;;  %6805 = vrot.lane.b32.xlu0 %v6804_v38, %s7353_s26  ;;  %v13976_v43 = vrot.slane %v7761_v20, 1  ;;  %v13977_v55 = vrot.slane %v7788_v61, 1  ;;  %v8303_v6 = vadd.f32 %v13499_v27, %v706_v23  ;;  %v13981_v23 = vld [vmem:[#allocation8_spill] sm:$0xff] }
  0xf0   :  { %v2207_v56 = vadd.f32 %v13975_v22, %v1895_v48  ;;  %v2383_v24 = vrot.slane %v2269_v51, 2  ;;  %v13979_v1 = vrot.slane %v7709_v11, 2  ;;  %v1465_v49 = vadd.f32 %v1335_v31, %v1153_v30 }
  0xf1   :  { %v2072_v25 = vsel %vm542_vm0, %v13977_v55, %v13976_v43  ;;  %v13978_v7 = vmov %v13976_v43  ;;  %v13498_v42 = vrot.slane %v8275_v0, 2  ;;  %v8310_v61 = vmul.f32 %v7698_v2, %v8171_v46 }
  0xf2   :  { %v2209_v19 = vadd.f32 %v13978_v7, %v1897_v13  ;;  %v2208_v59 = vadd.f32 %v2072_v25, %v1896_v26  ;;  %v2519_v52 = vadd.f32 %v13979_v1, %v2207_v56  ;;  %v13980_v48 = vrot.slane %v8088_v9, 2 }
  0xf3   :  { %v1212_v38 = vmul.f32 %v7615_v34, %v199_v41  ;;  %v13982_v13 = vrot.slane %v13981_v23, 2  ;;  %v576_v51 = vrot.slane %v452_v36, 1  ;;  %v8322_v46 = vmul.f32 %v7594_v14, %v199_v41 }
  0xf4   :  { %v888_v20 = vsel %vm855_vm1, %v886_v35, %v13980_v48  ;;  %v2521_v22 = vadd.f32 %v2383_v24, %v2209_v19  ;;  %v2582_v11 = vadd.f32 %v8152_v21, %v2519_v52  ;;  %v13984_v55 = vrot.slane %v8193_v3, 5 }
  0xf5   :  { %v2384_v26 = vsel %vm855_vm1, %v13982_v13, %v2383_v24  ;;  %v1016_v56 = vadd.f32 %v888_v20, %v703_v63  ;;  %v8331_v7 = vadd.f32 %v13498_v42, %v1465_v49  ;;  %v1096_v63 = vmul.f32 %v7613_v33, %v199_v41 }
  0xf6   :  { %v2520_v43 = vadd.f32 %v2384_v26, %v2208_v59  ;;  %v2584_v9 = vadd.f32 %v8152_v21, %v2521_v22  ;;  %v8325_v35 = vmax.f32 %v2582_v11, 0.0  ;;  %v2804_v25 = vrot.slane %v13984_v55, 4  ;;  %v8367_v55 = vpop.permute.xlu1 %213 }
  0xf7   :  { %13985 = vst [vmem:[#allocation64_spill] sm:$0xff] %v8331_v7  ;;  %v1334_v59 = vrot.slane %v1212_v38, 1  ;;  %v8337_v24 = vmul.f32 %v7619_v37, %v199_v41  ;;  %v392_v48 = vmul.f32 %v7597_v15, %v199_v41  ;;  %v13988_v49 = vrot.slane %v8202_v60, 1  ;;  %13993 = vst [vmem:[#allocation71_spill] sm:$0xff] %v8367_v55 }
  0xf8   :  { %13983 = vst [vmem:[#allocation8_spill] sm:$0xff] %v8325_v35  ;;  %v2583_v36 = vadd.f32 %v8152_v21, %v2520_v43  ;;  %v8341_v1 = vcombine.high %v8325_v35, %v8325_v35  ;;  %v2805_v52 = vrot.slane %v8325_v35, 5  ;;  %v8350_v13 = vmax.f32 %v2584_v9, 0.0 }
  0xf9   :  { %13986 = vst [vmem:[#allocation65_spill] sm:$0xff] %v8337_v24  ;;  %v578_v20 = vsel %vm542_vm0, %v576_v51, %v13988_v49  ;;  %v1152_v26 = vadd.f32 %v1096_v63, %v1016_v56  ;;  %v8354_v22 = vmul.f32 %v7621_v40, %v199_v41  ;;  %v1336_v63 = vsel %vm542_vm0, %v1334_v59, %v1335_v31  ;;  %v13996_v59 = vld [vmem:[#allocation5_spill] sm:$0xff]  ;;  %v14052_v24 = vld [vmem:[#allocation32_spill] sm:$0xff] }
  0xfa   :  { %13987 = vst [vmem:[#allocation66_spill] sm:$0xff] %v8341_v1  ;;  %v8348_v23 = vmax.f32 %v2583_v36, 0.0  ;;  %13990 = vst [vmem:[#allocation68_spill] sm:$0xff] %v8350_v13  ;;  %v8358_v11 = vsel %vm8220_vm4, %v2804_v25, %v2805_v52  ;;  %v2807_v60 = vrot.slane %v2805_v52, 4  ;;  %v2808_v51 = vrot.slane %v8341_v1, 5  ;;  %v13998_v36 = vld [vmem:[#allocation6_spill] sm:$0xff] }
  0xfb   :  { %13991 = vst [vmem:[#allocation69_spill] sm:$0xff] %v8358_v11  ;;  %v8369_v56 = vadd.f32 %v578_v20, %v392_v48  ;;  %v8374_v25 = vmul.f32 %v7626_v44, %v199_v41  ;;  %v8377_v49 = vmul.f32 %v7698_v2, %v199_v41  ;;  %v2815_v9 = vrot.slane %v8350_v13, 5  ;;  %v14002_v48 = vld [vmem:[#allocation12_spill] sm:$0xff]  ;;  %v14004_v1 = vld [vmem:[#allocation13_spill] sm:$0xff] }
  0xfc   :  { %13989 = vst [vmem:[#allocation67_spill] sm:$0xff] %v8348_v23  ;;  %v8362_v43 = vcombine.high %v8348_v23, %v8348_v23  ;;  %v6467_v52 = vrot.slane %v8348_v23, 9  ;;  %v8382_v19 = vadd.f32 %v1336_v63, %v1152_v26  ;;  %v8387_v31 = vmul.f32 %v7615_v34, %v8367_v55 }
  0xfd   :  { %13994 = vst [vmem:[#allocation72_spill] sm:$0xff] %v8377_v49  ;;  %v13997_v20 = vrot.slane %v13996_v59, 2  ;;  %v13999_v30 = vrot.slane %v13998_v36, 2  ;;  %v8396_v38 = vsel %vm8220_vm4, %v2807_v60, %v2808_v51  ;;  %v14003_v36 = vld [vmem:[#allocation7_spill] sm:$0xff]  ;;  %v8438_v35 = vmul.f32 %v7586_v5, %v8367_v55  ;;  %v14054_v49 = vld [vmem:[#allocation38_spill] sm:$0xff] }
  0xfe   :  { %13992 = vst [vmem:[#allocation70_spill] sm:$0xff] %v8362_v43  ;;  %v2812_v42 = vrot.slane %v8362_v43, 5  ;;  %13995 = vst [vmem:[#allocation73_spill] sm:$0xff] %v8382_v19  ;;  %v3443_v12 = vcombine.low %v8358_v11, %v8396_v38  ;;  %v14053_v0 = vrot.slane %v14052_v24, 2 }
  0xff   :  { %v1627_v41 = vsel %vm855_vm1, %v13999_v30, %v13997_v20  ;;  %14000 = vst [vmem:[#allocation5_spill] sm:$0xff] %v8396_v38  ;;  %v1899_v30 = vadd.f32 %v14004_v1, %v14003_v36  ;;  %v14005_v20 = vld [vmem:[#allocation4_spill] sm:$0xff]  ;;  %v14010_v38 = vld [vmem:[#allocation11_spill] sm:$0xff] }
 0x100   :  { %v8400_v26 = vsel %vm8220_vm4, %v6467_v52, %v2812_v42  ;;  %v2814_v63 = vrot.slane %v2812_v42, 4  ;;  %v1762_v27 = vadd.f32 %v1627_v41, %v14002_v48  ;;  %v2271_v60 = vmul.f32 %v7698_v2, %v14005_v20  ;;  %v14007_v52 = vld [vmem:[#allocation15_spill] sm:$0xff]  ;;  %v14012_v36 = vld [vmem:[#allocation16_spill] sm:$0xff]  ;;  %14015 = vst [vmem:[#allocation4_spill] sm:$0xff] %v8438_v35 }
 0x101   :  { %14001 = vst [vmem:[#allocation6_spill] sm:$0xff] %v8400_v26  ;;  %v8418_v48 = vcombine.high %v8350_v13, %v8350_v13  ;;  %v2817_v41 = vrot.slane %v2815_v9, 4  ;;  %v14011_v1 = vrot.slane %v14010_v38, 1  ;;  %v14013_v11 = vrot.slane %v14012_v36, 1  ;;  %v14016_v36 = vld [vmem:[#allocation18_spill] sm:$0xff] }
 0x102   :  { %v8413_v51 = vsel %vm8220_vm4, %v2814_v63, %v2815_v9  ;;  %v1898_v42 = vadd.f32 %v14007_v52, %v1762_v27  ;;  %v2386_v43 = vrot.slane %v2271_v60, 2  ;;  %v1099_v52 = vmul.f32 %v7613_v33, %v8367_v55 }
 0x103   :  { %14006 = vst [vmem:[#allocation12_spill] sm:$0xff] %v8413_v51  ;;  %14008 = vst [vmem:[#allocation7_spill] sm:$0xff] %v8418_v48  ;;  %v8422_v59 = vcombine.low %v8400_v26, %v8413_v51  ;;  %v2075_v20 = vsel %vm542_vm0, %v14013_v11, %v14011_v1  ;;  %v14014_v63 = vmov %v14011_v1  ;;  %v2818_v13 = vrot.slane %v8418_v48, 5  ;;  %v14033_v48 = vld [vmem:[#allocation17_spill] sm:$0xff] }
 0x104   :  { %v2211_v23 = vadd.f32 %v14014_v63, %v1899_v30  ;;  %v2210_v9 = vadd.f32 %v2075_v20, %v1898_v42  ;;  %v14017_v11 = vrot.slane %v14016_v36, 2  ;;  %v1155_v60 = vadd.f32 %v1099_v52, %v8303_v6  ;;  %v14022_v52 = vld [vmem:[#allocation14_spill] sm:$0xff] }
 0x105   :  { %14009 = vst [vmem:[#allocation13_spill] sm:$0xff] %v8422_v59  ;;  %v6809_v26 = vpack.i.bf16 %v8422_v59, %v3443_v12  ;;  %v8446_v1 = vmul.f32 %v7619_v37, %v8367_v55  ;;  %v8450_v20 = vsel %vm8220_vm4, %v2817_v41, %v2818_v13  ;;  %v14023_v36 = vrot.slane %v14022_v52, 2  ;;  %v14029_v12 = vld [vmem:[#allocation21_spill] sm:$0xff]  ;;  %v8477_v52 = vpop.permute.xlu0 %208 }
 0x106   :  { %v2387_v38 = vsel %vm855_vm1, %v14017_v11, %v2386_v43  ;;  %v2523_v30 = vadd.f32 %v2386_v43, %v2211_v23  ;;  %14019 = vst [vmem:[#allocation11_spill] sm:$0xff] %v8450_v20  ;;  %v14020_v43 = vld [vmem:[#allocation10_spill] sm:$0xff]  ;;  %14030 = vst [vmem:[#allocation18_spill] sm:$0xff] %v8477_v52 }
 0x107   :  { %14018 = vst [vmem:[#allocation15_spill] sm:$0xff] %v8446_v1  ;;  %v2522_v42 = vadd.f32 %v2387_v38, %v2210_v9  ;;  %6810 = vrot.lane.b32.xlu1 %v6809_v26, %s7353_s26  ;;  %v14021_v6 = vrot.slane %v14020_v43, 2  ;;  %v8464_v9 = vmul.f32 %v7626_v44, %v8367_v55  ;;  %v14025_v26 = vld [vmem:[#allocation19_spill] sm:$0xff]  ;;  %v14027_v38 = vld [vmem:[#allocation24_spill] sm:$0xff]  ;;  %v8475_v43 = vmul.f32 %v7621_v40, %v8367_v55  ;;  %v14041_v55 = vld [vmem:[#allocation9_spill] sm:$0xff] }
 0x108   :  { %v2586_v63 = vadd.f32 %v8152_v21, %v2523_v30  ;;  %v14026_v41 = vrot.slane %v14025_v26, 2  ;;  %v14028_v27 = vrot.slane %v14027_v38, 2  ;;  %v14036_v38 = vld [vmem:[#allocation27_spill] sm:$0xff] }
 0x109   :  { %v1630_v11 = vsel %vm855_vm1, %v14023_v36, %v14021_v6  ;;  %14024 = vst [vmem:[#allocation16_spill] sm:$0xff] %v8464_v9  ;;  %v2585_v13 = vadd.f32 %v8152_v21, %v2522_v42  ;;  %v14032_v36 = vld [vmem:[#allocation31_spill] sm:$0xff]  ;;  %v14034_v42 = vld [vmem:[#allocation22_spill] sm:$0xff]  ;;  %v2273_v9 = vmul.f32 %v7698_v2, %v14041_v55 }
 0x10a   :  { %v1633_v30 = vsel %vm855_vm1, %v14028_v27, %v14026_v41  ;;  %v1764_v23 = vadd.f32 %v1630_v11, %v14029_v12  ;;  %v8479_v6 = vmax.f32 %v2586_v63, 0.0  ;;  %v1901_v59 = vadd.f32 %v14034_v42, %v14033_v48  ;;  %v14037_v27 = vld [vmem:[#allocation20_spill] sm:$0xff]  ;;  %v14039_v12 = vld [vmem:[#allocation25_spill] sm:$0xff] }
 0x10b   :  { %v1766_v51 = vadd.f32 %v1633_v30, %v14032_v36  ;;  %v8484_v26 = vmax.f32 %v2585_v13, 0.0  ;;  %v14038_v41 = vrot.slane %v14037_v27, 1  ;;  %v14040_v11 = vrot.slane %v14039_v12, 1  ;;  %v14043_v48 = vld [vmem:[#allocation37_spill] sm:$0xff]  ;;  %v14048_v12 = vld [vmem:[#allocation35_spill] sm:$0xff]  ;;  %v14050_v27 = vld [vmem:[#allocation26_spill] sm:$0xff] }
 0x10c   :  { %14031 = vst [vmem:[#allocation10_spill] sm:$0xff] %v8479_v6  ;;  %v1900_v3 = vadd.f32 %v14036_v38, %v1764_v23  ;;  %v8496_v63 = vcombine.high %v8479_v6, %v8479_v6  ;;  %v2825_v30 = vrot.slane %v8479_v6, 5  ;;  %v14046_v38 = vld [vmem:[#allocation29_spill] sm:$0xff]  ;;  %v2389_v7 = vrot.slane %v2273_v9, 2 }
 0x10d   :  { %14035 = vst [vmem:[#allocation14_spill] sm:$0xff] %v8484_v26  ;;  %v2078_v35 = vsel %vm542_vm0, %v14040_v11, %v14038_v41  ;;  %v1902_v13 = vadd.f32 %v14043_v48, %v1766_v51  ;;  %v14044_v36 = vmov %v14038_v41  ;;  %v8504_v42 = vcombine.high %v8484_v26, %v8484_v26 }
 0x10e   :  { %14042 = vst [vmem:[#allocation19_spill] sm:$0xff] %v8496_v63  ;;  %v2213_v23 = vadd.f32 %v14044_v36, %v1901_v59  ;;  %v14047_v41 = vrot.slane %v14046_v38, 1  ;;  %v14049_v11 = vrot.slane %v14048_v12, 1  ;;  %v2212_v55 = vadd.f32 %v2078_v35, %v1900_v3 }
 0x10f   :  { %14045 = vst [vmem:[#allocation24_spill] sm:$0xff] %v8504_v42  ;;  %v6468_v19 = vrot.slane %v8484_v26, 9  ;;  %v2827_v6 = vrot.slane %v2825_v30, 4  ;;  %v2828_v51 = vrot.slane %v8496_v63, 5  ;;  %v2822_v59 = vrot.slane %v8504_v42, 5  ;;  %v8525_v63 = vpop.permute.xlu1 %223 }
 0x110   :  { %v2081_v2 = vsel %vm542_vm0, %v14049_v11, %v14047_v41  ;;  %v14051_v36 = vrot.slane %v14050_v27, 2  ;;  %v14055_v12 = vrot.slane %v14054_v49, 2  ;;  %v2525_v3 = vadd.f32 %v2389_v7, %v2213_v23  ;;  %14057 = vst [vmem:[#allocation21_spill] sm:$0xff] %v8525_v63 }
 0x111   :  { %v2214_v48 = vadd.f32 %v2081_v2, %v1902_v13  ;;  %v14056_v35 = vrot.slane %v8387_v31, 1  ;;  %v8527_v13 = vpop.permute.xlu0 %218  ;;  %v8532_v42 = vsel %vm8220_vm4, %v6468_v19, %v2822_v59  ;;  %v2824_v49 = vrot.slane %v2822_v59, 4 }
 0x112   :  { %v2390_v8 = vsel %vm855_vm1, %v14051_v36, %v2389_v7  ;;  %v2393_v41 = vsel %vm855_vm1, %v14055_v12, %v14053_v0  ;;  %14058 = vst [vmem:[#allocation31_spill] sm:$0xff] %v8527_v13  ;;  %14059 = vst [vmem:[#allocation17_spill] sm:$0xff] %v8532_v42  ;;  %v2588_v0 = vadd.f32 %v8152_v21, %v2525_v3  ;;  %v14060_v7 = vrot.slane %v8233_v53, 2 }
 0x113   :  { %v1467_v9 = vadd.f32 %v14056_v35, %v1155_v60  ;;  %v2524_v2 = vadd.f32 %v2390_v8, %v2212_v55  ;;  %v2526_v27 = vadd.f32 %v2393_v41, %v2214_v48  ;;  %v14061_v60 = vrot.slane %v8322_v46, 2 }
 0x114   :  { %v1214_v12 = vmul.f32 %v7615_v34, %v8477_v52  ;;  %v8546_v19 = vsel %vm8220_vm4, %v2824_v49, %v2825_v30  ;;  %v8550_v48 = vsel %vm8220_vm4, %v2827_v6, %v2828_v51  ;;  %v8554_v53 = vcombine.low %v8450_v20, %v8532_v42 }
 0x115   :  { %v891_v23 = vsel %vm855_vm1, %v14061_v60, %v14060_v7  ;;  %v2587_v8 = vadd.f32 %v8152_v21, %v2524_v2  ;;  %v2589_v55 = vadd.f32 %v8152_v21, %v2526_v27  ;;  %14062 = vst [vmem:[#allocation22_spill] sm:$0xff] %v8546_v19  ;;  %14063 = vst [vmem:[#allocation27_spill] sm:$0xff] %v8550_v48  ;;  %v8556_v46 = vmax.f32 %v2588_v0, 0.0  ;;  %v234_v7 = vpop.permute.xlu1 %233  ;;  %v229_v60 = vpop.permute.xlu0 %228 }
 0x116   :  { %14064 = vst [vmem:[#allocation20_spill] sm:$0xff] %v8554_v53  ;;  %v8560_v59 = vcombine.low %v8546_v19, %v8550_v48  ;;  %v1018_v6 = vadd.f32 %v891_v23, %v8369_v56  ;;  %v8571_v51 = vmul.f32 %v7586_v5, %v8477_v52  ;;  %v8580_v27 = vmul.f32 %v7594_v14, %v8477_v52 }
 0x117   :  { %14065 = vst [vmem:[#allocation25_spill] sm:$0xff] %v8556_v46  ;;  %v8564_v3 = vmax.f32 %v2587_v8, 0.0  ;;  %v8566_v30 = vmax.f32 %v2589_v55, 0.0  ;;  %v8575_v35 = vcombine.high %v8556_v46, %v8556_v46  ;;  %v2835_v2 = vrot.slane %v8556_v46, 5 }
 0x118   :  { %14066 = vst [vmem:[#allocation9_spill] sm:$0xff] %v8560_v59  ;;  %14069 = vst [vmem:[#allocation35_spill] sm:$0xff] %v8571_v51  ;;  %v6814_v49 = vpack.i.bf16 %v8560_v59, %v8554_v53  ;;  %v1098_v23 = vmul.f32 %v7613_v33, %v8477_v52  ;;  %v1337_v8 = vrot.slane %v1214_v12, 1  ;;  %v14074_v20 = vrot.slane %v8446_v1, 2  ;;  %v14092_v51 = vld [vmem:[#allocation33_spill] sm:$0xff] }
 0x119   :  { %14067 = vst [vmem:[#allocation37_spill] sm:$0xff] %v8564_v3  ;;  %14068 = vst [vmem:[#allocation29_spill] sm:$0xff] %v8566_v30  ;;  %v8586_v56 = vcombine.high %v8564_v3, %v8564_v3  ;;  %v8590_v0 = vcombine.high %v8566_v30, %v8566_v30  ;;  %v2837_v55 = vrot.slane %v2835_v2, 4  ;;  %v2838_v41 = vrot.slane %v8575_v35, 5 }
 0x11a   :  { %14070 = vst [vmem:[#allocation26_spill] sm:$0xff] %v8575_v35  ;;  %14071 = vst [vmem:[#allocation32_spill] sm:$0xff] %v8580_v27  ;;  %6815 = vrot.lane.b32.xlu0 %v6814_v49, %s7353_s26  ;;  %v6469_v36 = vrot.slane %v8564_v3, 9  ;;  %v6470_v19 = vrot.slane %v8566_v30, 9  ;;  %v8602_v46 = vadd.f32 %v14074_v20, %v1467_v9  ;;  %v1154_v59 = vadd.f32 %v1098_v23, %v1018_v6  ;;  %v14091_v27 = vld [vmem:[#allocation23_spill] sm:$0xff] }
 0x11b   :  { %14072 = vst [vmem:[#allocation38_spill] sm:$0xff] %v8586_v56  ;;  %14073 = vst [vmem:[#allocation74_spill] sm:$0xff] %v8590_v0  ;;  %v2832_v11 = vrot.slane %v8586_v56, 5  ;;  %v13538_v42 = vrot.slane %v8590_v0, 5  ;;  %v459_v12 = vmul.f32 %v7586_v5, %v234_v7  ;;  %v458_v53 = vmul.f32 %v7586_v5, %v229_v60 }
 0x11c   :  { %14075 = vst [vmem:[#allocation75_spill] sm:$0xff] %v8602_v46  ;;  %v8612_v3 = vsel %vm8220_vm4, %v2837_v55, %v2838_v41  ;;  %v8633_v55 = vmul.f32 %v7619_v37, %v8477_v52  ;;  %v8670_v30 = vmul.f32 %v7621_v40, %v8527_v13  ;;  %v1903_v56 = vadd.f32 %v14092_v51, %v14091_v27 }
 0x11d   :  { %v8608_v49 = vsel %vm8220_vm4, %v6469_v36, %v2832_v11  ;;  %v2834_v35 = vrot.slane %v2832_v11, 4  ;;  %14077 = vst [vmem:[#allocation77_spill] sm:$0xff] %v8612_v3  ;;  %v8618_v20 = vsel %vm8220_vm4, %v6470_v19, %v13538_v42  ;;  %v14080_v36 = vrot.slane %v8387_v31, 1  ;;  %v8646_v11 = vld [vmem:[%s13441_s1 + $0x8] ss:$0 sm:$0xff] }
 0x11e   :  { %14076 = vst [vmem:[#allocation76_spill] sm:$0xff] %v8608_v49  ;;  %14078 = vst [vmem:[#allocation78_spill] sm:$0xff] %v8618_v20  ;;  %v8624_v23 = vcombine.low %v8612_v3, %v8618_v20  ;;  %v8637_v19 = vmul.f32 %v7621_v40, %v8477_v52  ;;  %v8650_v31 = vmul.f32 %v8646_v11, %v8477_v52  ;;  %v586_v9 = vrot.slane %v459_v12, 1 }
 0x11f   :  { %v1339_v41 = vsel %vm542_vm0, %v1337_v8, %v14080_v36  ;;  %14081 = vst [vmem:[#allocation80_spill] sm:$0xff] %v8633_v55  ;;  %v8641_v6 = vsel %vm8220_vm4, %v2834_v35, %v2835_v2  ;;  %v8662_v35 = vmul.f32 %v7626_v44, %v8477_v52  ;;  %v8666_v2 = vmul.f32 %v7621_v40, %v8525_v63  ;;  %v14099_v55 = vld [vmem:[#allocation42_spill] sm:$0xff]  ;;  %v239_v52 = vpop.permute.xlu0 %238 }
 0x120   :  { %14079 = vst [vmem:[#allocation79_spill] sm:$0xff] %v8624_v23  ;;  %14082 = vst [vmem:[#allocation81_spill] sm:$0xff] %v8641_v6  ;;  %v8654_v8 = vcombine.low %v8608_v49, %v8641_v6  ;;  %v8658_v42 = vadd.f32 %v1339_v41, %v1154_v59  ;;  %v585_v48 = vrot.slane %v458_v53, 1  ;;  %v399_v12 = vmul.f32 %v7597_v15, %v234_v7  ;;  %v244_v41 = vpop.permute.xlu1 %243 }
 0x121   :  { %14083 = vst [vmem:[#allocation82_spill] sm:$0xff] %v8650_v31  ;;  %14086 = vst [vmem:[#allocation85_spill] sm:$0xff] %v8666_v2  ;;  %v772_v59 = vmul.f32 %v7594_v14, %v234_v7  ;;  %v8680_v6 = vmul.f32 %v8646_v11, %v8527_v13  ;;  %v771_v53 = vmul.f32 %v7594_v14, %v229_v60  ;;  %v14098_v2 = vld [vmem:[#allocation36_spill] sm:$0xff] }
 0x122   :  { %14084 = vst [vmem:[#allocation83_spill] sm:$0xff] %v8654_v8  ;;  %14085 = vst [vmem:[#allocation84_spill] sm:$0xff] %v8658_v42  ;;  %v6819_v49 = vpack.i.bf16 %v8624_v23, %v8654_v8  ;;  %v8686_v23 = vmul.f32 %v7626_v44, %v8525_v63  ;;  %v8690_v7 = vmul.f32 %v7626_v44, %v8527_v13 }
 0x123   :  { %14087 = vst [vmem:[#allocation86_spill] sm:$0xff] %v8670_v30  ;;  %14088 = vst [vmem:[#allocation87_spill] sm:$0xff] %v8680_v6  ;;  %v712_v36 = vadd.f32 %v586_v9, %v399_v12  ;;  %v587_v8 = vsel %vm542_vm0, %v585_v48, %v586_v9  ;;  %v461_v26 = vmul.f32 %v7586_v5, %v244_v41  ;;  %v899_v42 = vrot.slane %v772_v59, 2  ;;  %v14097_v48 = vld [vmem:[#allocation40_spill] sm:$0xff]  ;;  %v14102_v12 = vld [vmem:[#allocation39_spill] sm:$0xff] }
 0x124   :  { %14089 = vst [vmem:[#allocation88_spill] sm:$0xff] %v8686_v23  ;;  %14090 = vst [vmem:[#allocation89_spill] sm:$0xff] %v8690_v7  ;;  %6820 = vrot.lane.b32.xlu1 %v6819_v49, %s7353_s26  ;;  %v398_v63 = vmul.f32 %v7597_v15, %v229_v60  ;;  %v14093_v23 = vld [vmem:[#allocation28_spill] sm:$0xff]  ;;  %v14095_v7 = vld [vmem:[#allocation34_spill] sm:$0xff]  ;;  %v898_v3 = vrot.slane %v771_v53, 2  ;;  %v1905_v1 = vadd.f32 %v14099_v55, %v14098_v2  ;;  %v14100_v60 = vrot.slane %v14046_v38, 1 }
 0x125   :  { %v14094_v13 = vrot.slane %v14093_v23, 2  ;;  %v14096_v46 = vrot.slane %v14095_v7, 2  ;;  %v1025_v51 = vadd.f32 %v899_v42, %v712_v36  ;;  %v774_v59 = vmul.f32 %v7594_v14, %v244_v41  ;;  %v14106_v36 = vld [vmem:[#allocation30_spill] sm:$0xff] }
 0x126   :  { %v711_v27 = vadd.f32 %v587_v8, %v398_v63  ;;  %v2215_v23 = vadd.f32 %v14100_v60, %v1903_v56  ;;  %v401_v7 = vmul.f32 %v7597_v15, %v244_v41  ;;  %v589_v30 = vrot.slane %v461_v26, 1 }
 0x127   :  { %v1636_v49 = vsel %vm855_vm1, %v14096_v46, %v14094_v13  ;;  %v1105_v13 = vmul.f32 %v7613_v33, %v244_v41  ;;  %v14101_v46 = vld [vmem:[#allocation43_spill] sm:$0xff]  ;;  %v2277_v38 = vmul.f32 %v8646_v11, %v14106_v36  ;;  %v14107_v56 = vrot.slane %v14052_v24, 2 }
 0x128   :  { %v1768_v9 = vadd.f32 %v1636_v49, %v14097_v48  ;;  %v14103_v49 = vrot.slane %v14102_v12, 1  ;;  %v14104_v48 = vrot.slane %v8010_v58, 1  ;;  %v900_v26 = vsel %vm855_vm1, %v898_v3, %v899_v42 }
 0x129   :  { %v2527_v2 = vadd.f32 %v14107_v56, %v2215_v23  ;;  %v1221_v60 = vmul.f32 %v7615_v34, %v244_v41  ;;  %v1024_v6 = vadd.f32 %v900_v26, %v711_v27  ;;  %v902_v58 = vrot.slane %v774_v59, 2 }
 0x12a   :  { %v1904_v53 = vadd.f32 %v14101_v46, %v1768_v9  ;;  %v2084_v55 = vsel %vm542_vm0, %v14104_v48, %v14103_v49  ;;  %v14105_v63 = vmov %v14103_v49  ;;  %v460_v9 = vmul.f32 %v7586_v5, %v239_v52 }
 0x12b   :  { %v2217_v8 = vadd.f32 %v14105_v63, %v1905_v1  ;;  %v2395_v31 = vrot.slane %v2277_v38, 2  ;;  %v2590_v49 = vadd.f32 %v8152_v21, %v2527_v2  ;;  %v714_v12 = vadd.f32 %v589_v30, %v401_v7 }
 0x12c   :  { %v2216_v46 = vadd.f32 %v2084_v55, %v1904_v53  ;;  %v1161_v1 = vadd.f32 %v1105_v13, %v1025_v51  ;;  %v773_v48 = vmul.f32 %v7594_v14, %v239_v52  ;;  %v1220_v63 = vmul.f32 %v7615_v34, %v239_v52 }
 0x12d   :  { %v14108_v24 = vrot.slane %v8022_v29, 2  ;;  %v2529_v3 = vadd.f32 %v2395_v31, %v2217_v8  ;;  %v8735_v23 = vmax.f32 %v2590_v49, 0.0  ;;  %v14110_v53 = vrot.slane %v8590_v0, 5 }
 0x12e   :  { %v1347_v59 = vrot.slane %v1221_v60, 1  ;;  %v8740_v55 = vmul.f32 %v7619_v37, %v244_v41  ;;  %v588_v7 = vrot.slane %v460_v9, 1  ;;  %v1104_v13 = vmul.f32 %v7613_v33, %v239_v52 }
 0x12f   :  { %v2396_v42 = vsel %vm855_vm1, %v14108_v24, %v2395_v31  ;;  %14109 = vst [vmem:[#allocation23_spill] sm:$0xff] %v8735_v23  ;;  %v2844_v27 = vrot.slane %v14110_v53, 4  ;;  %v2592_v36 = vadd.f32 %v8152_v21, %v2529_v3  ;;  %v8746_v29 = vcombine.high %v8735_v23, %v8735_v23 }
 0x130   :  { %v2528_v51 = vadd.f32 %v2396_v42, %v2216_v46  ;;  %v2845_v31 = vrot.slane %v8735_v23, 5  ;;  %v1473_v8 = vadd.f32 %v1347_v59, %v1161_v1  ;;  %v1346_v38 = vrot.slane %v1220_v63, 1 }
 0x131   :  { %14111 = vst [vmem:[#allocation33_spill] sm:$0xff] %v8746_v29  ;;  %v8750_v56 = vmul.f32 %v7619_v37, %v239_v52  ;;  %v901_v2 = vrot.slane %v773_v48, 2  ;;  %v1160_v26 = vadd.f32 %v1104_v13, %v1024_v6  ;;  %v8753_v60 = vmax.f32 %v2592_v36, 0.0 }
 0x132   :  { %v2591_v41 = vadd.f32 %v8152_v21, %v2528_v51  ;;  %v8757_v9 = vsel %vm8220_vm4, %v2844_v27, %v2845_v31  ;;  %v1659_v46 = vrot.slane %v8740_v55, 2  ;;  %v590_v49 = vsel %vm542_vm0, %v588_v7, %v589_v30  ;;  %v8775_v55 = vpop.permute.xlu1 %253 }
 0x133   :  { %14112 = vst [vmem:[#allocation28_spill] sm:$0xff] %v8753_v60  ;;  %14113 = vst [vmem:[#allocation34_spill] sm:$0xff] %v8757_v9  ;;  %v1027_v63 = vadd.f32 %v902_v58, %v714_v12  ;;  %v400_v42 = vmul.f32 %v7597_v15, %v239_v52  ;;  %v2847_v48 = vrot.slane %v2845_v31, 4  ;;  %v2848_v6 = vrot.slane %v8746_v29, 5  ;;  %v14150_v29 = vld [vmem:[#allocation49_spill] sm:$0xff] }
 0x134   :  { %v8761_v24 = vmax.f32 %v2591_v41, 0.0  ;;  %v8767_v3 = vadd.f32 %v1659_v46, %v1473_v8  ;;  %v1348_v53 = vsel %vm542_vm0, %v1346_v38, %v1347_v59  ;;  %v1658_v27 = vrot.slane %v8750_v56, 2  ;;  %v14118_v38 = vld [vmem:[#allocation44_spill] sm:$0xff]  ;;  %v14119_v56 = vld [vmem:[#allocation47_spill] sm:$0xff] }
 0x135   :  { %v713_v7 = vadd.f32 %v590_v49, %v400_v42  ;;  %v903_v12 = vsel %vm855_vm1, %v901_v2, %v902_v58  ;;  %v1472_v51 = vadd.f32 %v1348_v53, %v1160_v26  ;;  %v2855_v52 = vrot.slane %v8753_v60, 5  ;;  %v14121_v26 = vld [vmem:[#allocation45_spill] sm:$0xff] }
 0x136   :  { %14114 = vst [vmem:[#allocation40_spill] sm:$0xff] %v8761_v24  ;;  %v8773_v30 = vcombine.high %v8761_v24, %v8761_v24  ;;  %v6471_v13 = vrot.slane %v8761_v24, 9  ;;  %v14116_v59 = vrot.slane %v7977_v4, 2  ;;  %v14117_v31 = vrot.slane %v8001_v28, 2  ;;  %v14151_v24 = vld [vmem:[#allocation51_spill] sm:$0xff] }
 0x137   :  { %v1907_v41 = vadd.f32 %v14119_v56, %v14118_v38  ;;  %v8790_v49 = vsel %vm8220_vm4, %v2847_v48, %v2848_v6  ;;  %v463_v58 = vmul.f32 %v7586_v5, %v8775_v55  ;;  %v1107_v2 = vmul.f32 %v7613_v33, %v8775_v55  ;;  %v8809_v56 = vpop.permute.xlu0 %248 }
 0x138   :  { %14115 = vst [vmem:[#allocation36_spill] sm:$0xff] %v8773_v30  ;;  %v2852_v36 = vrot.slane %v8773_v30, 5  ;;  %v1639_v8 = vsel %vm855_vm1, %v14117_v31, %v14116_v59  ;;  %14120 = vst [vmem:[#allocation42_spill] sm:$0xff] %v8790_v49  ;;  %v14123_v53 = vrot.slane %v8044_v10, 1  ;;  %v14124_v31 = vld [vmem:[#allocation41_spill] sm:$0xff]  ;;  %v1223_v38 = vmul.f32 %v7615_v34, %v8775_v55 }
 0x139   :  { %v1770_v42 = vadd.f32 %v1639_v8, %v14121_v26  ;;  %v2279_v48 = vmul.f32 %v8646_v11, %v14124_v31  ;;  %v14128_v26 = vrot.slane %v8061_v18, 1  ;;  %v2857_v6 = vrot.slane %v2855_v52, 4 }
 0x13a   :  { %v8799_v28 = vsel %vm8220_vm4, %v6471_v13, %v2852_v36  ;;  %v2854_v4 = vrot.slane %v2852_v36, 4  ;;  %v2219_v59 = vadd.f32 %v14123_v53, %v1907_v41  ;;  %v8814_v13 = vcombine.high %v8753_v60, %v8753_v60 }
 0x13b   :  { %14122 = vst [vmem:[#allocation43_spill] sm:$0xff] %v8799_v28  ;;  %v1906_v8 = vadd.f32 %v8082_v54, %v1770_v42  ;;  %v14127_v41 = vmov %v14123_v53  ;;  %v2398_v31 = vrot.slane %v2279_v48, 2  ;;  %v8827_v1 = vcombine.low %v8757_v9, %v8790_v49 }
 0x13c   :  { %14125 = vst [vmem:[#allocation39_spill] sm:$0xff] %v8814_v13  ;;  %v8818_v36 = vsel %vm8220_vm4, %v2854_v4, %v2855_v52  ;;  %v2087_v53 = vsel %vm542_vm0, %v14128_v26, %v14127_v41  ;;  %v2858_v4 = vrot.slane %v8814_v13, 5  ;;  %v592_v20 = vrot.slane %v463_v58, 1 }
 0x13d   :  { %14126 = vst [vmem:[#allocation30_spill] sm:$0xff] %v8818_v36  ;;  %14129 = vst [vmem:[#allocation44_spill] sm:$0xff] %v8827_v1  ;;  %v8831_v54 = vcombine.low %v8799_v28, %v8818_v36  ;;  %v2218_v42 = vadd.f32 %v2087_v53, %v1906_v8  ;;  %v462_v10 = vmul.f32 %v7586_v5, %v8809_v56  ;;  %v14131_v18 = vrot.slane %v8066_v62, 2 }
 0x13e   :  { %v2531_v52 = vadd.f32 %v2398_v31, %v2219_v59  ;;  %v1163_v26 = vadd.f32 %v1107_v2, %v1027_v63  ;;  %v8843_v28 = vsel %vm8220_vm4, %v2857_v6, %v2858_v4  ;;  %v403_v58 = vmul.f32 %v7597_v15, %v8775_v55  ;;  %v8869_v59 = vpop.permute.xlu1 %263 }
 0x13f   :  { %14130 = vst [vmem:[#allocation47_spill] sm:$0xff] %v8831_v54  ;;  %v2399_v48 = vsel %vm855_vm1, %v14131_v18, %v2398_v31  ;;  %v6824_v41 = vpack.i.bf16 %v8831_v54, %v8827_v1  ;;  %14132 = vst [vmem:[#allocation45_spill] sm:$0xff] %v8843_v28  ;;  %v8849_v8 = vmul.f32 %v7594_v14, %v8775_v55  ;;  %v1350_v63 = vrot.slane %v1223_v38, 1 }
 0x140   :  { %v2530_v49 = vadd.f32 %v2399_v48, %v2218_v42  ;;  %v2594_v62 = vadd.f32 %v8152_v21, %v2531_v52  ;;  %v8857_v2 = vmul.f32 %v7619_v37, %v8775_v55  ;;  %v1222_v6 = vmul.f32 %v7615_v34, %v8809_v56 }
 0x141   :  { %6825 = vrot.lane.b32.xlu0 %v6824_v41, %s7353_s26  ;;  %v1026_v31 = vadd.f32 %v903_v12, %v713_v7  ;;  %v1660_v42 = vsel %vm855_vm1, %v1658_v27, %v1659_v46  ;;  %v591_v4 = vrot.slane %v462_v10, 1  ;;  %v716_v52 = vadd.f32 %v592_v20, %v403_v58 }
 0x142   :  { %v2593_v53 = vadd.f32 %v8152_v21, %v2530_v49  ;;  %v8863_v18 = vmax.f32 %v2594_v62, 0.0  ;;  %v8865_v48 = vadd.f32 %v1660_v42, %v1472_v51  ;;  %v1475_v41 = vadd.f32 %v1350_v63, %v1163_v26 }
 0x143   :  { %v8873_v36 = vmul.f32 %v7594_v14, %v8809_v56  ;;  %v1106_v7 = vmul.f32 %v7613_v33, %v8809_v56  ;;  %v1349_v49 = vrot.slane %v1222_v6, 1  ;;  %v593_v26 = vsel %vm542_vm0, %v591_v4, %v592_v20 }
 0x144   :  { %14133 = vst [vmem:[#allocation41_spill] sm:$0xff] %v8863_v18  ;;  %v8867_v38 = vmax.f32 %v2593_v53, 0.0  ;;  %v8879_v46 = vcombine.high %v8863_v18, %v8863_v18  ;;  %v2865_v27 = vrot.slane %v8863_v18, 5  ;;  %v8891_v62 = vmul.f32 %v7619_v37, %v8809_v56 }
 0x145   :  { %v1162_v58 = vadd.f32 %v1106_v7, %v1026_v31  ;;  %v8895_v53 = vmul.f32 %v7586_v5, %v8869_v59  ;;  %v14137_v9 = vrot.slane %v8849_v8, 2  ;;  %v14138_v20 = vrot.slane %v8857_v2, 2 }
 0x146   :  { %14134 = vst [vmem:[#allocation90_spill] sm:$0xff] %v8867_v38  ;;  %14135 = vst [vmem:[#allocation91_spill] sm:$0xff] %v8879_v46  ;;  %v8886_v10 = vcombine.high %v8867_v38, %v8867_v38  ;;  %v6472_v42 = vrot.slane %v8867_v38, 9  ;;  %v2867_v6 = vrot.slane %v2865_v27, 4  ;;  %v2868_v12 = vrot.slane %v8879_v46, 5  ;;  %v14149_v38 = vld [vmem:[#allocation50_spill] sm:$0xff] }
 0x147   :  { %v1029_v18 = vadd.f32 %v14137_v9, %v716_v52  ;;  %v8904_v31 = vadd.f32 %v14138_v20, %v1475_v41  ;;  %v402_v4 = vmul.f32 %v7597_v15, %v8809_v56  ;;  %v904_v7 = vrot.slane %v8873_v36, 2 }
 0x148   :  { %14136 = vst [vmem:[#allocation92_spill] sm:$0xff] %v8886_v10  ;;  %v2862_v51 = vrot.slane %v8886_v10, 5  ;;  %v1351_v13 = vsel %vm542_vm0, %v1349_v49, %v1350_v63  ;;  %v8916_v46 = vmul.f32 %v7594_v14, %v8869_v59  ;;  %v8923_v20 = vmul.f32 %v7621_v40, %v8809_v56 }
 0x149   :  { %v715_v9 = vadd.f32 %v593_v26, %v402_v4  ;;  %v8918_v52 = vadd.f32 %v1351_v13, %v1162_v58  ;;  %v8931_v63 = vsel %vm8220_vm4, %v2867_v6, %v2868_v12  ;;  %v595_v13 = vrot.slane %v8895_v53, 1  ;;  %v14145_v6 = vld [vmem:[#allocation48_spill] sm:$0xff] }
 0x14a   :  { %v8912_v10 = vsel %vm8220_vm4, %v6472_v42, %v2862_v51  ;;  %v2864_v60 = vrot.slane %v2862_v51, 4  ;;  %14141 = vst [vmem:[#allocation95_spill] sm:$0xff] %v8931_v63  ;;  %v405_v51 = vmul.f32 %v7597_v15, %v8869_v59  ;;  %v8951_v58 = vmul.f32 %v7615_v34, %v8869_v59 }
 0x14b   :  { %14139 = vst [vmem:[#allocation93_spill] sm:$0xff] %v8912_v10  ;;  %v8938_v49 = vcombine.low %v8843_v28, %v8912_v10  ;;  %v8955_v53 = vmul.f32 %v7619_v37, %v8869_v59  ;;  %v14144_v42 = vrot.slane %v8035_v50, 2  ;;  %v14146_v4 = vrot.slane %v14145_v6, 2 }
 0x14c   :  { %v8927_v36 = vsel %vm8220_vm4, %v2864_v60, %v2865_v27  ;;  %v1109_v27 = vmul.f32 %v7613_v33, %v8869_v59  ;;  %v14147_v12 = vrot.slane %v8110_v45, 2  ;;  %v14148_v10 = vrot.slane %v8178_v32, 2  ;;  %v14152_v32 = vld [vmem:[#allocation56_spill] sm:$0xff] }
 0x14d   :  { %14140 = vst [vmem:[#allocation94_spill] sm:$0xff] %v8927_v36  ;;  %14142 = vst [vmem:[#allocation96_spill] sm:$0xff] %v8938_v49  ;;  %v8942_v26 = vcombine.low %v8927_v36, %v8931_v63  ;;  %v1642_v41 = vsel %vm855_vm1, %v14146_v4, %v14144_v42  ;;  %v8964_v36 = vpop.permute.xlu0 %258  ;;  %v1909_v50 = vadd.f32 %v14151_v24, %v14150_v29  ;;  %v14155_v29 = vld [vmem:[#allocation46_spill] sm:$0xff]  ;;  %v14183_v63 = vrot.slane %v8916_v46, 2 }
 0x14e   :  { %v1645_v28 = vsel %vm855_vm1, %v14148_v10, %v14147_v12  ;;  %v1772_v54 = vadd.f32 %v1642_v41, %v14149_v38  ;;  %v718_v30 = vadd.f32 %v595_v13, %v405_v51  ;;  %v1165_v6 = vadd.f32 %v1109_v27, %v1029_v18  ;;  %v14153_v38 = vld [vmem:[#allocation52_spill] sm:$0xff] }
 0x14f   :  { %14143 = vst [vmem:[#allocation97_spill] sm:$0xff] %v8942_v26  ;;  %v6829_v60 = vpack.i.bf16 %v8942_v26, %v8938_v49  ;;  %v8976_v42 = vmul.f32 %v7626_v44, %v8869_v59  ;;  %v1774_v4 = vadd.f32 %v1645_v28, %v8244_v57  ;;  %v8982_v45 = vmul.f32 %v7621_v40, %v8869_v59 }
 0x150   :  { %v1908_v10 = vadd.f32 %v14152_v32, %v1772_v54  ;;  %v14154_v41 = vrot.slane %v14153_v38, 1  ;;  %v2281_v24 = vmul.f32 %v8646_v11, %v14155_v29  ;;  %v464_v51 = vmul.f32 %v7586_v5, %v8964_v36 }
 0x151   :  { %6830 = vrot.lane.b32.xlu1 %v6829_v60, %s7353_s26  ;;  %v1910_v57 = vadd.f32 %v8374_v25, %v1774_v4  ;;  %v14157_v60 = vrot.slane %v8213_v16, 1  ;;  %v13591_v54 = vrot.slane %v8955_v53, 2  ;;  %v14159_v32 = vrot.slane %v8354_v22, 1 }
 0x152   :  { %v2221_v12 = vadd.f32 %v14154_v41, %v1909_v50  ;;  %v14156_v28 = vmov %v14154_v41  ;;  %v14158_v50 = vrot.slane %v8291_v17, 1  ;;  %v2401_v18 = vrot.slane %v2281_v24, 2 }
 0x153   :  { %v2090_v27 = vsel %vm542_vm0, %v14157_v60, %v14156_v28  ;;  %v14160_v26 = vrot.slane %v8916_v46, 2  ;;  %v14161_v25 = vrot.slane %v8951_v58, 1  ;;  %v9010_v16 = vmul.f32 %v8646_v11, %v8869_v59 }
 0x154   :  { %v2093_v41 = vsel %vm542_vm0, %v14159_v32, %v14158_v50  ;;  %v2220_v29 = vadd.f32 %v2090_v27, %v1908_v10  ;;  %v14162_v28 = vrot.slane %v8849_v8, 2  ;;  %v14163_v22 = vrot.slane %v8216_v39, 2  ;;  %v14165_v27 = vld [vmem:[#allocation72_spill] sm:$0xff] }
 0x155   :  { %v1031_v49 = vadd.f32 %v14160_v26, %v718_v30  ;;  %v1477_v4 = vadd.f32 %v14161_v25, %v1165_v6  ;;  %v2222_v38 = vadd.f32 %v2093_v41, %v1910_v57  ;;  %v14164_v24 = vrot.slane %v8310_v61, 2 }
 0x156   :  { %v906_v60 = vsel %vm855_vm1, %v904_v7, %v14162_v28  ;;  %v2402_v10 = vsel %vm855_vm1, %v14163_v22, %v2401_v18  ;;  %v14166_v30 = vrot.slane %v14165_v27, 2  ;;  %v2533_v6 = vadd.f32 %v2401_v18, %v2221_v12 }
 0x157   :  { %v594_v50 = vrot.slane %v464_v51, 1  ;;  %v777_v59 = vmul.f32 %v7594_v14, %v8964_v36  ;;  %v2532_v57 = vadd.f32 %v2402_v10, %v2220_v29  ;;  %v1028_v7 = vadd.f32 %v906_v60, %v715_v9 }
 0x158   :  { %v2405_v26 = vsel %vm855_vm1, %v14166_v30, %v14164_v24  ;;  %v1224_v39 = vmul.f32 %v7615_v34, %v8964_v36  ;;  %v2596_v41 = vadd.f32 %v8152_v21, %v2533_v6  ;;  %v9032_v28 = vmul.f32 %v7619_v37, %v8964_v36 }
 0x159   :  { %v2534_v32 = vadd.f32 %v2405_v26, %v2222_v38  ;;  %v2595_v12 = vadd.f32 %v8152_v21, %v2532_v57  ;;  %v9038_v51 = vadd.f32 %v13591_v54, %v1477_v4  ;;  %v404_v9 = vmul.f32 %v7597_v15, %v8964_v36  ;;  %v9071_v57 = vpop.permute.xlu0 %268 }
 0x15a   :  { %v1108_v29 = vmul.f32 %v7613_v33, %v8964_v36  ;;  %v9044_v38 = vmax.f32 %v2596_v41, 0.0  ;;  %v596_v60 = vsel %vm542_vm0, %v594_v50, %v595_v13  ;;  %v907_v22 = vrot.slane %v777_v59, 2 }
 0x15b   :  { %v2597_v18 = vadd.f32 %v8152_v21, %v2534_v32  ;;  %14167 = vst [vmem:[#allocation48_spill] sm:$0xff] %v9038_v51  ;;  %v9047_v10 = vmax.f32 %v2595_v12, 0.0  ;;  %v9051_v21 = vpop.permute.xlu1 %273  ;;  %v1352_v4 = vrot.slane %v1224_v39, 1  ;;  %v9061_v13 = vmul.f32 %v7626_v44, %v8964_v36 }
 0x15c   :  { %14168 = vst [vmem:[#allocation50_spill] sm:$0xff] %v9044_v38  ;;  %14171 = vst [vmem:[#allocation56_spill] sm:$0xff] %v9051_v21  ;;  %v1164_v27 = vadd.f32 %v1108_v29, %v1028_v7  ;;  %v9055_v30 = vcombine.high %v9044_v38, %v9044_v38  ;;  %v2875_v26 = vrot.slane %v9044_v38, 5  ;;  %v717_v32 = vadd.f32 %v596_v60, %v404_v9 }
 0x15d   :  { %14169 = vst [vmem:[#allocation49_spill] sm:$0xff] %v9047_v10  ;;  %v9049_v24 = vmax.f32 %v2597_v18, 0.0  ;;  %v9065_v50 = vcombine.high %v9047_v10, %v9047_v10  ;;  %v467_v41 = vmul.f32 %v7586_v5, %v9051_v21  ;;  %v6473_v12 = vrot.slane %v9047_v10, 9 }
 0x15e   :  { %14172 = vst [vmem:[#allocation52_spill] sm:$0xff] %v9055_v30  ;;  %v2877_v7 = vrot.slane %v2875_v26, 4  ;;  %v2878_v39 = vrot.slane %v9055_v30, 5  ;;  %v9082_v54 = vmul.f32 %v7621_v40, %v8964_v36  ;;  %v1111_v9 = vmul.f32 %v7613_v33, %v9051_v21 }
 0x15f   :  { %14170 = vst [vmem:[#allocation51_spill] sm:$0xff] %v9049_v24  ;;  %14173 = vst [vmem:[#allocation46_spill] sm:$0xff] %v9065_v50  ;;  %v9069_v59 = vcombine.high %v9049_v24, %v9049_v24  ;;  %v2872_v18 = vrot.slane %v9065_v50, 5  ;;  %v6474_v29 = vrot.slane %v9049_v24, 9  ;;  %v1227_v60 = vmul.f32 %v7615_v34, %v9051_v21 }
 0x160   :  { %v466_v25 = vmul.f32 %v7586_v5, %v9071_v57  ;;  %v9096_v6 = vsel %vm8220_vm4, %v2877_v7, %v2878_v39  ;;  %v9118_v39 = vmul.f32 %v7594_v14, %v9051_v21 }
 0x161   :  { %14174 = vst [vmem:[#allocation72_spill] sm:$0xff] %v9069_v59  ;;  %v9092_v8 = vsel %vm8220_vm4, %v6473_v12, %v2872_v18  ;;  %v2874_v24 = vrot.slane %v2872_v18, 4  ;;  %14176 = vst [vmem:[#allocation99_spill] sm:$0xff] %v9096_v6  ;;  %v14177_v30 = vrot.slane %v9069_v59, 5  ;;  %v407_v12 = vmul.f32 %v7597_v15, %v9051_v21 }
 0x162   :  { %14175 = vst [vmem:[#allocation98_spill] sm:$0xff] %v9092_v8  ;;  %v598_v18 = vrot.slane %v467_v41, 1  ;;  %v1356_v1 = vrot.slane %v1227_v60, 1  ;;  %v597_v23 = vrot.slane %v466_v25, 1  ;;  %v1110_v25 = vmul.f32 %v7613_v33, %v9071_v57  ;;  %v9158_v60 = vpop.permute.xlu1 %283 }
 0x163   :  { %v9102_v38 = vsel %vm8220_vm4, %v6474_v29, %v14177_v30  ;;  %v9114_v7 = vsel %vm8220_vm4, %v2874_v24, %v2875_v26  ;;  %v1167_v30 = vadd.f32 %v1111_v9, %v1031_v49  ;;  %v9122_v29 = vmul.f32 %v7619_v37, %v9051_v21  ;;  %14187 = vst [vmem:[#allocation107_spill] sm:$0xff] %v9158_v60 }
 0x164   :  { %14178 = vst [vmem:[#allocation100_spill] sm:$0xff] %v9102_v38  ;;  %v9106_v10 = vcombine.low %v9096_v6, %v9102_v38  ;;  %14180 = vst [vmem:[#allocation102_spill] sm:$0xff] %v9114_v7  ;;  %v9126_v50 = vcombine.low %v9092_v8, %v9114_v7  ;;  %v909_v24 = vsel %vm855_vm1, %v907_v22, %v14183_v63  ;;  %v14184_v49 = vrot.slane %v8951_v58, 1 }
 0x165   :  { %14181 = vst [vmem:[#allocation103_spill] sm:$0xff] %v9122_v29  ;;  %v1226_v26 = vmul.f32 %v7615_v34, %v9071_v57  ;;  %v1030_v0 = vadd.f32 %v909_v24, %v717_v32  ;;  %v9142_v8 = vmul.f32 %v8646_v11, %v8964_v36  ;;  %v720_v63 = vadd.f32 %v598_v18, %v407_v12 }
 0x166   :  { %14179 = vst [vmem:[#allocation101_spill] sm:$0xff] %v9106_v10  ;;  %14182 = vst [vmem:[#allocation104_spill] sm:$0xff] %v9126_v50  ;;  %v1354_v9 = vsel %vm542_vm0, %v1352_v4, %v14184_v49  ;;  %v6834_v46 = vpack.i.bf16 %v9106_v10, %v9126_v50  ;;  %v1479_v41 = vadd.f32 %v1356_v1, %v1167_v30  ;;  %v13609_v36 = vrot.slane %v9122_v29, 2 }
 0x167   :  { %v9138_v51 = vadd.f32 %v1354_v9, %v1164_v27  ;;  %v9149_v58 = vmul.f32 %v7621_v40, %v9051_v21  ;;  %v911_v27 = vrot.slane %v9118_v39, 2  ;;  %v779_v4 = vmul.f32 %v7594_v14, %v9071_v57 }
 0x168   :  { %6835 = vrot.lane.b32.xlu0 %v6834_v46, %s7353_s26  ;;  %v1355_v32 = vrot.slane %v1226_v26, 1  ;;  %v599_v12 = vsel %vm542_vm0, %v597_v23, %v598_v18  ;;  %v1166_v30 = vadd.f32 %v1110_v25, %v1030_v0  ;;  %v9163_v24 = vmul.f32 %v7619_v37, %v9071_v57 }
 0x169   :  { %14185 = vst [vmem:[#allocation105_spill] sm:$0xff] %v9138_v51  ;;  %14186 = vst [vmem:[#allocation106_spill] sm:$0xff] %v9149_v58  ;;  %v9167_v49 = vmul.f32 %v7621_v40, %v9071_v57  ;;  %v1033_v9 = vadd.f32 %v911_v27, %v720_v63  ;;  %v9172_v46 = vmul.f32 %v7626_v44, %v9051_v21  ;;  %v910_v39 = vrot.slane %v779_v4, 2  ;;  %v14195_v4 = vld [vmem:[#allocation62_spill] sm:$0xff]  ;;  %v14243_v51 = vld [vmem:[#allocation85_spill] sm:$0xff] }
 0x16a   :  { %14188 = vst [vmem:[#allocation108_spill] sm:$0xff] %v9163_v24  ;;  %v406_v26 = vmul.f32 %v7597_v15, %v9071_v57  ;;  %v9178_v0 = vadd.f32 %v13609_v36, %v1479_v41  ;;  %v9183_v18 = vmul.f32 %v8646_v11, %v9071_v57  ;;  %v9187_v63 = vmul.f32 %v7586_v5, %v9158_v60 }
 0x16b   :  { %14189 = vst [vmem:[#allocation109_spill] sm:$0xff] %v9167_v49  ;;  %14190 = vst [vmem:[#allocation110_spill] sm:$0xff] %v9172_v46  ;;  %v1357_v22 = vsel %vm542_vm0, %v1355_v32, %v1356_v1  ;;  %v9192_v6 = vmul.f32 %v7626_v44, %v9071_v57  ;;  %v409_v7 = vmul.f32 %v7597_v15, %v9158_v60  ;;  %v14196_v57 = vrot.slane %v14195_v4, 2  ;;  %v14197_v32 = vld [vmem:[#allocation65_spill] sm:$0xff] }
 0x16c   :  { %14191 = vst [vmem:[#allocation111_spill] sm:$0xff] %v9178_v0  ;;  %14192 = vst [vmem:[#allocation112_spill] sm:$0xff] %v9183_v18  ;;  %v719_v25 = vadd.f32 %v599_v12, %v406_v26  ;;  %v9194_v41 = vadd.f32 %v1357_v22, %v1166_v30  ;;  %v9202_v10 = vmul.f32 %v7594_v14, %v9158_v60  ;;  %v14198_v22 = vrot.slane %v14197_v32, 2  ;;  %v14199_v30 = vld [vmem:[#allocation55_spill] sm:$0xff]  ;;  %v279_v32 = vpop.permute.xlu0 %278 }
 0x16d   :  { %14193 = vst [vmem:[#allocation113_spill] sm:$0xff] %v9192_v6  ;;  %v9206_v1 = vmul.f32 %v7615_v34, %v9158_v60  ;;  %v14200_v26 = vld [vmem:[#allocation63_spill] sm:$0xff]  ;;  %v601_v50 = vrot.slane %v9187_v63, 1  ;;  %v1113_v0 = vmul.f32 %v7613_v33, %v9158_v60  ;;  %v9222_v29 = vmul.f32 %v7619_v37, %v9158_v60  ;;  %v14205_v63 = vld [vmem:[#allocation16_spill] sm:$0xff] }
 0x16e   :  { %14194 = vst [vmem:[#allocation114_spill] sm:$0xff] %v9194_v41  ;;  %v1648_v12 = vsel %vm855_vm1, %v14198_v22, %v14196_v57  ;;  %v1911_v36 = vadd.f32 %v14200_v26, %v14199_v30  ;;  %v14201_v41 = vld [vmem:[#allocation73_spill] sm:$0xff]  ;;  %v9226_v4 = vmul.f32 %v7626_v44, %v9158_v60  ;;  %v9230_v57 = vmul.f32 %v7621_v40, %v9158_v60  ;;  %v14204_v22 = vld [vmem:[#allocation64_spill] sm:$0xff]  ;;  %v14207_v18 = vld [vmem:[#allocation71_spill] sm:$0xff] }
 0x16f   :  { %v1776_v24 = vadd.f32 %v1648_v12, %v14201_v41  ;;  %v1913_v30 = vadd.f32 %v14205_v63, %v14204_v22  ;;  %v1169_v26 = vadd.f32 %v1113_v0, %v1033_v9  ;;  %v14206_v41 = vrot.slane %v8291_v17, 1 }
 0x170   :  { %14202 = vst [vmem:[#allocation62_spill] sm:$0xff] %v9226_v4  ;;  %14203 = vst [vmem:[#allocation65_spill] sm:$0xff] %v9230_v57  ;;  %v2285_v49 = vmul.f32 %v8646_v11, %v14207_v18  ;;  %v1359_v4 = vrot.slane %v9206_v1, 1  ;;  %v14208_v60 = vrot.slane %v8475_v43, 1  ;;  %v14209_v58 = vrot.slane %v8637_v19, 1  ;;  %v14212_v18 = vld [vmem:[#allocation82_spill] sm:$0xff] }
 0x171   :  { %v1912_v23 = vadd.f32 %v8662_v35, %v1776_v24  ;;  %v2223_v12 = vadd.f32 %v14206_v41, %v1911_v36  ;;  %v468_v35 = vmul.f32 %v7586_v5, %v279_v32  ;;  %v14211_v24 = vrot.slane %v8310_v61, 2 }
 0x172   :  { %v2096_v6 = vsel %vm542_vm0, %v14209_v58, %v14208_v60  ;;  %v14210_v9 = vmov %v14208_v60  ;;  %v2407_v36 = vrot.slane %v2285_v49, 2  ;;  %v722_v63 = vadd.f32 %v601_v50, %v409_v7 }
 0x173   :  { %v2225_v0 = vadd.f32 %v14210_v9, %v1913_v30  ;;  %v2224_v17 = vadd.f32 %v2096_v6, %v1912_v23  ;;  %v2535_v22 = vadd.f32 %v14211_v24, %v2223_v12  ;;  %v13621_v41 = vrot.slane %v9222_v29, 2  ;;  %v9260_v6 = vld [vmem:[%s13442_s2] ss:$0 sm:$0xff]  ;;  %v294_v24 = vpop.permute.xlu1 %293 }
 0x174   :  { %v912_v21 = vsel %vm855_vm1, %v910_v39, %v911_v27  ;;  %v1481_v19 = vadd.f32 %v1359_v4, %v1169_v26  ;;  %v14213_v58 = vrot.slane %v14212_v18, 2  ;;  %v9264_v49 = vmul.f32 %v7594_v14, %v279_v32 }
 0x175   :  { %v2537_v60 = vadd.f32 %v2407_v36, %v2225_v0  ;;  %v2598_v61 = vadd.f32 %v9260_v6, %v2535_v22  ;;  %v1032_v7 = vadd.f32 %v912_v21, %v719_v25  ;;  %v1228_v23 = vmul.f32 %v7615_v34, %v279_v32 }
 0x176   :  { %v2408_v43 = vsel %vm855_vm1, %v14213_v58, %v2407_v36  ;;  %v600_v39 = vrot.slane %v468_v35, 1  ;;  %v14215_v26 = vrot.slane %v9069_v59, 5  ;;  %v14216_v9 = vrot.slane %v9202_v10, 2 }
 0x177   :  { %v2536_v27 = vadd.f32 %v2408_v43, %v2224_v17  ;;  %v2600_v18 = vadd.f32 %v9260_v6, %v2537_v60  ;;  %v9268_v30 = vmax.f32 %v2598_v61, 0.0  ;;  %v408_v36 = vmul.f32 %v7597_v15, %v279_v32 }
 0x178   :  { %v2884_v12 = vrot.slane %v14215_v26, 4  ;;  %v1035_v0 = vadd.f32 %v14216_v9, %v722_v63  ;;  %v1112_v21 = vmul.f32 %v7613_v33, %v279_v32  ;;  %v9279_v35 = vadd.f32 %v13621_v41, %v1481_v19 }
 0x179   :  { %14214 = vst [vmem:[#allocation55_spill] sm:$0xff] %v9268_v30  ;;  %v2599_v25 = vadd.f32 %v9260_v6, %v2536_v27  ;;  %v9282_v17 = vmul.f32 %v7619_v37, %v279_v32  ;;  %v9286_v22 = vcombine.high %v9268_v30, %v9268_v30  ;;  %v2885_v63 = vrot.slane %v9268_v30, 5 }
 0x17a   :  { %v1358_v43 = vrot.slane %v1228_v23, 1  ;;  %v9291_v60 = vmul.f32 %v7626_v44, %v279_v32  ;;  %v602_v19 = vsel %vm542_vm0, %v600_v39, %v601_v50  ;;  %v9296_v27 = vmax.f32 %v2600_v18, 0.0 }
 0x17b   :  { %14217 = vst [vmem:[#allocation63_spill] sm:$0xff] %v9286_v22  ;;  %v9293_v61 = vmax.f32 %v2599_v25, 0.0  ;;  %v9300_v26 = vsel %vm8220_vm4, %v2884_v12, %v2885_v63  ;;  %v9303_v9 = vmul.f32 %v7586_v5, %v294_v24  ;;  %v2887_v23 = vrot.slane %v2885_v63, 4 }
 0x17c   :  { %14218 = vst [vmem:[#allocation73_spill] sm:$0xff] %v9291_v60  ;;  %14220 = vst [vmem:[#allocation16_spill] sm:$0xff] %v9296_v27  ;;  %v2888_v41 = vrot.slane %v9286_v22, 5  ;;  %v1168_v50 = vadd.f32 %v1112_v21, %v1032_v7  ;;  %v9314_v18 = vmul.f32 %v7621_v40, %v279_v32  ;;  %v9317_v12 = vmul.f32 %v8646_v11, %v279_v32 }
 0x17d   :  { %14219 = vst [vmem:[#allocation64_spill] sm:$0xff] %v9293_v61  ;;  %14221 = vst [vmem:[#allocation82_spill] sm:$0xff] %v9300_v26  ;;  %v9307_v1 = vcombine.high %v9293_v61, %v9293_v61  ;;  %v721_v58 = vadd.f32 %v602_v19, %v408_v36  ;;  %v6475_v30 = vrot.slane %v9293_v61, 9  ;;  %v9322_v63 = vmul.f32 %v7594_v14, %v294_v24 }
 0x17e   :  { %14223 = vst [vmem:[#allocation116_spill] sm:$0xff] %v9314_v18  ;;  %14224 = vst [vmem:[#allocation117_spill] sm:$0xff] %v9317_v12  ;;  %v1360_v22 = vsel %vm542_vm0, %v1358_v43, %v1359_v4  ;;  %v1115_v21 = vmul.f32 %v7613_v33, %v294_v24  ;;  %v9328_v25 = vmul.f32 %v7615_v34, %v294_v24  ;;  %v2895_v39 = vrot.slane %v9296_v27, 5  ;;  %v14233_v43 = vld [vmem:[#allocation15_spill] sm:$0xff]  ;;  %v14235_v4 = vld [vmem:[#allocation80_spill] sm:$0xff] }
 0x17f   :  { %14222 = vst [vmem:[#allocation115_spill] sm:$0xff] %v9307_v1  ;;  %v2892_v59 = vrot.slane %v9307_v1, 5  ;;  %v9332_v32 = vsel %vm8220_vm4, %v2887_v23, %v2888_v41  ;;  %v1480_v38 = vadd.f32 %v1360_v22, %v1168_v50  ;;  %v411_v23 = vmul.f32 %v7597_v15, %v294_v24  ;;  %v14239_v18 = vld [vmem:[#allocation21_spill] sm:$0xff] }
 0x180   :  { %14225 = vst [vmem:[#allocation118_spill] sm:$0xff] %v9328_v25  ;;  %14226 = vst [vmem:[#allocation119_spill] sm:$0xff] %v9332_v32  ;;  %v1171_v7 = vadd.f32 %v1115_v21, %v1035_v0  ;;  %v9359_v50 = vmul.f32 %v7619_v37, %v294_v24  ;;  %v14232_v21 = vrot.slane %v9303_v9, 1  ;;  %v14234_v1 = vrot.slane %v14233_v43, 2  ;;  %v14242_v43 = vld [vmem:[#allocation84_spill] sm:$0xff] }
 0x181   :  { %v9336_v36 = vsel %vm8220_vm4, %v6475_v30, %v2892_v59  ;;  %v2894_v19 = vrot.slane %v2892_v59, 4  ;;  %v9351_v59 = vcombine.low %v9300_v26, %v9332_v32  ;;  %v14236_v30 = vrot.slane %v14235_v4, 2  ;;  %v14237_v32 = vld [vmem:[#allocation75_spill] sm:$0xff]  ;;  %v14238_v26 = vld [vmem:[#allocation88_spill] sm:$0xff]  ;;  %v289_v4 = vpop.permute.xlu0 %288 }
 0x182   :  { %14227 = vst [vmem:[#allocation120_spill] sm:$0xff] %v9336_v36  ;;  %14231 = vst [vmem:[#allocation124_spill] sm:$0xff] %v9359_v50  ;;  %v1915_v12 = vadd.f32 %v14238_v26, %v14237_v32  ;;  %v14240_v57 = vrot.slane %v9328_v25, 1  ;;  %v9384_v26 = vcombine.high %v9296_v27, %v9296_v27  ;;  %v2897_v32 = vrot.slane %v2895_v39, 4 }
 0x183   :  { %v9345_v41 = vsel %vm8220_vm4, %v2894_v19, %v2895_v39  ;;  %14229 = vst [vmem:[#allocation122_spill] sm:$0xff] %v9351_v59  ;;  %v724_v19 = vadd.f32 %v14232_v21, %v411_v23  ;;  %v1651_v61 = vsel %vm855_vm1, %v14236_v30, %v14234_v1  ;;  %v9377_v23 = vmul.f32 %v7621_v40, %v294_v24 }
 0x184   :  { %14228 = vst [vmem:[#allocation121_spill] sm:$0xff] %v9345_v41  ;;  %v9355_v22 = vcombine.low %v9336_v36, %v9345_v41  ;;  %v2287_v36 = vmul.f32 %v8646_v11, %v14239_v18  ;;  %v1483_v60 = vadd.f32 %v14240_v57, %v1171_v7  ;;  %v1778_v21 = vadd.f32 %v1651_v61, %v14242_v43  ;;  %v14247_v61 = vld [vmem:[#allocation89_spill] sm:$0xff] }
 0x185   :  { %14241 = vst [vmem:[#allocation15_spill] sm:$0xff] %v9377_v23  ;;  %v14244_v1 = vrot.slane %v14243_v51, 1  ;;  %14245 = vst [vmem:[#allocation80_spill] sm:$0xff] %v9384_v26  ;;  %v13644_v25 = vrot.slane %v9359_v50, 2  ;;  %v1873_v57 = vmul.f32 %v7626_v44, %v294_v24  ;;  %v9390_v7 = vmul.f32 %v8646_v11, %v294_v24  ;;  %v14253_v51 = vld [vmem:[#allocation87_spill] sm:$0xff] }
 0x186   :  { %14230 = vst [vmem:[#allocation123_spill] sm:$0xff] %v9355_v22  ;;  %v6839_v0 = vpack.i.bf16 %v9355_v22, %v9351_v59  ;;  %v2410_v46 = vrot.slane %v2287_v36, 2  ;;  %v1914_v43 = vadd.f32 %v14247_v61, %v1778_v21  ;;  %v14248_v22 = vrot.slane %v9322_v63, 2 }
 0x187   :  { %v2227_v30 = vadd.f32 %v14244_v1, %v1915_v12  ;;  %14246 = vst [vmem:[#allocation75_spill] sm:$0xff] %v9390_v7  ;;  %v14249_v36 = vmov %v14244_v1  ;;  %v14250_v1 = vld [vmem:[#allocation86_spill] sm:$0xff]  ;;  %v9403_v18 = vadd.f32 %v13644_v25, %v1483_v60  ;;  %v9406_v24 = vadd.f32 %v1873_v57, %v9279_v35 }
 0x188   :  { %6840 = vrot.lane.b32.xlu1 %v6839_v0, %s7353_s26  ;;  %v1037_v12 = vadd.f32 %v14248_v22, %v724_v19  ;;  %v14251_v27 = vrot.slane %v14250_v1, 1  ;;  %v2898_v0 = vrot.slane %v9384_v26, 5  ;;  %v470_v21 = vmul.f32 %v7586_v5, %v289_v4 }
 0x189   :  { %v2539_v59 = vadd.f32 %v2410_v46, %v2227_v30  ;;  %14252 = vst [vmem:[#allocation88_spill] sm:$0xff] %v9406_v24  ;;  %v14254_v19 = vrot.slane %v14253_v51, 2  ;;  %v14256_v35 = vrot.slane %v9202_v10, 2  ;;  %v14257_v57 = vrot.slane %v9264_v49, 2  ;;  %v304_v51 = vpop.permute.xlu1 %303 }
 0x18a   :  { %v2099_v39 = vsel %vm542_vm0, %v14251_v27, %v14249_v36  ;;  %v9416_v30 = vsel %vm8220_vm4, %v2897_v32, %v2898_v0  ;;  %v14260_v0 = vrot.slane %v9222_v29, 2  ;;  %v14261_v10 = vrot.slane %v9282_v17, 2 }
 0x18b   :  { %v2226_v61 = vadd.f32 %v2099_v39, %v1914_v43  ;;  %v2411_v1 = vsel %vm855_vm1, %v14254_v19, %v2410_v46  ;;  %v2602_v27 = vadd.f32 %v9260_v6, %v2539_v59  ;;  %14255 = vst [vmem:[#allocation84_spill] sm:$0xff] %v9416_v30  ;;  %v915_v43 = vsel %vm855_vm1, %v14257_v57, %v14256_v35 }
 0x18c   :  { %v1034_v46 = vadd.f32 %v915_v43, %v721_v58  ;;  %v783_v59 = vmul.f32 %v7594_v14, %v289_v4  ;;  %v9428_v19 = vmul.f32 %v7615_v34, %v289_v4  ;;  %v1672_v49 = vsel %vm855_vm1, %v14261_v10, %v14260_v0 }
 0x18d   :  { %v2538_v36 = vadd.f32 %v2411_v1, %v2226_v61  ;;  %v9430_v32 = vmax.f32 %v2602_v27, 0.0  ;;  %v603_v35 = vrot.slane %v470_v21, 1  ;;  %v9438_v61 = vmul.f32 %v7619_v37, %v289_v4 }
 0x18e   :  { %14258 = vst [vmem:[#allocation85_spill] sm:$0xff] %v9428_v19  ;;  %v1792_v58 = vadd.f32 %v1672_v49, %v1480_v38  ;;  %v410_v57 = vmul.f32 %v7597_v15, %v289_v4  ;;  %v1114_v43 = vmul.f32 %v7613_v33, %v289_v4  ;;  %v473_v27 = vmul.f32 %v7586_v5, %v304_v51 }
 0x18f   :  { %14259 = vst [vmem:[#allocation89_spill] sm:$0xff] %v9430_v32  ;;  %14262 = vst [vmem:[#allocation86_spill] sm:$0xff] %v9438_v61  ;;  %v2601_v1 = vadd.f32 %v9260_v6, %v2538_v36  ;;  %v1872_v39 = vmul.f32 %v7626_v44, %v289_v4  ;;  %v9449_v17 = vcombine.high %v9430_v32, %v9430_v32  ;;  %v2905_v21 = vrot.slane %v9430_v32, 5 }
 0x190   :  { %v916_v0 = vrot.slane %v783_v59, 2  ;;  %v9452_v10 = vadd.f32 %v1114_v43, %v1034_v46  ;;  %v1117_v36 = vmul.f32 %v7613_v33, %v304_v51  ;;  %v14266_v49 = vrot.slane %v9303_v9, 1  ;;  %v9467_v59 = vpop.permute.xlu0 %298 }
 0x191   :  { %v9445_v29 = vmax.f32 %v2601_v1, 0.0  ;;  %14264 = vst [vmem:[#allocation125_spill] sm:$0xff] %v9449_v17  ;;  %v9465_v22 = vmul.f32 %v7615_v34, %v304_v51  ;;  %v9469_v46 = vadd.f32 %v1872_v39, %v1792_v58  ;;  %v9472_v43 = vmul.f32 %v7621_v40, %v289_v4 }
 0x192   :  { %14265 = vst [vmem:[#allocation126_spill] sm:$0xff] %v9452_v10  ;;  %v605_v25 = vsel %vm542_vm0, %v603_v35, %v14266_v49  ;;  %v607_v38 = vrot.slane %v473_v27, 1  ;;  %v1173_v9 = vadd.f32 %v1117_v36, %v1037_v12  ;;  %v2907_v1 = vrot.slane %v2905_v21, 4 }
 0x193   :  { %14263 = vst [vmem:[#allocation87_spill] sm:$0xff] %v9445_v29  ;;  %v9462_v60 = vcombine.high %v9445_v29, %v9445_v29  ;;  %v6476_v35 = vrot.slane %v9445_v29, 9  ;;  %v2908_v41 = vrot.slane %v9449_v17, 5  ;;  %v723_v61 = vadd.f32 %v605_v25, %v410_v57 }
 0x194   :  { %v9478_v50 = vmul.f32 %v8646_v11, %v289_v4  ;;  %v413_v10 = vmul.f32 %v7597_v15, %v304_v51  ;;  %v472_v39 = vmul.f32 %v7586_v5, %v9467_v59  ;;  %v786_v27 = vmul.f32 %v7594_v14, %v304_v51 }
 0x195   :  { %14267 = vst [vmem:[#allocation127_spill] sm:$0xff] %v9462_v60  ;;  %v2902_v49 = vrot.slane %v9462_v60, 5  ;;  %v1365_v36 = vrot.slane %v9465_v22, 1  ;;  %v9491_v4 = vmul.f32 %v7619_v37, %v304_v51  ;;  %v9494_v57 = vmul.f32 %v7621_v40, %v304_v51 }
 0x196   :  { %v726_v25 = vadd.f32 %v607_v38, %v413_v10  ;;  %v9505_v22 = vmul.f32 %v8646_v11, %v304_v51  ;;  %v1232_v11 = vmul.f32 %v7615_v34, %v9467_v59  ;;  %v14276_v32 = vrot.slane %v9322_v63, 2 }
 0x197   :  { %v9485_v58 = vsel %vm8220_vm4, %v6476_v35, %v2902_v49  ;;  %v2904_v12 = vrot.slane %v2902_v49, 4  ;;  %14269 = vst [vmem:[#allocation129_spill] sm:$0xff] %v9494_v57  ;;  %v9502_v35 = vsel %vm8220_vm4, %v2907_v1, %v2908_v41  ;;  %v1485_v49 = vadd.f32 %v1365_v36, %v1173_v9  ;;  %v9521_v9 = vpop.permute.xlu1 %313 }
 0x198   :  { %14268 = vst [vmem:[#allocation128_spill] sm:$0xff] %v9485_v58  ;;  %14271 = vst [vmem:[#allocation131_spill] sm:$0xff] %v9502_v35  ;;  %v9509_v10 = vcombine.low %v9416_v30, %v9485_v58  ;;  %v920_v41 = vrot.slane %v786_v27, 2  ;;  %v1875_v1 = vmul.f32 %v7626_v44, %v304_v51  ;;  %v13663_v17 = vrot.slane %v9494_v57, 1  ;;  %v309_v58 = vpop.permute.xlu0 %308 }
 0x199   :  { %v9498_v24 = vsel %vm8220_vm4, %v2904_v12, %v2905_v21  ;;  %14272 = vst [vmem:[#allocation132_spill] sm:$0xff] %v9505_v22  ;;  %v606_v12 = vrot.slane %v472_v39, 1  ;;  %14275 = vst [vmem:[#allocation135_spill] sm:$0xff] %v9521_v9  ;;  %v918_v21 = vsel %vm855_vm1, %v916_v0, %v14276_v32  ;;  %v785_v39 = vmul.f32 %v7594_v14, %v9467_v59 }
 0x19a   :  { %14270 = vst [vmem:[#allocation130_spill] sm:$0xff] %v9498_v24  ;;  %14273 = vst [vmem:[#allocation133_spill] sm:$0xff] %v9509_v10  ;;  %v9513_v19 = vcombine.low %v9498_v24, %v9502_v35  ;;  %v13657_v35 = vrot.slane %v9491_v4, 2  ;;  %v1039_v27 = vadd.f32 %v920_v41, %v726_v25  ;;  %v1931_v51 = vadd.f32 %v1875_v1, %v9403_v18 }
 0x19b   :  { %v1036_v24 = vadd.f32 %v918_v21, %v723_v61  ;;  %v608_v32 = vsel %vm542_vm0, %v606_v12, %v607_v38  ;;  %v475_v0 = vmul.f32 %v7586_v5, %v9521_v9  ;;  %v412_v18 = vmul.f32 %v7597_v15, %v9467_v59 }
 0x19c   :  { %14274 = vst [vmem:[#allocation134_spill] sm:$0xff] %v9513_v19  ;;  %v6844_v30 = vpack.i.bf16 %v9513_v19, %v9509_v10  ;;  %v9536_v19 = vadd.f32 %v13657_v35, %v1485_v49  ;;  %v1116_v61 = vmul.f32 %v7613_v33, %v9467_v59  ;;  %v1364_v25 = vrot.slane %v1232_v11, 1 }
 0x19d   :  { %v919_v49 = vrot.slane %v785_v39, 2  ;;  %v1119_v21 = vmul.f32 %v7613_v33, %v9521_v9  ;;  %v1235_v38 = vmul.f32 %v7615_v34, %v9521_v9  ;;  %v474_v12 = vmul.f32 %v7586_v5, %v309_v58 }
 0x19e   :  { %6845 = vrot.lane.b32.xlu0 %v6844_v30, %s7353_s26  ;;  %14277 = vst [vmem:[#allocation136_spill] sm:$0xff] %v9536_v19  ;;  %v9548_v30 = vmul.f32 %v7619_v37, %v9467_v59  ;;  %v9557_v1 = vadd.f32 %v13663_v17, %v1931_v51  ;;  %v725_v63 = vadd.f32 %v608_v32, %v412_v18  ;;  %v610_v26 = vrot.slane %v475_v0, 1 }
 0x19f   :  { %v1172_v35 = vadd.f32 %v1116_v61, %v1036_v24  ;;  %v9561_v11 = vmul.f32 %v7626_v44, %v9467_v59  ;;  %v9565_v39 = vmul.f32 %v7621_v40, %v9467_v59  ;;  %v9569_v60 = vmul.f32 %v7594_v14, %v9521_v9 }
 0x1a0   :  { %14278 = vst [vmem:[#allocation137_spill] sm:$0xff] %v9557_v1  ;;  %v1175_v10 = vadd.f32 %v1119_v21, %v1039_v27  ;;  %v1366_v57 = vsel %vm542_vm0, %v1364_v25, %v1365_v36  ;;  %v415_v24 = vmul.f32 %v7597_v15, %v9521_v9  ;;  %v9577_v32 = vmul.f32 %v7619_v37, %v9521_v9  ;;  %v9586_v36 = vld [vmem:[%s13441_s1 + $0x8] ss:$0 sm:$0xff] }
 0x1a1   :  { %14279 = vst [vmem:[#allocation138_spill] sm:$0xff] %v9561_v11  ;;  %14280 = vst [vmem:[#allocation139_spill] sm:$0xff] %v9565_v39  ;;  %v1368_v18 = vrot.slane %v1235_v38, 1  ;;  %v921_v61 = vsel %vm855_vm1, %v919_v49, %v920_v41  ;;  %v609_v0 = vrot.slane %v474_v12, 1  ;;  %v1234_v17 = vmul.f32 %v7615_v34, %v309_v58 }
 0x1a2   :  { %14281 = vst [vmem:[#allocation140_spill] sm:$0xff] %v9577_v32  ;;  %v9581_v11 = vadd.f32 %v1366_v57, %v1172_v35  ;;  %v9590_v27 = vmul.f32 %v9586_v36, %v9467_v59  ;;  %v9594_v25 = vmul.f32 %v7621_v40, %v9521_v9  ;;  %v1038_v21 = vadd.f32 %v921_v61, %v725_v63  ;;  %v9601_v35 = vpop.permute.xlu1 %323 }
 0x1a3   :  { %v728_v41 = vadd.f32 %v610_v26, %v415_v24  ;;  %v1487_v38 = vadd.f32 %v1368_v18, %v1175_v10  ;;  %v9599_v57 = vmul.f32 %v7626_v44, %v9521_v9  ;;  %14285 = vst [vmem:[#allocation144_spill] sm:$0xff] %v9601_v35  ;;  %v9605_v59 = vmul.f32 %v7594_v14, %v309_v58 }
 0x1a4   :  { %14282 = vst [vmem:[#allocation141_spill] sm:$0xff] %v9590_v27  ;;  %14283 = vst [vmem:[#allocation142_spill] sm:$0xff] %v9594_v25  ;;  %v1118_v51 = vmul.f32 %v7613_v33, %v309_v58  ;;  %v9609_v27 = vmul.f32 %v7619_v37, %v309_v58  ;;  %v611_v63 = vsel %vm542_vm0, %v609_v0, %v610_v26  ;;  %v1367_v24 = vrot.slane %v1234_v17, 1 }
 0x1a5   :  { %14284 = vst [vmem:[#allocation143_spill] sm:$0xff] %v9599_v57  ;;  %v9613_v10 = vmul.f32 %v7621_v40, %v309_v58  ;;  %v9616_v61 = vmul.f32 %v9586_v36, %v309_v58  ;;  %v414_v12 = vmul.f32 %v7597_v15, %v309_v58  ;;  %v9622_v39 = vmul.f32 %v7586_v5, %v9601_v35 }
 0x1a6   :  { %14286 = vst [vmem:[#allocation145_spill] sm:$0xff] %v9609_v27  ;;  %v1174_v29 = vadd.f32 %v1118_v51, %v1038_v21  ;;  %v14289_v22 = vrot.slane %v9569_v60, 2  ;;  %v14290_v26 = vrot.slane %v9577_v32, 2  ;;  %v9631_v0 = vmul.f32 %v7626_v44, %v309_v58 }
 0x1a7   :  { %14287 = vst [vmem:[#allocation146_spill] sm:$0xff] %v9613_v10  ;;  %14288 = vst [vmem:[#allocation147_spill] sm:$0xff] %v9616_v61  ;;  %v9635_v49 = vmul.f32 %v7594_v14, %v9601_v35  ;;  %v9637_v9 = vadd.f32 %v611_v63, %v414_v12  ;;  %v13671_v51 = vrot.slane %v9622_v39, 1  ;;  %v1864_v27 = vmul.f32 %v7626_v44, %v8809_v56 }
 0x1a8   :  { %v1041_v1 = vadd.f32 %v14289_v22, %v728_v41  ;;  %v9628_v17 = vadd.f32 %v14290_v26, %v1487_v38  ;;  %14292 = vst [vmem:[#allocation149_spill] sm:$0xff] %v9631_v0  ;;  %v417_v22 = vmul.f32 %v7597_v15, %v9601_v35  ;;  %v1369_v41 = vsel %vm542_vm0, %v1367_v24, %v1368_v18 }
 0x1a9   :  { %14293 = vst [vmem:[#allocation150_spill] sm:$0xff] %v9635_v49  ;;  %v14294_v26 = vrot.slane %v8857_v2, 2  ;;  %v9651_v63 = vadd.f32 %v1369_v41, %v1174_v29  ;;  %v1865_v24 = vmul.f32 %v7626_v44, %v8775_v55  ;;  %v1981_v2 = vmul.f32 %v7621_v40, %v8775_v55 }
 0x1aa   :  { %14291 = vst [vmem:[#allocation148_spill] sm:$0xff] %v9628_v17  ;;  %v14295_v17 = vrot.slane %v8891_v62, 2  ;;  %v2106_v62 = vrot.slane %v8923_v20, 1  ;;  %v1920_v29 = vadd.f32 %v1864_v27, %v8865_v48  ;;  %v2293_v41 = vmul.f32 %v9586_v36, %v8775_v55 }
 0x1ab   :  { %14296 = vst [vmem:[#allocation151_spill] sm:$0xff] %v9651_v63  ;;  %v2107_v58 = vrot.slane %v1981_v2, 1  ;;  %v14297_v38 = vrot.slane %v8982_v45, 1  ;;  %v14298_v20 = vrot.slane %v9082_v54, 1  ;;  %v9683_v18 = vmul.f32 %v7619_v37, %v9601_v35 }
 0x1ac   :  { %v1663_v12 = vsel %vm855_vm1, %v14295_v17, %v14294_v26  ;;  %v1121_v26 = vmul.f32 %v7613_v33, %v9601_v35  ;;  %v2419_v55 = vrot.slane %v2293_v41, 2  ;;  %v14299_v2 = vrot.slane %v9010_v16, 2 }
 0x1ad   :  { %v1786_v21 = vadd.f32 %v1663_v12, %v8918_v52  ;;  %v2292_v52 = vmul.f32 %v9586_v36, %v8809_v56  ;;  %v1921_v12 = vadd.f32 %v1865_v24, %v8767_v3  ;;  %v2111_v48 = vsel %vm542_vm0, %v14298_v20, %v14297_v38  ;;  %v319_v56 = vpop.permute.xlu0 %318 }
 0x1ae   :  { %v2108_v3 = vsel %vm542_vm0, %v2106_v62, %v2107_v58  ;;  %v14300_v54 = vrot.slane %v9142_v8, 2  ;;  %v730_v20 = vadd.f32 %v13671_v51, %v417_v22 }
 0x1af   :  { %v1922_v17 = vadd.f32 %v9061_v13, %v1786_v21  ;;  %v9679_v13 = vmul.f32 %v7615_v34, %v9601_v35  ;;  %v2418_v21 = vrot.slane %v2292_v52, 2  ;;  %v2233_v24 = vadd.f32 %v2107_v58, %v1921_v12 }
 0x1b0   :  { %v2423_v38 = vsel %vm855_vm1, %v14300_v54, %v14299_v2  ;;  %v2232_v52 = vadd.f32 %v2108_v3, %v1920_v29  ;;  %v476_v58 = vmul.f32 %v7586_v5, %v319_v56  ;;  %v1177_v12 = vadd.f32 %v1121_v26, %v1041_v1 }
 0x1b1   :  { %v2234_v27 = vadd.f32 %v2111_v48, %v1922_v17  ;;  %v9695_v17 = vmul.f32 %v7621_v40, %v9601_v35  ;;  %v9699_v48 = vmul.f32 %v7626_v44, %v9601_v35  ;;  %v2420_v62 = vsel %vm855_vm1, %v2418_v21, %v2419_v55  ;;  %v9746_v21 = vpop.permute.xlu0 %328 }
 0x1b2   :  { %v2545_v8 = vadd.f32 %v2419_v55, %v2233_v24  ;;  %v9704_v2 = vmul.f32 %v7594_v14, %v319_v56  ;;  %v2544_v22 = vadd.f32 %v2420_v62, %v2232_v52  ;;  %v13673_v51 = vrot.slane %v9679_v13, 1  ;;  %v9717_v55 = vpop.permute.xlu1 %333 }
 0x1b3   :  { %14301 = vst [vmem:[#allocation152_spill] sm:$0xff] %v9695_v17  ;;  %v2546_v41 = vadd.f32 %v2423_v38, %v2234_v27  ;;  %14302 = vst [vmem:[#allocation153_spill] sm:$0xff] %v9699_v48  ;;  %v416_v27 = vmul.f32 %v7597_v15, %v319_v56  ;;  %v14304_v38 = vrot.slane %v9635_v49, 2  ;;  %v612_v24 = vrot.slane %v476_v58, 1 }
 0x1b4   :  { %14303 = vst [vmem:[#allocation154_spill] sm:$0xff] %v9704_v2  ;;  %v2608_v3 = vadd.f32 %v9260_v6, %v2545_v8  ;;  %v2607_v1 = vadd.f32 %v9260_v6, %v2544_v22  ;;  %v9720_v52 = vmul.f32 %v7613_v33, %v319_v56  ;;  %v9737_v58 = vmul.f32 %v7619_v37, %v319_v56 }
 0x1b5   :  { %v2609_v54 = vadd.f32 %v9260_v6, %v2546_v41  ;;  %v1043_v35 = vadd.f32 %v14304_v38, %v730_v20  ;;  %v9723_v41 = vmul.f32 %v7615_v34, %v319_v56  ;;  %v1489_v20 = vadd.f32 %v13673_v51, %v1177_v12 }
 0x1b6   :  { %v9725_v62 = vmax.f32 %v2608_v3, 0.0  ;;  %v9730_v38 = vmax.f32 %v2607_v1, 0.0  ;;  %v479_v12 = vmul.f32 %v7586_v5, %v9717_v55  ;;  %v9749_v1 = vmul.f32 %v7626_v44, %v319_v56  ;;  %v9809_v19 = vpop.permute.xlu1 %343 }
 0x1b7   :  { %v9715_v26 = vmax.f32 %v2609_v54, 0.0  ;;  %14306 = vst [vmem:[#allocation156_spill] sm:$0xff] %v9723_v41  ;;  %v14313_v2 = vrot.slane %v9622_v39, 1  ;;  %v1123_v63 = vmul.f32 %v7613_v33, %v9717_v55  ;;  %v478_v39 = vmul.f32 %v7586_v5, %v9746_v21  ;;  %14321 = vst [vmem:[#allocation169_spill] sm:$0xff] %v9809_v19 }
 0x1b8   :  { %14307 = vst [vmem:[#allocation157_spill] sm:$0xff] %v9725_v62  ;;  %14308 = vst [vmem:[#allocation158_spill] sm:$0xff] %v9730_v38  ;;  %v9741_v54 = vcombine.high %v9725_v62, %v9725_v62  ;;  %v2915_v3 = vrot.slane %v9725_v62, 5  ;;  %v9753_v8 = vcombine.high %v9730_v38, %v9730_v38  ;;  %v6477_v32 = vrot.slane %v9730_v38, 9 }
 0x1b9   :  { %14305 = vst [vmem:[#allocation155_spill] sm:$0xff] %v9715_v26  ;;  %v9734_v22 = vcombine.high %v9715_v26, %v9715_v26  ;;  %14311 = vst [vmem:[#allocation161_spill] sm:$0xff] %v9749_v1  ;;  %v6478_v51 = vrot.slane %v9715_v26, 9  ;;  %v614_v62 = vsel %vm542_vm0, %v612_v24, %v14313_v2  ;;  %v9772_v26 = vmul.f32 %v7615_v34, %v9717_v55 }
 0x1ba   :  { %14310 = vst [vmem:[#allocation160_spill] sm:$0xff] %v9741_v54  ;;  %14312 = vst [vmem:[#allocation162_spill] sm:$0xff] %v9753_v8  ;;  %v2917_v49 = vrot.slane %v2915_v3, 4  ;;  %v2918_v17 = vrot.slane %v9741_v54, 5  ;;  %v2912_v1 = vrot.slane %v9753_v8, 5  ;;  %v9778_v24 = vmul.f32 %v7621_v40, %v319_v56 }
 0x1bb   :  { %14309 = vst [vmem:[#allocation159_spill] sm:$0xff] %v9734_v22  ;;  %v13686_v29 = vrot.slane %v9734_v22, 5  ;;  %14315 = vst [vmem:[#allocation164_spill] sm:$0xff] %v9772_v26  ;;  %v9781_v54 = vmul.f32 %v9586_v36, %v319_v56  ;;  %v616_v8 = vrot.slane %v479_v12, 1  ;;  %v1179_v61 = vadd.f32 %v1123_v63, %v1043_v35 }
 0x1bc   :  { %v419_v25 = vmul.f32 %v7597_v15, %v9717_v55  ;;  %v9791_v2 = vmul.f32 %v7594_v14, %v9717_v55  ;;  %v9795_v56 = vmul.f32 %v7619_v37, %v9717_v55  ;;  %v2913_v12 = vsel %vm8220_vm4, %v6477_v32, %v2912_v1 }
 0x1bd   :  { %v9768_v48 = vsel %vm8220_vm4, %v6478_v51, %v13686_v29  ;;  %v2914_v51 = vrot.slane %v2912_v1, 4  ;;  %v2919_v29 = vsel %vm8220_vm4, %v2917_v49, %v2918_v17  ;;  %v13694_v35 = vrot.slane %v9772_v26, 1 }
 0x1be   :  { %14314 = vst [vmem:[#allocation163_spill] sm:$0xff] %v9768_v48  ;;  %v3460_v10 = vcombine.low %v2919_v29, %v9768_v48  ;;  %14316 = vst [vmem:[#allocation165_spill] sm:$0xff] %v9791_v2  ;;  %v615_v63 = vrot.slane %v478_v39, 1  ;;  %v14318_v17 = vrot.slane %v9683_v18, 2  ;;  %v9806_v38 = vadd.f32 %v614_v62, %v416_v27  ;;  %v14364_v48 = vld [vmem:[#allocation111_spill] sm:$0xff] }
 0x1bf   :  { %14317 = vst [vmem:[#allocation166_spill] sm:$0xff] %v9795_v56  ;;  %v2916_v49 = vsel %vm8220_vm4, %v2914_v51, %v2915_v3  ;;  %v732_v1 = vadd.f32 %v616_v8, %v419_v25  ;;  %v1491_v3 = vadd.f32 %v13694_v35, %v1179_v61  ;;  %v13695_v51 = vrot.slane %v9791_v2, 2 }
 0x1c0   :  { %v9804_v29 = vadd.f32 %v14318_v17, %v1489_v20  ;;  %14320 = vst [vmem:[#allocation168_spill] sm:$0xff] %v9806_v38  ;;  %v3459_v57 = vcombine.low %v2913_v12, %v2916_v49  ;;  %v9818_v27 = vmul.f32 %v7626_v44, %v9717_v55  ;;  %v9822_v62 = vmul.f32 %v7594_v14, %v9746_v21 }
 0x1c1   :  { %v13696_v20 = vrot.slane %v9795_v56, 2  ;;  %v418_v12 = vmul.f32 %v7597_v15, %v9746_v21  ;;  %v617_v25 = vsel %vm542_vm0, %v615_v63, %v616_v8  ;;  %v14325_v61 = vrot.slane %v8955_v53, 2  ;;  %v14327_v8 = vld [vmem:[#allocation48_spill] sm:$0xff]  ;;  %v14328_v63 = vld [vmem:[#allocation110_spill] sm:$0xff] }
 0x1c2   :  { %14319 = vst [vmem:[#allocation167_spill] sm:$0xff] %v9804_v29  ;;  %v6849_v39 = vpack.i.bf16 %v3460_v10, %v3459_v57  ;;  %14322 = vst [vmem:[#allocation170_spill] sm:$0xff] %v9818_v27  ;;  %v9830_v57 = vmul.f32 %v7586_v5, %v9809_v19  ;;  %v9835_v10 = vmul.f32 %v7615_v34, %v9746_v21  ;;  %v14326_v49 = vrot.slane %v9032_v28, 2  ;;  %v14331_v28 = vld [vmem:[#allocation105_spill] sm:$0xff] }
 0x1c3   :  { %14323 = vst [vmem:[#allocation171_spill] sm:$0xff] %v9822_v62  ;;  %v1923_v35 = vadd.f32 %v8976_v42, %v8904_v31  ;;  %v1925_v32 = vadd.f32 %v14328_v63, %v14327_v8  ;;  %v1045_v41 = vadd.f32 %v13695_v51, %v732_v1  ;;  %v9854_v53 = vmul.f32 %v7613_v33, %v9746_v21  ;;  %v14335_v8 = vld [vmem:[#allocation113_spill] sm:$0xff]  ;;  %v14336_v51 = vld [vmem:[#allocation106_spill] sm:$0xff] }
 0x1c4   :  { %6850 = vrot.lane.b32.xlu1 %v6849_v39, %s7353_s26  ;;  %14324 = vst [vmem:[#allocation172_spill] sm:$0xff] %v9835_v10  ;;  %v1666_v17 = vsel %vm855_vm1, %v14326_v49, %v14325_v61  ;;  %v9850_v39 = vadd.f32 %v13696_v20, %v1491_v3  ;;  %v9857_v61 = vadd.f32 %v617_v25, %v418_v12  ;;  %v14334_v1 = vrot.slane %v8982_v45, 1  ;;  %v14340_v31 = vld [vmem:[#allocation109_spill] sm:$0xff] }
 0x1c5   :  { %14330 = vst [vmem:[#allocation110_spill] sm:$0xff] %v9854_v53  ;;  %v1788_v0 = vadd.f32 %v1666_v17, %v14331_v28  ;;  %v9862_v42 = vmul.f32 %v7619_v37, %v9746_v21  ;;  %v13700_v3 = vrot.slane %v9830_v57, 1  ;;  %v14337_v20 = vrot.slane %v14336_v51, 1 }
 0x1c6   :  { %14329 = vst [vmem:[#allocation48_spill] sm:$0xff] %v9850_v39  ;;  %14332 = vst [vmem:[#allocation105_spill] sm:$0xff] %v9857_v61  ;;  %v2235_v49 = vadd.f32 %v14334_v1, %v1923_v35  ;;  %v14338_v39 = vld [vmem:[#allocation56_spill] sm:$0xff]  ;;  %v421_v17 = vmul.f32 %v7597_v15, %v9809_v19  ;;  %v14341_v45 = vrot.slane %v14340_v31, 1  ;;  %v14342_v1 = vrot.slane %v9010_v16, 2 }
 0x1c7   :  { %14333 = vst [vmem:[#allocation173_spill] sm:$0xff] %v9862_v42  ;;  %v1924_v63 = vadd.f32 %v14335_v8, %v1788_v0  ;;  %v2237_v2 = vadd.f32 %v14337_v20, %v1925_v32  ;;  %v2297_v12 = vmul.f32 %v9586_v36, %v14338_v39  ;;  %v14339_v28 = vmov %v14337_v20  ;;  %v9890_v39 = vpop.permute.xlu0 %338 }
 0x1c8   :  { %v2114_v35 = vsel %vm542_vm0, %v14341_v45, %v14339_v28  ;;  %v2547_v0 = vadd.f32 %v14342_v1, %v2235_v49  ;;  %v9884_v32 = vmul.f32 %v7594_v14, %v9809_v19  ;;  %v9888_v20 = vmul.f32 %v7615_v34, %v9809_v19  ;;  %14344 = vst [vmem:[#allocation106_spill] sm:$0xff] %v9890_v39 }
 0x1c9   :  { %v2236_v8 = vadd.f32 %v2114_v35, %v1924_v63  ;;  %v2425_v25 = vrot.slane %v2297_v12, 2  ;;  %v1125_v31 = vmul.f32 %v7613_v33, %v9809_v19  ;;  %v9897_v16 = vmul.f32 %v7619_v37, %v9809_v19  ;;  %v14347_v63 = vld [vmem:[#allocation112_spill] sm:$0xff] }
 0x1ca   :  { %14343 = vst [vmem:[#allocation113_spill] sm:$0xff] %v9888_v20  ;;  %v2610_v49 = vadd.f32 %v9260_v6, %v2547_v0  ;;  %v734_v28 = vadd.f32 %v13700_v3, %v421_v17  ;;  %v9904_v45 = vmul.f32 %v7626_v44, %v9809_v19  ;;  %v14348_v12 = vrot.slane %v14347_v63, 2 }
 0x1cb   :  { %14345 = vst [vmem:[#allocation56_spill] sm:$0xff] %v9897_v16  ;;  %v2549_v1 = vadd.f32 %v2425_v25, %v2237_v2  ;;  %v420_v51 = vmul.f32 %v7597_v15, %v9890_v39  ;;  %v14350_v0 = vrot.slane %v9734_v22, 5  ;;  %v13702_v17 = vrot.slane %v9884_v32, 2 }
 0x1cc   :  { %14346 = vst [vmem:[#allocation109_spill] sm:$0xff] %v9904_v45  ;;  %v2426_v35 = vsel %vm855_vm1, %v14348_v12, %v2425_v25  ;;  %v9911_v62 = vmax.f32 %v2610_v49, 0.0  ;;  %v1181_v3 = vadd.f32 %v1125_v31, %v1045_v41  ;;  %v480_v41 = vmul.f32 %v7586_v5, %v9890_v39 }
 0x1cd   :  { %v2548_v61 = vadd.f32 %v2426_v35, %v2236_v8  ;;  %v2924_v42 = vrot.slane %v14350_v0, 4  ;;  %v2612_v45 = vadd.f32 %v9260_v6, %v2549_v1  ;;  %v9927_v49 = vadd.f32 %v13702_v17, %v734_v28 }
 0x1ce   :  { %14349 = vst [vmem:[#allocation112_spill] sm:$0xff] %v9911_v62  ;;  %v9922_v25 = vcombine.high %v9911_v62, %v9911_v62  ;;  %v2925_v8 = vrot.slane %v9911_v62, 5  ;;  %v9933_v31 = vmul.f32 %v7594_v14, %v9890_v39  ;;  %v14358_v62 = vld [vmem:[#allocation108_spill] sm:$0xff]  ;;  %v618_v63 = vrot.slane %v480_v41, 1  ;;  %v14370_v41 = vld [vmem:[#allocation65_spill] sm:$0xff] }
 0x1cf   :  { %v2611_v2 = vadd.f32 %v9260_v6, %v2548_v61  ;;  %v9935_v12 = vmax.f32 %v2612_v45, 0.0  ;;  %v9939_v61 = vmul.f32 %v7613_v33, %v9890_v39  ;;  %v14356_v45 = vld [vmem:[#allocation103_spill] sm:$0xff]  ;;  %v14359_v22 = vrot.slane %v14358_v62, 2  ;;  %v14365_v62 = vld [vmem:[#allocation62_spill] sm:$0xff] }
 0x1d0   :  { %14351 = vst [vmem:[#allocation174_spill] sm:$0xff] %v9922_v25  ;;  %v9945_v1 = vsel %vm8220_vm4, %v2924_v42, %v2925_v8  ;;  %v2927_v28 = vrot.slane %v2925_v8, 4  ;;  %v2928_v0 = vrot.slane %v9922_v25, 5  ;;  %v14357_v56 = vrot.slane %v14356_v45, 2  ;;  %v14363_v25 = vld [vmem:[#allocation114_spill] sm:$0xff] }
 0x1d1   :  { %14352 = vst [vmem:[#allocation175_spill] sm:$0xff] %v9935_v12  ;;  %14353 = vst [vmem:[#allocation176_spill] sm:$0xff] %v9939_v61  ;;  %v9941_v35 = vmax.f32 %v2611_v2, 0.0  ;;  %v2935_v17 = vrot.slane %v9935_v12, 5  ;;  %v14360_v2 = vrot.slane %v9888_v20, 1  ;;  %v9960_v42 = vmul.f32 %v7615_v34, %v9890_v39 }
 0x1d2   :  { %14355 = vst [vmem:[#allocation178_spill] sm:$0xff] %v9945_v1  ;;  %v1669_v61 = vsel %vm855_vm1, %v14359_v22, %v14357_v56  ;;  %v1927_v53 = vadd.f32 %v14365_v62, %v14364_v48  ;;  %v14366_v22 = vld [vmem:[#allocation107_spill] sm:$0xff]  ;;  %v9976_v19 = vcombine.high %v9935_v12, %v9935_v12 }
 0x1d3   :  { %14354 = vst [vmem:[#allocation177_spill] sm:$0xff] %v9941_v35  ;;  %v1493_v10 = vadd.f32 %v14360_v2, %v1181_v3  ;;  %14361 = vst [vmem:[#allocation103_spill] sm:$0xff] %v9960_v42  ;;  %v9964_v8 = vcombine.high %v9941_v35, %v9941_v35  ;;  %v1790_v26 = vadd.f32 %v1669_v61, %v14363_v25  ;;  %v6479_v45 = vrot.slane %v9941_v35, 9  ;;  %v14367_v2 = vld [vmem:[#allocation73_spill] sm:$0xff]  ;;  %v14372_v35 = vld [vmem:[#allocation116_spill] sm:$0xff] }
 0x1d4   :  { %v2299_v56 = vmul.f32 %v9586_v36, %v14366_v22  ;;  %14368 = vst [vmem:[#allocation114_spill] sm:$0xff] %v9976_v19  ;;  %v2937_v38 = vrot.slane %v2935_v17, 4  ;;  %v9980_v25 = vsel %vm8220_vm4, %v2927_v28, %v2928_v0  ;;  %v14371_v61 = vrot.slane %v14370_v41, 1  ;;  %v14377_v0 = vld [vmem:[#allocation117_spill] sm:$0xff] }
 0x1d5   :  { %14362 = vst [vmem:[#allocation108_spill] sm:$0xff] %v9964_v8  ;;  %v2932_v3 = vrot.slane %v9964_v8, 5  ;;  %v1926_v20 = vadd.f32 %v14367_v2, %v1790_v26  ;;  %14369 = vst [vmem:[#allocation111_spill] sm:$0xff] %v9980_v25  ;;  %v14373_v48 = vrot.slane %v14372_v35, 1  ;;  %v2938_v29 = vrot.slane %v9976_v19, 5  ;;  %v14395_v35 = vld [vmem:[#allocation4_spill] sm:$0xff] }
 0x1d6   :  { %v14374_v22 = vmov %v14371_v61  ;;  %v2428_v27 = vrot.slane %v2299_v56, 2  ;;  %v9996_v28 = vmul.f32 %v7619_v37, %v9890_v39  ;;  %v14379_v41 = vrot.slane %v9830_v57, 1 }
 0x1d7   :  { %v2117_v62 = vsel %vm542_vm0, %v14373_v48, %v14371_v61  ;;  %v2239_v8 = vadd.f32 %v14374_v22, %v1927_v53  ;;  %v9991_v26 = vsel %vm8220_vm4, %v6479_v45, %v2932_v3  ;;  %v2934_v2 = vrot.slane %v2932_v3, 4 }
 0x1d8   :  { %14375 = vst [vmem:[#allocation62_spill] sm:$0xff] %v9991_v26  ;;  %v2238_v12 = vadd.f32 %v2117_v62, %v1926_v20  ;;  %14376 = vst [vmem:[#allocation107_spill] sm:$0xff] %v9996_v28  ;;  %v14378_v61 = vrot.slane %v14377_v0, 2  ;;  %v620_v45 = vsel %vm542_vm0, %v618_v63, %v14379_v41  ;;  %v10012_v48 = vsel %vm8220_vm4, %v2937_v38, %v2938_v29 }
 0x1d9   :  { %v2551_v56 = vadd.f32 %v2428_v27, %v2239_v8  ;;  %v10008_v20 = vsel %vm8220_vm4, %v2934_v2, %v2935_v17  ;;  %14381 = vst [vmem:[#allocation65_spill] sm:$0xff] %v10012_v48  ;;  %v3461_v62 = vcombine.low %v9945_v1, %v9980_v25  ;;  %v14384_v63 = vrot.slane %v9897_v16, 2 }
 0x1da   :  { %v2429_v53 = vsel %vm855_vm1, %v14378_v61, %v2428_v27  ;;  %14380 = vst [vmem:[#allocation73_spill] sm:$0xff] %v10008_v20  ;;  %v10018_v22 = vcombine.low %v9991_v26, %v10008_v20  ;;  %v10020_v27 = vpop.permute.xlu1 %353  ;;  %v931_v38 = vrot.slane %v9933_v31, 2  ;;  %v733_v2 = vadd.f32 %v620_v45, %v420_v51  ;;  %v10076_v26 = vpop.permute.xlu0 %348 }
 0x1db   :  { %v2550_v3 = vadd.f32 %v2429_v53, %v2238_v12  ;;  %14383 = vst [vmem:[#allocation117_spill] sm:$0xff] %v10020_v27  ;;  %v2614_v57 = vadd.f32 %v9260_v6, %v2551_v56  ;;  %v10027_v12 = vadd.f32 %v14384_v63, %v1493_v10  ;;  %v10038_v56 = vmul.f32 %v7586_v5, %v10020_v27 }
 0x1dc   :  { %14382 = vst [vmem:[#allocation116_spill] sm:$0xff] %v10018_v22  ;;  %v6854_v61 = vpack.i.bf16 %v10018_v22, %v3461_v62  ;;  %v1127_v10 = vmul.f32 %v7613_v33, %v10020_v27  ;;  %v10044_v31 = vmul.f32 %v7615_v34, %v10020_v27  ;;  %v10051_v51 = vmul.f32 %v7619_v37, %v10020_v27 }
 0x1dd   :  { %14385 = vst [vmem:[#allocation179_spill] sm:$0xff] %v10027_v12  ;;  %v2613_v8 = vadd.f32 %v9260_v6, %v2550_v3  ;;  %v10034_v53 = vmax.f32 %v2614_v57, 0.0  ;;  %v14391_v62 = vrot.slane %v9377_v23, 1  ;;  %v14392_v57 = vrot.slane %v9472_v43, 1  ;;  %14397 = vst [vmem:[#allocation4_spill] sm:$0xff] %v10076_v26 }
 0x1de   :  { %14387 = vst [vmem:[#allocation181_spill] sm:$0xff] %v10044_v31  ;;  %6855 = vrot.lane.b32.xlu0 %v6854_v61, %s7353_s26  ;;  %14389 = vst [vmem:[#allocation183_spill] sm:$0xff] %v10051_v51  ;;  %v14394_v61 = vld [vmem:[#allocation71_spill] sm:$0xff]  ;;  %v580_v0 = vrot.slane %v14395_v35, 1  ;;  %v10074_v20 = vmul.f32 %v7626_v44, %v10020_v27  ;;  %v10082_v23 = vpop.permute.xlu1 %363  ;;  %v13735_v19 = vrot.slane %v10044_v31, 1  ;;  %v14398_v22 = vrot.slane %v9884_v32, 2 }
 0x1df   :  { %14386 = vst [vmem:[#allocation180_spill] sm:$0xff] %v10034_v53  ;;  %v10046_v41 = vmax.f32 %v2613_v8, 0.0  ;;  %v10055_v45 = vcombine.high %v10034_v53, %v10034_v53  ;;  %v2945_v3 = vrot.slane %v10034_v53, 5  ;;  %v2120_v63 = vsel %vm542_vm0, %v14392_v57, %v14391_v62 }
 0x1e0   :  { %v395_v17 = vmul.f32 %v7597_v15, %v14394_v61  ;;  %v768_v29 = vmul.f32 %v7594_v14, %v14394_v61  ;;  %14396 = vst [vmem:[#allocation71_spill] sm:$0xff] %v10074_v20  ;;  %v2240_v57 = vadd.f32 %v2120_v63, %v9469_v46  ;;  %v1183_v61 = vadd.f32 %v1127_v10, %v9927_v49 }
 0x1e1   :  { %14388 = vst [vmem:[#allocation182_spill] sm:$0xff] %v10046_v41  ;;  %14390 = vst [vmem:[#allocation184_spill] sm:$0xff] %v10055_v45  ;;  %v10065_v8 = vcombine.high %v10046_v41, %v10046_v41  ;;  %v6480_v43 = vrot.slane %v10046_v41, 9  ;;  %v2947_v62 = vrot.slane %v2945_v3, 4  ;;  %v2948_v1 = vrot.slane %v10055_v45, 5  ;;  %v14399_v41 = vld [vmem:[#allocation21_spill] sm:$0xff] }
 0x1e2   :  { %v708_v35 = vadd.f32 %v580_v0, %v395_v17  ;;  %v893_v53 = vrot.slane %v768_v29, 2  ;;  %v933_v28 = vsel %vm855_vm1, %v931_v38, %v14398_v22  ;;  %v1101_v16 = vmul.f32 %v7613_v33, %v14399_v41 }
 0x1e3   :  { %14393 = vst [vmem:[#allocation185_spill] sm:$0xff] %v10065_v8  ;;  %v2942_v25 = vrot.slane %v10065_v8, 5  ;;  %v1217_v17 = vmul.f32 %v7615_v34, %v14399_v41  ;;  %v1046_v29 = vadd.f32 %v933_v28, %v733_v2  ;;  %v10100_v32 = vmul.f32 %v7586_v5, %v10076_v26 }
 0x1e4   :  { %v1021_v45 = vadd.f32 %v893_v53, %v708_v35  ;;  %v14401_v22 = vrot.slane %v9390_v7, 2  ;;  %v14402_v38 = vrot.slane %v9478_v50, 2  ;;  %v10142_v50 = vmul.f32 %v7594_v14, %v10076_v26  ;;  %v14413_v7 = vld [vmem:[#allocation32_spill] sm:$0xff] }
 0x1e5   :  { %v10093_v46 = vsel %vm8220_vm4, %v6480_v43, %v2942_v25  ;;  %v2944_v63 = vrot.slane %v2942_v25, 4  ;;  %v10113_v43 = vsel %vm8220_vm4, %v2947_v62, %v2948_v1  ;;  %v10131_v1 = vadd.f32 %v13735_v19, %v1183_v61  ;;  %v14408_v62 = vld [vmem:[#allocation18_spill] sm:$0xff] }
 0x1e6   :  { %14400 = vst [vmem:[#allocation21_spill] sm:$0xff] %v10093_v46  ;;  %v2432_v10 = vsel %vm855_vm1, %v14402_v38, %v14401_v22  ;;  %14404 = vst [vmem:[#allocation187_spill] sm:$0xff] %v10113_v43  ;;  %v1157_v28 = vadd.f32 %v1101_v16, %v1021_v45  ;;  %v10117_v2 = vcombine.low %v10012_v48, %v10093_v46  ;;  %v10125_v22 = vpop.permute.xlu0 %358  ;;  %v1341_v16 = vrot.slane %v1217_v17, 1  ;;  %v10133_v45 = vpop.permute.xlu1 %1059 }
 0x1e7   :  { %v10109_v25 = vsel %vm8220_vm4, %v2944_v63, %v2945_v3  ;;  %v2552_v35 = vadd.f32 %v2432_v10, %v2240_v57  ;;  %v1529_v3 = vmul.f32 %v7619_v37, %v14399_v41  ;;  %14407 = vst [vmem:[#allocation190_spill] sm:$0xff] %v10131_v1  ;;  %v394_v57 = vmul.f32 %v7597_v15, %v14408_v62  ;;  %v14409_v63 = vld [vmem:[#allocation35_spill] sm:$0xff] }
 0x1e8   :  { %14403 = vst [vmem:[#allocation186_spill] sm:$0xff] %v10109_v25  ;;  %14405 = vst [vmem:[#allocation188_spill] sm:$0xff] %v10117_v2  ;;  %v10121_v49 = vcombine.low %v10109_v25, %v10113_v43  ;;  %v14410_v38 = vrot.slane %v14409_v63, 1  ;;  %v1126_v43 = vmul.f32 %v7613_v33, %v10076_v26  ;;  %v10148_v61 = vmul.f32 %v7615_v34, %v10076_v26  ;;  %v14412_v25 = vld [vmem:[#allocation31_spill] sm:$0xff] }
 0x1e9   :  { %v2615_v62 = vadd.f32 %v9260_v6, %v2552_v35  ;;  %v1469_v19 = vadd.f32 %v1341_v16, %v1157_v28  ;;  %v1861_v46 = vmul.f32 %v7626_v44, %v10133_v45  ;;  %v1977_v48 = vmul.f32 %v7621_v40, %v10133_v45 }
 0x1ea   :  { %14406 = vst [vmem:[#allocation189_spill] sm:$0xff] %v10121_v49  ;;  %v581_v10 = vsel %vm542_vm0, %v14410_v38, %v580_v0  ;;  %14411 = vst [vmem:[#allocation18_spill] sm:$0xff] %v10148_v61  ;;  %v6859_v17 = vpack.i.bf16 %v10121_v49, %v10117_v2  ;;  %v1216_v0 = vmul.f32 %v7615_v34, %v14412_v25  ;;  %v1653_v38 = vrot.slane %v1529_v3, 2  ;;  %v10232_v61 = vpop.permute.xlu1 %1069 }
 0x1eb   :  { %v707_v63 = vadd.f32 %v581_v10, %v394_v57  ;;  %v14414_v8 = vrot.slane %v14413_v7, 2  ;;  %v1100_v6 = vmul.f32 %v7613_v33, %v14412_v25  ;;  %v1528_v28 = vmul.f32 %v7619_v37, %v14412_v25  ;;  %v1055_v7 = vpop.permute.xlu0 %1054 }
 0x1ec   :  { %6860 = vrot.lane.b32.xlu1 %v6859_v17, %s7353_s26  ;;  %v1340_v35 = vrot.slane %v1216_v0, 1  ;;  %v621_v3 = vrot.slane %v10100_v32, 1  ;;  %v10169_v10 = vadd.f32 %v1126_v43, %v1046_v29  ;;  %v10173_v17 = vmul.f32 %v7619_v37, %v10076_v26 }
 0x1ed   :  { %v894_v49 = vsel %vm855_vm1, %v14414_v8, %v893_v53  ;;  %v10176_v8 = vmax.f32 %v2615_v62, 0.0  ;;  %v2101_v0 = vrot.slane %v1977_v48, 1  ;;  %v423_v1 = vmul.f32 %v7597_v15, %v10020_v27 }
 0x1ee   :  { %v1020_v2 = vadd.f32 %v894_v49, %v707_v63  ;;  %14415 = vst [vmem:[#allocation35_spill] sm:$0xff] %v10169_v10  ;;  %14416 = vst [vmem:[#allocation31_spill] sm:$0xff] %v10173_v17  ;;  %v1781_v49 = vadd.f32 %v1653_v38, %v1469_v19  ;;  %v622_v32 = vrot.slane %v10038_v56, 1  ;;  %v10183_v29 = vmul.f32 %v7594_v14, %v10020_v27  ;;  %v14438_v27 = vld [vmem:[#allocation136_spill] sm:$0xff] }
 0x1ef   :  { %14417 = vst [vmem:[#allocation32_spill] sm:$0xff] %v10176_v8  ;;  %v1342_v57 = vsel %vm542_vm0, %v1340_v35, %v1341_v16  ;;  %v1652_v51 = vrot.slane %v1528_v28, 2  ;;  %v1976_v53 = vmul.f32 %v7621_v40, %v1055_v7  ;;  %v10195_v56 = vmul.f32 %v7626_v44, %v10082_v23 }
 0x1f0   :  { %v1156_v63 = vadd.f32 %v1100_v6, %v1020_v2  ;;  %v1917_v43 = vadd.f32 %v1861_v46, %v1781_v49  ;;  %v736_v2 = vadd.f32 %v622_v32, %v423_v1  ;;  %v935_v48 = vrot.slane %v10183_v29, 2 }
 0x1f1   :  { %v10191_v6 = vcombine.high %v10176_v8, %v10176_v8  ;;  %14419 = vst [vmem:[#allocation192_spill] sm:$0xff] %v10195_v56  ;;  %v10199_v46 = vmul.f32 %v7621_v40, %v10082_v23  ;;  %v2289_v16 = vmul.f32 %v9586_v36, %v10133_v45  ;;  %v10205_v1 = vmul.f32 %v9586_v36, %v10082_v23 }
 0x1f2   :  { %v1468_v19 = vadd.f32 %v1342_v57, %v1156_v63  ;;  %v10209_v35 = vmul.f32 %v7621_v40, %v10125_v22  ;;  %v1860_v28 = vmul.f32 %v7626_v44, %v1055_v7  ;;  %v1049_v57 = vadd.f32 %v935_v48, %v736_v2 }
 0x1f3   :  { %14418 = vst [vmem:[#allocation191_spill] sm:$0xff] %v10191_v6  ;;  %14420 = vst [vmem:[#allocation193_spill] sm:$0xff] %v10199_v46  ;;  %v2229_v49 = vadd.f32 %v2101_v0, %v1917_v43  ;;  %v1654_v63 = vsel %vm855_vm1, %v1652_v51, %v1653_v38  ;;  %v2100_v29 = vrot.slane %v1976_v53, 1  ;;  %v2288_v62 = vmul.f32 %v9586_v36, %v1055_v7 }
 0x1f4   :  { %14421 = vst [vmem:[#allocation194_spill] sm:$0xff] %v10205_v1  ;;  %14422 = vst [vmem:[#allocation195_spill] sm:$0xff] %v10209_v35  ;;  %v10216_v56 = vmul.f32 %v7626_v44, %v10125_v22  ;;  %v1780_v17 = vadd.f32 %v1654_v63, %v1468_v19  ;;  %v1129_v1 = vmul.f32 %v7613_v33, %v10082_v23  ;;  %v2413_v38 = vrot.slane %v2289_v16, 2 }
 0x1f5   :  { %v10222_v10 = vmul.f32 %v7615_v34, %v10082_v23  ;;  %v10228_v51 = vmul.f32 %v9586_v36, %v10125_v22  ;;  %v6481_v53 = vrot.slane %v10176_v8, 9  ;;  %v10235_v42 = vmul.f32 %v7615_v34, %v1055_v7 }
 0x1f6   :  { %14423 = vst [vmem:[#allocation196_spill] sm:$0xff] %v10216_v56  ;;  %v1916_v63 = vadd.f32 %v1860_v28, %v1780_v17  ;;  %v1185_v56 = vadd.f32 %v1129_v1, %v1049_v57  ;;  %v2541_v31 = vadd.f32 %v2413_v38, %v2229_v49  ;;  %v2102_v2 = vsel %vm542_vm0, %v2100_v29, %v2101_v0 }
 0x1f7   :  { %14424 = vst [vmem:[#allocation197_spill] sm:$0xff] %v10228_v51  ;;  %v2412_v43 = vrot.slane %v2288_v62, 2  ;;  %v10240_v46 = vmul.f32 %v7613_v33, %v10133_v45  ;;  %v13758_v16 = vrot.slane %v10222_v10, 1  ;;  %v10245_v19 = vmul.f32 %v7619_v37, %v10082_v23 }
 0x1f8   :  { %v623_v17 = vsel %vm542_vm0, %v621_v3, %v622_v32  ;;  %v14425_v1 = vrot.slane %v10191_v6, 5  ;;  %v10256_v0 = vmul.f32 %v7621_v40, %v10232_v61  ;;  %v10260_v62 = vmul.f32 %v9586_v36, %v10232_v61 }
 0x1f9   :  { %v422_v57 = vmul.f32 %v7597_v15, %v10076_v26  ;;  %v10265_v49 = vmul.f32 %v7613_v33, %v1055_v7  ;;  %v10268_v3 = vmul.f32 %v7619_v37, %v1055_v7  ;;  %v2228_v32 = vadd.f32 %v2102_v2, %v1916_v63  ;;  %v1065_v63 = vpop.permute.xlu0 %1064 }
 0x1fa   :  { %v10252_v28 = vsel %vm8220_vm4, %v6481_v53, %v14425_v1  ;;  %v1497_v29 = vadd.f32 %v13758_v16, %v1185_v56  ;;  %v10275_v53 = vld [vmem:[%s13442_s2] ss:$0 sm:$0xff]  ;;  %v2414_v8 = vsel %vm855_vm1, %v2412_v43, %v2413_v38  ;;  %v13760_v7 = vrot.slane %v10245_v19, 2 }
 0x1fb   :  { %14426 = vst [vmem:[#allocation198_spill] sm:$0xff] %v10252_v28  ;;  %v10278_v1 = vadd.f32 %v10275_v53, %v2541_v31  ;;  %v735_v6 = vadd.f32 %v623_v17, %v422_v57  ;;  %v10285_v2 = vmul.f32 %v7613_v33, %v10232_v61  ;;  %v1244_v56 = vmul.f32 %v7615_v34, %v10125_v22 }
 0x1fc   :  { %v10291_v16 = vmul.f32 %v7586_v5, %v14399_v41  ;;  %v1889_v31 = vmul.f32 %v7626_v44, %v10232_v61  ;;  %v1556_v17 = vmul.f32 %v7619_v37, %v10125_v22  ;;  %v10299_v57 = vadd.f32 %v2414_v8, %v2228_v32 }
 0x1fd   :  { %14427 = vst [vmem:[#allocation199_spill] sm:$0xff] %v10278_v1  ;;  %v1809_v28 = vadd.f32 %v13760_v7, %v1497_v29  ;;  %v14429_v1 = vrot.slane %v10142_v50, 2  ;;  %v1128_v51 = vmul.f32 %v7613_v33, %v10125_v22  ;;  %v10309_v43 = vmul.f32 %v7613_v33, %v1065_v63 }
 0x1fe   :  { %14428 = vst [vmem:[#allocation200_spill] sm:$0xff] %v10299_v57  ;;  %v10312_v38 = vmul.f32 %v7615_v34, %v1065_v63  ;;  %v10316_v8 = vmul.f32 %v7594_v14, %v14399_v41  ;;  %v1382_v32 = vrot.slane %v1244_v56, 1  ;;  %v10319_v29 = vmul.f32 %v7619_v37, %v1065_v63 }
 0x1ff   :  { %v936_v35 = vsel %vm855_vm1, %v14429_v1, %v935_v48  ;;  %v14430_v48 = vrot.slane %v9569_v60, 2  ;;  %v10328_v1 = vmul.f32 %v7626_v44, %v1065_v63  ;;  %v10331_v7 = vmul.f32 %v7621_v40, %v1065_v63 }
 0x200   :  { %v1048_v20 = vadd.f32 %v936_v35, %v735_v6  ;;  %v14431_v6 = vrot.slane %v9605_v59, 2  ;;  %v1694_v35 = vrot.slane %v1556_v17, 2  ;;  %v1945_v57 = vadd.f32 %v1889_v31, %v1809_v28 }
 0x201   :  { %v10335_v12 = vmul.f32 %v9586_v36, %v1065_v63  ;;  %v397_v60 = vmul.f32 %v7597_v15, %v14399_v41  ;;  %v14432_v59 = vrot.slane %v9491_v4, 2  ;;  %v896_v50 = vrot.slane %v10316_v8, 2 }
 0x202   :  { %v924_v33 = vsel %vm855_vm1, %v14431_v6, %v14430_v48  ;;  %v14433_v48 = vrot.slane %v9548_v30, 2  ;;  %v1184_v6 = vadd.f32 %v1128_v51, %v1048_v20  ;;  %v14434_v28 = vrot.slane %v10291_v16, 1  ;;  %v14439_v30 = vld [vmem:[#allocation143_spill] sm:$0xff] }
 0x203   :  { %v1040_v56 = vadd.f32 %v924_v33, %v9637_v9  ;;  %v14435_v31 = vrot.slane %v9679_v13, 1  ;;  %v14436_v33 = vld [vmem:[#allocation156_spill] sm:$0xff]  ;;  %v1933_v39 = vadd.f32 %v14439_v30, %v14438_v27  ;;  %v1996_v20 = vmul.f32 %v7621_v40, %v9746_v21 }
 0x204   :  { %v1678_v17 = vsel %vm855_vm1, %v14433_v48, %v14432_v59  ;;  %v710_v63 = vadd.f32 %v14434_v28, %v397_v60  ;;  %v14437_v41 = vrot.slane %v14436_v33, 1  ;;  %v14442_v60 = vld [vmem:[#allocation149_spill] sm:$0xff]  ;;  %v10366_v13 = vmul.f32 %v7621_v40, %v9717_v55  ;;  %v14443_v48 = vld [vmem:[#allocation142_spill] sm:$0xff] }
 0x205   :  { %v1176_v26 = vadd.f32 %v9720_v52, %v1040_v56  ;;  %v1796_v9 = vadd.f32 %v1678_v17, %v9581_v11  ;;  %v14440_v52 = vrot.slane %v9683_v18, 2  ;;  %v14441_v11 = vrot.slane %v9737_v58, 2  ;;  %v14445_v28 = vld [vmem:[#allocation146_spill] sm:$0xff] }
 0x206   :  { %v1372_v4 = vsel %vm542_vm0, %v14437_v41, %v14435_v31  ;;  %v14444_v17 = vrot.slane %v14443_v48, 1  ;;  %v14446_v27 = vrot.slane %v14445_v28, 1  ;;  %v2130_v33 = vrot.slane %v1996_v20, 1  ;;  %v14448_v41 = vld [vmem:[#allocation135_spill] sm:$0xff] }
 0x207   :  { %v1488_v51 = vadd.f32 %v1372_v4, %v1176_v26  ;;  %v1684_v56 = vsel %vm855_vm1, %v14441_v11, %v14440_v52  ;;  %v1932_v59 = vadd.f32 %v14442_v60, %v1796_v9  ;;  %v2305_v58 = vmul.f32 %v9586_v36, %v14448_v41  ;;  %v14450_v28 = vld [vmem:[#allocation147_spill] sm:$0xff] }
 0x208   :  { %v2126_v31 = vsel %vm542_vm0, %v14446_v27, %v14444_v17  ;;  %v14447_v26 = vmov %v14444_v17  ;;  %v1880_v9 = vmul.f32 %v7626_v44, %v9746_v21  ;;  %v13768_v30 = vrot.slane %v10366_v13, 1 }
 0x209   :  { %v2245_v18 = vadd.f32 %v14447_v26, %v1933_v39  ;;  %v1800_v4 = vadd.f32 %v1684_v56, %v1488_v51  ;;  %v2244_v52 = vadd.f32 %v2126_v31, %v1932_v59  ;;  %v10382_v11 = vmul.f32 %v7615_v34, %v10133_v45 }
 0x20a   :  { %v2308_v20 = vmul.f32 %v9586_v36, %v9746_v21  ;;  %v10388_v39 = vmul.f32 %v9586_v36, %v9717_v55  ;;  %v2437_v60 = vrot.slane %v2305_v58, 2  ;;  %v14449_v51 = vrot.slane %v10222_v10, 1 }
 0x20b   :  { %v1023_v48 = vadd.f32 %v896_v50, %v710_v63  ;;  %v1936_v59 = vadd.f32 %v1880_v9, %v1800_v4  ;;  %v2132_v17 = vsel %vm542_vm0, %v2130_v33, %v13768_v30  ;;  %v14451_v27 = vrot.slane %v14450_v28, 2  ;;  %v14471_v30 = vld [vmem:[#allocation148_spill] sm:$0xff] }
 0x20c   :  { %v1384_v56 = vsel %vm542_vm0, %v1382_v32, %v14449_v51  ;;  %v2442_v31 = vrot.slane %v2308_v20, 2  ;;  %v13767_v55 = vrot.slane %v10388_v39, 2  ;;  %v2557_v26 = vadd.f32 %v2437_v60, %v2245_v18 }
 0x20d   :  { %v2438_v21 = vsel %vm855_vm1, %v14451_v27, %v2437_v60  ;;  %v1496_v41 = vadd.f32 %v1384_v56, %v1184_v6  ;;  %v10404_v10 = vmul.f32 %v7619_v37, %v10133_v45  ;;  %v2248_v32 = vadd.f32 %v2132_v17, %v1936_v59  ;;  %v14455_v27 = vld [vmem:[#allocation137_spill] sm:$0xff] }
 0x20e   :  { %v2556_v63 = vadd.f32 %v2438_v21, %v2244_v52  ;;  %v14452_v58 = vrot.slane %v10245_v19, 2  ;;  %v1159_v33 = vadd.f32 %v10240_v46, %v1023_v48  ;;  %v1344_v9 = vrot.slane %v10382_v11, 1  ;;  %v1820_v48 = vpop.permute.xlu1 %1819 }
 0x20f   :  { %v2444_v20 = vsel %vm855_vm1, %v2442_v31, %v13767_v55  ;;  %v2620_v60 = vadd.f32 %v10275_v53, %v2557_v26  ;;  %v14453_v52 = vrot.slane %v10256_v0, 1  ;;  %v456_v46 = vmul.f32 %v7586_v5, %v14412_v25 }
 0x210   :  { %v1696_v4 = vsel %vm855_vm1, %v1694_v35, %v14452_v58  ;;  %v2560_v18 = vadd.f32 %v2444_v20, %v2248_v32  ;;  %v2619_v45 = vadd.f32 %v10275_v53, %v2556_v63  ;;  %v769_v11 = vmul.f32 %v7594_v14, %v14412_v25 }
 0x211   :  { %v10419_v19 = vadd.f32 %v14453_v52, %v1945_v57  ;;  %v1808_v51 = vadd.f32 %v1696_v4, %v1496_v41  ;;  %v1656_v56 = vrot.slane %v10404_v10, 2  ;;  %v1471_v28 = vadd.f32 %v1344_v9, %v1159_v33  ;;  %v14456_v57 = vld [vmem:[#allocation132_spill] sm:$0xff] }
 0x212   :  { %v2623_v59 = vadd.f32 %v10275_v53, %v2560_v18  ;;  %v10428_v17 = vmax.f32 %v2619_v45, 0.0  ;;  %v14457_v21 = vrot.slane %v14456_v57, 2  ;;  %v582_v26 = vrot.slane %v456_v46, 1 }
 0x213   :  { %v895_v32 = vrot.slane %v769_v11, 2  ;;  %v10433_v63 = vmax.f32 %v2620_v60, 0.0  ;;  %v396_v10 = vmul.f32 %v7597_v15, %v14412_v25  ;;  %v1863_v4 = vmul.f32 %v7626_v44, %v1820_v48 }
 0x214   :  { %14454 = vst [vmem:[#allocation156_spill] sm:$0xff] %v10428_v17  ;;  %v2555_v31 = vadd.f32 %v14457_v21, %v14455_v27  ;;  %v10435_v58 = vmax.f32 %v2623_v59, 0.0  ;;  %v10439_v41 = vcombine.high %v10428_v17, %v10428_v17  ;;  %v14460_v33 = vrot.slane %v10291_v16, 1 }
 0x215   :  { %14458 = vst [vmem:[#allocation136_spill] sm:$0xff] %v10433_v63  ;;  %v1979_v18 = vmul.f32 %v7621_v40, %v1820_v48  ;;  %v1783_v46 = vadd.f32 %v1656_v56, %v1471_v28  ;;  %v10454_v25 = vmul.f32 %v9586_v36, %v1820_v48  ;;  %v6507_v11 = vrot.slane %v10428_v17, 10  ;;  %v1815_v28 = vpop.permute.xlu0 %1814 }
 0x216   :  { %14459 = vst [vmem:[#allocation143_spill] sm:$0xff] %v10439_v41  ;;  %v584_v20 = vsel %vm542_vm0, %v582_v26, %v14460_v33  ;;  %v10450_v45 = vcombine.high %v10435_v58, %v10435_v58  ;;  %v3215_v60 = vrot.slane %v10439_v41, 6  ;;  %v897_v16 = vsel %vm855_vm1, %v895_v32, %v896_v50 }
 0x217   :  { %v709_v52 = vadd.f32 %v584_v20, %v396_v10  ;;  %v2618_v59 = vadd.f32 %v10275_v53, %v2555_v31  ;;  %v13769_v26 = vrot.slane %v10433_v63, 6  ;;  %v14465_v50 = vrot.slane %v10235_v42, 1  ;;  %v14472_v42 = vld [vmem:[#allocation153_spill] sm:$0xff] }
 0x218   :  { %v3217_v21 = vrot.slane %v3215_v60, 4  ;;  %v10468_v48 = vsel %vm10461_vm7, %v6507_v11, %v3215_v60  ;;  %v10472_v8 = vcombine.low %v10435_v58, %v10450_v45  ;;  %v1655_v32 = vrot.slane %v10268_v3, 2  ;;  %v14467_v60 = vld [vmem:[#allocation140_spill] sm:$0xff]  ;;  %v14469_v11 = vld [vmem:[#allocation145_spill] sm:$0xff] }
 0x219   :  { %v1022_v10 = vadd.f32 %v897_v16, %v709_v52  ;;  %14463 = vst [vmem:[#allocation149_spill] sm:$0xff] %v10468_v48  ;;  %v1345_v31 = vsel %vm542_vm0, %v14465_v50, %v1344_v9  ;;  %v14468_v52 = vrot.slane %v14467_v60, 2  ;;  %v14470_v16 = vrot.slane %v14469_v11, 2  ;;  %v14477_v11 = vld [vmem:[#allocation144_spill] sm:$0xff] }
 0x21a   :  { %14464 = vst [vmem:[#allocation142_spill] sm:$0xff] %v10472_v8  ;;  %v10482_v33 = vsel %vm10461_vm7, %v3217_v21, %v13769_v26  ;;  %v1935_v35 = vadd.f32 %v14472_v42, %v14471_v30  ;;  %v2104_v9 = vrot.slane %v1979_v18, 1  ;;  %v1978_v50 = vmul.f32 %v7621_v40, %v1815_v28  ;;  %v14474_v21 = vld [vmem:[#allocation151_spill] sm:$0xff]  ;;  %v14479_v42 = vld [vmem:[#allocation161_spill] sm:$0xff] }
 0x21b   :  { %14466 = vst [vmem:[#allocation146_spill] sm:$0xff] %v10482_v33  ;;  %v1158_v20 = vadd.f32 %v10265_v49, %v1022_v10  ;;  %v1681_v55 = vsel %vm855_vm1, %v14470_v16, %v14468_v52  ;;  %v10494_v3 = vcombine.low %v10468_v48, %v10482_v33  ;;  %v1919_v6 = vadd.f32 %v1863_v4, %v1783_v46  ;;  %v14475_v10 = vld [vmem:[#allocation152_spill] sm:$0xff] }
 0x21c   :  { %v1798_v26 = vadd.f32 %v1681_v55, %v14474_v21  ;;  %v14476_v60 = vrot.slane %v14475_v10, 1  ;;  %v2307_v52 = vmul.f32 %v9586_v36, %v14477_v11  ;;  %v10502_v16 = vmax.f32 %v2618_v59, 0.0 }
 0x21d   :  { %14473 = vst [vmem:[#allocation135_spill] sm:$0xff] %v10494_v3  ;;  %v1470_v49 = vadd.f32 %v1345_v31, %v1158_v20  ;;  %v6869_v30 = vpack.i.bf16 %v10494_v3, %v10472_v8  ;;  %v1657_v18 = vsel %vm855_vm1, %v1655_v32, %v1656_v56  ;;  %v1862_v55 = vmul.f32 %v7626_v44, %v1815_v28  ;;  %v14505_v3 = vld [vmem:[#allocation57_spill] sm:$0xff] }
 0x21e   :  { %v2247_v57 = vadd.f32 %v14476_v60, %v1935_v35  ;;  %14478 = vst [vmem:[#allocation147_spill] sm:$0xff] %v10502_v16  ;;  %v1934_v48 = vadd.f32 %v14479_v42, %v1798_v26  ;;  %v14480_v4 = vmov %v14476_v60  ;;  %v14481_v46 = vrot.slane %v9778_v24, 1 }
 0x21f   :  { %v1782_v33 = vadd.f32 %v1657_v18, %v1470_v49  ;;  %v2440_v31 = vrot.slane %v2307_v52, 2  ;;  %v14482_v59 = vrot.slane %v10256_v0, 1  ;;  %v14483_v20 = vrot.slane %v10331_v7, 1  ;;  %6870 = vrot.lane.b32.xlu1 %v6869_v30, %s7354_s10 }
 0x220   :  { %v2129_v35 = vsel %vm542_vm0, %v14481_v46, %v14480_v4  ;;  %v2103_v56 = vrot.slane %v1978_v50, 1  ;;  %v2290_v26 = vmul.f32 %v9586_v36, %v1815_v28  ;;  %v14484_v49 = vrot.slane %v10260_v62, 2 }
 0x221   :  { %v2144_v21 = vsel %vm542_vm0, %v14483_v20, %v14482_v59  ;;  %v2246_v32 = vadd.f32 %v2129_v35, %v1934_v48  ;;  %v1944_v10 = vadd.f32 %v10328_v1, %v1808_v51  ;;  %v14485_v60 = vrot.slane %v9781_v54, 2 }
 0x222   :  { %v2569_v24 = vadd.f32 %v14484_v49, %v10419_v19  ;;  %v2559_v7 = vadd.f32 %v2440_v31, %v2247_v57  ;;  %v2231_v11 = vadd.f32 %v2104_v9, %v1919_v6  ;;  %v2416_v52 = vrot.slane %v10454_v25, 2 }
 0x223   :  { %v2441_v0 = vsel %vm855_vm1, %v14485_v60, %v2440_v31  ;;  %v485_v50 = vmul.f32 %v7586_v5, %v10082_v23  ;;  %v10533_v36 = vcombine.high %v10502_v16, %v10502_v16  ;;  %v1918_v28 = vadd.f32 %v1862_v55, %v1782_v33 }
 0x224   :  { %v2558_v18 = vadd.f32 %v2441_v0, %v2246_v32  ;;  %v2622_v19 = vadd.f32 %v10275_v53, %v2559_v7  ;;  %v2972_v1 = vrot.slane %v10439_v41, 5  ;;  %v2105_v54 = vsel %vm542_vm0, %v2103_v56, %v2104_v9 }
 0x225   :  { %14486 = vst [vmem:[#allocation137_spill] sm:$0xff] %v10533_v36  ;;  %v2415_v51 = vrot.slane %v2290_v26, 2  ;;  %v625_v57 = vrot.slane %v485_v50, 1  ;;  %v10540_v25 = vadd.f32 %v10275_v53, %v2569_v24  ;;  %v1385_v48 = vrot.slane %v10312_v38, 1 }
 0x226   :  { %v2621_v6 = vadd.f32 %v10275_v53, %v2558_v18  ;;  %v14488_v30 = vmov %v14484_v49  ;;  %v14489_v42 = vrot.slane %v10335_v12, 2  ;;  %v13773_v55 = vrot.slane %v10502_v16, 5 }
 0x227   :  { %14487 = vst [vmem:[#allocation140_spill] sm:$0xff] %v10540_v25  ;;  %v10551_v4 = vadd.f32 %v2144_v21, %v1944_v10  ;;  %v425_v46 = vmul.f32 %v7597_v15, %v10082_v23  ;;  %v798_v35 = vmul.f32 %v7594_v14, %v10082_v23  ;;  %v10559_v31 = vadd.f32 %v2416_v52, %v2231_v11  ;;  %v14523_v25 = vld [vmem:[#allocation169_spill] sm:$0xff] }
 0x228   :  { %v10548_v33 = vsel %vm855_vm1, %v14489_v42, %v14488_v30  ;;  %v10553_v9 = vmax.f32 %v2621_v6, 0.0  ;;  %v2230_v62 = vadd.f32 %v2105_v54, %v1918_v28  ;;  %v10561_v59 = vmax.f32 %v2622_v19, 0.0 }
 0x229   :  { %v2974_v12 = vrot.slane %v2972_v1, 4  ;;  %v2417_v20 = vsel %vm855_vm1, %v2415_v51, %v2416_v52  ;;  %v738_v26 = vadd.f32 %v625_v57, %v425_v46  ;;  %v10571_v32 = vrot.slane %v13773_v55, 4  ;;  %v1830_v51 = vpop.permute.xlu1 %1829 }
 0x22a   :  { %14490 = vst [vmem:[#allocation145_spill] sm:$0xff] %v10553_v9  ;;  %14491 = vst [vmem:[#allocation148_spill] sm:$0xff] %v10561_v59  ;;  %v10566_v21 = vcombine.high %v10553_v9, %v10553_v9  ;;  %v6483_v23 = vrot.slane %v10428_v17, 9  ;;  %v13774_v49 = vrot.slane %v10433_v63, 5  ;;  %v1247_v24 = vmul.f32 %v7615_v34, %v10232_v61 }
 0x22b   :  { %v938_v60 = vrot.slane %v798_v35, 2  ;;  %v484_v0 = vmul.f32 %v7586_v5, %v10125_v22  ;;  %v797_v7 = vmul.f32 %v7594_v14, %v10125_v22  ;;  %v10582_v11 = vadd.f32 %v2417_v20, %v2230_v62  ;;  %v14496_v20 = vld [vmem:[#allocation58_spill] sm:$0xff] }
 0x22c   :  { %14492 = vst [vmem:[#allocation153_spill] sm:$0xff] %v10566_v21  ;;  %v3225_v10 = vrot.slane %v10566_v21, 6  ;;  %v10586_v52 = vsel %vm8220_vm4, %v6483_v23, %v2972_v1  ;;  %v10592_v34 = vsel %vm8220_vm4, %v2974_v12, %v13774_v49  ;;  %v3228_v18 = vrot.slane %v10561_v59, 6 }
 0x22d   :  { %14493 = vst [vmem:[#allocation151_spill] sm:$0xff] %v10586_v52  ;;  %14494 = vst [vmem:[#allocation152_spill] sm:$0xff] %v10592_v34  ;;  %v6508_v50 = vrot.slane %v10553_v9, 10  ;;  %v1051_v28 = vadd.f32 %v938_v60, %v738_v26  ;;  %v624_v19 = vrot.slane %v484_v0, 1  ;;  %v1386_v14 = vrot.slane %v1247_v24, 1 }
 0x22e   :  { %v3227_v5 = vrot.slane %v3225_v10, 4  ;;  %v1559_v54 = vmul.f32 %v7619_v37, %v10232_v61  ;;  %v424_v1 = vmul.f32 %v7597_v15, %v10125_v22  ;;  %v937_v6 = vrot.slane %v797_v7, 2 }
 0x22f   :  { %v10602_v30 = vsel %vm10461_vm7, %v6508_v50, %v3225_v10  ;;  %v1187_v46 = vadd.f32 %v10285_v2, %v1051_v28  ;;  %v626_v35 = vsel %vm542_vm0, %v624_v19, %v625_v57  ;;  %v10612_v37 = vcombine.low %v10586_v52, %v10592_v34  ;;  %v10625_v57 = vpop.permute.xlu0 %1824  ;;  %v10632_v10 = vld [vmem:[%s13441_s1 + $0x8] ss:$0 sm:$0xff]  ;;  %v14497_v28 = vld [vmem:[#allocation8_spill] sm:$0xff]  ;;  %s7355_s1 = smov 96  }
 0x230   :  { %v10606_v42 = vsel %vm10461_vm7, %v3227_v5, %v3228_v18  ;;  %v737_v22 = vadd.f32 %v626_v35, %v424_v1  ;;  %v10618_v61 = vcombine.high %v10561_v59, %v10561_v59  ;;  %v1891_v62 = vmul.f32 %v7626_v44, %v1830_v51  ;;  %v14498_v1 = vld [vmem:[#allocation53_spill] sm:$0xff] }
 0x231   :  { %14495 = vst [vmem:[#allocation144_spill] sm:$0xff] %v10612_v37  ;;  %v3972_v15 = vcombine.low %v10602_v30, %v10606_v42  ;;  %v10622_v12 = vmul.f32 %v7621_v40, %v1830_v51  ;;  %v939_v2 = vsel %vm855_vm1, %v937_v6, %v938_v60  ;;  %v3045_v26 = vrot.slane %v14496_v20, 6 }
 0x232   :  { %v1698_v24 = vrot.slane %v1559_v54, 2  ;;  %v10635_v0 = vmul.f32 %v10632_v10, %v1830_v51  ;;  %v1050_v7 = vadd.f32 %v939_v2, %v737_v22  ;;  %v1499_v50 = vadd.f32 %v1386_v14, %v1187_v46  ;;  %v14499_v22 = vld [vmem:[#allocation167_spill] sm:$0xff]  ;;  %v14500_v2 = vld [vmem:[#allocation170_spill] sm:$0xff] }
 0x233   :  { %v6864_v23 = vpack.i.bf16 %v10612_v37, %v3972_v15  ;;  %v1697_v5 = vrot.slane %v10319_v29, 2  ;;  %v3047_v60 = vrot.slane %v3045_v26, 4  ;;  %v3048_v19 = vrot.slane %v14497_v28, 6 }
 0x234   :  { %v10642_v54 = vmul.f32 %v7621_v40, %v10625_v57  ;;  %v6490_v6 = vrot.slane %v14498_v1, 10  ;;  %v3230_v35 = vrot.slane %v3228_v18, 4  ;;  %v3231_v15 = vrot.slane %v10618_v61, 6 }
 0x235   :  { %6865 = vrot.lane.b32.xlu0 %v6864_v23, %s7353_s26  ;;  %v10648_v51 = vsel %vm10461_vm7, %v3047_v60, %v3048_v19  ;;  %v6509_v29 = vrot.slane %v10435_v58, 10  ;;  %v1937_v23 = vadd.f32 %v14500_v2, %v14499_v22  ;;  %v2146_v55 = vrot.slane %v10622_v12, 1 }
 0x236   :  { %v1186_v49 = vadd.f32 %v10309_v43, %v1050_v7  ;;  %v1387_v18 = vsel %vm542_vm0, %v1385_v48, %v1386_v14  ;;  %v10662_v60 = vsel %vm10461_vm7, %v6490_v6, %v3045_v26  ;;  %v10666_v46 = vsel %vm10461_vm7, %v3230_v35, %v3231_v15 }
 0x237   :  { %v14501_v22 = vrot.slane %v10450_v45, 6  ;;  %v14502_v43 = vrot.slane %v10366_v13, 1  ;;  %v1811_v38 = vadd.f32 %v1698_v24, %v1499_v50  ;;  %v3945_v48 = vcombine.low %v10662_v60, %v10648_v51 }
 0x238   :  { %v2992_v26 = vrot.slane %v10450_v45, 5  ;;  %v1699_v6 = vsel %vm855_vm1, %v1697_v5, %v1698_v24  ;;  %v2145_v35 = vrot.slane %v10642_v54, 1  ;;  %v10685_v15 = vmul.f32 %v10632_v10, %v10625_v57 }
 0x239   :  { %v10672_v12 = vsel %vm10461_vm7, %v6509_v29, %v14501_v22  ;;  %v2249_v7 = vadd.f32 %v14502_v43, %v1937_v23  ;;  %v14503_v13 = vrot.slane %v10388_v39, 2  ;;  %v1947_v50 = vadd.f32 %v1891_v62, %v1811_v38  ;;  %v14504_v22 = vld [vmem:[#allocation60_spill] sm:$0xff]  ;;  %v14506_v39 = vld [vmem:[#allocation54_spill] sm:$0xff] }
 0x23a   :  { %v3973_v14 = vcombine.low %v10666_v46, %v10672_v12  ;;  %v1498_v2 = vadd.f32 %v1387_v18, %v1186_v49  ;;  %v3035_v43 = vrot.slane %v14504_v22, 6  ;;  %v6485_v52 = vrot.slane %v10435_v58, 9  ;;  %v14511_v22 = vld [vmem:[#allocation66_spill] sm:$0xff] }
 0x23b   :  { %v2561_v29 = vadd.f32 %v14503_v13, %v2249_v7  ;;  %v6489_v24 = vrot.slane %v14505_v3, 10  ;;  %v2781_v5 = vcombine.high %v10433_v63, %v10433_v63  ;;  %v2994_v54 = vrot.slane %v2992_v26, 4 }
 0x23c   :  { %v6874_v23 = vpack.i.bf16 %v3973_v14, %v3945_v48  ;;  %v3037_v37 = vrot.slane %v3035_v43, 4  ;;  %v13783_v7 = vrot.slane %v14506_v39, 6  ;;  %v14507_v49 = vrot.slane %v10433_v63, 5  ;;  %v14508_v48 = vld [vmem:[#allocation70_spill] sm:$0xff]  ;;  %v14509_v14 = vld [vmem:[#allocation67_spill] sm:$0xff] }
 0x23d   :  { %v2624_v56 = vadd.f32 %v10275_v53, %v2561_v29  ;;  %v3036_v38 = vsel %vm10461_vm7, %v6489_v24, %v3035_v43  ;;  %v10705_v13 = vcombine.low %v14509_v14, %v14508_v48  ;;  %v2978_v29 = vrot.slane %v2781_v5, 5 }
 0x23e   :  { %6875 = vrot.lane.b32.xlu0 %v6874_v23, %s7353_s26  ;;  %v2977_v62 = vrot.slane %v14507_v49, 4  ;;  %v3039_v23 = vsel %vm10461_vm7, %v3037_v37, %v13783_v7  ;;  %v6484_v8 = vrot.slane %v10553_v9, 9  ;;  %v2982_v3 = vrot.slane %v10566_v21, 5 }
 0x23f   :  { %v10699_v18 = vmax.f32 %v2624_v56, 0.0  ;;  %14510 = vst [vmem:[#allocation161_spill] sm:$0xff] %v10705_v13  ;;  %v3050_v49 = vrot.slane %v3048_v19, 4  ;;  %v3756_v43 = vcombine.low %v10553_v9, %v10566_v21  ;;  %v3585_v24 = vcombine.low %v3036_v38, %v3039_v23 }
 0x240   :  { %v3051_v17 = vrot.slane %v14511_v22, 6  ;;  %v10719_v41 = vsel %vm8220_vm4, %v2977_v62, %v2978_v29  ;;  %v10723_v37 = vsel %vm8220_vm4, %v6484_v8, %v2982_v3  ;;  %v6491_v7 = vrot.slane %v14509_v14, 10 }
 0x241   :  { %v2995_v56 = vrot.slane %v10699_v18, 5  ;;  %14512 = vst [vmem:[#allocation167_spill] sm:$0xff] %v10719_v41  ;;  %v13789_v19 = vrot.slane %v14508_v48, 6  ;;  %v10729_v16 = vsel %vm8220_vm4, %v6485_v52, %v2992_v26  ;;  %v6884_v22 = vpack.i.bf16 %v3585_v24, %v10705_v13  ;;  %v14519_v13 = vld [vmem:[#allocation154_spill] sm:$0xff] }
 0x242   :  { %14513 = vst [vmem:[#allocation170_spill] sm:$0xff] %v10729_v16  ;;  %v10738_v62 = vcombine.low %v10719_v41, %v10723_v37  ;;  %v10746_v29 = vsel %vm10461_vm7, %v3050_v49, %v3051_v17  ;;  %v1890_v23 = vmul.f32 %v7626_v44, %v10625_v57  ;;  %v14517_v17 = vld [vmem:[#allocation150_spill] sm:$0xff]  ;;  %v14520_v21 = vrot.slane %v14519_v13, 2 }
 0x243   :  { %v10733_v38 = vsel %vm8220_vm4, %v2994_v54, %v2995_v56  ;;  %v10752_v52 = vsel %vm10461_vm7, %v6491_v7, %v13789_v19  ;;  %v1810_v54 = vadd.f32 %v1699_v6, %v1498_v2  ;;  %6885 = vrot.lane.b32.xlu0 %v6884_v22, %s7354_s10  ;;  %v14518_v49 = vrot.slane %v14517_v17, 2  ;;  %v14521_v2 = vld [vmem:[#allocation168_spill] sm:$0xff]  ;;  %v14522_v41 = vld [vmem:[#allocation106_spill] sm:$0xff] }
 0x244   :  { %14514 = vst [vmem:[#allocation70_spill] sm:$0xff] %v10733_v38  ;;  %14515 = vst [vmem:[#allocation67_spill] sm:$0xff] %v10738_v62  ;;  %v10742_v8 = vcombine.low %v10729_v16, %v10733_v38  ;;  %v3946_v24 = vcombine.low %v10746_v29, %v10752_v52  ;;  %v2147_v7 = vsel %vm542_vm0, %v2145_v35, %v2146_v55  ;;  %v2457_v19 = vrot.slane %v10685_v15, 2  ;;  %v14524_v35 = vld [vmem:[#allocation110_spill] sm:$0xff]  ;;  %v14570_v38 = vld [vmem:[#allocation117_spill] sm:$0xff] }
 0x245   :  { %14516 = vst [vmem:[#allocation66_spill] sm:$0xff] %v10752_v52  ;;  %v927_v9 = vsel %vm855_vm1, %v14520_v21, %v14518_v49  ;;  %v2259_v57 = vadd.f32 %v2146_v55, %v1947_v50  ;;  %v1998_v34 = vmul.f32 %v7621_v40, %v14522_v41  ;;  %v1999_v17 = vmul.f32 %v7621_v40, %v14523_v25  ;;  %v14528_v49 = vld [vmem:[#allocation172_spill] sm:$0xff] }
 0x246   :  { %v6879_v6 = vpack.i.bf16 %v3756_v43, %v10742_v8  ;;  %v1042_v26 = vadd.f32 %v927_v9, %v14521_v2  ;;  %v6889_v22 = vpack.i.bf16 %v3946_v24, %v10738_v62  ;;  %v3729_v21 = vcombine.low %v14498_v1, %v14496_v20  ;;  %v14526_v43 = vld [vmem:[#allocation164_spill] sm:$0xff] }
 0x247   :  { %v14525_v13 = vrot.slane %v10433_v63, 6  ;;  %v3221_v55 = vrot.slane %v2781_v5, 6  ;;  %v1946_v50 = vadd.f32 %v1890_v23, %v1810_v54  ;;  %v14527_v24 = vrot.slane %v14526_v43, 1  ;;  %v14531_v5 = vld [vmem:[#allocation13_spill] sm:$0xff]  ;;  %v14739_v16 = vld [vmem:[#allocation136_spill] sm:$0xff] }
 0x248   :  { %6880 = vrot.lane.b32.xlu1 %v6879_v6, %s7355_s1  ;;  %v1178_v15 = vadd.f32 %v14524_v35, %v1042_v26  ;;  %6890 = vrot.lane.b32.xlu0 %v6889_v22, %s7353_s26  ;;  %v14529_v2 = vrot.slane %v14528_v49, 1  ;;  %v2310_v6 = vmul.f32 %v10632_v10, %v14522_v41  ;;  %v2311_v20 = vmul.f32 %v10632_v10, %v14523_v25 }
 0x249   :  { %v3220_v9 = vrot.slane %v14525_v13, 4  ;;  %v14530_v26 = vrot.slane %v10635_v0, 2  ;;  %v6894_v54 = vpack.i.bf16 %v3729_v21, %v14531_v5  ;;  %v14533_v13 = vld [vmem:[#allocation166_spill] sm:$0xff]  ;;  %v2133_v1 = vrot.slane %v1998_v34, 1 }
 0x24a   :  { %v1375_v62 = vsel %vm542_vm0, %v14529_v2, %v14527_v24  ;;  %v14534_v43 = vrot.slane %v14533_v13, 2  ;;  %v14535_v24 = vld [vmem:[#allocation173_spill] sm:$0xff]  ;;  %v2134_v63 = vrot.slane %v1999_v17, 1  ;;  %v2783_v21 = vcombine.high %v10699_v18, %v10699_v18 }
 0x24b   :  { %v2459_v35 = vsel %vm855_vm1, %v2457_v19, %v14530_v26  ;;  %v1490_v23 = vadd.f32 %v1375_v62, %v1178_v15  ;;  %v10797_v22 = vsel %vm10461_vm7, %v3220_v9, %v3221_v55  ;;  %v14536_v49 = vrot.slane %v14535_v24, 2 }
 0x24c   :  { %14532 = vst [vmem:[#allocation150_spill] sm:$0xff] %v10797_v22  ;;  %6895 = vrot.lane.b32.xlu1 %v6894_v54, %s7355_s1  ;;  %v1882_v62 = vmul.f32 %v7626_v44, %v14522_v41  ;;  %v2997_v15 = vrot.slane %v2995_v56, 4  ;;  %v2258_v9 = vadd.f32 %v2147_v7, %v1946_v50  ;;  %v2445_v55 = vrot.slane %v2310_v6, 2 }
 0x24d   :  { %v1687_v2 = vsel %vm855_vm1, %v14536_v49, %v14534_v43  ;;  %v2446_v26 = vrot.slane %v2311_v20, 2  ;;  %v2984_v5 = vrot.slane %v2982_v3, 4  ;;  %v2998_v34 = vrot.slane %v2783_v21, 5 }
 0x24e   :  { %v1802_v19 = vadd.f32 %v1687_v2, %v1490_v23  ;;  %v2985_v17 = vrot.slane %v10561_v59, 5  ;;  %v2988_v43 = vrot.slane %v10618_v61, 5  ;;  %v14538_v54 = vrot.slane %v10635_v0, 2  ;;  %v14540_v2 = vld [vmem:[#allocation59_spill] sm:$0xff] }
 0x24f   :  { %v2135_v24 = vsel %vm542_vm0, %v2133_v1, %v2134_v63  ;;  %v14539_v41 = vrot.slane %v14506_v39, 6  ;;  %v3041_v56 = vrot.slane %v14540_v2, 6  ;;  %v10821_v3 = vsel %vm8220_vm4, %v2997_v15, %v2998_v34  ;;  %v14543_v15 = vld [vmem:[#allocation48_spill] sm:$0xff] }
 0x250   :  { %v1938_v13 = vadd.f32 %v1882_v62, %v1802_v19  ;;  %v2571_v23 = vadd.f32 %v14538_v54, %v2259_v57  ;;  %14541 = vst [vmem:[#allocation154_spill] sm:$0xff] %v10821_v3  ;;  %v10825_v20 = vsel %vm8220_vm4, %v2984_v5, %v2985_v17  ;;  %v2987_v61 = vrot.slane %v2985_v17, 4  ;;  %v14544_v5 = vld [vmem:[#allocation109_spill] sm:$0xff]  ;;  %v14549_v2 = vld [vmem:[#allocation68_spill] sm:$0xff]  ;;  %v14558_v17 = vld [vmem:[#allocation7_spill] sm:$0xff] }
 0x251   :  { %v3040_v49 = vrot.slane %v14539_v41, 4  ;;  %v2570_v50 = vadd.f32 %v2459_v35, %v2258_v9  ;;  %v2447_v0 = vsel %vm855_vm1, %v2445_v55, %v2446_v26  ;;  %v3238_v57 = vrot.slane %v10699_v18, 6  ;;  %v14548_v41 = vld [vmem:[#allocation14_spill] sm:$0xff] }
 0x252   :  { %v2250_v7 = vadd.f32 %v2135_v24, %v1938_v13  ;;  %v10833_v19 = vsel %vm8220_vm4, %v2987_v61, %v2988_v43  ;;  %v1939_v13 = vadd.f32 %v14544_v5, %v14543_v15  ;;  %v10841_v35 = vadd.f32 %v10548_v33, %v10551_v4 }
 0x253   :  { %14542 = vst [vmem:[#allocation168_spill] sm:$0xff] %v10833_v19  ;;  %v10845_v9 = vadd.f32 %v10275_v53, %v10559_v31  ;;  %v14545_v55 = vrot.slane %v10533_v36, 5  ;;  %v3042_v33 = vsel %vm10461_vm7, %v3040_v49, %v3041_v56  ;;  %v14547_v4 = vrot.slane %v10450_v45, 6 }
 0x254   :  { %v2562_v6 = vadd.f32 %v2447_v0, %v2250_v7  ;;  %v2251_v31 = vadd.f32 %v2134_v63, %v1939_v13  ;;  %v10863_v24 = vadd.f32 %v10275_v53, %v10582_v11  ;;  %v3240_v7 = vrot.slane %v3238_v57, 4 }
 0x255   :  { %v10852_v34 = vsel %vm8220_vm4, %v10571_v32, %v14545_v55  ;;  %v3237_v54 = vrot.slane %v14547_v4, 4  ;;  %v10867_v32 = vcombine.low %v14549_v2, %v14548_v41  ;;  %v3241_v61 = vrot.slane %v2783_v21, 6 }
 0x256   :  { %14546 = vst [vmem:[#allocation106_spill] sm:$0xff] %v10852_v34  ;;  %v2625_v43 = vadd.f32 %v10275_v53, %v2562_v6  ;;  %v10870_v0 = vadd.f32 %v10275_v53, %v2571_v23  ;;  %v10873_v6 = vadd.f32 %v10275_v53, %v2570_v50  ;;  %v2563_v56 = vadd.f32 %v2446_v26, %v2251_v31 }
 0x257   :  { %14550 = vst [vmem:[#allocation169_spill] sm:$0xff] %v10867_v32  ;;  %v10879_v63 = vcombine.low %v10797_v22, %v10602_v30  ;;  %v3586_v11 = vcombine.low %v3042_v33, %v10662_v60  ;;  %v3757_v15 = vcombine.low %v10561_v59, %v10435_v58  ;;  %v3730_v21 = vcombine.low %v14497_v28, %v14509_v14  ;;  %v14553_v33 = vld [vmem:[#allocation20_spill] sm:$0xff] }
 0x258   :  { %v10875_v49 = vmax.f32 %v2625_v43, 0.0  ;;  %v10896_v30 = vsel %vm10461_vm7, %v3237_v54, %v3238_v57  ;;  %v2626_v60 = vadd.f32 %v10275_v53, %v2563_v56  ;;  %v10903_v14 = vsel %vm10461_vm7, %v3240_v7, %v3241_v61 }
 0x259   :  { %14551 = vst [vmem:[#allocation110_spill] sm:$0xff] %v10879_v63  ;;  %v6909_v26 = vpack.i.bf16 %v3586_v11, %v10867_v32  ;;  %v3058_v5 = vrot.slane %v14549_v2, 6  ;;  %v6919_v4 = vpack.i.bf16 %v3730_v21, %v14553_v33  ;;  %v10915_v54 = vcombine.low %v10825_v20, %v10833_v19  ;;  %v14557_v21 = vld [vmem:[#allocation24_spill] sm:$0xff]  ;;  %v11412_v19 = vpop.permute.xlu0 %6805 }
 0x25a   :  { %v10888_v23 = vcombine.low %v10699_v18, %v10875_v49  ;;  %v10892_v50 = vcombine.high %v10875_v49, %v10875_v49  ;;  %v6486_v58 = vrot.slane %v10875_v49, 9  ;;  %v10909_v43 = vmax.f32 %v2626_v60, 0.0 }
 0x25b   :  { %14554 = vst [vmem:[#allocation172_spill] sm:$0xff] %v10915_v54  ;;  %v3974_v31 = vcombine.low %v10896_v30, %v10903_v14  ;;  %v14555_v7 = vrot.slane %v14508_v48, 6  ;;  %v3065_v33 = vrot.slane %v14557_v21, 6  ;;  %v3060_v1 = vrot.slane %v3058_v5, 4 }
 0x25c   :  { %14552 = vst [vmem:[#allocation164_spill] sm:$0xff] %v10888_v23  ;;  %v6899_v13 = vpack.i.bf16 %v10879_v63, %v10888_v23  ;;  %v3002_v55 = vrot.slane %v10892_v50, 5  ;;  %v3245_v57 = vrot.slane %v10892_v50, 6  ;;  %v13802_v60 = vrot.slane %v10909_v43, 6  ;;  %v14560_v23 = vld [vmem:[#allocation10_spill] sm:$0xff] }
 0x25d   :  { %v3057_v61 = vrot.slane %v14555_v7, 4  ;;  %v3061_v62 = vrot.slane %v14558_v17, 6  ;;  %v6510_v7 = vrot.slane %v10875_v49, 10  ;;  %v3005_v22 = vrot.slane %v10909_v43, 5 }
 0x25e   :  { %6900 = vrot.lane.b32.xlu1 %v6899_v13, %s7354_s10  ;;  %v10924_v56 = vsel %vm8220_vm4, %v6486_v58, %v3002_v55  ;;  %v3247_v11 = vrot.slane %v3245_v57, 4  ;;  %v10942_v13 = vcombine.high %v10909_v43, %v10909_v43  ;;  %v3004_v63 = vrot.slane %v3002_v55, 4 }
 0x25f   :  { %14556 = vst [vmem:[#allocation13_spill] sm:$0xff] %v10924_v56  ;;  %v10930_v52 = vcombine.low %v10821_v3, %v10924_v56  ;;  %v10948_v17 = vsel %vm10461_vm7, %v3057_v61, %v3058_v5  ;;  %v10952_v34 = vcombine.low %v10606_v42, %v10666_v46  ;;  %v3246_v55 = vsel %vm10461_vm7, %v6510_v7, %v3245_v57  ;;  %v14566_v56 = vld [vmem:[#allocation171_spill] sm:$0xff] }
 0x260   :  { %v10938_v58 = vsel %vm10461_vm7, %v3247_v11, %v13802_v60  ;;  %v10956_v11 = vcombine.low %v14557_v21, %v14560_v23  ;;  %v3067_v60 = vrot.slane %v3065_v33, 4  ;;  %v3068_v5 = vrot.slane %v14560_v23, 6 }
 0x261   :  { %v6904_v25 = vpack.i.bf16 %v3757_v15, %v10930_v52  ;;  %14559 = vst [vmem:[#allocation166_spill] sm:$0xff] %v10952_v34  ;;  %v10963_v15 = vsel %vm8220_vm4, %v3004_v63, %v3005_v22  ;;  %v6914_v42 = vpack.i.bf16 %v10915_v54, %v3974_v31  ;;  %v3975_v46 = vcombine.low %v3246_v55, %v10938_v58 }
 0x262   :  { %14561 = vst [vmem:[#allocation173_spill] sm:$0xff] %v10956_v11  ;;  %6910 = vrot.lane.b32.xlu1 %v6909_v26, %s7354_s10  ;;  %14562 = vst [vmem:[#allocation59_spill] sm:$0xff] %v10963_v15  ;;  %v3587_v61 = vcombine.low %v10648_v51, %v10746_v29  ;;  %v3062_v57 = vsel %vm10461_vm7, %v3060_v1, %v3061_v62  ;;  %v3007_v63 = vrot.slane %v3005_v22, 4  ;;  %v3008_v7 = vrot.slane %v10942_v13, 5  ;;  %v14564_v62 = vld [vmem:[#allocation165_spill] sm:$0xff] }
 0x263   :  { %6905 = vrot.lane.b32.xlu0 %v6904_v25, %s7355_s1  ;;  %v6492_v32 = vrot.slane %v14548_v41, 10  ;;  %v3947_v25 = vcombine.low %v10948_v17, %v3062_v57  ;;  %v10980_v31 = vcombine.low %v10892_v50, %v10909_v43  ;;  %v3758_v51 = vcombine.low %v10450_v45, %v10699_v18  ;;  %v14569_v18 = vld [vmem:[#allocation105_spill] sm:$0xff] }
 0x264   :  { %v6939_v54 = vpack.i.bf16 %v3587_v61, %v10956_v11  ;;  %v3069_v22 = vsel %vm10461_vm7, %v3067_v60, %v3068_v5  ;;  %v3070_v1 = vrot.slane %v3068_v5, 4  ;;  %v14565_v26 = vrot.slane %v14564_v62, 2  ;;  %v14568_v11 = vld [vmem:[#allocation19_spill] sm:$0xff] }
 0x265   :  { %14563 = vst [vmem:[#allocation48_spill] sm:$0xff] %v10980_v31  ;;  %v3066_v29 = vsel %vm10461_vm7, %v6492_v32, %v3065_v33  ;;  %v14567_v28 = vrot.slane %v14566_v56, 2  ;;  %v6929_v61 = vpack.i.bf16 %v3975_v46, %v3947_v25  ;;  %v3071_v45 = vrot.slane %v14568_v11, 6  ;;  %v14572_v33 = vld [vmem:[#allocation4_spill] sm:$0xff]  ;;  %v14573_v56 = vld [vmem:[#allocation179_spill] sm:$0xff] }
 0x266   :  { %6920 = vrot.lane.b32.xlu1 %v6919_v4, %s7355_s1  ;;  %v2001_v32 = vmul.f32 %v7621_v40, %v14570_v38  ;;  %v11002_v60 = vsel %vm8220_vm4, %v3007_v63, %v3008_v7  ;;  %v2000_v5 = vmul.f32 %v7621_v40, %v14572_v33  ;;  %v6924_v11 = vpack.i.bf16 %v10952_v34, %v10980_v31 }
 0x267   :  { %v930_v3 = vsel %vm855_vm1, %v14567_v28, %v14565_v26  ;;  %6915 = vrot.lane.b32.xlu0 %v6914_v42, %s7353_s26  ;;  %14571 = vst [vmem:[#allocation109_spill] sm:$0xff] %v11002_v60  ;;  %v2313_v28 = vmul.f32 %v10632_v10, %v14570_v38  ;;  %v14574_v42 = vld [vmem:[#allocation71_spill] sm:$0xff]  ;;  %v14575_v26 = vld [vmem:[#allocation176_spill] sm:$0xff]  ;;  %v11019_v40 = vcombine.low %v10903_v14, %v3246_v55  ;;  %v14578_v38 = vld [vmem:[#allocation113_spill] sm:$0xff] }
 0x268   :  { %v1044_v4 = vadd.f32 %v930_v3, %v14569_v18  ;;  %v1941_v46 = vadd.f32 %v14574_v42, %v14573_v56  ;;  %v11014_v3 = vcombine.low %v10963_v15, %v11002_v60  ;;  %v2137_v63 = vrot.slane %v2001_v32, 1  ;;  %v14580_v18 = vld [vmem:[#allocation103_spill] sm:$0xff] }
 0x269   :  { %14576 = vst [vmem:[#allocation14_spill] sm:$0xff] %v11019_v40  ;;  %v11021_v7 = vcombine.low %v3062_v57, %v3066_v29  ;;  %v14579_v62 = vrot.slane %v14578_v38, 1  ;;  %v14581_v56 = vrot.slane %v14580_v18, 1  ;;  %v2312_v34 = vmul.f32 %v10632_v10, %v14572_v33  ;;  %v14582_v57 = vld [vmem:[#allocation56_spill] sm:$0xff]  ;;  %v14584_v18 = vld [vmem:[#allocation107_spill] sm:$0xff] }
 0x26a   :  { %v1180_v25 = vadd.f32 %v14575_v26, %v1044_v4  ;;  %6930 = vrot.lane.b32.xlu1 %v6929_v61, %s7353_s26  ;;  %v3948_v4 = vcombine.low %v3066_v29, %v3069_v22  ;;  %v2449_v26 = vrot.slane %v2313_v28, 2  ;;  %v2253_v61 = vadd.f32 %v2137_v63, %v1941_v46 }
 0x26b   :  { %14577 = vst [vmem:[#allocation68_spill] sm:$0xff] %v11021_v7  ;;  %v1378_v42 = vsel %vm542_vm0, %v14581_v56, %v14579_v62  ;;  %6925 = vrot.lane.b32.xlu0 %v6924_v11, %s7354_s10  ;;  %v11033_v14 = vsel %vm10461_vm7, %v3070_v1, %v3071_v45  ;;  %v3731_v55 = vcombine.low %v14508_v48, %v14549_v2  ;;  %v14583_v38 = vrot.slane %v14582_v57, 2  ;;  %v14587_v45 = vld [vmem:[#allocation181_spill] sm:$0xff] }
 0x26c   :  { %v1492_v32 = vadd.f32 %v1378_v42, %v1180_v25  ;;  %v14585_v62 = vrot.slane %v14584_v18, 2  ;;  %v2136_v10 = vrot.slane %v2000_v5, 1  ;;  %v6934_v11 = vpack.i.bf16 %v3758_v51, %v11014_v3  ;;  %v14589_v42 = vld [vmem:[#allocation18_spill] sm:$0xff]  ;;  %v14591_v51 = vld [vmem:[#allocation9_spill] sm:$0xff] }
 0x26d   :  { %v1884_v28 = vmul.f32 %v7626_v44, %v14572_v33  ;;  %v2565_v46 = vadd.f32 %v2449_v26, %v2253_v61  ;;  %v11047_v1 = vcombine.low %v3069_v22, %v11033_v14  ;;  %v6949_v48 = vpack.i.bf16 %v3948_v4, %v10742_v8 }
 0x26e   :  { %v1690_v56 = vsel %vm855_vm1, %v14585_v62, %v14583_v38  ;;  %6940 = vrot.lane.b32.xlu1 %v6939_v54, %s7354_s10  ;;  %v2448_v2 = vrot.slane %v2312_v34, 2  ;;  %v14588_v25 = vrot.slane %v14587_v45, 1  ;;  %v14590_v57 = vrot.slane %v14589_v42, 1  ;;  %v14592_v54 = vld [vmem:[#allocation35_spill] sm:$0xff] }
 0x26f   :  { %v1804_v29 = vadd.f32 %v1690_v56, %v1492_v32  ;;  %14586 = vst [vmem:[#allocation20_spill] sm:$0xff] %v11047_v1  ;;  %6935 = vrot.lane.b32.xlu0 %v6934_v11, %s7355_s1  ;;  %v6944_v32 = vpack.i.bf16 %v3731_v55, %v14591_v51  ;;  %v2628_v33 = vadd.f32 %v10275_v53, %v2565_v46  ;;  %v14594_v34 = vrot.slane %v10909_v43, 6  ;;  %v14595_v38 = vld [vmem:[#allocation183_spill] sm:$0xff]  ;;  %v14605_v51 = vld [vmem:[#allocation194_spill] sm:$0xff] }
 0x270   :  { %v1381_v5 = vsel %vm542_vm0, %v14590_v57, %v14588_v25  ;;  %v2138_v22 = vsel %vm542_vm0, %v2136_v10, %v2137_v63  ;;  %v11062_v8 = vcombine.low %v10672_v12, %v10896_v30  ;;  %v14596_v18 = vrot.slane %v14595_v38, 2  ;;  %v14597_v62 = vld [vmem:[#allocation31_spill] sm:$0xff]  ;;  %v14599_v63 = vld [vmem:[#allocation38_spill] sm:$0xff]  ;;  %v14600_v10 = vld [vmem:[#allocation37_spill] sm:$0xff] }
 0x271   :  { %v1940_v44 = vadd.f32 %v1884_v28, %v1804_v29  ;;  %v1494_v61 = vadd.f32 %v1381_v5, %v14592_v54  ;;  %v3250_v4 = vrot.slane %v14594_v34, 4  ;;  %v14598_v56 = vrot.slane %v14597_v62, 2  ;;  %v14602_v57 = vld [vmem:[#allocation66_spill] sm:$0xff]  ;;  %v14604_v5 = vld [vmem:[#allocation197_spill] sm:$0xff]  ;;  %v14609_v62 = vld [vmem:[#allocation195_spill] sm:$0xff] }
 0x272   :  { %14593 = vst [vmem:[#allocation24_spill] sm:$0xff] %v11062_v8  ;;  %v11071_v29 = vmax.f32 %v2628_v33, 0.0  ;;  %v3251_v28 = vrot.slane %v10942_v13, 6  ;;  %6950 = vrot.lane.b32.xlu1 %v6949_v48, %s7353_s26  ;;  %v2450_v12 = vsel %vm855_vm1, %v2448_v2, %v2449_v26  ;;  %v11080_v45 = vcombine.low %v14600_v10, %v14599_v63  ;;  %v14606_v33 = vld [vmem:[#allocation196_spill] sm:$0xff]  ;;  %v14607_v34 = vld [vmem:[#allocation193_spill] sm:$0xff] }
 0x273   :  { %v1693_v55 = vsel %vm855_vm1, %v14598_v56, %v14596_v18  ;;  %v2252_v11 = vadd.f32 %v2138_v22, %v1940_v44  ;;  %v3075_v25 = vrot.slane %v14599_v63, 6  ;;  %6945 = vrot.lane.b32.xlu0 %v6944_v32, %s7355_s1  ;;  %v11086_v13 = vcombine.low %v14602_v57, %v10948_v17  ;;  %v14612_v57 = vld [vmem:[#allocation25_spill] sm:$0xff] }
 0x274   :  { %v1806_v46 = vadd.f32 %v1693_v55, %v1494_v61  ;;  %14601 = vst [vmem:[#allocation7_spill] sm:$0xff] %v11080_v45  ;;  %v2451_v48 = vrot.slane %v14604_v5, 2  ;;  %v13812_v26 = vrot.slane %v14605_v51, 2  ;;  %v2785_v2 = vcombine.high %v11071_v29, %v11071_v29 }
 0x275   :  { %v2564_v42 = vadd.f32 %v2450_v12, %v2252_v11  ;;  %14603 = vst [vmem:[#allocation10_spill] sm:$0xff] %v11086_v13  ;;  %v3015_v44 = vrot.slane %v11071_v29, 5  ;;  %v6493_v61 = vrot.slane %v14600_v10, 10  ;;  %v11098_v22 = vsel %vm10461_vm7, %v3250_v4, %v3251_v28 }
 0x276   :  { %v1942_v54 = vadd.f32 %v14606_v33, %v1806_v46  ;;  %v3258_v17 = vrot.slane %v11071_v29, 6  ;;  %v14608_v18 = vrot.slane %v14607_v34, 1  ;;  %v14610_v56 = vrot.slane %v14609_v62, 1 }
 0x277   :  { %v2627_v32 = vadd.f32 %v10275_v53, %v2564_v42  ;;  %v3732_v11 = vcombine.low %v14548_v41, %v14557_v21  ;;  %v11110_v12 = vsel %vm10461_vm7, %v6493_v61, %v3075_v25  ;;  %v14611_v42 = vld [vmem:[#allocation29_spill] sm:$0xff]  ;;  %v6964_v5 = vpack.i.bf16 %v11086_v13, %v11080_v45  ;;  %v14615_v61 = vld [vmem:[#allocation83_spill] sm:$0xff] }
 0x278   :  { %v2141_v55 = vsel %vm542_vm0, %v14610_v56, %v14608_v18  ;;  %v11114_v4 = vcombine.low %v14612_v57, %v14611_v42  ;;  %v11122_v33 = vcombine.low %v10938_v58, %v11098_v22  ;;  %v2453_v41 = vsel %vm855_vm1, %v2451_v48, %v13812_v26 }
 0x279   :  { %v2254_v46 = vadd.f32 %v2141_v55, %v1942_v54  ;;  %v11116_v28 = vmax.f32 %v2627_v32, 0.0  ;;  %v3017_v21 = vrot.slane %v3015_v44, 4  ;;  %v3018_v54 = vrot.slane %v2785_v2, 5 }
 0x27a   :  { %14613 = vst [vmem:[#allocation165_spill] sm:$0xff] %v11114_v4  ;;  %14614 = vst [vmem:[#allocation171_spill] sm:$0xff] %v11122_v33  ;;  %v11128_v18 = vpack.i.bf16 %v3732_v11, %v14615_v61  ;;  %v3260_v56 = vrot.slane %v3258_v17, 4  ;;  %v3261_v55 = vrot.slane %v2785_v2, 6  ;;  %v3949_v58 = vcombine.low %v11033_v14, %v11110_v12 }
 0x27b   :  { %v2566_v62 = vadd.f32 %v2453_v41, %v2254_v46  ;;  %v11132_v32 = vcombine.high %v11116_v28, %v11116_v28  ;;  %v6487_v30 = vrot.slane %v11116_v28, 9  ;;  %v6511_v13 = vrot.slane %v11116_v28, 10 }
 0x27c   :  { %v3078_v61 = vrot.slane %v14612_v57, 6  ;;  %v11150_v14 = vsel %vm8220_vm4, %v3017_v21, %v3018_v54 }
 0x27d   :  { %v2629_v48 = vadd.f32 %v10275_v53, %v2566_v62  ;;  %v11143_v46 = vcombine.low %v11116_v28, %v11132_v32  ;;  %v3012_v41 = vrot.slane %v11132_v32, 5  ;;  %v3255_v2 = vrot.slane %v11132_v32, 6  ;;  %14617 = vst [vmem:[#allocation105_spill] sm:$0xff] %v11150_v14 }
 0x27e   :  { %v3733_v53 = vcombine.low %v14560_v23, %v14600_v10  ;;  %v3077_v62 = vrot.slane %v3075_v25, 4  ;;  %v14619_v23 = vld [vmem:[#allocation190_spill] sm:$0xff]  ;;  %v14620_v10 = vrot.slane %v14595_v38, 2 }
 0x27f   :  { %14616 = vst [vmem:[#allocation19_spill] sm:$0xff] %v11143_v46  ;;  %v11152_v26 = vmax.f32 %v2629_v48, 0.0  ;;  %v6954_v11 = vpack.i.bf16 %v11062_v8, %v11143_v46  ;;  %v11160_v45 = vsel %vm8220_vm4, %v6487_v30, %v3012_v41  ;;  %v3014_v31 = vrot.slane %v3012_v41, 4  ;;  %v4555_v46 = vld [vmem:[%s13443_s3 + $0x68] sm:$0xff] }
 0x280   :  { %14618 = vst [vmem:[#allocation117_spill] sm:$0xff] %v11160_v45  ;;  %v3256_v15 = vsel %vm10461_vm7, %v6511_v13, %v3255_v2  ;;  %v3257_v54 = vrot.slane %v3255_v2, 4  ;;  %v11168_v48 = vsel %vm10461_vm7, %v3260_v56, %v3261_v55  ;;  %v1807_v25 = vadd.f32 %v14620_v10, %v14619_v23  ;;  %v14622_v2 = vld [vmem:[#allocation26_spill] sm:$0xff] }
 0x281   :  { %6955 = vrot.lane.b32.xlu0 %v6954_v11, %s7354_s10  ;;  %v11176_v30 = vsel %vm8220_vm4, %v3014_v31, %v3015_v44  ;;  %v11180_v13 = vcombine.high %v11152_v26, %v11152_v26  ;;  %v3080_v41 = vrot.slane %v3078_v61, 4  ;;  %v3081_v21 = vrot.slane %v14622_v2, 6 }
 0x282   :  { %14621 = vst [vmem:[#allocation4_spill] sm:$0xff] %v11176_v30  ;;  %v11185_v56 = vcombine.low %v11160_v45, %v11176_v30  ;;  %v3259_v55 = vsel %vm10461_vm7, %v3257_v54, %v3258_v17  ;;  %v3976_v31 = vcombine.low %v11098_v22, %v3256_v15  ;;  %v6488_v44 = vrot.slane %v11152_v26, 9  ;;  %v14625_v54 = vld [vmem:[#allocation192_spill] sm:$0xff] }
 0x283   :  { %v3022_v11 = vrot.slane %v11180_v13, 5  ;;  %v3760_v23 = vcombine.low %v10909_v43, %v11116_v28  ;;  %v11198_v10 = vsel %vm10461_vm7, %v3077_v62, %v3078_v61  ;;  %v14623_v2 = vcombine.low %v10875_v49, %v10892_v50  ;;  %v4557_v43 = vld [vmem:[%s13443_s3 + $0x78] sm:$0xff]  ;;  %v14627_v49 = vld [vmem:[#allocation79_spill] sm:$0xff]  ;;  %v14628_v62 = vld [vmem:[#allocation140_spill] sm:$0xff] }
 0x284   :  { %v11206_v17 = vcombine.low %v11071_v29, %v11152_v26  ;;  %v3977_v22 = vcombine.low %v3259_v55, %v11168_v48  ;;  %v1943_v8 = vadd.f32 %v14625_v54, %v1807_v25  ;;  %v11219_v50 = vpack.i.bf16 %v3733_v53, %v14627_v49 }
 0x285   :  { %v6959_v38 = vpack.i.bf16 %v14623_v2, %v11185_v56  ;;  %6965 = vrot.lane.b32.xlu0 %v6964_v5, %s7354_s10  ;;  %v11216_v28 = vsel %vm8220_vm4, %v6488_v44, %v3022_v11  ;;  %v11223_v61 = vsel %vm10461_vm7, %v3080_v41, %v3081_v21  ;;  %v11226_v2 = vmax.f32 %v14628_v62, 0.0  ;;  %v4556_v21 = vld [vmem:[%s13443_s3 + $0x70] sm:$0xff] }
 0x286   :  { %14624 = vst [vmem:[#allocation179_spill] sm:$0xff] %v11206_v17  ;;  %14626 = vst [vmem:[#allocation71_spill] sm:$0xff] %v11216_v28  ;;  %v6969_v25 = vpack.i.bf16 %v10930_v52, %v3976_v31  ;;  %v11232_v5 = vcombine.low %v11150_v14, %v11216_v28  ;;  %v14629_v44 = vrot.slane %v14607_v34, 1  ;;  %v13819_v53 = vmov 0.0   ;;  %v14631_v52 = vld [vmem:[#allocation23_spill] sm:$0xff]  ;;  %v14632_v31 = vld [vmem:[#allocation74_spill] sm:$0xff] }
 0x287   :  { %6960 = vrot.lane.b32.xlu1 %v6959_v38, %s7355_s1  ;;  %6732 = vmatprep.subr.mxu1 %v13819_v53  ;;  %v11240_v41 = vcombine.low %v3256_v15, %v3259_v55  ;;  %v3950_v38 = vcombine.low %v11198_v10, %v11223_v61  ;;  %v11246_v49 = vcombine.low %v14632_v31, %v14631_v52  ;;  %v3024_v55 = vrot.slane %v3022_v11, 4 }
 0x288   :  { %v2255_v54 = vadd.f32 %v14629_v44, %v1943_v8  ;;  %6764 = vmatpush1.msra.mxu1 %v4557_v43  ;;  %4657 = vmatprep.subr.mxu0 %v13819_v53  ;;  %v3265_v8 = vrot.slane %v11180_v13, 6  ;;  %v6979_v34 = vpack.i.bf16 %v11019_v40, %v11206_v17  ;;  %v6984_v62 = vpack.i.bf16 %v3977_v22, %v3949_v58 }
 0x289   :  { %14630 = vst [vmem:[#allocation176_spill] sm:$0xff] %v11240_v41  ;;  %14633 = vst [vmem:[#allocation113_spill] sm:$0xff] %v11246_v49  ;;  %v14634_v44 = vrot.slane %v14605_v51, 2  ;;  %6733 = vmatprep.subr.mxu1 %v13819_v53  ;;  %4658 = vmatpush1.msra.mxu0 %v4557_v43  ;;  %v11261_v28 = vpack.i.bf16 %v3950_v38, %v11014_v3  ;;  %v6512_v51 = vrot.slane %v11152_v26, 10  ;;  %v4554_v43 = vld [vmem:[%s13443_s3 + $0x60] sm:$0xff]  ;;  %v6494_v38 = vrot.slane %v14611_v42, 10 }
 0x28a   :  { %6975 = vrot.lane.b32.xlu0 %v11128_v18, %s7355_s1  ;;  %6765 = vmatpush1.msra.mxu1 %v4556_v21  ;;  %v3734_v11 = vcombine.low %v14599_v63, %v14612_v57  ;;  %v6989_v22 = vpack.i.bf16 %v3760_v23, %v11232_v5  ;;  %v11273_v18 = vld [vmem:[%s13442_s2] ss:$0 sm:$0xff]  ;;  %v3085_v57 = vrot.slane %v14632_v31, 6  ;;  %v11325_v17 = vmax.f32 %v10873_v6, 0.0  ;;  %v4552_v6 = vld [vmem:[%s13443_s3 + $0x50] sm:$0xff] }
 0x28b   :  { %v2567_v15 = vadd.f32 %v14634_v44, %v2255_v54  ;;  %6970 = vrot.lane.b32.xlu1 %v6969_v25, %s7353_s26  ;;  %6734 = vmatprep.subr.mxu1 %v13819_v53  ;;  %v2631_v63 = vadd.f32 %v11273_v18, %v10841_v35  ;;  %v11287_v25 = vsel %vm10461_vm7, %v6512_v51, %v3265_v8  ;;  %v3267_v54 = vrot.slane %v3265_v8, 4  ;;  %v4553_v35 = vld [vmem:[%s13443_s3 + $0x58] sm:$0xff] }
 0x28c   :  { %6766 = vmatpush1.msra.mxu1 %v4555_v46  ;;  %4659 = vmatprep.subr.mxu0 %v13819_v53  ;;  %v3087_v51 = vrot.slane %v3085_v57, 4  ;;  %v11305_v8 = vsel %vm10461_vm7, %v6494_v38, %v3085_v57  ;;  %v14640_v38 = vmov 0.0   ;;  %14641 = vst [vmem:[#allocation107_spill] sm:$0xff] %v11325_v17 }
 0x28d   :  { %v2630_v3 = vadd.f32 %v11273_v18, %v2567_v15  ;;  %v14635_v15 = vld [vmem:[#allocation44_spill] sm:$0xff]  ;;  %6735 = vmatprep.subr.mxu1 %v13819_v53  ;;  %4660 = vmatpush1.msra.mxu0 %v4556_v21  ;;  %v11300_v23 = vmax.f32 %v2631_v63, 0.0  ;;  %v11314_v21 = vcombine.low %v11110_v12, %v11198_v10 }
 0x28e   :  { %v11294_v58 = vpack.i.bf16 %v3734_v11, %v14635_v15  ;;  %6985 = vrot.lane.b32.xlu0 %v6984_v62, %s7353_s26  ;;  %6767 = vmatpush1.msra.mxu1 %v4554_v43  ;;  %v3088_v11 = vrot.slane %v14631_v52, 6  ;;  %v14637_v15 = vld [vmem:[#allocation40_spill] sm:$0xff] }
 0x28f   :  { %v11291_v44 = vmax.f32 %v2630_v3, 0.0  ;;  %v14636_v3 = vld [vmem:[#allocation36_spill] sm:$0xff]  ;;  %14639 = vst [vmem:[#allocation56_spill] sm:$0xff] %v11314_v21  ;;  %6980 = vrot.lane.b32.xlu1 %v6979_v34, %s7354_s10  ;;  %6736 = vmatprep.subr.mxu1 %v14640_v38  ;;  %v11334_v10 = vcombine.high %v11300_v23, %v11300_v23  ;;  %v6516_v45 = vrot.slane %v11300_v23, 10  ;;  %v6495_v39 = vrot.slane %v14637_v15, 10 }
 0x290   :  { %v11310_v53 = vcombine.low %v14637_v15, %v14636_v3  ;;  %4661 = vmatprep.subr.mxu0 %v14640_v38  ;;  %6768 = vmatpush1.msra.mxu1 %v4553_v35  ;;  %v11338_v34 = vsel %vm10461_vm7, %v3087_v51, %v3088_v11  ;;  %v14644_v51 = vpack.i.bf16 %v11021_v7, %v11114_v4 }
 0x291   :  { %v2786_v62 = vcombine.high %v11291_v44, %v11291_v44  ;;  %v3025_v63 = vrot.slane %v11291_v44, 5  ;;  %v3268_v57 = vrot.slane %v11291_v44, 6  ;;  %v11329_v12 = vcombine.low %v11180_v13, %v11291_v44  ;;  %4662 = vmatpush1.msra.mxu0 %v4555_v46  ;;  %6737 = vmatprep.subr.mxu1 %v14640_v38  ;;  %v4551_v46 = vld [vmem:[%s13443_s3 + $0x48] sm:$0xff] }
 0x292   :  { %14638 = vst [vmem:[#allocation103_spill] sm:$0xff] %v11310_v53  ;;  %6995 = vrot.lane.b32.xlu0 %v14644_v51, %s7354_s10  ;;  %4663 = vmatprep.subr.mxu0 %v14640_v38  ;;  %v3313_v7 = vrot.slane %v11334_v10, 6 }
 0x293   :  { %14642 = vst [vmem:[#allocation181_spill] sm:$0xff] %v11329_v12  ;;  %v11345_v40 = vsel %vm8220_vm4, %v3024_v55, %v3025_v63  ;;  %v3027_v14 = vrot.slane %v3025_v63, 4  ;;  %v3028_v30 = vrot.slane %v2786_v62, 5  ;;  %v11355_v60 = vsel %vm10461_vm7, %v3267_v54, %v3268_v57  ;;  %6990 = vrot.lane.b32.xlu1 %v6989_v22, %s7355_s1  ;;  %6769 = vmatpush1.msra.mxu1 %v4552_v6 }
 0x294   :  { %14643 = vst [vmem:[#allocation18_spill] sm:$0xff] %v11345_v40  ;;  %v4092_v55 = vcombine.low %v11300_v23, %v11334_v10  ;;  %v3270_v59 = vrot.slane %v3268_v57, 4  ;;  %v3271_v63 = vrot.slane %v2786_v62, 6  ;;  %v3978_v54 = vcombine.low %v11287_v25, %v11355_v60  ;;  %4664 = vmatpush1.msra.mxu0 %v4554_v43  ;;  %6738 = vmatprep.subr.mxu1 %v14640_v38 }
 0x295   :  { %v11366_v51 = vsel %vm8220_vm4, %v3027_v14, %v3028_v30  ;;  %v7009_v57 = vpack.i.bf16 %v11122_v33, %v11329_v12  ;;  %v3951_v14 = vcombine.low %v11305_v8, %v11338_v34  ;;  %v3296_v30 = vrot.slane %v11226_v2, 5  ;;  %4665 = vmatprep.subr.mxu0 %v14640_v38  ;;  %6770 = vmatpush1.msra.mxu1 %v4551_v46  ;;  %v4550_v12 = vld [vmem:[%s13443_s3 + $0x40] sm:$0xff] }
 0x296   :  { %14645 = vst [vmem:[#allocation9_spill] sm:$0xff] %v11366_v51  ;;  %v11377_v4 = vcombine.low %v11345_v40, %v11366_v51  ;;  %v11384_v22 = vpack.i.bf16 %v11240_v41, %v4092_v55  ;;  %v11388_v62 = vsel %vm10461_vm7, %v3270_v59, %v3271_v63  ;;  %v11392_v33 = vsel %vm10461_vm7, %v6516_v45, %v3313_v7  ;;  %v14647_v63 = vld [vmem:[#allocation33_spill] sm:$0xff] }
 0x297   :  { %14646 = vst [vmem:[#allocation35_spill] sm:$0xff] %v11392_v33  ;;  %v3293_v43 = vrot.slane %v11334_v10, 5  ;;  %7005 = vrot.lane.b32.xlu0 %v11261_v28, %s7353_s26  ;;  %v3979_v59 = vcombine.low %v11388_v62, %v11392_v33  ;;  %v6514_v55 = vrot.slane %v11300_v23, 9  ;;  %4666 = vmatpush1.msra.mxu0 %v4553_v35  ;;  %v3090_v45 = vrot.slane %v3088_v11, 4 }
 0x298   :  { %v3091_v41 = vrot.slane %v14647_v63, 6  ;;  %7000 = vrot.lane.b32.xlu1 %v11219_v50, %s7355_s1  ;;  %v7024_v51 = vpack.i.bf16 %v11185_v56, %v3978_v54  ;;  %6739 = vmatprep.subr.mxu1 %v14640_v38  ;;  %v13839_v28 = vrot.slane %v14636_v3, 6  ;;  %v14649_v35 = vcombine.low %v11132_v32, %v11071_v29  ;;  %v4549_v50 = vld [vmem:[%s13443_s3 + $0x38] sm:$0xff]  ;;  %v14651_v54 = vld [vmem:[#allocation199_spill] sm:$0xff] }
 0x299   :  { %v3295_v40 = vrot.slane %v3293_v43, 4  ;;  %v11418_v63 = vpack.i.bf16 %v3979_v59, %v3951_v14  ;;  %v11422_v56 = vsel %vm8220_vm4, %v6514_v55, %v3293_v43  ;;  %4667 = vmatprep.subr.mxu0 %v14640_v38  ;;  %6771 = vmatpush1.msra.mxu1 %v4550_v12  ;;  %v11429_v33 = vmax.f32 %v14651_v54, 0.0 }
 0x29a   :  { %v7014_v11 = vpack.i.bf16 %v14649_v35, %v11377_v4  ;;  %14650 = vst [vmem:[#allocation183_spill] sm:$0xff] %v11422_v56  ;;  %4668 = vmatpush1.msra.mxu0 %v4552_v6  ;;  %6740 = vmatprep.subr.mxu1 %v14640_v38  ;;  %v11438_v32 = vsel %vm10461_vm7, %v3090_v45, %v3091_v41  ;;  %v11455_v41 = vld [vmem:[%s13443_s3 + $0x30] sm:$0xff]  ;;  %v3298_v6 = vrot.slane %v3296_v30, 4  ;;  %v3315_v59 = vrot.slane %v3313_v7, 4  ;;  %v11469_v35 = vpop.permute.xlu0 %6815  ;;  %v14655_v7 = vld [vmem:[#allocation47_spill] sm:$0xff] }
 0x29b   :  { %v11433_v29 = vsel %vm8220_vm4, %v3295_v40, %v3296_v30  ;;  %v11444_v14 = vsel %vm10461_vm7, %v6495_v39, %v13839_v28  ;;  %4669 = vmatprep.subr.mxu0 %v14640_v38  ;;  %v3735_v40 = vcombine.low %v14611_v42, %v14632_v31  ;;  %6772 = vmatpush1.msra.mxu1 %v4549_v50  ;;  %v3316_v42 = vrot.slane %v11226_v2, 6  ;;  %v11467_v31 = vpop.permute.xlu1 %6810 }
 0x29c   :  { %14652 = vst [vmem:[#allocation31_spill] sm:$0xff] %v11433_v29  ;;  %7015 = vrot.lane.b32.xlu0 %v7014_v11, %s7355_s1  ;;  %v4206_v43 = vcombine.low %v11422_v56, %v11433_v29  ;;  %7010 = vrot.lane.b32.xlu1 %v7009_v57, %s7354_s10  ;;  %v3952_v39 = vcombine.low %v11438_v32, %v11444_v14  ;;  %14654 = vst [vmem:[#allocation37_spill] sm:$0xff] %v11469_v35  ;;  %v6518_v54 = vrot.slane %v11325_v17, 9 }
 0x29d   :  { %v3280_v55 = vcombine.high %v11226_v2, %v11226_v2  ;;  %v11464_v45 = vcombine.high %v11325_v17, %v11325_v17  ;;  %v11472_v30 = vpack.i.bf16 %v3735_v40, %v14655_v7  ;;  %4670 = vmatpush1.msra.mxu0 %v4551_v46  ;;  %6741 = vmatprep.subr.mxu1 %v14640_v38  ;;  %v14658_v40 = vld [vmem:[#allocation90_spill] sm:$0xff] }
 0x29e   :  { %v11477_v57 = vcombine.low %v11168_v48, %v11287_v25  ;;  %v4093_v11 = vcombine.low %v11226_v2, %v11325_v17  ;;  %v14657_v28 = vcombine.low %v11152_v26, %v11180_v13  ;;  %v11486_v56 = vpack.i.bf16 %v3952_v39, %v11232_v5  ;;  %4671 = vmatprep.subr.mxu0 %v14640_v38  ;;  %v4547_v48 = vld [vmem:[%s13443_s3 + $0x28] sm:$0xff]  ;;  %v14659_v26 = vld [vmem:[#allocation28_spill] sm:$0xff] }
 0x29f   :  { %14653 = vst [vmem:[#allocation38_spill] sm:$0xff] %v11464_v45  ;;  %6773 = vmatpush1.msra.mxu1 %v11455_v41  ;;  %v3299_v25 = vrot.slane %v3280_v55, 5  ;;  %v3341_v46 = vrot.slane %v11464_v45, 5  ;;  %4672 = vmatpush1.msra.mxu0 %v4550_v12  ;;  %v11497_v13 = vcombine.low %v14659_v26, %v14658_v40  ;;  %v11501_v5 = vsel %vm10461_vm7, %v3315_v59, %v3316_v42 }
 0x2a0   :  { %14656 = vst [vmem:[#allocation66_spill] sm:$0xff] %v11477_v57  ;;  %v7044_v29 = vpack.i.bf16 %v14657_v28, %v4206_v43  ;;  %7025 = vrot.lane.b32.xlu0 %v7024_v51, %s7353_s26  ;;  %14661 = vst [vmem:[#allocation194_spill] sm:$0xff] %v11501_v5  ;;  %v3318_v28 = vrot.slane %v3316_v42, 4  ;;  %v3319_v43 = vrot.slane %v3280_v55, 6  ;;  %v11504_v39 = vmax.f32 %v10870_v0, 0.0  ;;  %6742 = vmatprep.subr.mxu1 %v14640_v38  ;;  %v11521_v0 = vpop.permute.xlu1 %6820  ;;  %v11523_v55 = vpop.permute.xlu0 %6825 }
 0x2a1   :  { %14660 = vst [vmem:[#allocation197_spill] sm:$0xff] %v11497_v13  ;;  %v14663_v7 = vpack.i.bf16 %v11047_v1, %v11246_v49  ;;  %v11513_v12 = vsel %vm8220_vm4, %v3298_v6, %v3299_v25  ;;  %v3342_v51 = vsel %vm8220_vm4, %v6518_v54, %v3341_v46  ;;  %v11519_v59 = vcombine.low %v11223_v61, %v11305_v8  ;;  %v4546_v6 = vld [vmem:[%s13443_s3 + $0x20] sm:$0xff]  ;;  %v14705_v49 = vld [vmem:[#allocation63_spill] sm:$0xff] }
 0x2a2   :  { %14662 = vst [vmem:[#allocation196_spill] sm:$0xff] %v11504_v39  ;;  %14664 = vst [vmem:[#allocation193_spill] sm:$0xff] %v11513_v12  ;;  %4673 = vmatprep.subr.mxu0 %v14640_v38  ;;  %6774 = vmatpush1.msra.mxu1 %v4547_v48  ;;  %v4207_v42 = vcombine.low %v11513_v12, %v3342_v51  ;;  %v11532_v54 = vsel %vm10461_vm7, %v3318_v28, %v3319_v43  ;;  %v14669_v8 = vrot.slane %v14636_v3, 6 }
 0x2a3   :  { %7020 = vrot.lane.b32.xlu1 %v14663_v7, %s7354_s10  ;;  %14665 = vst [vmem:[#allocation195_spill] sm:$0xff] %v11519_v59  ;;  %14666 = vst [vmem:[#allocation29_spill] sm:$0xff] %v11521_v0  ;;  %v3736_v61 = vcombine.low %v14631_v52, %v14637_v15  ;;  %v11539_v7 = vpack.i.bf16 %v11477_v57, %v4093_v11  ;;  %v3763_v51 = vcombine.low %v11291_v44, %v11300_v23  ;;  %v11553_v52 = vld [vmem:[%s13443_s3 + $0x18] sm:$0xff]  ;;  %v14670_v44 = vld [vmem:[#allocation96_spill] sm:$0xff] }
 0x2a4   :  { %14667 = vst [vmem:[#allocation25_spill] sm:$0xff] %v11523_v55  ;;  %14668 = vst [vmem:[#allocation83_spill] sm:$0xff] %v11532_v54  ;;  %v3097_v25 = vrot.slane %v14669_v8, 4  ;;  %4674 = vmatpush1.msra.mxu0 %v4549_v50  ;;  %6743 = vmatprep.subr.mxu1 %v14640_v38  ;;  %v3980_v17 = vcombine.low %v11501_v5, %v11532_v54  ;;  %v3098_v28 = vrot.slane %v14659_v26, 6  ;;  %v14671_v11 = vld [vmem:[#allocation39_spill] sm:$0xff]  ;;  %v14673_v23 = vld [vmem:[#allocation92_spill] sm:$0xff] }
 0x2a5   :  { %7035 = vrot.lane.b32.xlu0 %v11384_v22, %s7354_s10  ;;  %4675 = vmatprep.subr.mxu0 %v14640_v38  ;;  %v11558_v15 = vpack.i.bf16 %v3736_v61, %v14670_v44  ;;  %v4094_v50 = vcombine.low %v11464_v45, %v11504_v39  ;;  %v3101_v43 = vrot.slane %v14671_v11, 6  ;;  %v11565_v22 = vpack.i.bf16 %v3763_v51, %v4207_v42  ;;  %v11572_v61 = vpop.permute.xlu1 %6830  ;;  %v11574_v44 = vpop.permute.xlu0 %6835 }
 0x2a6   :  { %6775 = vmatpush1.msra.mxu1 %v4546_v6  ;;  %v11569_v8 = vcombine.low %v11355_v60, %v11388_v62  ;;  %v3100_v54 = vrot.slane %v3098_v28, 4  ;;  %v3105_v5 = vrot.slane %v14673_v23, 6  ;;  %14674 = vst [vmem:[#allocation26_spill] sm:$0xff] %v11572_v61  ;;  %14675 = vst [vmem:[#allocation192_spill] sm:$0xff] %v11574_v44  ;;  %4676 = vmatpush1.msra.mxu0 %v11455_v41  ;;  %v6496_v42 = vrot.slane %v14658_v40, 10  ;;  %v4544_v41 = vld [vmem:[%s13443_s3 + $0x10] sm:$0xff] }
 0x2a7   :  { %7030 = vrot.lane.b32.xlu1 %v11294_v58, %s7355_s1  ;;  %6744 = vmatprep.subr.mxu1 %v14640_v38  ;;  %v3099_v58 = vsel %vm10461_vm7, %v3097_v25, %v3098_v28  ;;  %v11583_v60 = vcombine.high %v11504_v39, %v11504_v39  ;;  %v3343_v62 = vrot.slane %v3341_v46, 4  ;;  %v11588_v51 = vpack.i.bf16 %v11377_v4, %v3980_v17  ;;  %v14677_v25 = vld [vmem:[#allocation41_spill] sm:$0xff]  ;;  %v14688_v44 = vld [vmem:[#allocation91_spill] sm:$0xff] }
 0x2a8   :  { %14672 = vst [vmem:[#allocation190_spill] sm:$0xff] %v11569_v8  ;;  %4677 = vmatprep.subr.mxu0 %v14640_v38  ;;  %6776 = vmatpush1.msra.mxu1 %v11553_v52  ;;  %v3107_v11 = vrot.slane %v3105_v5, 4  ;;  %v3108_v28 = vrot.slane %v14677_v25, 6  ;;  %v3344_v57 = vrot.slane %v11504_v39, 5  ;;  %v11597_v46 = vpack.i.bf16 %v11569_v8, %v4094_v50 }
 0x2a9   :  { %14676 = vst [vmem:[#allocation79_spill] sm:$0xff] %v11583_v60  ;;  %7045 = vrot.lane.b32.xlu0 %v7044_v29, %s7355_s1  ;;  %4678 = vmatpush1.msra.mxu0 %v4547_v48  ;;  %v11601_v45 = vsel %vm10461_vm7, %v3100_v54, %v3101_v43  ;;  %v11605_v4 = vsel %vm10461_vm7, %v6496_v42, %v3105_v5  ;;  %v3347_v17 = vrot.slane %v11583_v60, 5  ;;  %v14678_v43 = vld [vmem:[#allocation147_spill] sm:$0xff]  ;;  %v11619_v42 = vpop.permute.xlu1 %6840  ;;  %v11621_v60 = vpop.permute.xlu0 %6845  ;;  %v11636_v5 = vmax.f32 %v10845_v9, 0.0  ;;  %v11656_v9 = vld [vmem:[%s13443_s3] sm:$0xff] }
 0x2aa   :  { %6745 = vmatprep.subr.mxu1 %v14640_v38  ;;  %v11613_v29 = vsel %vm10461_vm7, %v3107_v11, %v3108_v28  ;;  %v3953_v48 = vcombine.low %v3099_v58, %v11601_v45  ;;  %v3345_v54 = vsel %vm8220_vm4, %v3343_v62, %v3344_v57  ;;  %v3346_v50 = vrot.slane %v3344_v57, 4  ;;  %14679 = vst [vmem:[#allocation140_spill] sm:$0xff] %v11619_v42  ;;  %v14684_v42 = vld [vmem:[#allocation49_spill] sm:$0xff] }
 0x2ab   :  { %7040 = vrot.lane.b32.xlu1 %v11418_v63, %s7353_s26  ;;  %14680 = vst [vmem:[#allocation23_spill] sm:$0xff] %v11621_v60  ;;  %4679 = vmatprep.subr.mxu0 %v14640_v38  ;;  %v4543_v63 = vld [vmem:[%s13443_s3 + $0x8] sm:$0xff]  ;;  %v3954_v11 = vcombine.low %v11605_v4, %v11613_v29  ;;  %v3764_v62 = vcombine.low %v11334_v10, %v11226_v2  ;;  %v14683_v60 = vld [vmem:[#allocation46_spill] sm:$0xff]  ;;  %v3110_v10 = vrot.slane %v3108_v28, 4  ;;  %v14696_v28 = vrot.slane %v14678_v43, 6 }
 0x2ac   :  { %6777 = vmatpush1.msra.mxu1 %v4544_v41  ;;  %v11633_v57 = vcombine.low %v14673_v23, %v14677_v25  ;;  %4680 = vmatpush1.msra.mxu0 %v4546_v6  ;;  %v3348_v8 = vsel %vm8220_vm4, %v3346_v50, %v3347_v17  ;;  %v11643_v39 = vcombine.low %v11338_v34, %v11438_v32  ;;  %v3131_v12 = vrot.slane %v14705_v49, 6  ;;  %v4570_v49 = vld [vmem:[%s13443_s3 + $0xe0] sm:$0xff] }
 0x2ad   :  { %6746 = vmatprep.subr.mxu1 %v14640_v38  ;;  %v11647_v2 = vcombine.low %v14684_v42, %v14683_v60  ;;  %7055 = vrot.lane.b32.xlu0 %v11472_v30, %s7355_s1  ;;  %v11658_v6 = vpack.i.bf16 %v3954_v11, %v3953_v48  ;;  %v4208_v34 = vcombine.low %v3345_v54, %v3348_v8  ;;  %v3111_v48 = vrot.slane %v14688_v44, 6  ;;  %v11672_v11 = vpop.permute.xlu1 %6850 }
 0x2ae   :  { %14681 = vst [vmem:[#allocation74_spill] sm:$0xff] %v11633_v57  ;;  %14682 = vst [vmem:[#allocation44_spill] sm:$0xff] %v11643_v39  ;;  %4681 = vmatprep.subr.mxu0 %v14640_v38  ;;  %v3737_v32 = vcombine.low %v14636_v3, %v14659_v26  ;;  %v14686_v17 = vpack.i.bf16 %v11314_v21, %v11310_v53  ;;  %6778 = vmatpush1.msra.mxu1 %v4543_v63  ;;  %v11676_v3 = vpop.permute.xlu0 %6855  ;;  %v14691_v26 = vld [vmem:[#allocation97_spill] sm:$0xff]  ;;  %v6497_v54 = vrot.slane %v14684_v42, 10 }
 0x2af   :  { %14685 = vst [vmem:[#allocation36_spill] sm:$0xff] %v11647_v2  ;;  %v11669_v50 = vcombine.low %v11444_v14, %v3099_v58  ;;  %14689 = vst [vmem:[#allocation33_spill] sm:$0xff] %v11672_v11  ;;  %4682 = vmatpush1.msra.mxu0 %v11553_v52  ;;  %6747 = vmatprep.subr.mxu1 %v14640_v38  ;;  %v14692_v14 = vld [vmem:[#allocation50_spill] sm:$0xff]  ;;  %v4573_v52 = vld [vmem:[%s13443_s3 + $0xf8] sm:$0xff]  ;;  %v11689_v44 = vpack.i.bf16 %v3764_v62, %v4208_v34  ;;  %v11708_v1 = vrot.slane %v14696_v28, 4 }
 0x2b0   :  { %7050 = vrot.lane.b32.xlu1 %v14686_v17, %s7354_s10  ;;  %14690 = vst [vmem:[#allocation199_spill] sm:$0xff] %v11676_v3  ;;  %v11679_v8 = vpack.i.bf16 %v3737_v32, %v14691_v26  ;;  %v3115_v17 = vrot.slane %v14683_v60, 6  ;;  %v3118_v58 = vrot.slane %v14692_v14, 6  ;;  %4683 = vmatprep.subr.mxu0 %v14640_v38  ;;  %v3738_v32 = vcombine.low %v14658_v40, %v14673_v23  ;;  %v14693_v26 = vld [vmem:[#allocation52_spill] sm:$0xff]  ;;  %v14694_v62 = vld [vmem:[#allocation51_spill] sm:$0xff] }
 0x2b1   :  { %14687 = vst [vmem:[#allocation40_spill] sm:$0xff] %v11669_v50  ;;  %6779 = vmatpush1.msra.mxu1 %v11656_v9  ;;  %v3121_v30 = vrot.slane %v14693_v26, 6  ;;  %7065 = vrot.lane.b32.xlu0 %v11539_v7, %s7354_s10  ;;  %v11704_v34 = vcombine.low %v14692_v14, %v14694_v62  ;;  %14697 = vst [vmem:[#allocation90_spill] sm:$0xff] %v11708_v1  ;;  %v14698_v40 = vld [vmem:[#allocation104_spill] sm:$0xff]  ;;  %v3112_v23 = vsel %vm10461_vm7, %v3110_v10, %v3111_v48 }
 0x2b2   :  { %4684 = vmatpush1.msra.mxu0 %v4544_v41  ;;  %v11700_v3 = vsel %vm10461_vm7, %v6497_v54, %v3115_v17  ;;  %v3117_v11 = vrot.slane %v3115_v17, 4  ;;  %v3120_v21 = vrot.slane %v3118_v58, 4  ;;  %6748 = vmatprep.subr.mxu1 %v14640_v38  ;;  %v11714_v7 = vpack.i.bf16 %v3738_v32, %v14698_v40  ;;  %v4572_v54 = vld [vmem:[%s13443_s3 + $0xf0] sm:$0xff]  ;;  %v11735_v48 = vpop.permute.xlu0 %6865  ;;  %v14701_v40 = vld [vmem:[#allocation55_spill] sm:$0xff] }
 0x2b3   :  { %14695 = vst [vmem:[#allocation47_spill] sm:$0xff] %v11704_v34  ;;  %v11720_v41 = vcombine.low %v11601_v45, %v11605_v4  ;;  %4685 = vmatprep.subr.mxu0 %v14640_v38  ;;  %6780 = vmatpush2.msra.mxu1 %v4573_v52  ;;  %v3739_v10 = vcombine.low %v14677_v25, %v14684_v42  ;;  %v14700_v45 = vld [vmem:[#allocation72_spill] sm:$0xff]  ;;  %v11752_v25 = vld [vmem:[%s13443_s3 + $0xe8] sm:$0xff] }
 0x2b4   :  { %7060 = vrot.lane.b32.xlu1 %v11486_v56, %s7353_s26  ;;  %v11726_v56 = vpop.permute.xlu1 %6860  ;;  %v3119_v17 = vsel %vm10461_vm7, %v3117_v11, %v3118_v58  ;;  %v3122_v28 = vsel %vm10461_vm7, %v3120_v21, %v3121_v30  ;;  %v3125_v4 = vrot.slane %v14700_v45, 6  ;;  %4686 = vmatpush1.msra.mxu0 %v4543_v63  ;;  %v3955_v32 = vcombine.low %v3112_v23, %v11700_v3  ;;  %v14704_v63 = vld [vmem:[#allocation101_spill] sm:$0xff] }
 0x2b5   :  { %14699 = vst [vmem:[#allocation28_spill] sm:$0xff] %v11726_v56  ;;  %6749 = vmatprep.subr.mxu1 %v14640_v38  ;;  %v3956_v26 = vcombine.low %v3119_v17, %v3122_v28  ;;  %v11741_v61 = vcombine.low %v14700_v45, %v14701_v40  ;;  %v3128_v11 = vrot.slane %v14701_v40, 6  ;;  %v14703_v21 = vpack.i.bf16 %v11519_v59, %v11497_v13 }
 0x2b6   :  { %4687 = vmatprep.subr.mxu0 %v14640_v38  ;;  %v11757_v30 = vpack.i.bf16 %v3739_v10, %v14704_v63  ;;  %v6498_v58 = vrot.slane %v14694_v62, 10  ;;  %v3127_v53 = vrot.slane %v3125_v4, 4  ;;  %6781 = vmatpush2.msra.mxu1 %v4572_v54  ;;  %v3740_v13 = vcombine.low %v14683_v60, %v14692_v14  ;;  %v14706_v63 = vld [vmem:[#allocation64_spill] sm:$0xff]  ;;  %v14708_v14 = vld [vmem:[#allocation122_spill] sm:$0xff] }
 0x2b7   :  { %14702 = vst [vmem:[#allocation96_spill] sm:$0xff] %v11741_v61  ;;  %7075 = vrot.lane.b32.xlu0 %v14703_v21, %s7354_s10  ;;  %v11763_v21 = vcombine.low %v11613_v29, %v3112_v23  ;;  %v3130_v59 = vrot.slane %v3128_v11, 4  ;;  %4688 = vmatpush1.msra.mxu0 %v11656_v9  ;;  %v6499_v29 = vrot.slane %v14706_v63, 10  ;;  %v14707_v23 = vld [vmem:[#allocation115_spill] sm:$0xff]  ;;  %v11781_v60 = vmax.f32 %v10863_v24, 0.0 }
 0x2b8   :  { %7070 = vrot.lane.b32.xlu1 %v11565_v22, %s7355_s1  ;;  %6750 = vmatprep.subr.mxu1 %v14640_v38  ;;  %v3126_v10 = vsel %vm10461_vm7, %v6498_v58, %v3125_v4  ;;  %v11774_v22 = vsel %vm10461_vm7, %v3127_v53, %v3128_v11  ;;  %v3135_v42 = vrot.slane %v14707_v23, 6  ;;  %v11778_v55 = vpop.permute.xlu1 %6870  ;;  %v11788_v9 = vpack.i.bf16 %v3956_v26, %v3955_v32  ;;  %v4569_v58 = vld [vmem:[%s13443_s3 + $0xd8] sm:$0xff]  ;;  %v14710_v11 = vld [vmem:[#allocation87_spill] sm:$0xff]  ;;  %v14711_v53 = vld [vmem:[#allocation16_spill] sm:$0xff] }
 0x2b9   :  { %4689 = vmatprep.subr.mxu0 %v14640_v38  ;;  %6782 = vmatpush2.msra.mxu1 %v11752_v25  ;;  %v11793_v4 = vpack.i.bf16 %v3740_v13, %v14708_v14  ;;  %v11800_v24 = vsel %vm10461_vm7, %v3130_v59, %v3131_v12  ;;  %v11808_v26 = vcombine.low %v14706_v63, %v14707_v23  ;;  %v11810_v13 = vpop.permute.xlu0 %6875  ;;  %v6873_v59 = vunpack.i.h.bf16 %v11778_v55 }
 0x2ba   :  { %4690 = vmatpush2.msra.mxu0 %v4573_v52  ;;  %v11804_v32 = vsel %vm10461_vm7, %v6499_v29, %v3135_v42  ;;  %6751 = vmatprep.subr.mxu1 %v14640_v38  ;;  %v6867_v52 = vunpack.i.l.bf16 %v11735_v48  ;;  %v6868_v29 = vunpack.i.h.bf16 %v11735_v48  ;;  %v11827_v14 = vcombine.low %v11700_v3, %v3119_v17  ;;  %v11847_v3 = vld [vmem:[%s13443_s3 + $0xd0] sm:$0xff] }
 0x2bb   :  { %7085 = vrot.lane.b32.xlu0 %v11558_v15, %s7355_s1  ;;  %14709 = vst [vmem:[#allocation39_spill] sm:$0xff] %v11808_v26  ;;  %v3957_v15 = vcombine.low %v3126_v10, %v11774_v22  ;;  %v3958_v12 = vcombine.low %v11800_v24, %v11804_v32  ;;  %4691 = vmatprep.subr.mxu0 %v14640_v38  ;;  %v6877_v1 = vunpack.i.l.bf16 %v11810_v13 }
 0x2bc   :  { %7080 = vrot.lane.b32.xlu1 %v11588_v51, %s7353_s26  ;;  %6783 = vmatpush2.msra.mxu1 %v4570_v49  ;;  %v6872_v51 = vunpack.i.l.bf16 %v11778_v55  ;;  %v11831_v56 = vcombine.low %v14711_v53, %v14710_v11  ;;  %v3741_v0 = vcombine.low %v14694_v62, %v14700_v45  ;;  %v11837_v36 = vcombine.low %v3122_v28, %v3126_v10  ;;  %v14715_v28 = vld [vmem:[#allocation143_spill] sm:$0xff]  ;;  %v14716_v45 = vld [vmem:[#allocation156_spill] sm:$0xff] }
 0x2bd   :  { %4692 = vmatpush2.msra.mxu0 %v4572_v54  ;;  %6752 = vmatprep.subr.mxu1 %v14640_v38  ;;  %v3742_v55 = vcombine.low %v14701_v40, %v14706_v63  ;;  %v11849_v54 = vpack.i.bf16 %v3958_v12, %v3957_v15  ;;  %v11861_v48 = vcombine.low %v14716_v45, %v14715_v28  ;;  %v3137_v40 = vrot.slane %v3135_v42, 4  ;;  %v14718_v63 = vld [vmem:[#allocation123_spill] sm:$0xff]  ;;  %v11874_v12 = vpop.permute.xlu0 %6885 }
 0x2be   :  { %14712 = vst [vmem:[#allocation92_spill] sm:$0xff] %v11831_v56  ;;  %14713 = vst [vmem:[#allocation41_spill] sm:$0xff] %v11837_v36  ;;  %4693 = vmatprep.subr.mxu0 %v14640_v38  ;;  %6784 = vmatpush2.msra.mxu1 %v4569_v58  ;;  %v3138_v10 = vrot.slane %v14711_v53, 6  ;;  %v11867_v15 = vpack.i.bf16 %v3741_v0, %v14718_v63  ;;  %v6500_v28 = vrot.slane %v14710_v11, 10 }
 0x2bf   :  { %7095 = vrot.lane.b32.xlu0 %v11658_v6, %s7353_s26  ;;  %v14714_v6 = vcombine.low %v10723_v37, %v10825_v20  ;;  %14717 = vst [vmem:[#allocation46_spill] sm:$0xff] %v11861_v48  ;;  %4694 = vmatpush2.msra.mxu0 %v11752_v25  ;;  %v14719_v37 = vld [vmem:[#allocation133_spill] sm:$0xff]  ;;  %v4567_v25 = vld [vmem:[%s13443_s3 + $0xc8] sm:$0xff]  ;;  %v4351_v42 = vsel %vm4323_vm8, %v11861_v48, %v6868_v29 }
 0x2c0   :  { %7090 = vrot.lane.b32.xlu1 %v11597_v46, %s7354_s10  ;;  %6753 = vmatprep.subr.mxu1 %v14640_v38  ;;  %v11872_v20 = vpack.i.bf16 %v3742_v55, %v14719_v37  ;;  %v14721_v55 = vld [vmem:[#allocation80_spill] sm:$0xff]  ;;  %v14722_v37 = vpack.i.bf16 %v11643_v39, %v11633_v57  ;;  %v6887_v46 = vunpack.i.l.bf16 %v11874_v12  ;;  %v3140_v62 = vrot.slane %v3138_v10, 4 }
 0x2c1   :  { %v4461_v17 = vsel %vm4323_vm8, %v14714_v6, %v6867_v52  ;;  %v14720_v52 = vld [vmem:[#allocation127_spill] sm:$0xff]  ;;  %4695 = vmatprep.subr.mxu0 %v14640_v38  ;;  %6785 = vmatpush2.msra.mxu1 %v11847_v3  ;;  %v3141_v63 = vrot.slane %v14721_v55, 6  ;;  %v4388_v29 = vsel %vm4360_vm9, %v4351_v42, %v6873_v59  ;;  %v14723_v55 = vld [vmem:[#allocation89_spill] sm:$0xff]  ;;  %v11925_v48 = vpop.permute.xlu0 %6890 }
 0x2c2   :  { %v3145_v6 = vrot.slane %v14720_v52, 6  ;;  %v4497_v0 = vsel %vm4360_vm9, %v4461_v17, %v6872_v51  ;;  %4696 = vmatpush2.msra.mxu0 %v4570_v49  ;;  %6754 = vmatprep.subr.mxu1 %v14640_v38  ;;  %v6881_v51 = vpop.permute.xlu1 %6880  ;;  %v3139_v17 = vsel %vm10461_vm7, %v3137_v40, %v3138_v10  ;;  %v11901_v49 = vcombine.low %v14720_v52, %v14723_v55 }
 0x2c3   :  { %7105 = vrot.lane.b32.xlu0 %v14722_v37, %s7354_s10  ;;  %v3148_v37 = vrot.slane %v14723_v55, 6  ;;  %4697 = vmatprep.subr.mxu0 %v14640_v38  ;;  %v6883_v57 = vunpack.i.h.bf16 %v6881_v51  ;;  %v6882_v39 = vunpack.i.l.bf16 %v6881_v51  ;;  %v11913_v40 = vcombine.low %v11774_v22, %v11800_v24 }
 0x2c4   :  { %v3147_v45 = vrot.slane %v3145_v6, 4  ;;  %7100 = vrot.lane.b32.xlu1 %v11689_v44, %s7355_s1  ;;  %6786 = vmatpush2.msra.mxu1 %v4567_v25  ;;  %v4566_v44 = vld [vmem:[%s13443_s3 + $0xc0] sm:$0xff]  ;;  %v11909_v59 = vsel %vm10461_vm7, %v6500_v28, %v3145_v6  ;;  %v6807_v10 = vunpack.i.l.bf16 %v11412_v19  ;;  %v11919_v42 = vsel %vm10461_vm7, %v3140_v62, %v3141_v63  ;;  %v14724_v28 = vld [vmem:[#allocation61_spill] sm:$0xff] }
 0x2c5   :  { %4698 = vmatpush2.msra.mxu0 %v4569_v58  ;;  %6755 = vmatprep.subr.mxu1 %v14640_v38  ;;  %v14725_v6 = vld [vmem:[#allocation69_spill] sm:$0xff]  ;;  %v14727_v24 = vpack.i.bf16 %v11669_v50, %v11647_v2  ;;  %v6878_v62 = vunpack.i.h.bf16 %v11810_v13  ;;  %v14736_v50 = vld [vmem:[#allocation170_spill] sm:$0xff] }
 0x2c6   :  { %v11923_v51 = vsel %vm10461_vm7, %v3147_v45, %v3148_v37  ;;  %v14726_v43 = vcombine.low %v14724_v28, %v14725_v6  ;;  %4699 = vmatprep.subr.mxu0 %v14640_v38  ;;  %v11939_v58 = vld [vmem:[%s13443_s3 + $0xb8] sm:$0xff]  ;;  %v3959_v45 = vcombine.low %v3139_v17, %v11919_v42  ;;  %6787 = vmatpush2.msra.mxu1 %v4566_v44  ;;  %v6888_v28 = vunpack.i.h.bf16 %v11874_v12  ;;  %v14729_v12 = vld [vmem:[#allocation60_spill] sm:$0xff] }
 0x2c7   :  { %7115 = vrot.lane.b32.xlu0 %v14727_v24, %s7354_s10  ;;  %v11950_v6 = vsel %vm4397_vm10, %v4497_v0, %v6882_v39  ;;  %v3960_v13 = vcombine.low %v11909_v59, %v11923_v51  ;;  %v14728_v24 = vld [vmem:[#allocation200_spill] sm:$0xff]  ;;  %4700 = vmatpush2.msra.mxu0 %v11847_v3  ;;  %v14730_v63 = vld [vmem:[#allocation57_spill] sm:$0xff]  ;;  %v3743_v0 = vcombine.low %v14707_v23, %v14711_v53  ;;  %v3286_v53 = vrot.slane %v11429_v33, 5 }
 0x2c8   :  { %v4434_v22 = vsel %vm4323_vm8, %v14726_v43, %v6877_v1  ;;  %7110 = vrot.lane.b32.xlu1 %v11679_v8, %s7355_s1  ;;  %v6896_v43 = vpop.permute.xlu1 %6895  ;;  %v2603_v2 = vadd.f32 %v11273_v18, %v14728_v24  ;;  %6756 = vmatprep.subr.mxu1 %v14640_v38  ;;  %v11959_v8 = vsel %vm4397_vm10, %v4388_v29, %v6883_v57  ;;  %v4564_v18 = vld [vmem:[%s13443_s3 + $0xb0] sm:$0xff] }
 0x2c9   :  { %v4470_v1 = vsel %vm4360_vm9, %v4434_v22, %v6887_v46  ;;  %v6897_v46 = vunpack.i.l.bf16 %v6896_v43  ;;  %v3369_v39 = vcombine.low %v14730_v63, %v14729_v12  ;;  %4701 = vmatprep.subr.mxu0 %v14640_v38  ;;  %6788 = vmatpush2.msra.mxu1 %v11939_v58  ;;  %v6898_v3 = vunpack.i.h.bf16 %v6896_v43  ;;  %v14732_v12 = vld [vmem:[#allocation125_spill] sm:$0xff] }
 0x2ca   :  { %v11971_v24 = vmax.f32 %v2603_v2, 0.0  ;;  %v11974_v57 = vcombine.low %v11804_v32, %v3139_v17  ;;  %4702 = vmatpush2.msra.mxu0 %v4567_v25  ;;  %v3150_v63 = vrot.slane %v3148_v37, 4  ;;  %v3151_v22 = vrot.slane %v14732_v12, 6  ;;  %6757 = vmatprep.subr.mxu1 %v14640_v38  ;;  %v4563_v32 = vld [vmem:[%s13443_s3 + $0xa8] sm:$0xff]  ;;  %v14733_v25 = vld [vmem:[#allocation134_spill] sm:$0xff]  ;;  %v14735_v37 = vld [vmem:[#allocation168_spill] sm:$0xff] }
 0x2cb   :  { %7125 = vrot.lane.b32.xlu0 %v11788_v9, %s7353_s26  ;;  %v4324_v29 = vsel %vm4323_vm8, %v3369_v39, %v6807_v10  ;;  %v11982_v43 = vcombine.high %v11429_v33, %v11429_v33  ;;  %v11987_v2 = vpack.i.bf16 %v3960_v13, %v3959_v45  ;;  %4703 = vmatprep.subr.mxu0 %v14640_v38  ;;  %v3306_v10 = vrot.slane %v11429_v33, 6 }
 0x2cc   :  { %14731 = vst [vmem:[#allocation49_spill] sm:$0xff] %v11974_v57  ;;  %7120 = vrot.lane.b32.xlu1 %v11714_v7, %s7355_s1  ;;  %v11991_v23 = vcombine.high %v11971_v24, %v11971_v24  ;;  %v4361_v9 = vsel %vm4360_vm9, %v4324_v29, %v6888_v28  ;;  %6789 = vmatpush2.msra.mxu1 %v4564_v18  ;;  %v6513_v45 = vrot.slane %v11971_v24, 9  ;;  %v6515_v13 = vrot.slane %v11971_v24, 10 }
 0x2cd   :  { %v12000_v7 = vsel %vm4397_vm10, %v4470_v1, %v6897_v46  ;;  %v12003_v17 = vpack.i.bf16 %v3743_v0, %v14733_v25  ;;  %4704 = vmatpush2.msra.mxu0 %v4566_v44  ;;  %6758 = vmatprep.subr.mxu1 %v14640_v38  ;;  %v4562_v46 = vld [vmem:[%s13443_s3 + $0xa0] sm:$0xff]  ;;  %v12022_v39 = vsel %vm4397_vm10, %v4361_v9, %v6898_v3  ;;  %v3309_v29 = vrot.slane %v11982_v43, 6  ;;  %v14738_v9 = vld [vmem:[#allocation145_spill] sm:$0xff] }
 0x2ce   :  { %v3283_v28 = vrot.slane %v11991_v23, 5  ;;  %v3303_v1 = vrot.slane %v11991_v23, 6  ;;  %4705 = vmatprep.subr.mxu0 %v14640_v38  ;;  %v4089_v44 = vcombine.low %v11971_v24, %v11991_v23  ;;  %v12026_v0 = vsel %vm10461_vm7, %v3150_v63, %v3151_v22  ;;  %6790 = vmatpush2.msra.mxu1 %v4563_v32 }
 0x2cf   :  { %7135 = vrot.lane.b32.xlu0 %v11757_v30, %s7355_s1  ;;  %v14734_v30 = vpack.i.bf16 %v11720_v41, %v11704_v34  ;;  %v3308_v25 = vrot.slane %v3306_v10, 4  ;;  %v14737_v35 = vcombine.low %v14735_v37, %v14736_v50  ;;  %v12041_v22 = vcombine.low %v14739_v16, %v14738_v9  ;;  %4706 = vmatpush2.msra.mxu0 %v11939_v58  ;;  %v4561_v50 = vld [vmem:[%s13443_s3 + $0x98] sm:$0xff]  ;;  %v12130_v37 = vld [vmem:[%s13443_s3 + $0x88] sm:$0xff] }
 0x2d0   :  { %v3285_v12 = vrot.slane %v3283_v28, 4  ;;  %6759 = vmatprep.subr.mxu1 %v14640_v38  ;;  %v12047_v63 = vsel %vm10461_vm7, %v6515_v13, %v3303_v1  ;;  %v12051_v34 = vcombine.low %v11919_v42, %v11909_v59  ;;  %4707 = vmatprep.subr.mxu0 %v14640_v38  ;;  %v12061_v58 = vsel %vm8220_vm4, %v6513_v45, %v3283_v28 }
 0x2d1   :  { %7130 = vrot.lane.b32.xlu1 %v14734_v30, %s7354_s10  ;;  %v12037_v3 = vsel %vm4323_vm8, %v14737_v35, %v6878_v62  ;;  %14740 = vst [vmem:[#allocation91_spill] sm:$0xff] %v12047_v63  ;;  %v3305_v30 = vrot.slane %v3303_v1, 4  ;;  %v4090_v35 = vcombine.low %v11429_v33, %v11781_v60  ;;  %6791 = vmatpush2.msra.mxu1 %v4562_v46  ;;  %14742 = vst [vmem:[#allocation50_spill] sm:$0xff] %v12061_v58  ;;  %v4560_v1 = vld [vmem:[%s13443_s3 + $0x90] sm:$0xff] }
 0x2d2   :  { %14741 = vst [vmem:[#allocation97_spill] sm:$0xff] %v12051_v34  ;;  %v12065_v62 = vsel %vm8220_vm4, %v3285_v12, %v3286_v53  ;;  %v3288_v59 = vrot.slane %v3286_v53, 4  ;;  %v3289_v42 = vrot.slane %v11982_v43, 5  ;;  %4708 = vmatpush2.msra.mxu0 %v4564_v18  ;;  %v12079_v28 = vcombine.high %v11781_v60, %v11781_v60  ;;  %6760 = vmatprep.subr.mxu1 %v14640_v38 }
 0x2d3   :  { %14743 = vst [vmem:[#allocation52_spill] sm:$0xff] %v12065_v62  ;;  %7145 = vrot.lane.b32.xlu0 %v11793_v4, %s7355_s1  ;;  %v4203_v13 = vcombine.low %v12061_v58, %v12065_v62  ;;  %v12075_v45 = vsel %vm10461_vm7, %v3305_v30, %v3306_v10  ;;  %v14745_v43 = vpack.i.bf16 %v11763_v21, %v11741_v61  ;;  %v6893_v4 = vunpack.i.h.bf16 %v11925_v48  ;;  %v14751_v58 = vld [vmem:[#allocation5_spill] sm:$0xff] }
 0x2d4   :  { %14744 = vst [vmem:[#allocation51_spill] sm:$0xff] %v12075_v45  ;;  %v12088_v18 = vpack.i.bf16 %v11974_v57, %v4089_v44  ;;  %v12092_v53 = vsel %vm10461_vm7, %v3308_v25, %v3309_v29  ;;  %v3961_v10 = vcombine.low %v12026_v0, %v12047_v63  ;;  %4709 = vmatprep.subr.mxu0 %v14640_v38  ;;  %v14747_v12 = vunpack.i.l.bf16 %v11925_v48  ;;  %v14764_v57 = vld [vmem:[#allocation177_spill] sm:$0xff] }
 0x2d5   :  { %7140 = vrot.lane.b32.xlu1 %v14745_v43, %s7354_s10  ;;  %14746 = vst [vmem:[#allocation104_spill] sm:$0xff] %v12092_v53  ;;  %6792 = vmatpush2.msra.mxu1 %v4561_v50  ;;  %v12107_v9 = vpack.i.bf16 %v12051_v34, %v4090_v35  ;;  %v3331_v29 = vrot.slane %v12079_v28, 5  ;;  %v3334_v25 = vrot.slane %v11636_v5, 5  ;;  %v3962_v30 = vcombine.low %v12075_v45, %v12092_v53 }
 0x2d6   :  { %v12104_v44 = vsel %vm4323_vm8, %v12041_v22, %v14747_v12  ;;  %4710 = vmatpush2.msra.mxu0 %v4563_v32  ;;  %6761 = vmatprep.subr.mxu1 %v14640_v38  ;;  %v12116_v48 = vsel %vm8220_vm4, %v3288_v59, %v3289_v42  ;;  %v6517_v43 = vrot.slane %v11781_v60, 9  ;;  %v14749_v32 = vpack.i.bf16 %v11827_v14, %v11808_v26  ;;  %v14755_v26 = vld [vmem:[#allocation54_spill] sm:$0xff] }
 0x2d7   :  { %14748 = vst [vmem:[#allocation72_spill] sm:$0xff] %v12116_v48  ;;  %4711 = vmatprep.subr.mxu0 %v14640_v38  ;;  %v14750_v59 = vcombine.low %v14710_v11, %v14720_v52  ;;  %v4091_v12 = vcombine.low %v12079_v28, %v11636_v5  ;;  %v12141_v35 = vcombine.high %v11636_v5, %v11636_v5  ;;  %v14752_v11 = vld [vmem:[#allocation6_spill] sm:$0xff]  ;;  %v3333_v63 = vrot.slane %v3331_v29, 4 }
 0x2d8   :  { %7155 = vrot.lane.b32.xlu0 %v14749_v32, %s7354_s10  ;;  %6793 = vmatpush2.msra.mxu1 %v4560_v1  ;;  %v6901_v32 = vpop.permute.xlu1 %6900  ;;  %v12147_v62 = vsel %vm8220_vm4, %v6517_v43, %v3331_v29  ;;  %v14753_v52 = vcombine.low %v14751_v58, %v14752_v11  ;;  %v12160_v45 = vcombine.low %v11923_v51, %v12026_v0  ;;  %v3336_v43 = vrot.slane %v3334_v25, 4  ;;  %v14758_v51 = vld [vmem:[#allocation159_spill] sm:$0xff]  ;;  %v14759_v29 = vld [vmem:[#allocation112_spill] sm:$0xff] }
 0x2d9   :  { %v12135_v42 = vpack.i.bf16 %v14750_v59, %v4203_v13  ;;  %7150 = vrot.lane.b32.xlu1 %v11849_v54, %s7353_s26  ;;  %v14754_v59 = vld [vmem:[#allocation53_spill] sm:$0xff]  ;;  %4712 = vmatpush2.msra.mxu0 %v4562_v46  ;;  %v6902_v54 = vunpack.i.l.bf16 %v6901_v32  ;;  %v3337_v61 = vrot.slane %v12141_v35, 5  ;;  %v12168_v58 = vpack.i.bf16 %v3962_v30, %v3961_v10 }
 0x2da   :  { %v12153_v13 = vsel %vm4323_vm8, %v14753_v52, %v6893_v4  ;;  %v3370_v53 = vcombine.low %v14755_v26, %v14754_v59  ;;  %6762 = vmatprep.subr.mxu1 %v14640_v38  ;;  %14756 = vst [vmem:[#allocation55_spill] sm:$0xff] %v12160_v45  ;;  %4713 = vmatprep.subr.mxu0 %v14640_v38  ;;  %v4558_v26 = vld [vmem:[%s13443_s3 + $0x80] sm:$0xff]  ;;  %v14757_v46 = vunpack.i.h.bf16 %v11412_v19  ;;  %v3165_v0 = vrot.slane %v14758_v51, 6  ;;  %v6906_v19 = vpop.permute.xlu0 %6905 }
 0x2db   :  { %6794 = vmatpush2.msra.mxu1 %v12130_v37  ;;  %v3168_v11 = vrot.slane %v14759_v29, 6  ;;  %v14760_v52 = vpack.i.bf16 %v11837_v36, %v11831_v56  ;;  %4714 = vmatpush2.msra.mxu0 %v4561_v50  ;;  %v6903_v59 = vunpack.i.h.bf16 %v6901_v32  ;;  %v4204_v10 = vcombine.low %v12116_v48, %v12147_v62  ;;  %v14761_v32 = vld [vmem:[#allocation155_spill] sm:$0xff] }
 0x2dc   :  { %v12173_v4 = vsel %vm4323_vm8, %v3370_v53, %v14757_v46  ;;  %v12184_v30 = vpack.i.bf16 %v12160_v45, %v4091_v12  ;;  %6763 = vmatprep.subr.mxu1 %v14640_v38  ;;  %v12191_v53 = vpop.permute.xlu1 %6910  ;;  %v12195_v50 = vsel %vm8220_vm4, %v3333_v63, %v3334_v25  ;;  %v6502_v46 = vrot.slane %v14761_v32, 10  ;;  %4715 = vmatprep.subr.mxu0 %v14640_v38  ;;  %v14763_v45 = vld [vmem:[#allocation108_spill] sm:$0xff] }
 0x2dd   :  { %7165 = vrot.lane.b32.xlu0 %v14760_v52, %s7354_s10  ;;  %7160 = vrot.lane.b32.xlu1 %v11867_v15, %s7355_s1  ;;  %v3167_v62 = vrot.slane %v3165_v0, 4  ;;  %v14762_v52 = vld [vmem:[#allocation174_spill] sm:$0xff]  ;;  %v4498_v15 = vsel %vm4360_vm9, %v12037_v3, %v6902_v54  ;;  %v3338_v48 = vsel %vm8220_vm4, %v3336_v43, %v3337_v61  ;;  %v3170_v56 = vrot.slane %v3168_v11, 4 }
 0x2de   :  { %v3171_v12 = vrot.slane %v14762_v52, 6  ;;  %6795 = vmatpush2.msra.mxu1 %v4558_v26  ;;  %v3175_v34 = vrot.slane %v14763_v45, 6  ;;  %4856 = vmatprep.mubr.f32.mxu1 %v11950_v6  ;;  %v6912_v63 = vunpack.i.l.bf16 %v12191_v53  ;;  %v6908_v25 = vunpack.i.h.bf16 %v6906_v19  ;;  %v14765_v6 = vld [vmem:[#allocation162_spill] sm:$0xff] }
 0x2df   :  { %4716 = vmatpush2.msra.mxu0 %v4560_v1  ;;  %v6907_v52 = vunpack.i.l.bf16 %v6906_v19  ;;  %v6503_v36 = vrot.slane %v14764_v57, 10  ;;  %4857 = vmatmul.mubr.f32.vlgmr.msra.gmra.mxu1 %v11959_v8  ;;  %v4389_v3 = vsel %vm4360_vm9, %v12104_v44, %v6903_v59  ;;  %v4205_v61 = vcombine.low %v12195_v50, %v3338_v48  ;;  %v14766_v48 = vld [vmem:[#allocation157_spill] sm:$0xff]  ;;  %v6916_v59 = vpop.permute.xlu0 %6915 }
 0x2e0   :  { %4717 = vmatprep.subr.mxu0 %v14640_v38  ;;  %v12215_v54 = vsel %vm10461_vm7, %v3167_v62, %v3168_v11  ;;  %v3155_v1 = vrot.slane %v14765_v6, 6  ;;  %v6921_v8 = vpop.permute.xlu1 %6920  ;;  %v4426_v19 = vsel %vm4397_vm10, %v4389_v3, %v6908_v25  ;;  %v3158_v11 = vrot.slane %v14766_v48, 6  ;;  %4721 = vmatprep.mubr.f32.mxu0 %v12000_v7  ;;  %v4576_v3 = vld [vmem:[%s13443_s3 + $0x110] sm:$0xff]  ;;  %v14828_v48 = vld [vmem:[#allocation198_spill] sm:$0xff] }
 0x2e1   :  { %7170 = vrot.lane.b32.xlu1 %v11872_v20, %s7355_s1  ;;  %7175 = vrot.lane.b32.xlu0 %v11987_v2, %s7353_s26  ;;  %v4534_v43 = vsel %vm4397_vm10, %v4498_v15, %v6907_v52  ;;  %v12228_v44 = vsel %vm10461_vm7, %v6503_v36, %v3175_v34  ;;  %v6913_v20 = vunpack.i.h.bf16 %v12191_v53  ;;  %v6922_v2 = vunpack.i.l.bf16 %v6921_v8 }
 0x2e2   :  { %4718 = vmatpush2.msra.mxu0 %v12130_v37  ;;  %v12236_v50 = vsel %vm10461_vm7, %v6502_v46, %v3165_v0  ;;  %v12240_v62 = vsel %vm10461_vm7, %v3170_v56, %v3171_v12  ;;  %v6923_v36 = vunpack.i.h.bf16 %v6921_v8  ;;  %4861 = vmatprep.mubr.f32.mxu1 %v4534_v43  ;;  %v4471_v37 = vsel %vm4360_vm9, %v12153_v13, %v6912_v63  ;;  %v4577_v0 = vld [vmem:[%s13443_s3 + $0x118] sm:$0xff]  ;;  %v14768_v12 = vld [vmem:[#allocation158_spill] sm:$0xff] }
 0x2e3   :  { %4719 = vmatprep.subr.mxu0 %v14640_v38  ;;  %v3964_v7 = vcombine.low %v12240_v62, %v12228_v44  ;;  %v3157_v53 = vrot.slane %v3155_v1, 4  ;;  %4862 = vmatmul.mubr.f32.gmra.mxu1 %v4426_v19  ;;  %v14767_v56 = vcombine.low %v14723_v55, %v11971_v24  ;;  %v4507_v38 = vsel %vm4397_vm10, %v4471_v37, %v6922_v2  ;;  %v6926_v43 = vpop.permute.xlu0 %6925 }
 0x2e4   :  { %4720 = vmatpush2.msra.mxu0 %v4558_v26  ;;  %v3963_v13 = vcombine.low %v12236_v50, %v12215_v54  ;;  %v6501_v15 = vrot.slane %v14768_v12, 10  ;;  %v14769_v63 = vpack.i.bf16 %v11913_v40, %v11901_v49  ;;  %v6917_v26 = vunpack.i.l.bf16 %v6916_v59  ;;  %v12265_v25 = vpop.permute.xlu1 %6930  ;;  %6670 = vmatprep.subr.mxu1 %v4577_v0 }
 0x2e5   :  { %v12253_v46 = vpack.i.bf16 %v14767_v56, %v4204_v10  ;;  %7185 = vrot.lane.b32.xlu0 %v12003_v17, %s7355_s1  ;;  %v3159_v55 = vsel %vm10461_vm7, %v3157_v53, %v3158_v11  ;;  %v3160_v24 = vrot.slane %v3158_v11, 4  ;;  %v14770_v10 = vld [vmem:[#allocation160_spill] sm:$0xff]  ;;  %4722 = vmatmul.mubr.f32.vlgmr.msra.gmra.mxu0 %v12022_v39  ;;  %v6918_v8 = vunpack.i.h.bf16 %v6916_v59 }
 0x2e6   :  { %7180 = vrot.lane.b32.xlu1 %v14769_v63, %s7354_s10  ;;  %v3161_v52 = vrot.slane %v14770_v10, 6  ;;  %v4362_v17 = vsel %vm4360_vm9, %v12173_v4, %v6913_v20  ;;  %v14771_v19 = vcombine.low %v11991_v23, %v11429_v33  ;;  %v12283_v11 = vcombine.low %v14764_v57, %v14763_v45  ;;  %4726 = vmatprep.mubr.f32.mxu0 %v4507_v38  ;;  %v14774_v20 = vld [vmem:[#allocation153_spill] sm:$0xff]  ;;  %v4575_v38 = vld [vmem:[%s13443_s3 + $0x108] sm:$0xff] }
 0x2e7   :  { %v6927_v37 = vunpack.i.l.bf16 %v6926_v43  ;;  %v4399_v53 = vsel %vm4397_vm10, %v4362_v17, %v6923_v36  ;;  %v12286_v39 = vpack.i.bf16 %v3964_v7, %v3963_v13  ;;  %v3156_v59 = vsel %vm10461_vm7, %v6501_v15, %v3155_v1  ;;  %6671 = vmatpush3.msra.mxu1 %v4577_v0  ;;  %v14775_v7 = vld [vmem:[#allocation70_spill] sm:$0xff] }
 0x2e8   :  { %v12279_v2 = vpack.i.bf16 %v14771_v19, %v4205_v61  ;;  %14772 = vst [vmem:[#allocation101_spill] sm:$0xff] %v12283_v11  ;;  %v6932_v4 = vunpack.i.l.bf16 %v12265_v25  ;;  %v6928_v33 = vunpack.i.h.bf16 %v6926_v43  ;;  %v3603_v23 = vcombine.low %v3156_v59, %v3159_v55  ;;  %v14773_v61 = vld [vmem:[#allocation148_spill] sm:$0xff]  ;;  %6672 = vmatprep.subr.mxu1 %v4576_v3  ;;  %v6941_v36 = vpop.permute.xlu1 %6940  ;;  %v14776_v0 = vld [vmem:[#allocation154_spill] sm:$0xff]  ;;  %v14779_v19 = vld [vmem:[#allocation175_spill] sm:$0xff] }
 0x2e9   :  { %v12293_v56 = vcombine.low %v14774_v20, %v14773_v61  ;;  %7195 = vrot.lane.b32.xlu0 %v12135_v42, %s7355_s1  ;;  %v6933_v1 = vunpack.i.h.bf16 %v12265_v25  ;;  %v14777_v13 = vcombine.low %v14775_v7, %v14776_v0  ;;  %v3747_v63 = vcombine.low %v14761_v32, %v14758_v51  ;;  %4727 = vmatmul.mubr.f32.gmra.mxu0 %v4399_v53  ;;  %v14778_v17 = vld [vmem:[#allocation182_spill] sm:$0xff]  ;;  %v14782_v7 = vld [vmem:[#allocation11_spill] sm:$0xff] }
 0x2ea   :  { %7190 = vrot.lane.b32.xlu1 %v12088_v18, %s7354_s10  ;;  %v3162_v55 = vsel %vm10461_vm7, %v3160_v24, %v3161_v52  ;;  %v6942_v10 = vunpack.i.l.bf16 %v6941_v36  ;;  %v6936_v18 = vpop.permute.xlu0 %6935  ;;  %v12312_v43 = vpack.i.bf16 %v3603_v23, %v12283_v11  ;;  %v12318_v59 = vcombine.low %v14779_v19, %v14778_v17  ;;  %6673 = vmatpush3.msra.mxu1 %v4576_v3  ;;  %v4574_v52 = vld [vmem:[%s13443_s3 + $0x100] sm:$0xff] }
 0x2eb   :  { %v4463_v15 = vsel %vm4323_vm8, %v14777_v13, %v6917_v26  ;;  %v4353_v42 = vsel %vm4323_vm8, %v12293_v56, %v6918_v8  ;;  %v6938_v26 = vunpack.i.h.bf16 %v6936_v18  ;;  %v6937_v61 = vunpack.i.l.bf16 %v6936_v18  ;;  %6674 = vmatprep.subr.mxu1 %v4575_v38  ;;  %v14781_v8 = vld [vmem:[#allocation12_spill] sm:$0xff] }
 0x2ec   :  { %14780 = vst [vmem:[#allocation63_spill] sm:$0xff] %v12318_v59  ;;  %v4499_v20 = vsel %vm4360_vm9, %v4463_v15, %v6927_v37  ;;  %v3604_v24 = vcombine.low %v3162_v55, %v12236_v50  ;;  %v6943_v53 = vunpack.i.h.bf16 %v6941_v36  ;;  %v4390_v23 = vsel %vm4360_vm9, %v4353_v42, %v6928_v33  ;;  %6675 = vmatpush3.msra.mxu1 %v4575_v38  ;;  %v14784_v36 = vld [vmem:[#allocation8_spill] sm:$0xff]  ;;  %v14785_v33 = vld [vmem:[#allocation58_spill] sm:$0xff]  ;;  %v14786_v55 = vld [vmem:[#allocation185_spill] sm:$0xff]  ;;  %v6951_v42 = vpop.permute.xlu1 %6950 }
 0x2ed   :  { %v14783_v0 = vcombine.low %v14781_v8, %v14782_v7  ;;  %v3178_v3 = vrot.slane %v14779_v19, 6  ;;  %7205 = vrot.lane.b32.xlu0 %v12107_v9, %s7354_s10  ;;  %v4535_v50 = vsel %vm4397_vm10, %v4499_v20, %v6937_v61  ;;  %v4427_v37 = vsel %vm4397_vm10, %v4390_v23, %v6938_v26  ;;  %v14787_v8 = vld [vmem:[#allocation116_spill] sm:$0xff]  ;;  %v14788_v9 = vld [vmem:[#allocation114_spill] sm:$0xff]  ;;  %6676 = vmatprep.subr.mxu1 %v4574_v52 }
 0x2ee   :  { %7200 = vrot.lane.b32.xlu1 %v12168_v58, %s7353_s26  ;;  %v3371_v15 = vcombine.low %v14785_v33, %v14784_v36  ;;  %v3185_v18 = vrot.slane %v14786_v55, 6  ;;  %4866 = vmatprep.mubr.f32.mxu1 %v4535_v50  ;;  %v7234_v38 = vpack.i.bf16 %v3747_v63, %v14787_v8  ;;  %v3177_v58 = vrot.slane %v3175_v34, 4 }
 0x2ef   :  { %v4436_v13 = vsel %vm4323_vm8, %v14783_v0, %v6932_v4  ;;  %v6946_v4 = vpop.permute.xlu0 %6945  ;;  %v3181_v0 = vrot.slane %v14788_v9, 6  ;;  %4867 = vmatmul.mubr.f32.gmra.mxu1 %v4427_v37  ;;  %v14789_v20 = vunpack.i.l.bf16 %v11467_v31  ;;  %v6504_v36 = vrot.slane %v14778_v17, 10 }
 0x2f0   :  { %v4472_v7 = vsel %vm4360_vm9, %v4436_v13, %v6942_v10  ;;  %v6948_v61 = vunpack.i.h.bf16 %v6946_v4  ;;  %v6947_v26 = vunpack.i.l.bf16 %v6946_v4  ;;  %v3180_v63 = vrot.slane %v3178_v3, 4  ;;  %v14790_v10 = vld [vmem:[#allocation180_spill] sm:$0xff]  ;;  %6677 = vmatpush3.msra.mxu1 %v4574_v52 }
 0x2f1   :  { %v4326_v23 = vsel %vm4323_vm8, %v3371_v15, %v14789_v20  ;;  %v3187_v33 = vrot.slane %v3185_v18, 4  ;;  %v3188_v13 = vrot.slane %v14790_v10, 6  ;;  %7215 = vrot.lane.b32.xlu0 %v12184_v30, %s7354_s10  ;;  %v6952_v34 = vunpack.i.l.bf16 %v6951_v42 }
 0x2f2   :  { %v4363_v50 = vsel %vm4360_vm9, %v4326_v23, %v6943_v53  ;;  %7210 = vrot.lane.b32.xlu1 %v12253_v46, %s7355_s1  ;;  %v4508_v37 = vsel %vm4397_vm10, %v4472_v7, %v6947_v26  ;;  %v3748_v4 = vcombine.low %v14759_v29, %v14764_v57  ;;  %v3179_v53 = vsel %vm10461_vm7, %v3177_v58, %v3178_v3  ;;  %v14791_v57 = vld [vmem:[#allocation188_spill] sm:$0xff]  ;;  %v14793_v58 = vld [vmem:[#allocation59_spill] sm:$0xff] }
 0x2f3   :  { %v4400_v15 = vsel %vm4397_vm10, %v4363_v50, %v6948_v61  ;;  %4731 = vmatprep.mubr.f32.mxu0 %v4508_v37  ;;  %v3186_v52 = vsel %vm10461_vm7, %v6504_v36, %v3185_v18  ;;  %v12365_v46 = vsel %vm10461_vm7, %v3187_v33, %v3188_v13  ;;  %v12369_v30 = vcombine.low %v14786_v55, %v14790_v10  ;;  %v14792_v18 = vld [vmem:[#allocation13_spill] sm:$0xff]  ;;  %v14795_v23 = vld [vmem:[#allocation88_spill] sm:$0xff]  ;;  %v14799_v33 = vld [vmem:[#allocation191_spill] sm:$0xff] }
 0x2f4   :  { %v6953_v8 = vunpack.i.h.bf16 %v6951_v42  ;;  %v7239_v7 = vpack.i.bf16 %v3604_v24, %v12318_v59  ;;  %4732 = vmatmul.mubr.f32.gmra.mxu0 %v4400_v15  ;;  %v7244_v9 = vpack.i.bf16 %v3748_v4, %v14791_v57  ;;  %v3966_v61 = vcombine.low %v3186_v52, %v12365_v46  ;;  %v14796_v24 = vld [vmem:[#allocation15_spill] sm:$0xff]  ;;  %v14801_v15 = vld [vmem:[#allocation32_spill] sm:$0xff] }
 0x2f5   :  { %v3182_v3 = vsel %vm10461_vm7, %v3180_v63, %v3181_v0  ;;  %v14794_v26 = vcombine.low %v14792_v18, %v14793_v58  ;;  %v3605_v42 = vcombine.low %v12215_v54, %v12240_v62  ;;  %v14797_v36 = vrot.slane %v14796_v24, 1  ;;  %7225 = vrot.lane.b32.xlu0 %v12286_v39, %s7353_s26  ;;  %v14798_v63 = vld [vmem:[#allocation142_spill] sm:$0xff]  ;;  %v14803_v39 = vld [vmem:[#allocation75_spill] sm:$0xff] }
 0x2f6   :  { %7220 = vrot.lane.b32.xlu1 %v12279_v2, %s7355_s1  ;;  %v3965_v0 = vcombine.low %v3179_v53, %v3182_v3  ;;  %v3749_v25 = vcombine.low %v14763_v45, %v14779_v19  ;;  %v14800_v37 = vrot.slane %v14799_v33, 5  ;;  %v12400_v4 = vcombine.low %v14801_v15, %v14799_v33 }
 0x2f7   :  { %v4464_v20 = vsel %vm4323_vm8, %v14794_v26, %v6933_v1  ;;  %v2241_v50 = vadd.f32 %v14797_v36, %v14795_v23  ;;  %v4354_v1 = vsel %vm4323_vm8, %v14798_v63, %v6952_v34  ;;  %v7254_v62 = vpack.i.bf16 %v3605_v42, %v12369_v30  ;;  %v14805_v34 = vld [vmem:[#allocation118_spill] sm:$0xff]  ;;  %v14807_v23 = vld [vmem:[#allocation85_spill] sm:$0xff] }
 0x2f8   :  { %v2954_v54 = vrot.slane %v14800_v37, 4  ;;  %14802 = vst [vmem:[#allocation64_spill] sm:$0xff] %v12400_v4  ;;  %v12403_v2 = vcombine.low %v12228_v44, %v3179_v53  ;;  %v14804_v57 = vrot.slane %v14803_v39, 2  ;;  %v7249_v58 = vpack.i.bf16 %v3966_v61, %v3965_v0  ;;  %v14809_v36 = vld [vmem:[#allocation189_spill] sm:$0xff]  ;;  %v12421_v44 = vld [vmem:[%s13442_s2] ss:$0 sm:$0xff] }
 0x2f9   :  { %v3195_v19 = vrot.slane %v14799_v33, 6  ;;  %v14806_v26 = vrot.slane %v14805_v34, 1  ;;  %v14808_v42 = vrot.slane %v14807_v23, 1  ;;  %v12416_v63 = vpack.i.bf16 %v3749_v25, %v14809_v36  ;;  %v14810_v61 = vld [vmem:[#allocation17_spill] sm:$0xff]  ;;  %v14813_v39 = vld [vmem:[#allocation126_spill] sm:$0xff]  ;;  %7235 = vrot.lane.b32.xlu0 %v7234_v38, %s7355_s1  ;;  %v14814_v34 = vld [vmem:[#allocation184_spill] sm:$0xff] }
 0x2fa   :  { %v2553_v18 = vadd.f32 %v14804_v57, %v2241_v50  ;;  %v14811_v50 = vld [vmem:[#allocation22_spill] sm:$0xff]  ;;  %7230 = vrot.lane.b32.xlu1 %v12312_v43, %s7354_s10  ;;  %v3190_v25 = vrot.slane %v3188_v13, 4  ;;  %v6505_v23 = vrot.slane %v14801_v15, 10  ;;  %v14819_v43 = vunpack.i.h.bf16 %v11467_v31  ;;  %v14820_v38 = vld [vmem:[#allocation161_spill] sm:$0xff] }
 0x2fb   :  { %v1363_v24 = vsel %vm542_vm0, %v14808_v42, %v14806_v26  ;;  %v14812_v0 = vcombine.low %v14810_v61, %v14811_v50  ;;  %v3191_v26 = vrot.slane %v14814_v34, 6  ;;  %v14815_v42 = vld [vmem:[#allocation124_spill] sm:$0xff]  ;;  %v6956_v50 = vpop.permute.xlu0 %6955  ;;  %v14821_v31 = vld [vmem:[#allocation138_spill] sm:$0xff]  ;;  %v12468_v11 = vcombine.low %v3182_v3, %v3186_v52 }
 0x2fc   :  { %v2616_v53 = vadd.f32 %v12421_v44, %v2553_v18  ;;  %v1482_v57 = vadd.f32 %v1363_v24, %v14813_v39  ;;  %v14816_v36 = vrot.slane %v14815_v42, 2  ;;  %v14817_v18 = vld [vmem:[#allocation86_spill] sm:$0xff]  ;;  %v4327_v13 = vsel %vm4323_vm8, %v14820_v38, %v14819_v43  ;;  %v14826_v38 = vld [vmem:[#allocation141_spill] sm:$0xff] }
 0x2fd   :  { %v4437_v37 = vsel %vm4323_vm8, %v14812_v0, %v6953_v8  ;;  %v14818_v45 = vrot.slane %v14817_v18, 2  ;;  %v7264_v8 = vpack.i.bf16 %v12403_v2, %v12400_v4  ;;  %v6958_v39 = vunpack.i.h.bf16 %v6956_v50  ;;  %7245 = vrot.lane.b32.xlu0 %v7244_v9, %s7355_s1 }
 0x2fe   :  { %v12441_v24 = vmax.f32 %v2616_v53, 0.0  ;;  %v6957_v34 = vunpack.i.l.bf16 %v6956_v50  ;;  %v12449_v42 = vsel %vm10461_vm7, %v6505_v23, %v3195_v19  ;;  %v3197_v18 = vrot.slane %v3195_v19, 4  ;;  %7240 = vrot.lane.b32.xlu1 %v7239_v7, %s7354_s10  ;;  %v14822_v23 = vld [vmem:[#allocation129_spill] sm:$0xff]  ;;  %v14824_v19 = vld [vmem:[#allocation139_spill] sm:$0xff] }
 0x2ff   :  { %v1675_v61 = vsel %vm855_vm1, %v14818_v45, %v14816_v36  ;;  %v14825_v50 = vrot.slane %v14824_v19, 1  ;;  %v2433_v59 = vrot.slane %v14826_v38, 2  ;;  %v6966_v51 = vpop.permute.xlu0 %6965  ;;  %v14827_v38 = vld [vmem:[#allocation37_spill] sm:$0xff] }
 0x300   :  { %v1794_v0 = vadd.f32 %v1675_v61, %v1482_v57  ;;  %v2955_v45 = vrot.slane %v12441_v24, 5  ;;  %v12454_v36 = vcombine.high %v12441_v24, %v12441_v24  ;;  %v3198_v53 = vrot.slane %v12441_v24, 6 }
 0x301   :  { %v3192_v57 = vsel %vm10461_vm7, %v3190_v25, %v3191_v26  ;;  %v14823_v61 = vrot.slane %v14822_v23, 1  ;;  %v6961_v26 = vpop.permute.xlu1 %6960  ;;  %v4391_v23 = vsel %vm4360_vm9, %v4354_v1, %v6958_v39  ;;  %v6817_v29 = vunpack.i.l.bf16 %v14827_v38  ;;  %7255 = vrot.lane.b32.xlu0 %v7254_v62, %s7354_s10  ;;  %v14829_v39 = vld [vmem:[#allocation132_spill] sm:$0xff] }
 0x302   :  { %v1930_v4 = vadd.f32 %v14821_v31, %v1794_v0  ;;  %v12472_v0 = vsel %vm8220_vm4, %v2954_v54, %v2955_v45  ;;  %v3200_v7 = vrot.slane %v3198_v53, 4  ;;  %v3201_v9 = vrot.slane %v12454_v36, 6  ;;  %7250 = vrot.lane.b32.xlu1 %v7249_v58, %s7353_s26 }
 0x303   :  { %v2123_v43 = vsel %vm542_vm0, %v14825_v50, %v14823_v61  ;;  %v3967_v25 = vcombine.low %v3192_v57, %v12449_v42  ;;  %v4500_v31 = vsel %vm4360_vm9, %v4464_v20, %v6957_v34  ;;  %v12480_v61 = vsel %vm10461_vm7, %v3197_v18, %v3198_v53  ;;  %v6976_v53 = vpop.permute.xlu0 %6975 }
 0x304   :  { %v2242_v52 = vadd.f32 %v2123_v43, %v1930_v4  ;;  %v6963_v3 = vunpack.i.h.bf16 %v6961_v26  ;;  %v6962_v19 = vunpack.i.l.bf16 %v6961_v26  ;;  %v6968_v50 = vunpack.i.h.bf16 %v6966_v51 }
 0x305   :  { %v6967_v54 = vunpack.i.l.bf16 %v6966_v51  ;;  %v12487_v20 = vcombine.low %v14828_v48, %v12472_v0  ;;  %v12491_v1 = vsel %vm10461_vm7, %v3200_v7, %v3201_v9  ;;  %v14830_v4 = vrot.slane %v14829_v39, 2  ;;  %v6971_v62 = vpop.permute.xlu1 %6970  ;;  %7265 = vrot.lane.b32.xlu0 %v7264_v8, %s7354_s10  ;;  %v14834_v39 = vld [vmem:[#allocation117_spill] sm:$0xff] }
 0x306   :  { %v4536_v51 = vsel %vm4397_vm10, %v4500_v31, %v6962_v19  ;;  %v4428_v18 = vsel %vm4397_vm10, %v4391_v23, %v6963_v3  ;;  %v2957_v43 = vrot.slane %v2955_v45, 4  ;;  %v6978_v26 = vunpack.i.h.bf16 %v6976_v53  ;;  %7260 = vrot.lane.b32.xlu1 %v12416_v63, %s7355_s1 }
 0x307   :  { %v2435_v34 = vsel %vm855_vm1, %v2433_v59, %v14830_v4  ;;  %4871 = vmatprep.mubr.f32.mxu1 %v4536_v51  ;;  %v6977_v48 = vunpack.i.l.bf16 %v6976_v53  ;;  %v3968_v32 = vcombine.low %v12480_v61, %v12491_v1  ;;  %v2958_v7 = vrot.slane %v12454_v36, 5  ;;  %v12515_v19 = vpop.permute.xlu0 %6985  ;;  %v14837_v51 = vld [vmem:[#allocation27_spill] sm:$0xff] }
 0x308   :  { %v2554_v58 = vadd.f32 %v2435_v34, %v2242_v52  ;;  %v6972_v9 = vunpack.i.l.bf16 %v6971_v62  ;;  %4872 = vmatmul.mubr.f32.gmra.mxu1 %v4428_v18  ;;  %v4473_v59 = vsel %vm4360_vm9, %v4437_v37, %v6967_v54  ;;  %v4364_v31 = vsel %vm4360_vm9, %v4327_v13, %v6968_v50  ;;  %v14838_v18 = vld [vmem:[#allocation76_spill] sm:$0xff] }
 0x309   :  { %v6973_v3 = vunpack.i.h.bf16 %v6971_v62  ;;  %v4509_v45 = vsel %vm4397_vm10, %v4473_v59, %v6977_v48  ;;  %v4401_v52 = vsel %vm4397_vm10, %v4364_v31, %v6978_v26  ;;  %v3751_v36 = vcombine.low %v14790_v10, %v14801_v15  ;;  %v6981_v8 = vpop.permute.xlu1 %6980 }
 0x30a   :  { %v2617_v23 = vadd.f32 %v12421_v44, %v2554_v58  ;;  %v14831_v37 = vcombine.low %v14778_v17, %v14786_v55  ;;  %4736 = vmatprep.mubr.f32.mxu0 %v4509_v45  ;;  %v12520_v63 = vcombine.low %v12365_v46, %v3192_v57  ;;  %v3752_v48 = vcombine.low %v14799_v33, %v12441_v24  ;;  %v14832_v55 = vld [vmem:[#allocation169_spill] sm:$0xff] }
 0x30b   :  { %v6987_v50 = vunpack.i.l.bf16 %v12515_v19  ;;  %4737 = vmatmul.mubr.f32.gmra.mxu0 %v4401_v52  ;;  %v7274_v10 = vpack.i.bf16 %v3968_v32, %v3967_v25  ;;  %v12527_v17 = vsel %vm8220_vm4, %v2957_v43, %v2958_v7  ;;  %v4328_v15 = vsel %vm4323_vm8, %v14832_v55, %v6817_v29  ;;  %v14833_v57 = vld [vmem:[#allocation109_spill] sm:$0xff]  ;;  %v14836_v29 = vld [vmem:[#allocation164_spill] sm:$0xff]  ;;  %v6996_v62 = vpop.permute.xlu0 %6995 }
 0x30c   :  { %v7269_v13 = vpack.i.bf16 %v14831_v37, %v12487_v20  ;;  %v12517_v44 = vmax.f32 %v2617_v23, 0.0  ;;  %v6982_v54 = vunpack.i.l.bf16 %v6981_v8  ;;  %v14835_v33 = vcombine.low %v14833_v57, %v14834_v39 }
 0x30d   :  { %v6983_v25 = vunpack.i.h.bf16 %v6981_v8  ;;  %7275 = vrot.lane.b32.xlu0 %v7274_v10, %s7353_s26  ;;  %v4355_v34 = vsel %vm4323_vm8, %v14836_v29, %v6973_v3  ;;  %v14839_v53 = vcombine.low %v14837_v51, %v14838_v18  ;;  %v6991_v59 = vpop.permute.xlu1 %6990  ;;  %v6998_v31 = vunpack.i.h.bf16 %v6996_v62  ;;  %v14840_v3 = vld [vmem:[#allocation147_spill] sm:$0xff] }
 0x30e   :  { %v12533_v46 = vcombine.low %v12441_v24, %v12517_v44  ;;  %v4465_v4 = vsel %vm4323_vm8, %v14835_v33, %v6972_v9  ;;  %v12541_v32 = vcombine.high %v12517_v44, %v12517_v44  ;;  %7270 = vrot.lane.b32.xlu1 %v7269_v13, %s7355_s1  ;;  %v6482_v24 = vrot.slane %v12517_v44, 9 }
 0x30f   :  { %v4438_v58 = vsel %vm4323_vm8, %v14839_v53, %v6987_v50  ;;  %v4501_v26 = vsel %vm4360_vm9, %v4465_v4, %v6982_v54  ;;  %v6506_v9 = vrot.slane %v12517_v44, 10  ;;  %v6997_v23 = vunpack.i.l.bf16 %v6996_v62  ;;  %v12577_v4 = vpop.permute.xlu0 %7005 }
 0x310   :  { %v7279_v43 = vpack.i.bf16 %v12468_v11, %v12533_v46  ;;  %v2962_v7 = vrot.slane %v12541_v32, 5  ;;  %v12559_v45 = vcombine.low %v12541_v32, %v14840_v3  ;;  %v3205_v52 = vrot.slane %v12541_v32, 6 }
 0x311   :  { %v6993_v37 = vunpack.i.h.bf16 %v6991_v59  ;;  %v6992_v13 = vunpack.i.l.bf16 %v6991_v59  ;;  %v4392_v10 = vsel %vm4360_vm9, %v4355_v34, %v6983_v25  ;;  %v4474_v57 = vsel %vm4360_vm9, %v4438_v58, %v6997_v23  ;;  %v7001_v34 = vpop.permute.xlu1 %7000  ;;  %v14842_v58 = vld [vmem:[#allocation106_spill] sm:$0xff] }
 0x312   :  { %v12564_v8 = vsel %vm8220_vm4, %v6482_v24, %v2962_v7  ;;  %v2964_v50 = vrot.slane %v2962_v7, 4  ;;  %7280 = vrot.lane.b32.xlu1 %v7279_v43, %s7354_s10  ;;  %v7289_v54 = vpack.i.bf16 %v12520_v63, %v12559_v45  ;;  %v3207_v29 = vrot.slane %v3205_v52, 4 }
 0x313   :  { %v12570_v55 = vcombine.low %v12527_v17, %v12564_v8  ;;  %v4537_v39 = vsel %vm4397_vm10, %v4501_v26, %v6992_v13  ;;  %v4429_v33 = vsel %vm4397_vm10, %v4392_v10, %v6993_v37  ;;  %v14841_v24 = vrot.slane %v14840_v3, 5  ;;  %v7016_v13 = vpop.permute.xlu0 %7015 }
 0x314   :  { %4876 = vmatprep.mubr.f32.mxu1 %v4537_v39  ;;  %v7007_v18 = vunpack.i.l.bf16 %v12577_v4  ;;  %v3206_v53 = vsel %vm10461_vm7, %v6506_v9, %v3205_v52  ;;  %v7003_v62 = vunpack.i.h.bf16 %v7001_v34  ;;  %v7002_v26 = vunpack.i.l.bf16 %v7001_v34 }
 0x315   :  { %v12583_v25 = vsel %vm8220_vm4, %v2964_v50, %v14841_v24  ;;  %v7284_v51 = vpack.i.bf16 %v3751_v36, %v12570_v55  ;;  %4877 = vmatmul.mubr.f32.gmra.mxu1 %v4429_v33  ;;  %v14843_v7 = vrot.slane %v14840_v3, 6  ;;  %v4365_v59 = vsel %vm4360_vm9, %v4328_v15, %v6998_v31  ;;  %v7011_v50 = vpop.permute.xlu1 %7010  ;;  %v14844_v31 = vld [vmem:[#allocation48_spill] sm:$0xff]  ;;  %v14845_v33 = vld [vmem:[#allocation137_spill] sm:$0xff] }
 0x316   :  { %v3467_v43 = vcombine.low %v12583_v25, %v14842_v58  ;;  %v6988_v36 = vunpack.i.h.bf16 %v12515_v19  ;;  %7290 = vrot.lane.b32.xlu1 %v7289_v54, %s7354_s10  ;;  %v4510_v23 = vsel %vm4397_vm10, %v4474_v57, %v7002_v26  ;;  %v4402_v37 = vsel %vm4397_vm10, %v4365_v59, %v7003_v62  ;;  %v14847_v54 = vld [vmem:[#allocation90_spill] sm:$0xff]  ;;  %v14849_v62 = vld [vmem:[#allocation105_spill] sm:$0xff] }
 0x317   :  { %v12595_v47 = vsel %vm10461_vm7, %v3207_v29, %v14843_v7  ;;  %7285 = vrot.lane.b32.xlu0 %v7284_v51, %s7355_s1  ;;  %4741 = vmatprep.mubr.f32.mxu0 %v4510_v23  ;;  %v7018_v39 = vunpack.i.h.bf16 %v7016_v13  ;;  %v7017_v15 = vunpack.i.l.bf16 %v7016_v13  ;;  %v4356_v19 = vsel %vm4323_vm8, %v14844_v31, %v7007_v18  ;;  %v14848_v18 = vld [vmem:[#allocation4_spill] sm:$0xff]  ;;  %v14851_v59 = vld [vmem:[#allocation149_spill] sm:$0xff]  ;;  %v7026_v23 = vpop.permute.xlu0 %7025 }
 0x318   :  { %v3969_v9 = vcombine.low %v3206_v53, %v12595_v47  ;;  %v7294_v52 = vpack.i.bf16 %v3752_v48, %v3467_v43  ;;  %v14846_v29 = vrot.slane %v14845_v33, 6  ;;  %v7013_v48 = vunpack.i.h.bf16 %v7011_v50  ;;  %4742 = vmatmul.mubr.f32.gmra.mxu0 %v4402_v37 }
 0x319   :  { %v7012_v57 = vunpack.i.l.bf16 %v7011_v50  ;;  %v6818_v34 = vunpack.i.h.bf16 %v14827_v38  ;;  %v12621_v51 = vcombine.low %v12449_v42, %v12480_v61  ;;  %v14850_v26 = vcombine.low %v14848_v18, %v14849_v62  ;;  %v14853_v42 = vld [vmem:[#allocation46_spill] sm:$0xff] }
 0x31a   :  { %v7299_v10 = vpack.i.bf16 %v12487_v20, %v3969_v9  ;;  %v12612_v24 = vsel %vm10461_vm7, %v14847_v54, %v14846_v29  ;;  %v3753_v20 = vcombine.low %v12517_v44, %v12541_v32  ;;  %v7008_v38 = vunpack.i.h.bf16 %v12577_v4  ;;  %v7021_v44 = vpop.permute.xlu1 %7020  ;;  %v14852_v32 = vld [vmem:[#allocation144_spill] sm:$0xff] }
 0x31b   :  { %7295 = vrot.lane.b32.xlu0 %v7294_v52, %s7355_s1  ;;  %v4466_v7 = vsel %vm4323_vm8, %v14850_v26, %v6988_v36  ;;  %v3970_v9 = vcombine.low %v12612_v24, %v14851_v59  ;;  %v4393_v37 = vsel %vm4360_vm9, %v4356_v19, %v7013_v48  ;;  %v7304_v61 = vpack.i.bf16 %v12621_v51, %v14853_v42  ;;  %v14855_v48 = vld [vmem:[#allocation173_spill] sm:$0xff] }
 0x31c   :  { %7300 = vrot.lane.b32.xlu1 %v7299_v10, %s7353_s26  ;;  %v4502_v52 = vsel %vm4360_vm9, %v4466_v7, %v7012_v57  ;;  %v7309_v13 = vpack.i.bf16 %v3753_v20, %v14852_v32  ;;  %v4430_v36 = vsel %vm4397_vm10, %v4393_v37, %v7018_v39  ;;  %v14854_v10 = vld [vmem:[#allocation29_spill] sm:$0xff]  ;;  %v12639_v4 = vcombine.low %v12491_v1, %v3206_v53  ;;  %v14856_v39 = vld [vmem:[#allocation156_spill] sm:$0xff]  ;;  %v7036_v53 = vpop.permute.xlu0 %7035  ;;  %v14861_v37 = vld [vmem:[#allocation150_spill] sm:$0xff] }
 0x31d   :  { %v4538_v50 = vsel %vm4397_vm10, %v4502_v52, %v7017_v15  ;;  %v6822_v31 = vunpack.i.l.bf16 %v14854_v10  ;;  %v6519_v33 = vrot.slane %v11781_v60, 10  ;;  %v3351_v19 = vrot.slane %v12079_v28, 6  ;;  %v14857_v28 = vld [vmem:[#allocation81_spill] sm:$0xff]  ;;  %v14860_v52 = vld [vmem:[#allocation146_spill] sm:$0xff]  ;;  %v14863_v32 = vld [vmem:[#allocation67_spill] sm:$0xff] }
 0x31e   :  { %4881 = vmatprep.mubr.f32.mxu1 %v4538_v50  ;;  %v7023_v29 = vunpack.i.h.bf16 %v7021_v44  ;;  %v7022_v54 = vunpack.i.l.bf16 %v7021_v44  ;;  %v4329_v15 = vsel %vm4323_vm8, %v14855_v48, %v6818_v34  ;;  %v3754_v57 = vcombine.low %v14840_v3, %v14856_v39  ;;  %v14858_v20 = vld [vmem:[#allocation77_spill] sm:$0xff]  ;;  %v7031_v7 = vpop.permute.xlu1 %7030 }
 0x31f   :  { %7305 = vrot.lane.b32.xlu0 %v7304_v61, %s7354_s10  ;;  %4882 = vmatmul.mubr.f32.gmra.mxu1 %v4430_v36  ;;  %v7319_v1 = vpack.i.bf16 %v12639_v4, %v12041_v22  ;;  %v7314_v60 = vpack.i.bf16 %v12570_v55, %v3970_v9  ;;  %v14859_v18 = vcombine.low %v14857_v28, %v14858_v20  ;;  %v3354_v26 = vrot.slane %v11636_v5, 6  ;;  %v14864_v61 = vld [vmem:[#allocation18_spill] sm:$0xff]  ;;  %v14866_v20 = vld [vmem:[#allocation19_spill] sm:$0xff] }
 0x320   :  { %7310 = vrot.lane.b32.xlu1 %v7309_v13, %s7355_s1  ;;  %v7028_v59 = vunpack.i.h.bf16 %v7026_v23  ;;  %v7027_v34 = vunpack.i.l.bf16 %v7026_v23  ;;  %v14862_v3 = vcombine.low %v14860_v52, %v14861_v37  ;;  %v7324_v13 = vpack.i.bf16 %v3754_v57, %v14863_v32  ;;  %v14865_v23 = vld [vmem:[#allocation71_spill] sm:$0xff]  ;;  %v7046_v39 = vpop.permute.xlu0 %7045  ;;  %v14868_v37 = vld [vmem:[#allocation172_spill] sm:$0xff] }
 0x321   :  { %v4439_v62 = vsel %vm4323_vm8, %v14859_v18, %v7008_v38  ;;  %v7033_v22 = vunpack.i.h.bf16 %v7031_v7  ;;  %v7032_v42 = vunpack.i.l.bf16 %v7031_v7  ;;  %v7038_v55 = vunpack.i.h.bf16 %v7036_v53 }
 0x322   :  { %v7329_v44 = vpack.i.bf16 %v3467_v43, %v14862_v3  ;;  %v7037_v9 = vunpack.i.l.bf16 %v7036_v53  ;;  %v4475_v38 = vsel %vm4360_vm9, %v4439_v62, %v7022_v54  ;;  %v4366_v5 = vsel %vm4360_vm9, %v4329_v15, %v7023_v29  ;;  %v7041_v28 = vpop.permute.xlu1 %7040  ;;  %v14867_v15 = vld [vmem:[#allocation143_spill] sm:$0xff] }
 0x323   :  { %7315 = vrot.lane.b32.xlu0 %v7314_v60, %s7353_s26  ;;  %v3906_v50 = vcombine.low %v14865_v23, %v14864_v61  ;;  %v3353_v36 = vrot.slane %v3351_v19, 4  ;;  %v4511_v43 = vsel %vm4397_vm10, %v4475_v38, %v7032_v42  ;;  %v4403_v48 = vsel %vm4397_vm10, %v4366_v5, %v7033_v22 }
 0x324   :  { %7320 = vrot.lane.b32.xlu1 %v7319_v1, %s7354_s10  ;;  %v3356_v57 = vrot.slane %v3354_v26, 4  ;;  %v3357_v53 = vrot.slane %v12141_v35, 6  ;;  %4746 = vmatprep.mubr.f32.mxu0 %v4511_v43  ;;  %v7048_v1 = vunpack.i.h.bf16 %v7046_v39  ;;  %v7047_v60 = vunpack.i.l.bf16 %v7046_v39  ;;  %v7056_v32 = vpop.permute.xlu0 %7055 }
 0x325   :  { %v4467_v54 = vsel %vm4323_vm8, %v3906_v50, %v7027_v34  ;;  %v4357_v29 = vsel %vm4323_vm8, %v14866_v20, %v7028_v59  ;;  %4747 = vmatmul.mubr.f32.gmra.mxu0 %v4403_v48  ;;  %v3755_v18 = vcombine.low %v14867_v15, %v14739_v16  ;;  %v12679_v35 = vsel %vm10461_vm7, %v6519_v33, %v3351_v19  ;;  %v14874_v20 = vld [vmem:[#allocation9_spill] sm:$0xff] }
 0x326   :  { %v4503_v62 = vsel %vm4360_vm9, %v4467_v54, %v7037_v9  ;;  %v4394_v7 = vsel %vm4360_vm9, %v4357_v29, %v7038_v55  ;;  %v7042_v52 = vunpack.i.l.bf16 %v7041_v28  ;;  %v12685_v59 = vcombine.low %v12595_v47, %v12612_v24  ;;  %v14870_v9 = vld [vmem:[#allocation34_spill] sm:$0xff]  ;;  %v14873_v54 = vld [vmem:[#allocation183_spill] sm:$0xff] }
 0x327   :  { %7325 = vrot.lane.b32.xlu0 %v7324_v13, %s7355_s1  ;;  %v4539_v34 = vsel %vm4397_vm10, %v4503_v62, %v7047_v60  ;;  %v4431_v16 = vsel %vm4397_vm10, %v4394_v7, %v7048_v1  ;;  %v7339_v3 = vpack.i.bf16 %v3755_v18, %v14868_v37  ;;  %v12692_v33 = vsel %vm10461_vm7, %v3353_v36, %v3354_v26  ;;  %v14869_v26 = vld [vmem:[#allocation78_spill] sm:$0xff]  ;;  %v14875_v62 = vld [vmem:[#allocation179_spill] sm:$0xff] }
 0x328   :  { %7330 = vrot.lane.b32.xlu1 %v7329_v44, %s7353_s26  ;;  %4886 = vmatprep.mubr.f32.mxu1 %v4539_v34  ;;  %v12696_v19 = vsel %vm10461_vm7, %v3356_v57, %v3357_v53  ;;  %v7051_v44 = vpop.permute.xlu1 %7050  ;;  %v7334_v47 = vpack.i.bf16 %v12685_v59, %v12293_v56  ;;  %v7058_v24 = vunpack.i.h.bf16 %v7056_v32  ;;  %v7057_v13 = vunpack.i.l.bf16 %v7056_v32  ;;  %v14872_v56 = vld [vmem:[#allocation7_spill] sm:$0xff]  ;;  %v7066_v50 = vpop.permute.xlu0 %7065 }
 0x329   :  { %4887 = vmatmul.mubr.f32.gmra.mxu1 %v4431_v16  ;;  %v4319_v22 = vcombine.low %v12692_v33, %v12696_v19  ;;  %v7053_v42 = vunpack.i.h.bf16 %v7051_v44  ;;  %v7052_v55 = vunpack.i.l.bf16 %v7051_v44  ;;  %v14871_v38 = vcombine.low %v14869_v26, %v14870_v9  ;;  %v14877_v26 = vld [vmem:[#allocation42_spill] sm:$0xff]  ;;  %v14878_v9 = vld [vmem:[#allocation43_spill] sm:$0xff] }
 0x32a   :  { %v4330_v61 = vsel %vm4323_vm8, %v14872_v56, %v6822_v31  ;;  %v7043_v23 = vunpack.i.h.bf16 %v7041_v28  ;;  %v7068_v39 = vunpack.i.h.bf16 %v7066_v50  ;;  %v7067_v57 = vunpack.i.l.bf16 %v7066_v50  ;;  %v14880_v56 = vld [vmem:[#allocation165_spill] sm:$0xff] }
 0x32b   :  { %7335 = vrot.lane.b32.xlu0 %v7334_v47, %s7354_s10  ;;  %v4440_v5 = vsel %vm4323_vm8, %v14871_v38, %v7042_v52  ;;  %v4367_v43 = vsel %vm4360_vm9, %v4330_v61, %v7053_v42  ;;  %v3907_v29 = vcombine.low %v14874_v20, %v14873_v54  ;;  %v6823_v31 = vunpack.i.h.bf16 %v14854_v10  ;;  %v14876_v52 = vld [vmem:[#allocation28_spill] sm:$0xff] }
 0x32c   :  { %7340 = vrot.lane.b32.xlu1 %v7339_v3, %s7355_s1  ;;  %v4476_v36 = vsel %vm4360_vm9, %v4440_v5, %v7052_v55  ;;  %v7061_v48 = vpop.permute.xlu1 %7060  ;;  %v4404_v1 = vsel %vm4397_vm10, %v4367_v43, %v7058_v24  ;;  %v7076_v15 = vpop.permute.xlu0 %7075  ;;  %v6863_v34 = vunpack.i.h.bf16 %v14876_v52  ;;  %v3896_v10 = vcombine.low %v12472_v0, %v12527_v17 }
 0x32d   :  { %v4512_v53 = vsel %vm4397_vm10, %v4476_v36, %v7057_v13  ;;  %v7062_v60 = vunpack.i.l.bf16 %v7061_v48  ;;  %v7063_v28 = vunpack.i.h.bf16 %v7061_v48  ;;  %v4468_v18 = vsel %vm4323_vm8, %v3907_v29, %v7043_v23 }
 0x32e   :  { %4751 = vmatprep.mubr.f32.mxu0 %v4512_v53  ;;  %v4504_v37 = vsel %vm4360_vm9, %v4468_v18, %v7067_v57  ;;  %v7078_v47 = vunpack.i.h.bf16 %v7076_v15  ;;  %v7077_v24 = vunpack.i.l.bf16 %v7076_v15  ;;  %v14879_v38 = vcombine.low %v14877_v26, %v14878_v9 }
 0x32f   :  { %4752 = vmatmul.mubr.f32.gmra.mxu0 %v4404_v1  ;;  %v4358_v7 = vsel %vm4323_vm8, %v14875_v62, %v7062_v60  ;;  %v4331_v61 = vsel %vm4323_vm8, %v14880_v56, %v6823_v31  ;;  %v12737_v43 = vsel %vm4323_vm8, %v12369_v30, %v6863_v34  ;;  %v3897_v48 = vcombine.low %v12564_v8, %v12583_v25  ;;  %v14881_v30 = vld [vmem:[#allocation25_spill] sm:$0xff]  ;;  %v14883_v34 = vld [vmem:[#allocation31_spill] sm:$0xff] }
 0x330   :  { %v7071_v16 = vpop.permute.xlu1 %7070  ;;  %v4395_v3 = vsel %vm4360_vm9, %v4358_v7, %v7068_v39  ;;  %v7086_v55 = vpop.permute.xlu0 %7085  ;;  %v4441_v5 = vsel %vm4323_vm8, %v14879_v38, %v7063_v28  ;;  %v4368_v57 = vsel %vm4360_vm9, %v4331_v61, %v7078_v47  ;;  %v6827_v31 = vunpack.i.l.bf16 %v14881_v30  ;;  %v14882_v7 = vld [vmem:[#allocation193_spill] sm:$0xff] }
 0x331   :  { %v7073_v32 = vunpack.i.h.bf16 %v7071_v16  ;;  %v7072_v44 = vunpack.i.l.bf16 %v7071_v16  ;;  %v7088_v50 = vunpack.i.h.bf16 %v7086_v55  ;;  %v7087_v36 = vunpack.i.l.bf16 %v7086_v55  ;;  %v14885_v38 = vld [vmem:[#allocation113_spill] sm:$0xff] }
 0x332   :  { %v4477_v39 = vsel %vm4360_vm9, %v4441_v5, %v7077_v24  ;;  %v3908_v16 = vcombine.low %v14883_v34, %v14882_v7  ;;  %v6828_v55 = vunpack.i.h.bf16 %v14881_v30  ;;  %v4332_v5 = vsel %vm4323_vm8, %v14885_v38, %v6827_v31  ;;  %v14891_v34 = vld [vmem:[#allocation94_spill] sm:$0xff] }
 0x333   :  { %v4540_v13 = vsel %vm4397_vm10, %v4504_v37, %v7072_v44  ;;  %v4432_v42 = vsel %vm4397_vm10, %v4395_v3, %v7073_v32  ;;  %v4513_v53 = vsel %vm4397_vm10, %v4477_v39, %v7087_v36  ;;  %v4405_v1 = vsel %vm4397_vm10, %v4368_v57, %v7088_v50  ;;  %v14886_v36 = vld [vmem:[#allocation30_spill] sm:$0xff]  ;;  %v14887_v39 = vld [vmem:[#allocation45_spill] sm:$0xff] }
 0x334   :  { %v7081_v23 = vpop.permute.xlu1 %7080  ;;  %4891 = vmatprep.mubr.f32.mxu1 %v4540_v13  ;;  %v7096_v60 = vpop.permute.xlu0 %7095  ;;  %4756 = vmatprep.mubr.f32.mxu0 %v4513_v53  ;;  %v14884_v13 = vld [vmem:[#allocation181_spill] sm:$0xff]  ;;  %v14888_v57 = vcombine.low %v14886_v36, %v14887_v39  ;;  %v14895_v38 = vld [vmem:[#allocation26_spill] sm:$0xff]  ;;  %vm6381_vm0 = vcmask 1046534   ;;  %vm6383_vm1 = vcmask 1047559  }
 0x335   :  { %4892 = vmatmul.mubr.f32.gmra.mxu1 %v4432_v42  ;;  %4757 = vmatmul.mubr.f32.gmra.mxu0 %v4405_v1  ;;  %v7083_v20 = vunpack.i.h.bf16 %v7081_v23  ;;  %v7082_v29 = vunpack.i.l.bf16 %v7081_v23  ;;  %v7097_v18 = vunpack.i.l.bf16 %v7096_v60  ;;  %v7098_v56 = vunpack.i.h.bf16 %v7096_v60 }
 0x337   :  { %v4469_v24 = vsel %vm4323_vm8, %v3908_v16, %v7082_v29  ;;  %v4359_v42 = vsel %vm4323_vm8, %v14884_v13, %v7083_v20  ;;  %v4442_v53 = vsel %vm4323_vm8, %v14888_v57, %v7097_v18  ;;  %v14890_v18 = vld [vmem:[#allocation93_spill] sm:$0xff]  ;;  %v14897_v57 = vld [vmem:[#allocation95_spill] sm:$0xff] }
 0x338   :  { %v7091_v54 = vpop.permute.xlu1 %7090  ;;  %v7106_v62 = vpop.permute.xlu0 %7105  ;;  %v14892_v16 = vcombine.low %v14890_v18, %v14891_v34 }
 0x339   :  { %v7093_v28 = vunpack.i.h.bf16 %v7091_v54  ;;  %v7092_v15 = vunpack.i.l.bf16 %v7091_v54  ;;  %v7108_v3 = vunpack.i.h.bf16 %v7106_v62  ;;  %v7107_v32 = vunpack.i.l.bf16 %v7106_v62 }
 0x33b   :  { %v4505_v26 = vsel %vm4360_vm9, %v4469_v24, %v7092_v15  ;;  %v4396_v9 = vsel %vm4360_vm9, %v4359_v42, %v7093_v28  ;;  %v4478_v29 = vsel %vm4360_vm9, %v4442_v53, %v7107_v32  ;;  %v4369_v30 = vsel %vm4360_vm9, %v4332_v5, %v7108_v3  ;;  %v14889_v28 = vld [vmem:[#allocation10_spill] sm:$0xff] }
 0x33c   :  { %v7101_v37 = vpop.permute.xlu1 %7100  ;;  %v7116_v50 = vpop.permute.xlu0 %7115  ;;  %v6832_v5 = vunpack.i.l.bf16 %v14895_v38  ;;  %v14898_v53 = vld [vmem:[#allocation98_spill] sm:$0xff] }
 0x33d   :  { %v7103_v44 = vunpack.i.h.bf16 %v7101_v37  ;;  %v7102_v47 = vunpack.i.l.bf16 %v7101_v37  ;;  %v7118_v54 = vunpack.i.h.bf16 %v7116_v50  ;;  %v7117_v20 = vunpack.i.l.bf16 %v7116_v50 }
 0x33e   :  { %v4443_v37 = vsel %vm4323_vm8, %v14892_v16, %v7098_v56 }
 0x33f   :  { %v4541_v61 = vsel %vm4397_vm10, %v4505_v26, %v7102_v47  ;;  %v4433_v23 = vsel %vm4397_vm10, %v4396_v9, %v7103_v44  ;;  %v14893_v44 = vld [vmem:[#allocation103_spill] sm:$0xff]  ;;  %v4479_v24 = vsel %vm4360_vm9, %v4443_v37, %v7117_v20  ;;  %v14894_v9 = vld [vmem:[#allocation68_spill] sm:$0xff] }
 0x340   :  { %v7111_v1 = vpop.permute.xlu1 %7110  ;;  %4896 = vmatprep.mubr.f32.mxu1 %v4541_v61  ;;  %v7126_v7 = vpop.permute.xlu0 %7125  ;;  %v4333_v32 = vsel %vm4323_vm8, %v14893_v44, %v6828_v55  ;;  %v14896_v61 = vld [vmem:[#allocation20_spill] sm:$0xff] }
 0x341   :  { %v7113_v31 = vunpack.i.h.bf16 %v7111_v1  ;;  %v7112_v60 = vunpack.i.l.bf16 %v7111_v1  ;;  %4897 = vmatmul.mubr.f32.gmra.mxu1 %v4433_v23  ;;  %v7127_v47 = vunpack.i.l.bf16 %v7126_v7  ;;  %v4370_v13 = vsel %vm4360_vm9, %v4333_v32, %v7118_v54 }
 0x342   :  { %6678 = vmatprep.mubr.msk.f32.mxu1 %vm4323_vm8, %v14889_v28  ;;  %v14899_v1 = vcombine.low %v14897_v57, %v14898_v53  ;;  %v14901_v28 = vld [vmem:[#allocation195_spill] sm:$0xff] }
 0x343   :  { %v4514_v15 = vsel %vm4397_vm10, %v4478_v29, %v7112_v60  ;;  %v4406_v62 = vsel %vm4397_vm10, %v4369_v30, %v7113_v31  ;;  %v14900_v30 = vld [vmem:[#allocation56_spill] sm:$0xff]  ;;  %v6833_v31 = vunpack.i.h.bf16 %v14895_v38  ;;  %v7128_v60 = vunpack.i.h.bf16 %v7126_v7 }
 0x344   :  { %v7121_v3 = vpop.permute.xlu1 %7120  ;;  %4761 = vmatprep.mubr.f32.mxu0 %v4514_v15  ;;  %v7136_v23 = vpop.permute.xlu0 %7135  ;;  %v4444_v54 = vsel %vm4323_vm8, %v14899_v1, %v7127_v47  ;;  %v14902_v15 = vld [vmem:[#allocation197_spill] sm:$0xff] }
 0x345   :  { %v7123_v42 = vunpack.i.h.bf16 %v7121_v3  ;;  %v7122_v26 = vunpack.i.l.bf16 %v7121_v3  ;;  %6679 = vmatmul.mubr.msk.f32.vlgmr.msra.gmra.mxu1 %vm4323_vm8, %v14894_v9  ;;  %4762 = vmatmul.mubr.f32.gmra.mxu0 %v4406_v62  ;;  %v7138_v36 = vunpack.i.h.bf16 %v7136_v23  ;;  %v7137_v39 = vunpack.i.l.bf16 %v7136_v23  ;;  %v14906_v9 = vld [vmem:[#allocation99_spill] sm:$0xff] }
 0x346   :  { %6681 = vmatprep.mubr.msk.f32.mxu1 %vm4323_vm8, %v14896_v61  ;;  %v4334_v62 = vsel %vm4323_vm8, %v14902_v15, %v6832_v5  ;;  %v14908_v61 = vld [vmem:[#allocation74_spill] sm:$0xff] }
 0x347   :  { %v4515_v55 = vsel %vm4397_vm10, %v4479_v24, %v7122_v26  ;;  %v4407_v56 = vsel %vm4397_vm10, %v4370_v13, %v7123_v42  ;;  %v14903_v13 = vld [vmem:[#allocation44_spill] sm:$0xff]  ;;  %v14905_v26 = vld [vmem:[#allocation102_spill] sm:$0xff] }
 0x348   :  { %v7131_v50 = vpop.permute.xlu1 %7130  ;;  %4766 = vmatprep.mubr.f32.mxu0 %v4515_v55  ;;  %v7146_v18 = vpop.permute.xlu0 %7145  ;;  %v14904_v42 = vld [vmem:[#allocation40_spill] sm:$0xff]  ;;  %v14907_v38 = vcombine.low %v14905_v26, %v14906_v9  ;;  %v4335_v55 = vsel %vm4323_vm8, %v14908_v61, %v6833_v31  ;;  %v14911_v15 = vld [vmem:[#allocation82_spill] sm:$0xff] }
 0x349   :  { %v7133_v20 = vunpack.i.h.bf16 %v7131_v50  ;;  %v7132_v29 = vunpack.i.l.bf16 %v7131_v50  ;;  %6682 = vmatmul.mubr.msk.f32.gmra.mxu1 %vm4323_vm8, %v14900_v30  ;;  %4767 = vmatmul.mubr.f32.gmra.mxu0 %v4407_v56  ;;  %v7148_v44 = vunpack.i.h.bf16 %v7146_v18  ;;  %v7147_v32 = vunpack.i.l.bf16 %v7146_v18  ;;  %v14909_v56 = vld [vmem:[#allocation192_spill] sm:$0xff] }
 0x34a   :  { %6684 = vmatprep.mubr.msk.f32.mxu1 %vm4323_vm8, %v14901_v28  ;;  %v4445_v5 = vsel %vm4323_vm8, %v14907_v38, %v7128_v60  ;;  %v6837_v23 = vunpack.i.l.bf16 %v14909_v56  ;;  %v6838_v30 = vunpack.i.h.bf16 %v14909_v56  ;;  %v14910_v28 = vld [vmem:[#allocation100_spill] sm:$0xff] }
 0x34b   :  { %v4480_v34 = vsel %vm4360_vm9, %v4444_v54, %v7132_v29  ;;  %v4371_v16 = vsel %vm4360_vm9, %v4334_v62, %v7133_v20  ;;  %v14912_v62 = vcombine.low %v14910_v28, %v14911_v15  ;;  %v14916_v26 = vld [vmem:[#allocation120_spill] sm:$0xff] }
 0x34c   :  { %v7141_v37 = vpop.permute.xlu1 %7140  ;;  %v4516_v3 = vsel %vm4397_vm10, %v4480_v34, %v7137_v39  ;;  %v4408_v47 = vsel %vm4397_vm10, %v4371_v16, %v7138_v36  ;;  %v7156_v50 = vpop.permute.xlu0 %7155  ;;  %v14913_v34 = vld [vmem:[#allocation36_spill] sm:$0xff] }
 0x34d   :  { %v7143_v24 = vunpack.i.h.bf16 %v7141_v37  ;;  %v7142_v7 = vunpack.i.l.bf16 %v7141_v37  ;;  %6685 = vmatmul.mubr.msk.f32.gmra.mxu1 %vm4323_vm8, %v14903_v13  ;;  %4771 = vmatprep.mubr.f32.mxu0 %v4516_v3  ;;  %v7158_v53 = vunpack.i.h.bf16 %v7156_v50  ;;  %v7157_v1 = vunpack.i.l.bf16 %v7156_v50 }
 0x34e   :  { %6687 = vmatprep.mubr.msk.f32.mxu1 %vm4323_vm8, %v14904_v42  ;;  %4772 = vmatmul.mubr.f32.gmra.mxu0 %v4408_v47  ;;  %v4336_v16 = vsel %vm4323_vm8, %v14913_v34, %v6837_v23  ;;  %v14915_v42 = vld [vmem:[#allocation119_spill] sm:$0xff] }
 0x34f   :  { %v4481_v36 = vsel %vm4360_vm9, %v4445_v5, %v7142_v7  ;;  %v4372_v39 = vsel %vm4360_vm9, %v4335_v55, %v7143_v24  ;;  %v14914_v24 = vld [vmem:[#allocation41_spill] sm:$0xff]  ;;  %v14917_v9 = vcombine.low %v14915_v42, %v14916_v26  ;;  %v14918_v5 = vld [vmem:[#allocation47_spill] sm:$0xff]  ;;  %v14929_v26 = vld [vmem:[#allocation104_spill] sm:$0xff] }
 0x350   :  { %v7151_v57 = vpop.permute.xlu1 %7150  ;;  %v4517_v54 = vsel %vm4397_vm10, %v4481_v36, %v7147_v32  ;;  %v4409_v20 = vsel %vm4397_vm10, %v4372_v39, %v7148_v44  ;;  %v7166_v60 = vpop.permute.xlu0 %7165  ;;  %v4337_v61 = vsel %vm4323_vm8, %v14918_v5, %v6838_v30 }
 0x351   :  { %v7152_v29 = vunpack.i.l.bf16 %v7151_v57  ;;  %6688 = vmatmul.mubr.msk.f32.gmra.mxu1 %vm4323_vm8, %v11720_v41  ;;  %4776 = vmatprep.mubr.f32.mxu0 %v4517_v54  ;;  %v7153_v31 = vunpack.i.h.bf16 %v7151_v57  ;;  %v7168_v44 = vunpack.i.h.bf16 %v7166_v60  ;;  %v7167_v41 = vunpack.i.l.bf16 %v7166_v60  ;;  %v14919_v57 = vld [vmem:[#allocation140_spill] sm:$0xff] }
 0x352   :  { %6690 = vmatprep.mubr.msk.f32.mxu1 %vm4323_vm8, %v11763_v21  ;;  %4777 = vmatmul.mubr.f32.gmra.mxu0 %v4409_v20  ;;  %v4373_v21 = vsel %vm4360_vm9, %v4336_v16, %v7158_v53  ;;  %v6842_v53 = vunpack.i.l.bf16 %v14919_v57  ;;  %v14922_v60 = vld [vmem:[#allocation84_spill] sm:$0xff] }
 0x353   :  { %v4446_v18 = vsel %vm4323_vm8, %v14912_v62, %v7152_v29  ;;  %v4447_v38 = vsel %vm4323_vm8, %v14917_v9, %v7153_v31  ;;  %v4374_v23 = vsel %vm4360_vm9, %v4337_v61, %v7168_v44  ;;  %v14921_v31 = vld [vmem:[#allocation121_spill] sm:$0xff]  ;;  %v4318_v9 = vcombine.low %v14929_v26, %v12679_v35 }
 0x354   :  { %v7161_v37 = vpop.permute.xlu1 %7160  ;;  %v4482_v32 = vsel %vm4360_vm9, %v4446_v18, %v7157_v1  ;;  %v7176_v56 = vpop.permute.xlu0 %7175  ;;  %v14920_v1 = vld [vmem:[#allocation49_spill] sm:$0xff]  ;;  %v14923_v28 = vcombine.low %v14921_v31, %v14922_v60 }
 0x355   :  { %v7163_v3 = vunpack.i.h.bf16 %v7161_v37  ;;  %v7162_v47 = vunpack.i.l.bf16 %v7161_v37  ;;  %6691 = vmatmul.mubr.msk.f32.gmra.mxu1 %vm4323_vm8, %v11827_v14  ;;  %v4483_v14 = vsel %vm4360_vm9, %v4447_v38, %v7167_v41  ;;  %v7177_v39 = vunpack.i.l.bf16 %v7176_v56  ;;  %v14924_v18 = vld [vmem:[#allocation97_spill] sm:$0xff]  ;;  %v14925_v41 = vld [vmem:[#allocation55_spill] sm:$0xff] }
 0x356   :  { %6693 = vmatprep.mubr.msk.f32.mxu1 %vm4323_vm8, %v14914_v24  ;;  %v6843_v37 = vunpack.i.h.bf16 %v14919_v57  ;;  %v7178_v44 = vunpack.i.h.bf16 %v7176_v56  ;;  %v14933_v57 = vld [vmem:[#allocation39_spill] sm:$0xff] }
 0x357   :  { %v4518_v7 = vsel %vm4397_vm10, %v4482_v32, %v7162_v47  ;;  %v4410_v13 = vsel %vm4397_vm10, %v4373_v21, %v7163_v3  ;;  %v4448_v15 = vsel %vm4323_vm8, %v14923_v28, %v7177_v39  ;;  %v14926_v32 = vld [vmem:[#allocation96_spill] sm:$0xff]  ;;  %v14927_v3 = vld [vmem:[#allocation51_spill] sm:$0xff] }
 0x358   :  { %v7171_v55 = vpop.permute.xlu1 %7170  ;;  %4781 = vmatprep.mubr.f32.mxu0 %v4518_v7  ;;  %v7186_v30 = vpop.permute.xlu0 %7185  ;;  %v4338_v21 = vsel %vm4323_vm8, %v14926_v32, %v6842_v53  ;;  %v14928_v47 = vld [vmem:[#allocation91_spill] sm:$0xff]  ;;  %v4339_v53 = vsel %vm4323_vm8, %v14933_v57, %v6843_v37  ;;  %v14937_v32 = vld [vmem:[#allocation92_spill] sm:$0xff] }
 0x359   :  { %v7173_v50 = vunpack.i.h.bf16 %v7171_v55  ;;  %v7172_v36 = vunpack.i.l.bf16 %v7171_v55  ;;  %6694 = vmatmul.mubr.msk.f32.gmra.mxu1 %vm4323_vm8, %v11913_v40  ;;  %4782 = vmatmul.mubr.f32.gmra.mxu0 %v4410_v13  ;;  %v7188_v34 = vunpack.i.h.bf16 %v7186_v30  ;;  %v7187_v16 = vunpack.i.l.bf16 %v7186_v30 }
 0x35a   :  { %6696 = vmatprep.mubr.msk.f32.mxu1 %vm4323_vm8, %v14920_v1  ;;  %v4317_v24 = vcombine.low %v14928_v47, %v14927_v3  ;;  %v14934_v1 = vld [vmem:[#allocation23_spill] sm:$0xff]  ;;  %v14938_v47 = vld [vmem:[#allocation72_spill] sm:$0xff] }
 0x35b   :  { %v4519_v54 = vsel %vm4397_vm10, %v4483_v14, %v7172_v36  ;;  %v4411_v20 = vsel %vm4397_vm10, %v4374_v23, %v7173_v50  ;;  %v14930_v50 = vld [vmem:[#allocation128_spill] sm:$0xff]  ;;  %v14931_v36 = vld [vmem:[#allocation130_spill] sm:$0xff]  ;;  %v6848_v37 = vunpack.i.h.bf16 %v14934_v1 }
 0x35c   :  { %v7181_v29 = vpop.permute.xlu1 %7180  ;;  %4786 = vmatprep.mubr.f32.mxu0 %v4519_v54  ;;  %v7196_v38 = vpop.permute.xlu0 %7195  ;;  %v14932_v39 = vcombine.low %v14930_v50, %v14931_v36  ;;  %v6847_v54 = vunpack.i.l.bf16 %v14934_v1  ;;  %v14940_v36 = vld [vmem:[#allocation33_spill] sm:$0xff]  ;;  %v14941_v1 = vld [vmem:[#allocation163_spill] sm:$0xff] }
 0x35d   :  { %v7183_v40 = vunpack.i.h.bf16 %v7181_v29  ;;  %v7182_v62 = vunpack.i.l.bf16 %v7181_v29  ;;  %6697 = vmatmul.mubr.msk.f32.gmra.mxu1 %vm4323_vm8, %v14924_v18  ;;  %4787 = vmatmul.mubr.f32.gmra.mxu0 %v4411_v20  ;;  %v7198_v14 = vunpack.i.h.bf16 %v7196_v38  ;;  %v7197_v23 = vunpack.i.l.bf16 %v7196_v38  ;;  %v14935_v18 = vld [vmem:[#allocation50_spill] sm:$0xff] }
 0x35e   :  { %6699 = vmatprep.mubr.msk.f32.mxu1 %vm4323_vm8, %v14925_v41  ;;  %v4449_v35 = vsel %vm4323_vm8, %v14932_v39, %v7178_v44  ;;  %v4340_v33 = vsel %vm4323_vm8, %v14937_v32, %v6847_v54  ;;  %v6852_v39 = vunpack.i.l.bf16 %v14940_v36  ;;  %v14942_v54 = vld [vmem:[#allocation178_spill] sm:$0xff] }
 0x35f   :  { %v4484_v7 = vsel %vm4360_vm9, %v4448_v15, %v7182_v62  ;;  %v4375_v13 = vsel %vm4360_vm9, %v4338_v21, %v7183_v40 }
 0x360   :  { %v7191_v42 = vpop.permute.xlu1 %7190  ;;  %v4520_v5 = vsel %vm4397_vm10, %v4484_v7, %v7187_v16  ;;  %v4412_v61 = vsel %vm4397_vm10, %v4375_v13, %v7188_v34  ;;  %v7206_v31 = vpop.permute.xlu0 %7205  ;;  %v14936_v34 = vld [vmem:[#allocation131_spill] sm:$0xff] }
 0x361   :  { %v7193_v55 = vunpack.i.h.bf16 %v7191_v42  ;;  %v7192_v56 = vunpack.i.l.bf16 %v7191_v42  ;;  %6700 = vmatmul.mubr.msk.f32.gmra.mxu1 %vm4323_vm8, %v4317_v24  ;;  %4791 = vmatprep.mubr.f32.mxu0 %v4520_v5  ;;  %v7208_v40 = vunpack.i.h.bf16 %v7206_v31  ;;  %v7207_v62 = vunpack.i.l.bf16 %v7206_v31  ;;  %v14939_v24 = vld [vmem:[#allocation52_spill] sm:$0xff] }
 0x362   :  { %6702 = vmatprep.mubr.msk.f32.mxu1 %vm4323_vm8, %v4318_v9  ;;  %4792 = vmatmul.mubr.f32.gmra.mxu0 %v4412_v61  ;;  %v3889_v16 = vcombine.low %v14936_v34, %v14935_v18  ;;  %v3890_v7 = vcombine.low %v14939_v24, %v14938_v47  ;;  %v4341_v61 = vsel %vm4323_vm8, %v11901_v49, %v6848_v37  ;;  %v14945_v37 = vld [vmem:[#allocation155_spill] sm:$0xff]  ;;  %v14950_v24 = vld [vmem:[#allocation62_spill] sm:$0xff] }
 0x363   :  { %v4485_v20 = vsel %vm4360_vm9, %v4449_v35, %v7192_v56  ;;  %v4376_v29 = vsel %vm4360_vm9, %v4339_v53, %v7193_v55  ;;  %v4377_v3 = vsel %vm4360_vm9, %v4340_v33, %v7208_v40  ;;  %v14944_v40 = vld [vmem:[#allocation135_spill] sm:$0xff] }
 0x364   :  { %v7201_v30 = vpop.permute.xlu1 %7200  ;;  %v4521_v60 = vsel %vm4397_vm10, %v4485_v20, %v7197_v23  ;;  %v4413_v28 = vsel %vm4397_vm10, %v4376_v29, %v7198_v14  ;;  %v14943_v20 = vcombine.low %v14941_v1, %v14942_v54  ;;  %v14949_v47 = vld [vmem:[#allocation111_spill] sm:$0xff]  ;;  %v14958_v1 = vld [vmem:[#allocation65_spill] sm:$0xff] }
 0x365   :  { %v7202_v15 = vunpack.i.l.bf16 %v7201_v30  ;;  %6703 = vmatmul.mubr.msk.f32.gmra.mxu1 %vm4323_vm8, %v4319_v22  ;;  %4796 = vmatprep.mubr.f32.mxu0 %v4521_v60  ;;  %v7203_v44 = vunpack.i.h.bf16 %v7201_v30  ;;  %v7216_v22 = vpop.permute.xlu0 %7215 }
 0x366   :  { %6705 = vmatprep.mubr.msk.f32.mxu1 %vm4323_vm8, %v12403_v2  ;;  %4797 = vmatmul.mubr.f32.gmra.mxu0 %v4413_v28  ;;  %v7218_v42 = vunpack.i.h.bf16 %v7216_v22  ;;  %v7217_v26 = vunpack.i.l.bf16 %v7216_v22  ;;  %v6853_v28 = vunpack.i.h.bf16 %v14940_v36  ;;  %v14955_v36 = vld [vmem:[#allocation159_spill] sm:$0xff] }
 0x367   :  { %v4450_v41 = vsel %vm4323_vm8, %v3889_v16, %v7202_v15  ;;  %v4451_v5 = vsel %vm4323_vm8, %v3890_v7, %v7203_v44  ;;  %v14946_v44 = vld [vmem:[#allocation157_spill] sm:$0xff]  ;;  %v14951_v7 = vcombine.low %v14949_v47, %v14950_v24 }
 0x368   :  { %v7211_v19 = vpop.permute.xlu1 %7210  ;;  %v4486_v21 = vsel %vm4360_vm9, %v4450_v41, %v7207_v62  ;;  %v4487_v14 = vsel %vm4360_vm9, %v4451_v5, %v7217_v26  ;;  %v3388_v41 = vcombine.low %v14946_v44, %v14945_v37 }
 0x369   :  { %v7213_v13 = vunpack.i.h.bf16 %v7211_v19  ;;  %v7212_v2 = vunpack.i.l.bf16 %v7211_v19  ;;  %6706 = vmatmul.mubr.msk.f32.gmra.mxu1 %vm4323_vm8, %v12468_v11  ;;  %v7226_v56 = vpop.permute.xlu0 %7225  ;;  %v4378_v11 = vsel %vm4360_vm9, %v4341_v61, %v7218_v42  ;;  %v14947_v19 = vld [vmem:[#allocation110_spill] sm:$0xff]  ;;  %v14952_v42 = vld [vmem:[#allocation199_spill] sm:$0xff] }
 0x36a   :  { %6708 = vmatprep.mubr.msk.f32.mxu1 %vm4323_vm8, %v12520_v63  ;;  %v7227_v63 = vunpack.i.l.bf16 %v7226_v56  ;;  %v7228_v15 = vunpack.i.h.bf16 %v7226_v56  ;;  %v6857_v26 = vunpack.i.l.bf16 %v14952_v42 }
 0x36b   :  { %v4522_v9 = vsel %vm4397_vm10, %v4486_v21, %v7212_v2  ;;  %v4414_v38 = vsel %vm4397_vm10, %v4377_v3, %v7213_v13  ;;  %v14948_v3 = vld [vmem:[#allocation166_spill] sm:$0xff]  ;;  %v4343_v2 = vsel %vm4323_vm8, %v3388_v41, %v6853_v28 }
 0x36c   :  { %v7221_v55 = vpop.permute.xlu1 %7220  ;;  %4801 = vmatprep.mubr.f32.mxu0 %v4522_v9  ;;  %v4452_v29 = vsel %vm4323_vm8, %v14943_v20, %v7227_v63  ;;  %v4453_v13 = vsel %vm4323_vm8, %v14951_v7, %v7228_v15  ;;  %v14954_v63 = vld [vmem:[#allocation112_spill] sm:$0xff] }
 0x36d   :  { %v7223_v23 = vunpack.i.h.bf16 %v7221_v55  ;;  %v7222_v50 = vunpack.i.l.bf16 %v7221_v55  ;;  %6709 = vmatmul.mubr.msk.f32.gmra.mxu1 %vm4323_vm8, %v12621_v51  ;;  %4802 = vmatmul.mubr.f32.gmra.mxu0 %v4414_v38  ;;  %v7236_v53 = vpop.permute.xlu0 %7235  ;;  %v3387_v51 = vcombine.low %v14768_v12, %v14765_v6 }
 0x36e   :  { %6711 = vmatprep.mubr.msk.f32.mxu1 %vm4323_vm8, %v12639_v4  ;;  %v7238_v4 = vunpack.i.h.bf16 %v7236_v53  ;;  %v7237_v60 = vunpack.i.l.bf16 %v7236_v53  ;;  %v14957_v53 = vld [vmem:[#allocation73_spill] sm:$0xff] }
 0x36f   :  { %v4523_v49 = vsel %vm4397_vm10, %v4487_v14, %v7222_v50  ;;  %v4415_v35 = vsel %vm4397_vm10, %v4378_v11, %v7223_v23  ;;  %v4342_v62 = vsel %vm4323_vm8, %v3387_v51, %v6852_v39  ;;  %v14953_v11 = vld [vmem:[#allocation24_spill] sm:$0xff]  ;;  %v3389_v39 = vcombine.low %v14955_v36, %v14954_v63 }
 0x370   :  { %v7231_v57 = vpop.permute.xlu1 %7230  ;;  %4806 = vmatprep.mubr.f32.mxu0 %v4523_v49  ;;  %v14956_v49 = vld [vmem:[#allocation14_spill] sm:$0xff]  ;;  %v14959_v54 = vcombine.low %v14957_v53, %v14958_v1  ;;  %v14976_v1 = vld [vmem:[#allocation187_spill] sm:$0xff] }
 0x371   :  { %v7233_v30 = vunpack.i.h.bf16 %v7231_v57  ;;  %v7232_v31 = vunpack.i.l.bf16 %v7231_v57  ;;  %6712 = vmatmul.mubr.msk.f32.gmra.mxu1 %vm4323_vm8, %v12685_v59  ;;  %4807 = vmatmul.mubr.f32.gmra.mxu0 %v4415_v35  ;;  %v7246_v34 = vpop.permute.xlu0 %7245  ;;  %v6858_v35 = vunpack.i.h.bf16 %v14952_v42  ;;  %v14975_v53 = vld [vmem:[#allocation198_spill] sm:$0xff] }
 0x372   :  { %6714 = vmatprep.mubr.msk.f32.mxu1 %vm4323_vm8, %v14944_v40  ;;  %v7248_v22 = vunpack.i.h.bf16 %v7246_v34  ;;  %v7247_v21 = vunpack.i.l.bf16 %v7246_v34  ;;  %v14963_v34 = vld [vmem:[#allocation107_spill] sm:$0xff] }
 0x373   :  { %v4488_v18 = vsel %vm4360_vm9, %v4452_v29, %v7232_v31  ;;  %v4379_v6 = vsel %vm4360_vm9, %v4342_v62, %v7233_v30  ;;  %v4344_v29 = vsel %vm4323_vm8, %v3389_v39, %v6857_v26  ;;  %v14961_v62 = vld [vmem:[#allocation171_spill] sm:$0xff] }
 0x374   :  { %v7241_v12 = vpop.permute.xlu1 %7240  ;;  %v4524_v16 = vsel %vm4397_vm10, %v4488_v18, %v7237_v60  ;;  %v4416_v59 = vsel %vm4397_vm10, %v4379_v6, %v7238_v4  ;;  %v14960_v60 = vld [vmem:[#allocation38_spill] sm:$0xff] }
 0x375   :  { %v7243_v32 = vunpack.i.h.bf16 %v7241_v12  ;;  %v7242_v33 = vunpack.i.l.bf16 %v7241_v12  ;;  %6715 = vmatmul.mubr.msk.f32.gmra.mxu1 %vm4323_vm8, %v14947_v19  ;;  %4811 = vmatprep.mubr.f32.mxu0 %v4524_v16  ;;  %v7256_v61 = vpop.permute.xlu0 %7255  ;;  %v3361_v28 = vrot.slane %v14960_v60, 6  ;;  %v14962_v12 = vld [vmem:[#allocation176_spill] sm:$0xff]  ;;  %v6520_v16 = vrot.slane %v14963_v34, 10 }
 0x376   :  { %6717 = vmatprep.mubr.msk.f32.mxu1 %vm4323_vm8, %v14948_v3  ;;  %4812 = vmatmul.mubr.f32.gmra.mxu0 %v4416_v59  ;;  %v7258_v23 = vunpack.i.h.bf16 %v7256_v61  ;;  %v7257_v50 = vunpack.i.l.bf16 %v7256_v61  ;;  %v14964_v59 = vld [vmem:[#allocation196_spill] sm:$0xff] }
 0x377   :  { %v4489_v9 = vsel %vm4360_vm9, %v4453_v13, %v7242_v33  ;;  %v4380_v38 = vsel %vm4360_vm9, %v4343_v2, %v7243_v32  ;;  %v3364_v37 = vrot.slane %v14964_v59, 6  ;;  %v14965_v32 = vld [vmem:[#allocation21_spill] sm:$0xff]  ;;  %v14966_v33 = vld [vmem:[#allocation186_spill] sm:$0xff]  ;;  %v3363_v2 = vrot.slane %v3361_v28, 4 }
 0x378   :  { %v7251_v5 = vpop.permute.xlu1 %7250  ;;  %v4525_v55 = vsel %vm4397_vm10, %v4489_v9, %v7247_v21  ;;  %v4417_v56 = vsel %vm4397_vm10, %v4380_v38, %v7248_v22  ;;  %v4381_v4 = vsel %vm4360_vm9, %v4344_v29, %v7258_v23  ;;  %v14967_v19 = vcombine.low %v14965_v32, %v14966_v33  ;;  %v14968_v21 = vld [vmem:[#allocation101_spill] sm:$0xff]  ;;  %v14969_v9 = vld [vmem:[#allocation66_spill] sm:$0xff] }
 0x379   :  { %v7252_v14 = vunpack.i.l.bf16 %v7251_v5  ;;  %6718 = vmatmul.mubr.msk.f32.gmra.mxu1 %vm4323_vm8, %v14953_v11  ;;  %4816 = vmatprep.mubr.f32.mxu0 %v4525_v55  ;;  %v7253_v57 = vunpack.i.h.bf16 %v7251_v5  ;;  %v7266_v30 = vpop.permute.xlu0 %7265  ;;  %v4345_v3 = vsel %vm4323_vm8, %v14968_v21, %v6858_v35  ;;  %v3362_v38 = vsel %vm10461_vm7, %v6520_v16, %v3361_v28  ;;  %v14970_v5 = vld [vmem:[#allocation190_spill] sm:$0xff]  ;;  %v14971_v55 = vld [vmem:[#allocation79_spill] sm:$0xff] }
 0x37a   :  { %6720 = vmatprep.mubr.msk.f32.mxu1 %vm4323_vm8, %v14956_v49  ;;  %4817 = vmatmul.mubr.f32.gmra.mxu0 %v4417_v56  ;;  %v7268_v18 = vunpack.i.h.bf16 %v7266_v30  ;;  %v7267_v6 = vunpack.i.l.bf16 %v7266_v30  ;;  %v3366_v61 = vrot.slane %v3364_v37, 4  ;;  %v3367_v56 = vrot.slane %v14971_v55, 6  ;;  %v14972_v23 = vld [vmem:[#allocation194_spill] sm:$0xff]  ;;  %v14974_v49 = vld [vmem:[#allocation83_spill] sm:$0xff] }
 0x37b   :  { %v4454_v20 = vsel %vm4323_vm8, %v14959_v54, %v7252_v14  ;;  %v4455_v22 = vsel %vm4323_vm8, %v14967_v19, %v7253_v57  ;;  %v4321_v35 = vcombine.low %v14974_v49, %v3362_v38  ;;  %v3365_v57 = vsel %vm10461_vm7, %v3363_v2, %v3364_v37 }
 0x37c   :  { %v7261_v51 = vpop.permute.xlu1 %7260  ;;  %v4490_v31 = vsel %vm4360_vm9, %v4454_v20, %v7257_v50  ;;  %v4491_v7 = vsel %vm4360_vm9, %v4455_v22, %v7267_v6  ;;  %v4382_v13 = vsel %vm4360_vm9, %v4345_v3, %v7268_v18  ;;  %v14973_v50 = vld [vmem:[#allocation35_spill] sm:$0xff]  ;;  %v3895_v54 = vcombine.low %v14976_v1, %v14975_v53 }
 0x37d   :  { %v7263_v15 = vunpack.i.h.bf16 %v7261_v51  ;;  %v7262_v40 = vunpack.i.l.bf16 %v7261_v51  ;;  %6721 = vmatmul.mubr.msk.f32.gmra.mxu1 %vm4323_vm8, %v14961_v62  ;;  %v4320_v63 = vcombine.low %v14973_v50, %v14972_v23  ;;  %v6862_v20 = vunpack.i.l.bf16 %v14876_v52  ;;  %v14977_v52 = vld [vmem:[#allocation63_spill] sm:$0xff] }
 0x37e   :  { %6723 = vmatprep.mubr.msk.f32.mxu1 %vm4323_vm8, %v14962_v12  ;;  %v3368_v30 = vsel %vm10461_vm7, %v3366_v61, %v3367_v56 }
 0x37f   :  { %v4526_v44 = vsel %vm4397_vm10, %v4490_v31, %v7262_v40  ;;  %v4418_v41 = vsel %vm4397_vm10, %v4381_v4, %v7263_v15  ;;  %v7276_v24 = vpop.permute.xlu0 %7275  ;;  %v4322_v31 = vcombine.low %v3365_v57, %v3368_v30  ;;  %v4346_v18 = vsel %vm4323_vm8, %v14977_v52, %v6862_v20 }
 0x380   :  { %v7271_v47 = vpop.permute.xlu1 %7270  ;;  %4821 = vmatprep.mubr.f32.mxu0 %v4526_v44  ;;  %v7277_v14 = vunpack.i.l.bf16 %v7276_v24  ;;  %v7278_v15 = vunpack.i.h.bf16 %v7276_v24 }
 0x381   :  { %v7273_v42 = vunpack.i.h.bf16 %v7271_v47  ;;  %v7272_v26 = vunpack.i.l.bf16 %v7271_v47  ;;  %6724 = vmatmul.mubr.msk.f32.gmra.mxu1 %vm4323_vm8, %v14969_v9  ;;  %4822 = vmatmul.mubr.f32.gmra.mxu0 %v4418_v41 }
 0x382   :  { %6726 = vmatprep.mubr.msk.f32.mxu1 %vm4323_vm8, %v14970_v5  ;;  %v4456_v4 = vsel %vm4323_vm8, %v3895_v54, %v7277_v14  ;;  %v4457_v33 = vsel %vm4323_vm8, %v3896_v10, %v7278_v15  ;;  %v14978_v10 = vld [vmem:[#allocation64_spill] sm:$0xff]  ;;  %v14979_v14 = vld [vmem:[#allocation151_spill] sm:$0xff] }
 0x383   :  { %v4527_v11 = vsel %vm4397_vm10, %v4491_v7, %v7272_v26  ;;  %v4419_v36 = vsel %vm4397_vm10, %v4382_v13, %v7273_v42 }
 0x384   :  { %v7281_v39 = vpop.permute.xlu1 %7280  ;;  %4826 = vmatprep.mubr.f32.mxu0 %v4527_v11  ;;  %v3898_v11 = vcombine.low %v14842_v58, %v14979_v14 }
 0x385   :  { %6727 = vmatmul.mubr.msk.f32.gmra.mxu1 %vm4323_vm8, %v4320_v63  ;;  %4827 = vmatmul.mubr.f32.gmra.mxu0 %v4419_v36  ;;  %v7283_v29 = vunpack.i.h.bf16 %v7281_v39  ;;  %v7282_v51 = vunpack.i.l.bf16 %v7281_v39 }
 0x386   :  { %6729 = vmatprep.mubr.msk.f32.mxu1 %vm4323_vm8, %v4321_v35 }
 0x387   :  { %v4492_v34 = vsel %vm4360_vm9, %v4456_v4, %v7282_v51  ;;  %v4383_v27 = vsel %vm4360_vm9, %v4346_v18, %v7283_v29 }
 0x388   :  { %v7291_v60 = vpop.permute.xlu1 %7290 }
 0x389   :  { %v7286_v28 = vpop.permute.xlu0 %7285  ;;  %6730 = vmatmul.mubr.msk.f32.gmra.mxu1 %vm4323_vm8, %v4322_v31  ;;  %v7293_v6 = vunpack.i.h.bf16 %v7291_v60  ;;  %v7292_v12 = vunpack.i.l.bf16 %v7291_v60  ;;  %v14980_v60 = vld [vmem:[#allocation152_spill] sm:$0xff] }
 0x38a   :  { %v7288_v40 = vunpack.i.h.bf16 %v7286_v28  ;;  %v7287_v62 = vunpack.i.l.bf16 %v7286_v28  ;;  %v14981_v28 = vld [vmem:[#allocation167_spill] sm:$0xff] }
 0x38b   :  { %v4493_v21 = vsel %vm4360_vm9, %v4457_v33, %v7292_v12  ;;  %v4384_v3 = vsel %vm4360_vm9, %v12737_v43, %v7293_v6  ;;  %v14982_v15 = vcombine.low %v14980_v60, %v14981_v28 }
 0x38c   :  { %v4528_v16 = vsel %vm4397_vm10, %v4492_v34, %v7287_v62  ;;  %v4420_v59 = vsel %vm4397_vm10, %v4383_v27, %v7288_v40 }
 0x38d   :  { %v7296_v44 = vpop.permute.xlu0 %7295  ;;  %4831 = vmatprep.mubr.f32.mxu0 %v4528_v16 }
 0x38e   :  { %v7301_v37 = vpop.permute.xlu1 %7300  ;;  %v7298_v41 = vunpack.i.h.bf16 %v7296_v44  ;;  %v7297_v32 = vunpack.i.l.bf16 %v7296_v44  ;;  %4832 = vmatmul.mubr.f32.gmra.mxu0 %v4420_v59 }
 0x38f   :  { %v7303_v19 = vunpack.i.h.bf16 %v7301_v37  ;;  %v7302_v22 = vunpack.i.l.bf16 %v7301_v37 }
 0x390   :  { %v4529_v47 = vsel %vm4397_vm10, %v4493_v21, %v7297_v32  ;;  %v4421_v24 = vsel %vm4397_vm10, %v4384_v3, %v7298_v41 }
 0x391   :  { %v7306_v13 = vpop.permute.xlu0 %7305  ;;  %4836 = vmatprep.mubr.f32.mxu0 %v4529_v47  ;;  %v4458_v17 = vsel %vm4323_vm8, %v3897_v48, %v7302_v22  ;;  %v4348_v43 = vsel %vm4323_vm8, %v14978_v10, %v7303_v19 }
 0x392   :  { %v7311_v7 = vpop.permute.xlu1 %7310  ;;  %v7308_v26 = vunpack.i.h.bf16 %v7306_v13  ;;  %v7307_v0 = vunpack.i.l.bf16 %v7306_v13  ;;  %4837 = vmatmul.mubr.f32.gmra.mxu0 %v4421_v24 }
 0x393   :  { %v7313_v2 = vunpack.i.h.bf16 %v7311_v7  ;;  %v7312_v42 = vunpack.i.l.bf16 %v7311_v7 }
 0x394   :  { %v4494_v9 = vsel %vm4360_vm9, %v4458_v17, %v7307_v0  ;;  %v4385_v38 = vsel %vm4360_vm9, %v4348_v43, %v7308_v26 }
 0x395   :  { %v7316_v61 = vpop.permute.xlu0 %7315  ;;  %v4530_v55 = vsel %vm4397_vm10, %v4494_v9, %v7312_v42  ;;  %v4422_v56 = vsel %vm4397_vm10, %v4385_v38, %v7313_v2 }
 0x396   :  { %v7321_v5 = vpop.permute.xlu1 %7320  ;;  %v7318_v23 = vunpack.i.h.bf16 %v7316_v61  ;;  %v7317_v8 = vunpack.i.l.bf16 %v7316_v61  ;;  %4841 = vmatprep.mubr.f32.mxu0 %v4530_v55 }
 0x397   :  { %v7323_v25 = vunpack.i.h.bf16 %v7321_v5  ;;  %v7322_v48 = vunpack.i.l.bf16 %v7321_v5  ;;  %4842 = vmatmul.mubr.f32.gmra.mxu0 %v4422_v56 }
 0x398   :  { %v4459_v50 = vsel %vm4323_vm8, %v3898_v11, %v7317_v8  ;;  %v4349_v63 = vsel %vm4323_vm8, %v12533_v46, %v7318_v23  ;;  %v7357_v23 = vmov 1983009808  }
 0x399   :  { %v7326_v39 = vpop.permute.xlu0 %7325  ;;  %v4495_v1 = vsel %vm4360_vm9, %v4459_v50, %v7322_v48  ;;  %v4386_v58 = vsel %vm4360_vm9, %v4349_v63, %v7323_v25  ;;  %v5364_v8 = vunpack.c.l.s4 %v7357_v23  ;;  %v13064_v25 = vld [vmem:[%s13444_s4] ss:$0 sm:$0xff] }
 0x39a   :  { %v7331_v36 = vpop.permute.xlu1 %7330  ;;  %v7328_v49 = vunpack.i.h.bf16 %v7326_v39  ;;  %v7327_v35 = vunpack.i.l.bf16 %v7326_v39 }
 0x39b   :  { %v7333_v57 = vunpack.i.h.bf16 %v7331_v36  ;;  %v7332_v53 = vunpack.i.l.bf16 %v7331_v36  ;;  %v5365_v39 = vunpack.c.0.s8 %v5364_v8 }
 0x39c   :  { %v4531_v54 = vsel %vm4397_vm10, %v4495_v1, %v7327_v35  ;;  %v4423_v20 = vsel %vm4397_vm10, %v4386_v58, %v7328_v49 }
 0x39d   :  { %v7336_v51 = vpop.permute.xlu0 %7335  ;;  %4846 = vmatprep.mubr.f32.mxu0 %v4531_v54  ;;  %v4460_v40 = vsel %vm4323_vm8, %v14982_v15, %v7332_v53  ;;  %v4350_v62 = vsel %vm4323_vm8, %v12559_v45, %v7333_v57 }
 0x39e   :  { %v7341_v29 = vpop.permute.xlu1 %7340  ;;  %v7338_v46 = vunpack.i.h.bf16 %v7336_v51  ;;  %v7337_v4 = vunpack.i.l.bf16 %v7336_v51  ;;  %4847 = vmatmul.mubr.f32.gmra.mxu0 %v4423_v20  ;;  %v14983_v20 = vld [vmem:[#allocation2_spill] sm:$0xff] }
 0x39f   :  { %v7343_v30 = vunpack.i.h.bf16 %v7341_v29  ;;  %v7342_v31 = vunpack.i.l.bf16 %v7341_v29  ;;  %v13043_v34 = vpop.f32.mrf.mxu1  ;;  %v13070_v29 = vsub.s32 %v5365_v39, %v14983_v20  ;;  %v14984_v39 = vld [vmem:[#allocation3_spill] sm:$0xff] }
 0x3a0   :  { %v4496_v52 = vsel %vm4360_vm9, %v4460_v40, %v7337_v4  ;;  %v4387_v18 = vsel %vm4360_vm9, %v4350_v62, %v7338_v46 }
 0x3a1   :  { %v4532_v6 = vsel %vm4397_vm10, %v4496_v52, %v7342_v31  ;;  %v4424_v12 = vsel %vm4397_vm10, %v4387_v18, %v7343_v30  ;;  %v4860_v27 = vpop.f32.mrf.mxu1 }
 0x3a2   :  { %4851 = vmatprep.mubr.f32.mxu0 %v4532_v6 }
 0x3a3   :  { %4852 = vmatmul.mubr.f32.gmra.mxu0 %v4424_v12  ;;  %v13045_v16 = vpop.f32.mrf.mxu1 }
 0x3a5   :  { %v4723_v59 = vpop.f32.mrf.mxu0  ;;  %v4865_v37 = vpop.f32.mrf.mxu1 }
 0x3a6   :  { %v4724_v49 = vadd.f32 %v13064_v25, %v4723_v59 }
 0x3a7   :  { %v4725_v44 = vpop.f32.mrf.mxu0 }
 0x3a9   :  { %v4728_v41 = vpop.f32.mrf.mxu0 }
 0x3aa   :  { %v4729_v50 = vadd.f32 %v13064_v25, %v4728_v41 }
 0x3ab   :  { %v4730_v45 = vpop.f32.mrf.mxu0 }
 0x3af   :  { %v13047_v32 = vpop.f32.mrf.mxu1 }
 0x3b1   :  { %v4870_v33 = vpop.f32.mrf.mxu1 }
 0x3b4   :  { %v4733_v19 = vpop.f32.mrf.mxu0 }
 0x3b5   :  { %v4734_v31 = vadd.f32 %v13064_v25, %v4733_v19 }
 0x3b6   :  { %v4735_v22 = vpop.f32.mrf.mxu0 }
 0x3c8   :  { %v13049_v21 = vpop.f32.mrf.mxu1 }
 0x3ca   :  { %v4875_v3 = vpop.f32.mrf.mxu1 }
 0x3cb   :  { %v4738_v47 = vpop.f32.mrf.mxu0 }
 0x3cc   :  { %v4739_v1 = vadd.f32 %v13064_v25, %v4738_v47 }
 0x3cd   :  { %v4740_v24 = vpop.f32.mrf.mxu0 }
 0x3d5   :  { %v13051_v7 = vpop.f32.mrf.mxu1 }
 0x3d7   :  { %v4880_v13 = vpop.f32.mrf.mxu1 }
 0x3d8   :  { %v4743_v2 = vpop.f32.mrf.mxu0 }
 0x3d9   :  { %v4744_v41 = vadd.f32 %v13064_v25, %v4743_v2 }
 0x3da   :  { %v4745_v42 = vpop.f32.mrf.mxu0 }
 0x3df   :  { %v13053_v26 = vpop.f32.mrf.mxu1 }
 0x3e1   :  { %v4885_v0 = vpop.f32.mrf.mxu1 }
 0x3e5   :  { %v4748_v17 = vpop.f32.mrf.mxu0 }
 0x3e6   :  { %v4749_v40 = vadd.f32 %v13064_v25, %v4748_v17 }
 0x3e7   :  { %v4750_v10 = vpop.f32.mrf.mxu0 }
 0x3e9   :  { %v13055_v43 = vpop.f32.mrf.mxu1 }
 0x3eb   :  { %v4890_v9 = vpop.f32.mrf.mxu1 }
 0x3ef   :  { %v4753_v38 = vpop.f32.mrf.mxu0 }
 0x3f0   :  { %v13079_v45 = vadd.f32 %v13064_v25, %v4753_v38 }
 0x3f1   :  { %v4755_v5 = vpop.f32.mrf.mxu0 }
 0x3f5   :  { %v13057_v61 = vpop.f32.mrf.mxu1  ;;  %v4758_v56 = vpop.f32.mrf.mxu0 }
 0x3f6   :  { %v4759_v33 = vadd.f32 %v13064_v25, %v4758_v56 }
 0x3f7   :  { %v4895_v55 = vpop.f32.mrf.mxu1  ;;  %v4760_v14 = vpop.f32.mrf.mxu0 }
 0x401   :  { %v13059_v11 = vpop.f32.mrf.mxu1 }
 0x403   :  { %v4900_v48 = vpop.f32.mrf.mxu1 }
 0x405   :  { %v6680_v63 = vpop.f32.mrf.mxu1  ;;  %v4763_v36 = vpop.f32.mrf.mxu0 }
 0x406   :  { %v4974_v35 = vadd.f32 %v6680_v63, %v4729_v50  ;;  %v13083_v19 = vadd.f32 %v13064_v25, %v4763_v36 }
 0x407   :  { %v4968_v57 = vpop.f32.mrf.mxu1  ;;  %v4765_v53 = vpop.f32.mrf.mxu0 }
 0x408   :  { %v5148_v58 = vmax.f32 %v4974_v35, 0.0  ;;  %v4969_v54 = vadd.f32 %v4968_v57, %v4724_v49 }
 0x409   :  { %v6683_v51 = vpop.f32.mrf.mxu1  ;;  %v4768_v30 = vpop.f32.mrf.mxu0 }
 0x40a   :  { %v5220_v46 = vcombine.high %v5148_v58, %v5148_v58  ;;  %v5147_v4 = vmax.f32 %v4969_v54, 0.0  ;;  %v4984_v60 = vadd.f32 %v6683_v51, %v4739_v1  ;;  %v13086_v17 = vadd.f32 %v13064_v25, %v4768_v30 }
 0x40b   :  { %v4978_v28 = vpop.f32.mrf.mxu1  ;;  %v4770_v15 = vpop.f32.mrf.mxu0 }
 0x40c   :  { %v5291_v62 = vmax.f32 %v5147_v4, %v5220_v46  ;;  %v4979_v52 = vadd.f32 %v4978_v28, %v4734_v31  ;;  %v5150_v18 = vmax.f32 %v4984_v60, 0.0  ;;  %v5219_v12 = vcombine.high %v5147_v4, %v5147_v4 }
 0x40d   :  { %v6686_v6 = vpop.f32.mrf.mxu1 }
 0x40e   :  { %v5369_v27 = vrot.slane %v5291_v62, %v13070_v29  ;;  %v5149_v59 = vmax.f32 %v4979_v52, 0.0  ;;  %v4994_v37 = vadd.f32 %v6686_v6, %v4749_v40  ;;  %v13075_v44 = vpop.f32.mrf.mxu0  ;;  %v5222_v0 = vcombine.high %v5150_v18, %v5150_v18 }
 0x40f   :  { %v4988_v22 = vpop.f32.mrf.mxu1 }
 0x410   :  { %v5370_v3 = vcombine.high %v5369_v27, %v5369_v27  ;;  %v6558_v47 = vrot.slane %v5369_v27, 9  ;;  %v5221_v24 = vcombine.high %v5149_v59, %v5149_v59  ;;  %v5292_v13 = vmax.f32 %v5219_v12, %v5149_v59  ;;  %v4775_v42 = vpop.f32.mrf.mxu0 }
 0x411   :  { %v5152_v2 = vmax.f32 %v4994_v37, 0.0  ;;  %v4989_v10 = vadd.f32 %v4988_v22, %v4744_v41  ;;  %v6689_v9 = vpop.f32.mrf.mxu1 }
 0x412   :  { %v6559_v38 = vrot.slane %v5370_v3, 9  ;;  %v5939_v5 = vmax.f32 %v5369_v27, %v6558_v47  ;;  %v5293_v55 = vmax.f32 %v5148_v58, %v5221_v24  ;;  %v5377_v56 = vrot.slane %v5292_v13, %v13070_v29  ;;  %v13089_v14 = vpop.f32.mrf.mxu0 }
 0x413   :  { %v5224_v23 = vcombine.high %v5152_v2, %v5152_v2  ;;  %v5295_v8 = vmax.f32 %v5222_v0, %v5152_v2  ;;  %v5151_v48 = vmax.f32 %v4989_v10, 0.0  ;;  %v5004_v50 = vadd.f32 %v6689_v9, %v4759_v33  ;;  %v4998_v63 = vpop.f32.mrf.mxu1 }
 0x414   :  { %v5940_v36 = vmax.f32 %v5370_v3, %v6559_v38  ;;  %v6086_v49 = vrot.slane %v5939_v5, %v14984_v39  ;;  %v5378_v35 = vcombine.high %v5377_v56, %v5377_v56  ;;  %v5385_v57 = vrot.slane %v5293_v55, %v13070_v29  ;;  %v4780_v53 = vpop.f32.mrf.mxu0 }
 0x415   :  { %v6560_v1 = vrot.slane %v5377_v56, 9  ;;  %v5401_v58 = vrot.slane %v5295_v8, %v13070_v29  ;;  %v5223_v54 = vcombine.high %v5151_v48, %v5151_v48  ;;  %v5296_v20 = vmax.f32 %v5151_v48, %v5224_v23  ;;  %v6692_v51 = vpop.f32.mrf.mxu1 }
 0x416   :  { %v6090_v30 = vrot.slane %v5940_v36, %v14984_v39  ;;  %v5386_v31 = vcombine.high %v5385_v57, %v5385_v57  ;;  %v6561_v46 = vrot.slane %v5378_v35, 9  ;;  %v6562_v4 = vrot.slane %v5385_v57, 9 }
 0x417   :  { %v5941_v60 = vmax.f32 %v5377_v56, %v6560_v1  ;;  %v5402_v28 = vcombine.high %v5401_v58, %v5401_v58  ;;  %v6566_v15 = vrot.slane %v5401_v58, 9  ;;  %v5294_v40 = vmax.f32 %v5150_v18, %v5223_v54  ;;  %v5008_v62 = vpop.f32.mrf.mxu1 }
 0x418   :  { %v6372_v52 = vsel %vm6371_vm11, %v6090_v30, %v6086_v49  ;;  %v6563_v6 = vrot.slane %v5386_v31, 9  ;;  %v5942_v12 = vmax.f32 %v5378_v35, %v6561_v46  ;;  %v5943_v27 = vmax.f32 %v5385_v57, %v6562_v4 }
 0x419   :  { %v6094_v59 = vrot.slane %v5941_v60, %v14984_v39  ;;  %v6567_v37 = vrot.slane %v5402_v28, 9  ;;  %v5947_v41 = vmax.f32 %v5401_v58, %v6566_v15  ;;  %v5393_v33 = vrot.slane %v5294_v40, %v13070_v29  ;;  %v6695_v22 = vpop.f32.mrf.mxu1  ;;  %v13098_v3 = vpop.f32.mrf.mxu0 }
 0x41a   :  { %v5944_v47 = vmax.f32 %v5386_v31, %v6563_v6  ;;  %v6098_v18 = vrot.slane %v5942_v12, %v14984_v39  ;;  %v6102_v24 = vrot.slane %v5943_v27, %v14984_v39  ;;  %v5409_v13 = vrot.slane %v5296_v20, %v13070_v29 }
 0x41b   :  { %v6374_v42 = vsel %vm6373_vm12, %v6094_v59, %v6372_v52  ;;  %v5948_v0 = vmax.f32 %v5402_v28, %v6567_v37  ;;  %v6118_v2 = vrot.slane %v5947_v41, %v14984_v39  ;;  %v5394_v10 = vcombine.high %v5393_v33, %v5393_v33  ;;  %v5018_v9 = vpop.f32.mrf.mxu1  ;;  %v4785_v38 = vpop.f32.mrf.mxu0 }
 0x41c   :  { %v6106_v5 = vrot.slane %v5944_v47, %v14984_v39  ;;  %v6376_v55 = vsel %vm6375_vm13, %v6098_v18, %v6374_v42  ;;  %v5410_v56 = vcombine.high %v5409_v13, %v5409_v13  ;;  %v6564_v23 = vrot.slane %v5393_v33, 9 }
 0x41d   :  { %v6378_v8 = vsel %vm6377_vm14, %v6102_v24, %v6376_v55  ;;  %v6122_v48 = vrot.slane %v5948_v0, %v14984_v39  ;;  %v6565_v36 = vrot.slane %v5394_v10, 9  ;;  %v6568_v49 = vrot.slane %v5409_v13, 9  ;;  %v6698_v35 = vpop.f32.mrf.mxu1  ;;  %v4788_v57 = vpop.f32.mrf.mxu0 }
 0x41e   :  { %v6380_v53 = vsel %vm6379_vm15, %v6106_v5, %v6378_v8  ;;  %v6569_v1 = vrot.slane %v5410_v56, 9  ;;  %v5945_v58 = vmax.f32 %v5393_v33, %v6564_v23  ;;  %v5154_v54 = vmax.f32 %v5004_v50, 0.0 }
 0x41f   :  { %v6385_v20 = vsel %vm6371_vm11, %v6122_v48, %v6118_v2  ;;  %v5946_v30 = vmax.f32 %v5394_v10, %v6565_v36  ;;  %v5949_v31 = vmax.f32 %v5409_v13, %v6568_v49  ;;  %v4999_v46 = vadd.f32 %v4998_v63, %v13079_v45  ;;  %v13112_v4 = vpop.f32.mrf.mxu1  ;;  %v4790_v60 = vpop.f32.mrf.mxu0 }
 0x420   :  { %v5950_v28 = vmax.f32 %v5410_v56, %v6569_v1  ;;  %v6110_v15 = vrot.slane %v5945_v58, %v14984_v39  ;;  %v5226_v40 = vcombine.high %v5154_v54, %v5154_v54  ;;  %v4779_v52 = vadd.f32 %v13064_v25, %v13089_v14 }
 0x421   :  { %v6114_v6 = vrot.slane %v5946_v30, %v14984_v39  ;;  %v6126_v50 = vrot.slane %v5949_v31, %v14984_v39  ;;  %v5153_v12 = vmax.f32 %v4999_v46, 0.0  ;;  %v5014_v27 = vadd.f32 %v6692_v51, %v13086_v17  ;;  %v13120_v59 = vpop.f32.mrf.mxu1 }
 0x422   :  { %v6130_v45 = vrot.slane %v5950_v28, %v14984_v39  ;;  %v6382_v63 = vsel %vm6381_vm0, %v6110_v15, %v6380_v53  ;;  %v5009_v37 = vadd.f32 %v5008_v62, %v13083_v19  ;;  %v5024_v41 = vadd.f32 %v6695_v22, %v4779_v52  ;;  %v13125_v33 = vpop.f32.mrf.mxu0 }
 0x423   :  { %v6384_v14 = vsel %vm6383_vm1, %v6114_v6, %v6382_v63  ;;  %v6386_v47 = vsel %vm6373_vm12, %v6126_v50, %v6385_v20  ;;  %v4774_v18 = vadd.f32 %v13064_v25, %v13075_v44  ;;  %v5297_v24 = vmax.f32 %v5153_v12, %v5226_v40  ;;  %v13131_v17 = vpop.f32.mrf.mxu1 }
 0x424   :  { %6450 = vst [vmem:[%s13445_s5] sm:$0xff] %v6384_v14  ;;  %v5225_v51 = vcombine.high %v5153_v12, %v5153_v12  ;;  %v5156_v13 = vmax.f32 %v5014_v27, 0.0  ;;  %v5155_v19 = vmax.f32 %v5009_v37, 0.0  ;;  %v5158_v62 = vmax.f32 %v5024_v41, 0.0  ;;  %v4795_v22 = vpop.f32.mrf.mxu0 }
 0x425   :  { %v6387_v42 = vsel %vm6375_vm13, %v6130_v45, %v6386_v47  ;;  %v5417_v0 = vrot.slane %v5297_v24, %v13070_v29  ;;  %v5019_v2 = vadd.f32 %v5018_v9, %v4774_v18  ;;  %v4789_v10 = vadd.f32 %v13064_v25, %v4788_v57  ;;  %v13139_v44 = vpop.f32.mrf.mxu1 }
 0x426   :  { %v5228_v38 = vcombine.high %v5156_v13, %v5156_v13  ;;  %v5227_v5 = vcombine.high %v5155_v19, %v5155_v19  ;;  %v5298_v55 = vmax.f32 %v5225_v51, %v5155_v19  ;;  %v5230_v56 = vcombine.high %v5158_v62, %v5158_v62  ;;  %v13141_v23 = vpop.f32.mrf.mxu0 }
 0x427   :  { %v5418_v8 = vcombine.high %v5417_v0, %v5417_v0  ;;  %v6570_v48 = vrot.slane %v5417_v0, 9  ;;  %v4784_v36 = vadd.f32 %v13064_v25, %v13098_v3  ;;  %v5157_v49 = vmax.f32 %v5019_v2, 0.0  ;;  %v13145_v53 = vpop.f32.mrf.mxu1 }
 0x428   :  { %v5299_v1 = vmax.f32 %v5154_v54, %v5227_v5  ;;  %v5425_v9 = vrot.slane %v5298_v55, %v13070_v29  ;;  %v5301_v57 = vmax.f32 %v5228_v38, %v5158_v62  ;;  %v5034_v58 = vadd.f32 %v6698_v35, %v4789_v10  ;;  %v4800_v20 = vpop.f32.mrf.mxu0 }
 0x429   :  { %v6571_v30 = vrot.slane %v5418_v8, 9  ;;  %v5951_v31 = vmax.f32 %v5417_v0, %v6570_v48  ;;  %v5229_v46 = vcombine.high %v5157_v49, %v5157_v49  ;;  %v5302_v60 = vmax.f32 %v5157_v49, %v5230_v56  ;;  %v13148_v28 = vpop.f32.mrf.mxu1 }
 0x42a   :  { %v5426_v15 = vcombine.high %v5425_v9, %v5425_v9  ;;  %v5433_v40 = vrot.slane %v5299_v1, %v13070_v29  ;;  %v6572_v52 = vrot.slane %v5425_v9, 9  ;;  %v5449_v3 = vrot.slane %v5301_v57, %v13070_v29 }
 0x42b   :  { %v5952_v6 = vmax.f32 %v5418_v8, %v6571_v30  ;;  %v6134_v54 = vrot.slane %v5951_v31, %v14984_v39  ;;  %v5300_v50 = vmax.f32 %v5156_v13, %v5229_v46  ;;  %v5457_v12 = vrot.slane %v5302_v60, %v13070_v29  ;;  %v13154_v35 = vpop.f32.mrf.mxu1 }
 0x42c   :  { %v5434_v27 = vcombine.high %v5433_v40, %v5433_v40  ;;  %v6573_v45 = vrot.slane %v5426_v15, 9  ;;  %v6574_v63 = vrot.slane %v5433_v40, 9  ;;  %v5953_v37 = vmax.f32 %v5425_v9, %v6572_v52 }
 0x42d   :  { %v6138_v41 = vrot.slane %v5952_v6, %v14984_v39  ;;  %v6388_v14 = vsel %vm6377_vm14, %v6134_v54, %v6387_v42  ;;  %v5450_v47 = vcombine.high %v5449_v3, %v5449_v3  ;;  %v6578_v18 = vrot.slane %v5449_v3, 9  ;;  %v13158_v24 = vpop.f32.mrf.mxu1  ;;  %v4803_v51 = vpop.f32.mrf.mxu0 }
 0x42e   :  { %v6575_v19 = vrot.slane %v5434_v27, 9  ;;  %v5954_v62 = vmax.f32 %v5426_v15, %v6573_v45  ;;  %v5955_v13 = vmax.f32 %v5433_v40, %v6574_v63  ;;  %v6142_v22 = vrot.slane %v5953_v37, %v14984_v39 }
 0x42f   :  { %v6389_v0 = vsel %vm6379_vm15, %v6138_v41, %v6388_v14  ;;  %v6579_v2 = vrot.slane %v5450_v47, 9  ;;  %v5959_v10 = vmax.f32 %v5449_v3, %v6578_v18  ;;  %v5441_v38 = vrot.slane %v5300_v50, %v13070_v29  ;;  %v13163_v5 = vpop.f32.mrf.mxu1  ;;  %v4805_v55 = vpop.f32.mrf.mxu0 }
 0x430   :  { %v5956_v42 = vmax.f32 %v5434_v27, %v6575_v19  ;;  %v6146_v56 = vrot.slane %v5954_v62, %v14984_v39  ;;  %v6390_v8 = vsel %vm6381_vm0, %v6142_v22, %v6389_v0  ;;  %v5029_v48 = vadd.f32 %v13112_v4, %v4784_v36 }
 0x431   :  { %v6150_v49 = vrot.slane %v5955_v13, %v14984_v39  ;;  %v5960_v1 = vmax.f32 %v5450_v47, %v6579_v2  ;;  %v5442_v9 = vcombine.high %v5441_v38, %v5441_v38  ;;  %v5458_v57 = vcombine.high %v5457_v12, %v5457_v12  ;;  %v13169_v20 = vpop.f32.mrf.mxu1  ;;  %v4808_v30 = vpop.f32.mrf.mxu0 }
 0x432   :  { %v6154_v31 = vrot.slane %v5956_v42, %v14984_v39  ;;  %v6391_v46 = vsel %vm6383_vm1, %v6146_v56, %v6390_v8  ;;  %v6576_v60 = vrot.slane %v5441_v38, 9  ;;  %v6580_v15 = vrot.slane %v5457_v12, 9 }
 0x433   :  { %6451 = vst [vmem:[%s13445_s5 + $0x8] sm:$0xff] %v6391_v46  ;;  %v6166_v4 = vrot.slane %v5959_v10, %v14984_v39  ;;  %v6577_v36 = vrot.slane %v5442_v9, 9  ;;  %v6581_v40 = vrot.slane %v5458_v57, 9  ;;  %v5160_v52 = vmax.f32 %v5034_v58, 0.0  ;;  %v13177_v3 = vpop.f32.mrf.mxu1  ;;  %v4810_v6 = vpop.f32.mrf.mxu0 }
 0x434   :  { %v6392_v54 = vsel %vm6371_vm11, %v6154_v31, %v6150_v49  ;;  %v5957_v50 = vmax.f32 %v5441_v38, %v6576_v60  ;;  %v5961_v27 = vmax.f32 %v5457_v12, %v6580_v15  ;;  %v5159_v45 = vmax.f32 %v5029_v48, 0.0 }
 0x435   :  { %v5958_v63 = vmax.f32 %v5442_v9, %v6577_v36  ;;  %v5962_v37 = vmax.f32 %v5458_v57, %v6581_v40  ;;  %v5232_v41 = vcombine.high %v5160_v52, %v5160_v52  ;;  %v4794_v14 = vadd.f32 %v13064_v25, %v13125_v33  ;;  %v13182_v47 = vpop.f32.mrf.mxu1 }
 0x436   :  { %v6170_v18 = vrot.slane %v5960_v1, %v14984_v39  ;;  %v6158_v58 = vrot.slane %v5957_v50, %v14984_v39  ;;  %v6174_v19 = vrot.slane %v5961_v27, %v14984_v39  ;;  %v4799_v62 = vadd.f32 %v13064_v25, %v13141_v23  ;;  %v4813_v13 = vpop.f32.mrf.mxu0 }
 0x437   :  { %v6162_v12 = vrot.slane %v5958_v63, %v14984_v39  ;;  %v5231_v22 = vcombine.high %v5159_v45, %v5159_v45  ;;  %v5303_v0 = vmax.f32 %v5159_v45, %v5232_v41  ;;  %v5039_v2 = vadd.f32 %v13131_v17, %v4794_v14  ;;  %v13191_v10 = vpop.f32.mrf.mxu1 }
 0x438   :  { %v6393_v33 = vsel %vm6373_vm12, %v6158_v58, %v6392_v54  ;;  %v5044_v38 = vadd.f32 %v13120_v59, %v4799_v62  ;;  %v4804_v55 = vadd.f32 %v13064_v25, %v4803_v51  ;;  %v4809_v42 = vadd.f32 %v13064_v25, %v4808_v30  ;;  %v4815_v56 = vpop.f32.mrf.mxu0 }
 0x439   :  { %v6178_v23 = vrot.slane %v5962_v37, %v14984_v39  ;;  %v6394_v8 = vsel %vm6375_vm13, %v6162_v12, %v6393_v33  ;;  %v5465_v48 = vrot.slane %v5303_v0, %v13070_v29  ;;  %v5161_v49 = vmax.f32 %v5039_v2, 0.0  ;;  %v13200_v1 = vpop.f32.mrf.mxu1 }
 0x43a   :  { %v6395_v17 = vsel %vm6377_vm14, %v6166_v4, %v6394_v8  ;;  %v5162_v9 = vmax.f32 %v5044_v38, 0.0  ;;  %v5049_v57 = vadd.f32 %v13145_v53, %v4804_v55  ;;  %v5054_v59 = vadd.f32 %v13139_v44, %v4809_v42  ;;  %v13205_v51 = vpop.f32.mrf.mxu0 }
 0x43b   :  { %v6396_v30 = vsel %vm6379_vm15, %v6170_v18, %v6395_v17  ;;  %v5466_v31 = vcombine.high %v5465_v48, %v5465_v48  ;;  %v6582_v46 = vrot.slane %v5465_v48, 9  ;;  %v5233_v60 = vcombine.high %v5161_v49, %v5161_v49  ;;  %v13212_v27 = vpop.f32.mrf.mxu1 }
 0x43c   :  { %v4859_v15 = vadd.f32 %v13064_v25, %v13043_v34  ;;  %v6397_v36 = vsel %vm6381_vm0, %v6174_v19, %v6396_v30  ;;  %v5304_v40 = vmax.f32 %v5231_v22, %v5161_v49  ;;  %v5163_v6 = vmax.f32 %v5049_v57, 0.0  ;;  %v4820_v4 = vpop.f32.mrf.mxu0 }
 0x43d   :  { %v6398_v54 = vsel %vm6383_vm1, %v6178_v23, %v6397_v36  ;;  %v6583_v53 = vrot.slane %v5466_v31, 9  ;;  %v5963_v50 = vmax.f32 %v5465_v48, %v6582_v46  ;;  %v5305_v44 = vmax.f32 %v5160_v52, %v5233_v60  ;;  %v6722_v38 = vpop.f32.mrf.mxu1 }
 0x43e   :  { %6452 = vst [vmem:[%s13445_s5 + $0x10] sm:$0xff] %v6398_v54  ;;  %v5473_v45 = vrot.slane %v5304_v40, %v13070_v29  ;;  %v5235_v63 = vcombine.high %v5163_v6, %v5163_v6  ;;  %v5164_v34 = vmax.f32 %v5054_v59, 0.0  ;;  %v4814_v37 = vadd.f32 %v13064_v25, %v4813_v13 }
 0x43f   :  { %v5964_v41 = vmax.f32 %v5466_v31, %v6583_v53  ;;  %v6182_v14 = vrot.slane %v5963_v50, %v14984_v39  ;;  %v5481_v18 = vrot.slane %v5305_v44, %v13070_v29  ;;  %v5234_v58 = vcombine.high %v5162_v9, %v5162_v9  ;;  %v5108_v4 = vpop.f32.mrf.mxu1 }
 0x440   :  { %v5474_v19 = vcombine.high %v5473_v45, %v5473_v45  ;;  %v6584_v52 = vrot.slane %v5473_v45, 9  ;;  %v5306_v62 = vmax.f32 %v5162_v9, %v5235_v63  ;;  %v5236_v12 = vcombine.high %v5164_v34, %v5164_v34 }
 0x441   :  { %v6186_v22 = vrot.slane %v5964_v41, %v14984_v39  ;;  %v5482_v0 = vcombine.high %v5481_v18, %v5481_v18  ;;  %v6586_v2 = vrot.slane %v5481_v18, 9  ;;  %v5307_v33 = vmax.f32 %v5234_v58, %v5164_v34  ;;  %v13222_v55 = vpop.f32.mrf.mxu0 }
 0x442   :  { %v6585_v42 = vrot.slane %v5474_v19, 9  ;;  %v5965_v13 = vmax.f32 %v5473_v45, %v6584_v52  ;;  %v5489_v56 = vrot.slane %v5306_v62, %v13070_v29  ;;  %v5308_v23 = vmax.f32 %v5163_v6, %v5236_v12 }
 0x443   :  { %v6399_v8 = vsel %vm6371_vm11, %v6186_v22, %v6182_v14  ;;  %v6587_v48 = vrot.slane %v5482_v0, 9  ;;  %v5967_v49 = vmax.f32 %v5481_v18, %v6586_v2  ;;  %v5497_v17 = vrot.slane %v5307_v33, %v13070_v29  ;;  %v4825_v9 = vpop.f32.mrf.mxu0 }
 0x444   :  { %v5966_v57 = vmax.f32 %v5474_v19, %v6585_v42  ;;  %v6190_v59 = vrot.slane %v5965_v13, %v14984_v39  ;;  %v5490_v30 = vcombine.high %v5489_v56, %v5489_v56  ;;  %v6588_v31 = vrot.slane %v5489_v56, 9 }
 0x445   :  { %v5968_v46 = vmax.f32 %v5482_v0, %v6587_v48  ;;  %v6198_v60 = vrot.slane %v5967_v49, %v14984_v39  ;;  %v5498_v36 = vcombine.high %v5497_v17, %v5497_v17  ;;  %v5505_v40 = vrot.slane %v5308_v23, %v13070_v29  ;;  %v13230_v6 = vpop.f32.mrf.mxu0  ;;  %v6725_v0 = vpop.f32.mrf.mxu1 }
 0x446   :  { %v6194_v54 = vrot.slane %v5966_v57, %v14984_v39  ;;  %v6400_v53 = vsel %vm6373_vm12, %v6190_v59, %v6399_v8  ;;  %v6589_v50 = vrot.slane %v5490_v30, 9  ;;  %v5969_v44 = vmax.f32 %v5489_v56, %v6588_v31 }
 0x447   :  { %v6202_v45 = vrot.slane %v5968_v46, %v14984_v39  ;;  %v5506_v63 = vcombine.high %v5505_v40, %v5505_v40  ;;  %v5104_v34 = vadd.f32 %v13200_v1, %v4859_v15  ;;  %v4830_v41 = vpop.f32.mrf.mxu0  ;;  %v6590_v19 = vrot.slane %v5497_v17, 9 }
 0x448   :  { %v6401_v14 = vsel %vm6375_vm13, %v6194_v54, %v6400_v53  ;;  %v5970_v18 = vmax.f32 %v5490_v30, %v6589_v50  ;;  %v6206_v58 = vrot.slane %v5969_v44, %v14984_v39  ;;  %v4864_v52 = vadd.f32 %v13064_v25, %v13045_v16 }
 0x449   :  { %v6402_v62 = vsel %vm6377_vm14, %v6198_v60, %v6401_v14  ;;  %v6591_v12 = vrot.slane %v5498_v36, 9  ;;  %v6592_v22 = vrot.slane %v5505_v40, 9  ;;  %v6593_v1 = vrot.slane %v5506_v63, 9 }
 0x44a   :  { %v6403_v2 = vsel %vm6379_vm15, %v6202_v45, %v6402_v62  ;;  %v6210_v33 = vrot.slane %v5970_v18, %v14984_v39  ;;  %v5059_v15 = vadd.f32 %v13154_v35, %v4814_v37  ;;  %v4869_v42 = vadd.f32 %v13064_v25, %v13047_v32  ;;  %v5118_v37 = vpop.f32.mrf.mxu1 }
 0x44b   :  { %v4874_v13 = vadd.f32 %v13064_v25, %v13049_v21  ;;  %v4879_v16 = vadd.f32 %v13064_v25, %v13051_v7  ;;  %v6404_v56 = vsel %vm6381_vm0, %v6206_v58, %v6403_v2  ;;  %v13253_v23 = vadd.f32 %v13064_v25, %v13053_v26 }
 0x44c   :  { %v6405_v8 = vsel %vm6383_vm1, %v6210_v33, %v6404_v56  ;;  %v5971_v48 = vmax.f32 %v5497_v17, %v6590_v19  ;;  %v5174_v49 = vmax.f32 %v5104_v34, 0.0  ;;  %v5972_v32 = vmax.f32 %v5498_v36, %v6591_v12 }
 0x44d   :  { %6453 = vst [vmem:[%s13445_s5 + $0x18] sm:$0xff] %v6405_v8  ;;  %v5973_v35 = vmax.f32 %v5505_v40, %v6592_v22  ;;  %v4819_v21 = vadd.f32 %v13064_v25, %v13205_v51  ;;  %v5114_v7 = vadd.f32 %v6722_v38, %v4869_v42  ;;  %v13263_v57 = vmax.f32 %v5506_v63, %v6593_v1 }
 0x44e   :  { %v13261_v9 = vpop.f32.mrf.mxu0  ;;  %v5165_v26 = vmax.f32 %v5059_v15, 0.0  ;;  %v5109_v59 = vadd.f32 %v5108_v4, %v4864_v52  ;;  %v5124_v30 = vadd.f32 %v6725_v0, %v4879_v16  ;;  %v5246_v17 = vcombine.high %v5174_v49, %v5174_v49 }
 0x44f   :  { %v5064_v31 = vadd.f32 %v13148_v28, %v4819_v21  ;;  %v5176_v46 = vmax.f32 %v5114_v7, 0.0  ;;  %v4824_v60 = vadd.f32 %v13064_v25, %v13222_v55  ;;  %v6214_v40 = vrot.slane %v5971_v48, %v14984_v39 }
 0x450   :  { %v4835_v36 = vpop.f32.mrf.mxu0  ;;  %v5175_v51 = vmax.f32 %v5109_v59, 0.0  ;;  %v13269_v38 = vmax.f32 %v5124_v30, 0.0  ;;  %v5119_v54 = vadd.f32 %v5118_v37, %v4874_v13  ;;  %v6218_v28 = vrot.slane %v5972_v32, %v14984_v39 }
 0x451   :  { %v5166_v53 = vmax.f32 %v5064_v31, 0.0  ;;  %v5248_v50 = vcombine.high %v5176_v46, %v5176_v46  ;;  %v5319_v44 = vmax.f32 %v5246_v17, %v5176_v46  ;;  %v5069_v4 = vadd.f32 %v13163_v5, %v4824_v60  ;;  %v6728_v17 = vpop.f32.mrf.mxu1 }
 0x452   :  { %v13272_v45 = vpop.f32.mrf.mxu0  ;;  %v5247_v63 = vcombine.high %v5175_v51, %v5175_v51  ;;  %v5250_v55 = vcombine.high %v13269_v38, %v13269_v38  ;;  %v13277_v34 = vmax.f32 %v5119_v54, 0.0  ;;  %v6222_v52 = vrot.slane %v5973_v35, %v14984_v39 }
 0x453   :  { %v5238_v41 = vcombine.high %v5166_v53, %v5166_v53  ;;  %v5593_v14 = vrot.slane %v5319_v44, %v13070_v29  ;;  %v5320_v18 = vmax.f32 %v5175_v51, %v5248_v50  ;;  %v5167_v58 = vmax.f32 %v5069_v4, 0.0 }
 0x454   :  { %v4840_v19 = vpop.f32.mrf.mxu0  ;;  %v5237_v62 = vcombine.high %v5165_v26, %v5165_v26  ;;  %v13281_v5 = vmax.f32 %v5174_v49, %v5247_v63  ;;  %v5321_v12 = vmax.f32 %v13277_v34, %v5250_v55  ;;  %v4889_v1 = vadd.f32 %v13064_v25, %v13055_v43 }
 0x455   :  { %v5309_v22 = vmax.f32 %v5165_v26, %v5238_v41  ;;  %v5594_v0 = vcombine.high %v5593_v14, %v5593_v14  ;;  %v6614_v2 = vrot.slane %v5593_v14, 9  ;;  %v5601_v33 = vrot.slane %v5320_v18, %v13070_v29  ;;  %v5128_v41 = vpop.f32.mrf.mxu1 }
 0x456   :  { %v6406_v15 = vsel %vm6371_vm11, %v6218_v28, %v6214_v40  ;;  %v5239_v42 = vcombine.high %v5167_v58, %v5167_v58  ;;  %v5310_v13 = vmax.f32 %v5237_v62, %v5167_v58  ;;  %v13293_v32 = vadd.f32 %v13064_v25, %v13057_v61 }
 0x457   :  { %v13288_v16 = vpop.f32.mrf.mxu0  ;;  %v5513_v56 = vrot.slane %v5309_v22, %v13070_v29  ;;  %v6615_v8 = vrot.slane %v5594_v0, 9  ;;  %v5995_v48 = vmax.f32 %v5593_v14, %v6614_v2  ;;  %v5602_v49 = vcombine.high %v5601_v33, %v5601_v33 }
 0x458   :  { %v4899_v35 = vadd.f32 %v13064_v25, %v13059_v11  ;;  %v6226_v43 = vrot.slane %v13263_v57, %v14984_v39  ;;  %v6616_v21 = vrot.slane %v5601_v33, 9  ;;  %v6407_v37 = vsel %vm6373_vm12, %v6222_v52, %v6406_v15 }
 0x459   :  { %v4845_v7 = vpop.f32.mrf.mxu0  ;;  %v5514_v26 = vcombine.high %v5513_v56, %v5513_v56  ;;  %v6594_v59 = vrot.slane %v5513_v56, 9  ;;  %v5996_v30 = vmax.f32 %v5594_v0, %v6615_v8  ;;  %v6310_v31 = vrot.slane %v5995_v48, %v14984_v39  ;;  %v6731_v48 = vpop.f32.mrf.mxu1 }
 0x45a   :  { %v6617_v46 = vrot.slane %v5602_v49, 9  ;;  %v5997_v60 = vmax.f32 %v5601_v33, %v6616_v21  ;;  %v5311_v61 = vmax.f32 %v5166_v53, %v5239_v42  ;;  %v5521_v51 = vrot.slane %v5310_v13, %v13070_v29 }
 0x45b   :  { %v6595_v36 = vrot.slane %v5514_v26, 9  ;;  %v5975_v40 = vmax.f32 %v5513_v56, %v6594_v59  ;;  %v6314_v11 = vrot.slane %v5996_v30, %v14984_v39  ;;  %v5609_v50 = vrot.slane %v5321_v12, %v13070_v29 }
 0x45c   :  { %v5998_v57 = vmax.f32 %v5602_v49, %v6617_v46  ;;  %v6318_v54 = vrot.slane %v5997_v60, %v14984_v39  ;;  %v5134_v44 = vadd.f32 %v6728_v17, %v4889_v1  ;;  %v5522_v55 = vcombine.high %v5521_v51, %v5521_v51 }
 0x45d   :  { %v5976_v4 = vmax.f32 %v5514_v26, %v6595_v36  ;;  %v6230_v28 = vrot.slane %v5975_v40, %v14984_v39  ;;  %v6427_v63 = vsel %vm6371_vm11, %v6314_v11, %v6310_v31  ;;  %v6408_v14 = vsel %vm6375_vm13, %v6226_v43, %v6407_v37 }
 0x45e   :  { %v13307_v53 = vpop.f32.mrf.mxu0  ;;  %v6322_v18 = vrot.slane %v5998_v57, %v14984_v39  ;;  %v6428_v58 = vsel %vm6373_vm12, %v6318_v54, %v6427_v63  ;;  %v5529_v19 = vrot.slane %v5311_v61, %v13070_v29  ;;  %v6596_v12 = vrot.slane %v5521_v51, 9  ;;  %v5138_v57 = vpop.f32.mrf.mxu1 }
 0x45f   :  { %v6234_v52 = vrot.slane %v5976_v4, %v14984_v39  ;;  %v6409_v62 = vsel %vm6377_vm14, %v6230_v28, %v6408_v14  ;;  %v6597_v22 = vrot.slane %v5522_v55, 9  ;;  %v5610_v15 = vcombine.high %v5609_v50, %v5609_v50 }
 0x460   :  { %v4850_v0 = vpop.f32.mrf.mxu0  ;;  %v6429_v2 = vsel %vm6375_vm13, %v6322_v18, %v6428_v58  ;;  %v5530_v33 = vcombine.high %v5529_v19, %v5529_v19  ;;  %v6598_v1 = vrot.slane %v5529_v19, 9  ;;  %v5977_v42 = vmax.f32 %v5521_v51, %v6596_v12 }
 0x461   :  { %v5978_v13 = vmax.f32 %v5522_v55, %v6597_v22  ;;  %v6618_v56 = vrot.slane %v5609_v50, 9  ;;  %v5180_v8 = vmax.f32 %v5134_v44, 0.0  ;;  %v6410_v43 = vsel %vm6379_vm15, %v6234_v52, %v6409_v62 }
 0x462   :  { %v6599_v49 = vrot.slane %v5530_v33, 9  ;;  %v6619_v21 = vrot.slane %v5610_v15, 9  ;;  %v4829_v7 = vadd.f32 %v13064_v25, %v13230_v6  ;;  %v6238_v26 = vrot.slane %v5977_v42, %v14984_v39 }
 0x463   :  { %v13319_v37 = vpop.f32.mrf.mxu0  ;;  %v6242_v59 = vrot.slane %v5978_v13, %v14984_v39  ;;  %v5999_v30 = vmax.f32 %v5609_v50, %v6618_v56  ;;  %v5129_v17 = vadd.f32 %v5128_v41, %v13253_v23  ;;  %v13324_v31 = vmax.f32 %v5529_v19, %v6598_v1 }
 0x464   :  { %v13326_v46 = vmax.f32 %v5530_v33, %v6599_v49  ;;  %v5249_v60 = vcombine.high %v13277_v34, %v13277_v34  ;;  %v6000_v61 = vmax.f32 %v5610_v15, %v6619_v21  ;;  %v6411_v6 = vsel %vm6381_vm0, %v6238_v26, %v6410_v43 }
 0x465   :  { %v4855_v36 = vpop.f32.mrf.mxu0  ;;  %v6326_v40 = vrot.slane %v5999_v30, %v14984_v39  ;;  %v5179_v11 = vmax.f32 %v5129_v17, 0.0  ;;  %v5144_v51 = vadd.f32 %v6731_v48, %v4899_v35  ;;  %v6412_v54 = vsel %vm6383_vm1, %v6242_v59, %v6411_v6 }
 0x466   :  { %v6330_v23 = vrot.slane %v6000_v61, %v14984_v39  ;;  %v5252_v50 = vcombine.high %v5180_v8, %v5180_v8  ;;  %v5074_v44 = vadd.f32 %v13158_v24, %v4829_v7  ;;  %6454 = vst [vmem:[%s13445_s5 + $0x20] sm:$0xff] %v6412_v54  ;;  %v6246_v35 = vrot.slane %v13324_v31, %v14984_v39 }
 0x467   :  { %v6430_v34 = vsel %vm6377_vm14, %v6326_v40, %v6429_v2  ;;  %v5251_v4 = vcombine.high %v5179_v11, %v5179_v11  ;;  %v5322_v28 = vmax.f32 %v5249_v60, %v5179_v11  ;;  %v5182_v63 = vmax.f32 %v5144_v51, 0.0 }
 0x468   :  { %v6250_v55 = vrot.slane %v13326_v46, %v14984_v39  ;;  %v6431_v41 = vsel %vm6379_vm15, %v6330_v23, %v6430_v34  ;;  %v5139_v14 = vadd.f32 %v5138_v57, %v13293_v32  ;;  %v5168_v52 = vmax.f32 %v5074_v44, 0.0 }
 0x469   :  { %v5323_v24 = vmax.f32 %v13269_v38, %v5251_v4  ;;  %v5617_v18 = vrot.slane %v5322_v28, %v13070_v29  ;;  %v5254_v58 = vcombine.high %v5182_v63, %v5182_v63  ;;  %v5325_v19 = vmax.f32 %v5252_v50, %v5182_v63 }
 0x46a   :  { %v5181_v62 = vmax.f32 %v5139_v14, 0.0  ;;  %v4834_v12 = vadd.f32 %v13064_v25, %v13261_v9  ;;  %v4839_v22 = vadd.f32 %v13064_v25, %v13272_v45  ;;  %v4844_v42 = vadd.f32 %v13064_v25, %v13288_v16 }
 0x46b   :  { %v5618_v0 = vcombine.high %v5617_v18, %v5617_v18  ;;  %v5625_v2 = vrot.slane %v5323_v24, %v13070_v29  ;;  %v6620_v33 = vrot.slane %v5617_v18, 9  ;;  %v5641_v32 = vrot.slane %v5325_v19, %v13070_v29 }
 0x46c   :  { %v5253_v1 = vcombine.high %v5181_v62, %v5181_v62  ;;  %v5326_v38 = vmax.f32 %v5181_v62, %v5254_v58  ;;  %v5079_v15 = vadd.f32 %v13177_v3, %v4834_v12  ;;  %v5084_v25 = vadd.f32 %v13169_v20, %v4839_v22 }
 0x46d   :  { %v5626_v13 = vcombine.high %v5625_v2, %v5625_v2  ;;  %v6621_v56 = vrot.slane %v5618_v0, 9  ;;  %v6622_v48 = vrot.slane %v5625_v2, 9  ;;  %v6001_v9 = vmax.f32 %v5617_v18, %v6620_v33 }
 0x46e   :  { %v5642_v49 = vcombine.high %v5641_v32, %v5641_v32  ;;  %v6626_v43 = vrot.slane %v5641_v32, 9  ;;  %v5324_v45 = vmax.f32 %v5180_v8, %v5253_v1  ;;  %v5649_v21 = vrot.slane %v5326_v38, %v13070_v29 }
 0x46f   :  { %v6623_v7 = vrot.slane %v5626_v13, 9  ;;  %v6002_v26 = vmax.f32 %v5618_v0, %v6621_v56  ;;  %v6003_v59 = vmax.f32 %v5625_v2, %v6622_v48  ;;  %v6334_v30 = vrot.slane %v6001_v9, %v14984_v39 }
 0x470   :  { %v6627_v17 = vrot.slane %v5642_v49, 9  ;;  %v5633_v3 = vrot.slane %v5324_v45, %v13070_v29  ;;  %v5650_v60 = vcombine.high %v5649_v21, %v5649_v21  ;;  %v6007_v6 = vmax.f32 %v5641_v32, %v6626_v43 }
 0x471   :  { %v6004_v16 = vmax.f32 %v5626_v13, %v6623_v7  ;;  %v6338_v61 = vrot.slane %v6002_v26, %v14984_v39  ;;  %v6432_v36 = vsel %vm6381_vm0, %v6334_v30, %v6431_v41  ;;  %v6342_v8 = vrot.slane %v6003_v59, %v14984_v39 }
 0x472   :  { %v6008_v40 = vmax.f32 %v5642_v49, %v6627_v17  ;;  %v5634_v11 = vcombine.high %v5633_v3, %v5633_v3  ;;  %v6624_v51 = vrot.slane %v5633_v3, 9  ;;  %v6628_v23 = vrot.slane %v5649_v21, 9 }
 0x473   :  { %v6346_v57 = vrot.slane %v6004_v16, %v14984_v39  ;;  %v6433_v54 = vsel %vm6383_vm1, %v6338_v61, %v6432_v36  ;;  %v6629_v50 = vrot.slane %v5650_v60, 9  ;;  %v5240_v44 = vcombine.high %v5168_v52, %v5168_v52 }
 0x474   :  { %6457 = vst [vmem:[%s13445_s5 + $0x38] sm:$0xff] %v6433_v54  ;;  %v6625_v20 = vrot.slane %v5634_v11, 9  ;;  %v6005_v34 = vmax.f32 %v5633_v3, %v6624_v51  ;;  %v5169_v4 = vmax.f32 %v5079_v15, 0.0  ;;  %v6009_v63 = vmax.f32 %v5649_v21, %v6628_v23 }
 0x475   :  { %v6434_v28 = vsel %vm6371_vm11, %v6346_v57, %v6342_v8  ;;  %v6010_v41 = vmax.f32 %v5650_v60, %v6629_v50  ;;  %v5170_v14 = vmax.f32 %v5084_v25, 0.0  ;;  %v5089_v19 = vadd.f32 %v13191_v10, %v4844_v42  ;;  %v7351_v10 = vld [vmem:[%s13444_s4] ss:$0 sm:$0xff] }
 0x476   :  { %v6006_v24 = vmax.f32 %v5634_v11, %v6625_v20  ;;  %v6350_v18 = vrot.slane %v6005_v34, %v14984_v39  ;;  %v5241_v58 = vcombine.high %v5169_v4, %v5169_v4  ;;  %v6358_v62 = vrot.slane %v6007_v6, %v14984_v39 }
 0x477   :  { %v6362_v12 = vrot.slane %v6008_v40, %v14984_v39  ;;  %v5242_v22 = vcombine.high %v5170_v14, %v5170_v14  ;;  %v5313_v0 = vmax.f32 %v5240_v44, %v5170_v14  ;;  %v6366_v33 = vrot.slane %v6009_v63, %v14984_v39 }
 0x478   :  { %v6354_v2 = vrot.slane %v6006_v24, %v14984_v39  ;;  %v6435_v32 = vsel %vm6373_vm12, %v6350_v18, %v6434_v28  ;;  %v5312_v1 = vmax.f32 %v5168_v52, %v5241_v58  ;;  %v6370_v38 = vrot.slane %v6010_v41, %v14984_v39 }
 0x479   :  { %v5314_v15 = vmax.f32 %v5169_v4, %v5242_v22  ;;  %v5545_v13 = vrot.slane %v5313_v0, %v13070_v29  ;;  %v4849_v42 = vadd.f32 %v7351_v10, %v13307_v53  ;;  %v5171_v9 = vmax.f32 %v5089_v19, 0.0 }
 0x47a   :  { %v6436_v56 = vsel %vm6375_vm13, %v6354_v2, %v6435_v32  ;;  %v5537_v48 = vrot.slane %v5312_v1, %v13070_v29  ;;  %v4854_v49 = vadd.f32 %v7351_v10, %v13319_v37  ;;  %v5585_v46 = vrot.slane %v13281_v5, %v13070_v29 }
 0x47b   :  { %v6437_v52 = vsel %vm6377_vm14, %v6358_v62, %v6436_v56  ;;  %v5546_v43 = vcombine.high %v5545_v13, %v5545_v13  ;;  %v5553_v45 = vrot.slane %v5314_v15, %v13070_v29  ;;  %v6602_v21 = vrot.slane %v5545_v13, 9 }
 0x47c   :  { %v6438_v7 = vsel %vm6379_vm15, %v6362_v12, %v6437_v52  ;;  %v5538_v26 = vcombine.high %v5537_v48, %v5537_v48  ;;  %v6600_v59 = vrot.slane %v5537_v48, 9  ;;  %v5094_v30 = vadd.f32 %v13182_v47, %v4849_v42 }
 0x47d   :  { %v6439_v53 = vsel %vm6381_vm0, %v6366_v33, %v6438_v7  ;;  %v5554_v17 = vcombine.high %v5553_v45, %v5553_v45  ;;  %v6603_v3 = vrot.slane %v5546_v43, 9  ;;  %v6604_v60 = vrot.slane %v5553_v45, 9 }
 0x47e   :  { %v6440_v25 = vsel %vm6383_vm1, %v6370_v38, %v6439_v53  ;;  %v6601_v37 = vrot.slane %v5538_v26, 9  ;;  %v5981_v16 = vmax.f32 %v5537_v48, %v6600_v59  ;;  %v5983_v61 = vmax.f32 %v5545_v13, %v6602_v21 }
 0x47f   :  { %6458 = vst [vmem:[%s13445_s5 + $0x40] sm:$0xff] %v6440_v25  ;;  %v6605_v36 = vrot.slane %v5554_v17, 9  ;;  %v5984_v6 = vmax.f32 %v5546_v43, %v6603_v3  ;;  %v5985_v8 = vmax.f32 %v5553_v45, %v6604_v60  ;;  %v5172_v40 = vmax.f32 %v5094_v30, 0.0 }
 0x480   :  { %v6413_v47 = vsel %vm6371_vm11, %v6250_v55, %v6246_v35  ;;  %v5982_v11 = vmax.f32 %v5538_v26, %v6601_v37  ;;  %v6254_v51 = vrot.slane %v5981_v16, %v14984_v39  ;;  %v5099_v57 = vadd.f32 %v13212_v27, %v4854_v49 }
 0x481   :  { %v5986_v54 = vmax.f32 %v5554_v17, %v6605_v36  ;;  %v6262_v23 = vrot.slane %v5983_v61, %v14984_v39  ;;  %v5243_v50 = vcombine.high %v5171_v9, %v5171_v9  ;;  %v5244_v44 = vcombine.high %v5172_v40, %v5172_v40 }
 0x482   :  { %v6258_v20 = vrot.slane %v5982_v11, %v14984_v39  ;;  %v6414_v34 = vsel %vm6373_vm12, %v6254_v51, %v6413_v47  ;;  %v6266_v31 = vrot.slane %v5984_v6, %v14984_v39  ;;  %v5173_v4 = vmax.f32 %v5099_v57, 0.0 }
 0x483   :  { %v6270_v35 = vrot.slane %v5985_v8, %v14984_v39  ;;  %v5315_v55 = vmax.f32 %v5171_v9, %v5244_v44  ;;  %v6274_v27 = vrot.slane %v5986_v54, %v14984_v39  ;;  %v5586_v62 = vcombine.high %v5585_v46, %v5585_v46 }
 0x484   :  { %v6415_v28 = vsel %vm6375_vm13, %v6258_v20, %v6414_v34  ;;  %v5245_v63 = vcombine.high %v5173_v4, %v5173_v4  ;;  %v5316_v41 = vmax.f32 %v5243_v50, %v5173_v4  ;;  %v6612_v1 = vrot.slane %v5585_v46, 9 }
 0x485   :  { %v6416_v14 = vsel %vm6377_vm14, %v6262_v23, %v6415_v28  ;;  %v5561_v24 = vrot.slane %v5315_v55, %v13070_v29  ;;  %v6613_v48 = vrot.slane %v5586_v62, 9 }
 0x486   :  { %v6417_v18 = vsel %vm6379_vm15, %v6266_v31, %v6416_v14  ;;  %v5317_v58 = vmax.f32 %v5172_v40, %v5245_v63  ;;  %v5569_v19 = vrot.slane %v5316_v41, %v13070_v29  ;;  %v5993_v7 = vmax.f32 %v5585_v46, %v6612_v1 }
 0x487   :  { %v6418_v5 = vsel %vm6381_vm0, %v6270_v35, %v6417_v18  ;;  %v5562_v12 = vcombine.high %v5561_v24, %v5561_v24  ;;  %v6606_v22 = vrot.slane %v5561_v24, 9  ;;  %v5994_v53 = vmax.f32 %v5586_v62, %v6613_v48 }
 0x488   :  { %v6419_v0 = vsel %vm6383_vm1, %v6274_v27, %v6418_v5  ;;  %v5570_v2 = vcombine.high %v5569_v19, %v5569_v19  ;;  %v5577_v33 = vrot.slane %v5317_v58, %v13070_v29  ;;  %v6608_v32 = vrot.slane %v5569_v19, 9 }
 0x489   :  { %6455 = vst [vmem:[%s13445_s5 + $0x28] sm:$0xff] %v6419_v0  ;;  %v6607_v38 = vrot.slane %v5562_v12, 9  ;;  %v5987_v15 = vmax.f32 %v5561_v24, %v6606_v22  ;;  %v6302_v37 = vrot.slane %v5993_v7, %v14984_v39  ;;  %v6306_v61 = vrot.slane %v5994_v53, %v14984_v39 }
 0x48a   :  { %v5578_v13 = vcombine.high %v5577_v33, %v5577_v33  ;;  %v6609_v10 = vrot.slane %v5570_v2, 9  ;;  %v6610_v42 = vrot.slane %v5577_v33, 9  ;;  %v5989_v56 = vmax.f32 %v5569_v19, %v6608_v32 }
 0x48b   :  { %v5988_v9 = vmax.f32 %v5562_v12, %v6607_v38  ;;  %v6278_v29 = vrot.slane %v5987_v15, %v14984_v39 }
 0x48c   :  { %v6611_v49 = vrot.slane %v5578_v13, 9  ;;  %v5990_v52 = vmax.f32 %v5570_v2, %v6609_v10  ;;  %v5991_v43 = vmax.f32 %v5577_v33, %v6610_v42  ;;  %v6286_v45 = vrot.slane %v5989_v56, %v14984_v39 }
 0x48d   :  { %v6282_v21 = vrot.slane %v5988_v9, %v14984_v39 }
 0x48e   :  { %v5992_v26 = vmax.f32 %v5578_v13, %v6611_v49  ;;  %v6290_v59 = vrot.slane %v5990_v52, %v14984_v39  ;;  %v6294_v30 = vrot.slane %v5991_v43, %v14984_v39 }
 0x48f   :  { %v6420_v17 = vsel %vm6371_vm11, %v6282_v21, %v6278_v29 }
 0x490   :  { %v6298_v3 = vrot.slane %v5992_v26, %v14984_v39  ;;  %v6421_v60 = vsel %vm6373_vm12, %v6286_v45, %v6420_v17 }
 0x491   :  { %v6422_v25 = vsel %vm6375_vm13, %v6290_v59, %v6421_v60 }
 0x492   :  { %v6423_v16 = vsel %vm6377_vm14, %v6294_v30, %v6422_v25 }
 0x493   :  { %v6424_v36 = vsel %vm6379_vm15, %v6298_v3, %v6423_v16 }
 0x494   :  { %v6425_v6 = vsel %vm6381_vm0, %v6302_v37, %v6424_v36 }
 0x495   :  { %v6426_v8 = vsel %vm6383_vm1, %v6306_v61, %v6425_v6 }
 0x496   :  { %6456 = vst [vmem:[%s13445_s5 + $0x30] sm:$0xff] %v6426_v8 }

</bundles_post_ra>
